<compile_context>
chip_gen: v5e
topology: v5e:2x2
jax: 0.10.0
libtpu: 0.0.40
codegen_flags: <defaults>
</compile_context>

<pallas_src>
import functools

import jax
import jax.numpy as jnp
import numpy as np
from jax import lax
from jax.experimental import pallas as pl
from jax.experimental.pallas import tpu as pltpu

LANE = 128          # TPU vreg lane width; all channel dims are padded to this.
_BN_EPS = 1e-5


def _round_up(x, m):
    return (x + m - 1) // m * m


# --------------------------------- kernel -----------------------------------

def _bottleneck_kernel(x_ref, mask_ref, w1_ref, b1_ref, w2_ref, b2_ref,
                       w3_ref, b3_ref, o_ref, h1s_ref, *, W, pad_rows, tile_m):
    """One image per grid step; 2-D (HW, C_p) blocks.

    x_ref   : (HW, Cin_p)        f32   flattened NHWC input block
    mask_ref: (2, HW, Cmid_p)    bf16  {0,1} masks: [0]=x-1 valid, [1]=x+1 valid
    w1_ref  : (Cin_p, Cmid_p)    bf16  1x1 conv, BN scale folded in
    w2_ref  : (9*Cmid_p, Cmid_p) bf16  3x3 conv, taps stacked along K (HWIO)
    w3_ref  : (Cmid_p, Cout_p)   bf16  1x1 conv, BN scale folded in
    b*_ref  : (1, C_p)           f32   folded BN biases
    o_ref   : (HW, Cout_p)       f32
    h1s_ref : (pad_rows + HW + pad_rows, Cmid_p) bf16 scratch: row-flattened
              stage-1 activation between zero guard rows, so each 3x3 tap is a
              plain row-offset window read.
    """
    HW = x_ref.shape[0]
    cmid_p = h1s_ref.shape[-1]

    # Zero only the small guard-row regions, every step (megacore-safe: not a
    # program_id()==0 guard).  Interior is fully rewritten below.
    h1s_ref[0:pad_rows, :] = jnp.zeros((pad_rows, cmid_p), jnp.bfloat16)
    h1s_ref[pad_rows + HW:2 * pad_rows + HW, :] = jnp.zeros(
        (pad_rows, cmid_p), jnp.bfloat16)

    # ---- stage 1: 1x1 conv (+ folded BN bias) + ReLU, whole block -----------
    h1 = jnp.dot(x_ref[...].astype(jnp.bfloat16), w1_ref[...],
                 preferred_element_type=jnp.float32)
    h1 = jnp.maximum(h1 + b1_ref[...], 0.0)
    h1_bf = h1.astype(jnp.bfloat16)
    h1s_ref[pad_rows:pad_rows + HW, :] = h1_bf     # aligned (pad_rows % 16 == 0)

    single_chunk = tile_m >= HW

    # ---- stages 2+3, M-tiled: 3x3 as ONE wide-K matmul per chunk ------------
    # Tap (dy, dx) operand = scratch shifted by dy*W + dx rows; vertical
    # out-of-image rows land in the zero guard rows, dx = +/-1 image-row
    # wraparound is killed by a multiply with the resident {0,1} mask.
    for m0 in range(0, HW, tile_m):
        tm = min(tile_m, HW - m0)
        wins = []
        for dy in (-1, 0, 1):
            for dx in (-1, 0, 1):
                if dy == 0 and dx == 0 and single_chunk:
                    win = h1_bf                     # reuse value already in vregs
                else:
                    k = pad_rows + m0 + dy * W + dx
                    win = h1s_ref[k:k + tm, :]
                if dx == -1:
                    win = win * mask_ref[0, m0:m0 + tm, :]
                elif dx == 1:
                    win = win * mask_ref[1, m0:m0 + tm, :]
                wins.append(win)
        win_all = jnp.concatenate(wins, axis=1)     # (tm, 9*Cmid_p) bf16

        h2 = jnp.dot(win_all, w2_ref[...], preferred_element_type=jnp.float32)
        h2 = jnp.maximum(h2 + b2_ref[...], 0.0)

        # ---- stage 3: 1x1 conv (+ folded BN bias), residual add, ReLU -------
        h3 = jnp.dot(h2.astype(jnp.bfloat16), w3_ref[...],
                     preferred_element_type=jnp.float32)
        h3 = h3 + b3_ref[...]
        o_ref[m0:m0 + tm, :] = jnp.maximum(h3 + x_ref[m0:m0 + tm, :], 0.0)


# ------------------------------ param prep ----------------------------------

def fold_and_pad_params(w1_t, bn1, w2_t, bn2, w3_t, bn3):
    """Fold eval-mode BatchNorm into conv weights/biases, convert to kernel
    layouts, pad channel dims to LANE multiples, cast weights to bf16.

    w1_t: (Cmid, Cin, 1, 1)  w2_t: (Cmid, Cmid, 3, 3)  w3_t: (Cout, Cmid, 1, 1)
    bn*:  (gamma, beta, running_mean, running_var)
    """
    def fold(gamma, beta, mean, var):
        scale = gamma / jnp.sqrt(var + _BN_EPS)
        return scale, beta - mean * scale

    s1, c1 = fold(*bn1)
    s2, c2 = fold(*bn2)
    s3, c3 = fold(*bn3)

    cmid, cin = w1_t.shape[0], w1_t.shape[1]
    cout = w3_t.shape[0]
    cin_p, cmid_p, cout_p = (_round_up(c, LANE) for c in (cin, cmid, cout))

    w1 = jnp.transpose(w1_t[:, :, 0, 0], (1, 0)) * s1[None, :]          # (Cin, Cmid)
    w3 = jnp.transpose(w3_t[:, :, 0, 0], (1, 0)) * s3[None, :]          # (Cmid, Cout)
    w2 = jnp.transpose(w2_t, (2, 3, 1, 0)) * s2[None, None, None, :]    # (3,3,Cmid,Cmid)

    w1 = jnp.pad(w1, ((0, cin_p - cin), (0, cmid_p - cmid))).astype(jnp.bfloat16)
    w3 = jnp.pad(w3, ((0, cmid_p - cmid), (0, cout_p - cout))).astype(jnp.bfloat16)
    w2 = jnp.pad(w2, ((0, 0), (0, 0),
                      (0, cmid_p - cmid), (0, cmid_p - cmid))).astype(jnp.bfloat16)

    b1 = jnp.pad(c1, (0, cmid_p - cmid)).reshape(1, cmid_p).astype(jnp.float32)
    b2 = jnp.pad(c2, (0, cmid_p - cmid)).reshape(1, cmid_p).astype(jnp.float32)
    b3 = jnp.pad(c3, (0, cout_p - cout)).reshape(1, cout_p).astype(jnp.float32)
    return dict(w1=w1, b1=b1, w2_hwio=w2, b2=b2, w3=w3, b3=b3,
                cin=cin, cout=cout)


def _make_masks(H, W, cmid_p):
    """{0,1} bf16 masks, shape (2, HW, Cmid_p): [0]=col>0 (x-1 valid),
    [1]=col<W-1 (x+1 valid).  Computed once, resident in VMEM."""
    col = jnp.arange(H * W, dtype=jnp.int32) % W
    m = jnp.stack([col > 0, col < (W - 1)], axis=0).astype(jnp.bfloat16)
    return jnp.broadcast_to(m[:, :, None], (2, H * W, cmid_p))


def _estimate_vmem_bytes(HW, cin_p, cmid_p, cout_p, pad_rows, tile_m):
    tm = min(tile_m, HW)
    est = 0
    est += 2 * HW * cin_p * 4                              # input block (x2 buf)
    est += 2 * HW * cout_p * 4                             # output block (x2 buf)
    est += 2 * 2 * HW * cmid_p * 2                         # boundary masks
    est += 2 * (cin_p * cmid_p + 9 * cmid_p * cmid_p
                + cmid_p * cout_p) * 2                     # bf16 weights
    est += 2 * (2 * cmid_p + cout_p) * 4                   # biases
    est += (2 * pad_rows + HW) * cmid_p * 2                # h1 scratch
    est += tm * 9 * cmid_p * 2                             # win_all
    est += HW * cmid_p * 4                                 # f32 h1 temp
    est += tm * (cmid_p + cout_p) * 4                      # f32 h2 / h3 temps
    return est


# ------------------------ layout conversion (entry/exit) ---------------------

def nchw_to_flat(x_nchw, cin_p):
    """NCHW f32 -> (N, H*W, Cin_p) padded flat NHWC (network-entry only)."""
    N, C, H, W = x_nchw.shape
    x = jnp.transpose(x_nchw, (0, 2, 3, 1)).reshape(N, H * W, C)
    return jnp.pad(x, ((0, 0), (0, 0), (0, cin_p - C)))


def flat_to_nchw(y_flat, cout, H, W):
    """(N, H*W, Cout_p) padded flat NHWC -> NCHW f32 (network-exit only)."""
    N = y_flat.shape[0]
    y = y_flat[..., :cout].reshape(N, H, W, cout)
    return jnp.transpose(y, (0, 3, 1, 2))


# --------------------------------- wrapper ----------------------------------

def residual_block_flat(x_flat, params, H, W, tile_m=512):
    """x_flat: (N, H*W, Cin_p) f32, channels already padded to LANE.
    Returns (N, H*W, Cout_p) f32 in the same flat padded layout, so consecutive
    blocks chain with zero per-block layout traffic."""
    N, HW, cin_p = x_flat.shape
    assert HW == H * W
    assert cin_p == params["w1"].shape[0]
    cmid_p = params["w1"].shape[1]
    cout_p = params["w3"].shape[1]
    assert cin_p == cout_p, "identity shortcut requires in_channels == out_channels"

    pad_rows = _round_up(W + 1, 16)            # bf16 sublane tile
    tile_m = min(tile_m, HW)
    if tile_m >= 8:
        tile_m = (tile_m // 8) * 8             # aligned chunk writes

    w2 = params["w2_hwio"].reshape(9 * cmid_p, cmid_p)   # taps stacked on K
    masks = _make_masks(H, W, cmid_p)

    vmem_limit = max(32 << 20,
                     min(int(1.5 * _estimate_vmem_bytes(
                         HW, cin_p, cmid_p, cout_p, pad_rows, tile_m))
                         + (1 << 20), 64 << 20))

    def full(a):  # whole-array (untiled, resident) spec
        return pl.BlockSpec(a.shape, lambda n, nd=a.ndim: (0,) * nd)

    kernel = functools.partial(_bottleneck_kernel, W=W, pad_rows=pad_rows,
                               tile_m=tile_m)

    out = pl.pallas_call(
        kernel,
        out_shape=jax.ShapeDtypeStruct((N, HW, cout_p), jnp.float32),
        grid_spec=pltpu.PrefetchScalarGridSpec(
            num_scalar_prefetch=0,
            grid=(N,),
            in_specs=[
                pl.BlockSpec((pl.Squeezed(), HW, cin_p), lambda n: (n, 0, 0)),
                full(masks),
                full(params["w1"]), full(params["b1"]),
                full(w2), full(params["b2"]),
                full(params["w3"]), full(params["b3"]),
            ],
            out_specs=pl.BlockSpec((pl.Squeezed(), HW, cout_p),
                                   lambda n: (n, 0, 0)),
            scratch_shapes=[
                pltpu.VMEM((2 * pad_rows + HW, cmid_p), jnp.bfloat16)],
        ),
        compiler_params=pltpu.CompilerParams(
            dimension_semantics=("parallel",),     # shard batch over TCs on v7x
            vmem_limit_bytes=vmem_limit),
    )(x_flat, masks, params["w1"], params["b1"], w2, params["b2"],
      params["w3"], params["b3"])
    return out


def residual_block_pallas(x_nchw, params, tile_m=512):
    """Standalone convenience wrapper: NCHW in, NCHW out (converts once)."""
    N, cin, H, W = x_nchw.shape
    assert cin == params["cin"] and cin == params["cout"]
    cin_p = params["w1"].shape[0]
    x_flat = nchw_to_flat(x_nchw, cin_p)
    y_flat = residual_block_flat(x_flat, params, H, W, tile_m=tile_m)
    return flat_to_nchw(y_flat, params["cout"], H, W)


# ----------------------------- references -----------------------------------

def init_params(key, in_c, mid_c, out_c):
    """Deterministic synthetic parameters in PyTorch layouts."""
    ks = jax.random.split(key, 15)
    w1_t = 0.1 * jax.random.normal(ks[0], (mid_c, in_c, 1, 1), jnp.float32)
    w2_t = 0.1 * jax.random.normal(ks[1], (mid_c, mid_c, 3, 3), jnp.float32)
    w3_t = 0.1 * jax.random.normal(ks[2], (out_c, mid_c, 1, 1), jnp.float32)

    def bn(kg, kb, km, kv, c):
        gamma = 1.0 + 0.1 * jax.random.normal(kg, (c,), jnp.float32)
        beta = 0.1 * jax.random.normal(kb, (c,), jnp.float32)
        mean = 0.1 * jax.random.normal(km, (c,), jnp.float32)
        var = jax.random.uniform(kv, (c,), jnp.float32, minval=0.5, maxval=1.5)
        return (gamma, beta, mean, var)

    bn1 = bn(ks[3], ks[4], ks[5], ks[6], mid_c)
    bn2 = bn(ks[7], ks[8], ks[9], ks[10], mid_c)
    bn3 = bn(ks[11], ks[12], ks[13], ks[14], out_c)
    return w1_t, bn1, w2_t, bn2, w3_t, bn3


def reference_module_f32(x_nchw, w1_t, bn1, w2_t, bn2, w3_t, bn3):
    """Full-f32 plain-JAX reference with the original module semantics."""
    dn = ('NHWC', 'HWIO', 'NHWC')
    x = jnp.transpose(x_nchw, (0, 2, 3, 1))

    def bn_apply(h, p):
        g, b, m, v = p
        return (h - m) * (g / jnp.sqrt(v + _BN_EPS)) + b

    w1 = jnp.transpose(w1_t, (2, 3, 1, 0))
    w2 = jnp.transpose(w2_t, (2, 3, 1, 0))
    w3 = jnp.transpose(w3_t, (2, 3, 1, 0))

    h = lax.conv_general_dilated(x, w1, (1, 1), 'VALID', dimension_numbers=dn)
    h = jnp.maximum(bn_apply(h, bn1), 0.0)
    h = lax.conv_general_dilated(h, w2, (1, 1), ((1, 1), (1, 1)),
                                 dimension_numbers=dn)
    h = jnp.maximum(bn_apply(h, bn2), 0.0)
    h = lax.conv_general_dilated(h, w3, (1, 1), 'VALID', dimension_numbers=dn)
    h = bn_apply(h, bn3)
    out = jnp.maximum(h + x, 0.0)
    return jnp.transpose(out, (0, 3, 1, 2))


def reference_folded_bf16(x_nchw, params):
    """Plain-JAX mirror of the kernel math (bf16 conv operands, f32 accum)."""
    dn = ('NHWC', 'HWIO', 'NHWC')
    cin_p, cmid_p = params["w1"].shape
    cout_p = params["w3"].shape[1]
    N, cin, H, W = x_nchw.shape
    x = jnp.transpose(x_nchw, (0, 2, 3, 1))
    x = jnp.pad(x, ((0, 0), (0, 0), (0, 0), (0, cin_p - cin)))

    def conv(h, w_hwio):
        pad = 'VALID' if w_hwio.shape[0] == 1 else ((1, 1), (1, 1))
        return lax.conv_general_dilated(
            h.astype(jnp.bfloat16), w_hwio, (1, 1), pad, dimension_numbers=dn,
            preferred_element_type=jnp.float32)

    h = jnp.maximum(conv(x, params["w1"].reshape(1, 1, cin_p, cmid_p))
                    + params["b1"].reshape(1, 1, 1, -1), 0.0)
    h = jnp.maximum(conv(h, params["w2_hwio"])
                    + params["b2"].reshape(1, 1, 1, -1), 0.0)
    h = (conv(h, params["w3"].reshape(1, 1, cmid_p, cout_p))
         + params["b3"].reshape(1, 1, 1, -1))
    out = jnp.maximum(h + x, 0.0)[..., :params["cout"]]
    return jnp.transpose(out, (0, 3, 1, 2))


if __name__ == "__main__":
    N, Cin, Cmid, Cout, H, W = 2, 32, 16, 32, 16, 16

    key = jax.random.PRNGKey(0)
    kx, kp = jax.random.split(key)
    x = jax.random.normal(kx, (N, Cin, H, W), jnp.float32)   # NCHW like PyTorch
    raw = init_params(kp, Cin, Cmid, Cout)
    params = fold_and_pad_params(*raw)

    # Single-chunk path (tile_m >= HW): center tap reuses h1 from vregs.
    out = jax.block_until_ready(residual_block_pallas(x, params))
    # M-chunked path (exercises the in-kernel spatial tiling).
    out_chunked = jax.block_until_ready(residual_block_pallas(x, params,
                                                              tile_m=128))

    # Tight check vs. a plain-JAX mirror of the kernel math (same bf16 operands).
    ref_q = reference_folded_bf16(x, params)
    np.testing.assert_allclose(np.asarray(out), np.asarray(ref_q),
                               rtol=1e-2, atol=1e-2)
    np.testing.assert_allclose(np.asarray(out_chunked), np.asarray(ref_q),
                               rtol=1e-2, atol=1e-2)

    # Module-semantics check vs. the full-f32 eval-mode reference; tolerance
    # covers the bf16 operand quantization used on the MXU.
    ref = reference_module_f32(x, *raw)
    np.testing.assert_allclose(np.asarray(out), np.asarray(ref),
                               rtol=5e-2, atol=5e-2)

    print("KERNEL_OK")
</pallas_src>

<mosaic_0001>
module attributes {stable_mosaic.version = 11 : i64} {
  func.func @_bottleneck_kernel(%arg0: i32, %arg1: memref<1x256x128xf32, #tpu.memory_space<vmem>>, %arg2: memref<2x256x128xbf16, #tpu.memory_space<vmem>>, %arg3: memref<128x128xbf16, #tpu.memory_space<vmem>>, %arg4: memref<1x128xf32, #tpu.memory_space<vmem>>, %arg5: memref<1152x128xbf16, #tpu.memory_space<vmem>>, %arg6: memref<1x128xf32, #tpu.memory_space<vmem>>, %arg7: memref<128x128xbf16, #tpu.memory_space<vmem>>, %arg8: memref<1x128xf32, #tpu.memory_space<vmem>>, %arg9: memref<1x256x128xf32, #tpu.memory_space<vmem>>, %arg10: memref<320x128xbf16, #tpu.memory_space<vmem>>) attributes {dimension_semantics = [#tpu.dimension_semantics<parallel>], iteration_bounds = array<i64: 2>, scalar_prefetch = 0 : i64, scratch_operands = 1 : i64, tpu.core_type = #tpu.core_type<tc>, window_params = [{transform_indices = @transform_0, window_bounds = array<i64: 1, 256, 128>}, {pipeline_mode = #tpu.pipeline_mode<synchronous>, transform_indices = @transform_1, window_bounds = array<i64: 2, 256, 128>}, {pipeline_mode = #tpu.pipeline_mode<synchronous>, transform_indices = @transform_2, window_bounds = array<i64: 128, 128>}, {pipeline_mode = #tpu.pipeline_mode<synchronous>, transform_indices = @transform_3, window_bounds = array<i64: 1, 128>}, {pipeline_mode = #tpu.pipeline_mode<synchronous>, transform_indices = @transform_4, window_bounds = array<i64: 1152, 128>}, {pipeline_mode = #tpu.pipeline_mode<synchronous>, transform_indices = @transform_5, window_bounds = array<i64: 1, 128>}, {pipeline_mode = #tpu.pipeline_mode<synchronous>, transform_indices = @transform_6, window_bounds = array<i64: 128, 128>}, {pipeline_mode = #tpu.pipeline_mode<synchronous>, transform_indices = @transform_7, window_bounds = array<i64: 1, 128>}, {transform_indices = @transform_8, window_bounds = array<i64: 1, 256, 128>}]} {
    %cst = arith.constant 0.000000e+00 : bf16
    %0 = vector.broadcast %cst : bf16 to vector<32x128xbf16>
    %c0 = arith.constant 0 : index
    %c0_0 = arith.constant 0 : index
    %1 = vector.load %arg10[%c0, %c0_0] : memref<320x128xbf16, #tpu.memory_space<vmem>>, vector<32x128xbf16>
    tpu.vector_store %arg10[%c0, %c0_0], %0 {strides = array<i32>} : memref<320x128xbf16, #tpu.memory_space<vmem>>, vector<32x128xbf16>,
    %cst_1 = arith.constant 0.000000e+00 : bf16
    %2 = vector.broadcast %cst_1 : bf16 to vector<32x128xbf16>
    %c288 = arith.constant 288 : index
    %c0_2 = arith.constant 0 : index
    %3 = vector.load %arg10[%c288, %c0_2] : memref<320x128xbf16, #tpu.memory_space<vmem>>, vector<32x128xbf16>
    tpu.vector_store %arg10[%c288, %c0_2], %2 {strides = array<i32>} : memref<320x128xbf16, #tpu.memory_space<vmem>>, vector<32x128xbf16>,
    %c0_3 = arith.constant 0 : index
    %c0_4 = arith.constant 0 : index
    %c0_5 = arith.constant 0 : index
    %4 = vector.load %arg1[%c0_3, %c0_4, %c0_5] : memref<1x256x128xf32, #tpu.memory_space<vmem>>, vector<1x256x128xf32>
    %5 = vector.shape_cast %4 : vector<1x256x128xf32> to vector<256x128xf32>
    %6 = arith.truncf %5 : vector<256x128xf32> to vector<256x128xbf16>
    %c0_6 = arith.constant 0 : index
    %c0_7 = arith.constant 0 : index
    %7 = vector.load %arg3[%c0_6, %c0_7] : memref<128x128xbf16, #tpu.memory_space<vmem>>, vector<128x128xbf16>
    %cst_8 = arith.constant dense<0.000000e+00> : vector<256x128xf32>
    %8 = tpu.matmul %6, %7, %cst_8 {dimension_numbers = #tpu.dot_dimension_numbers<[1], [0], [0], [1], [0, 0, 1, 1], [], []>} : vector<256x128xbf16>, vector<128x128xbf16>, vector<256x128xf32> -> vector<256x128xf32>
    %c0_9 = arith.constant 0 : index
    %c0_10 = arith.constant 0 : index
    %9 = vector.load %arg4[%c0_9, %c0_10] : memref<1x128xf32, #tpu.memory_space<vmem>>, vector<1x128xf32>
    %10 = vector.broadcast %9 : vector<1x128xf32> to vector<256x128xf32>
    %11 = arith.addf %8, %10 : vector<256x128xf32>
    %cst_11 = arith.constant 0.000000e+00 : f32
    %12 = vector.broadcast %cst_11 : f32 to vector<256x128xf32>
    %13 = arith.maximumf %11, %12 : vector<256x128xf32>
    %14 = arith.truncf %13 : vector<256x128xf32> to vector<256x128xbf16>
    %c32 = arith.constant 32 : index
    %c0_12 = arith.constant 0 : index
    %15 = vector.load %arg10[%c32, %c0_12] : memref<320x128xbf16, #tpu.memory_space<vmem>>, vector<256x128xbf16>
    tpu.vector_store %arg10[%c32, %c0_12], %14 {strides = array<i32>} : memref<320x128xbf16, #tpu.memory_space<vmem>>, vector<256x128xbf16>,
    %c15 = arith.constant 15 : index
    %c0_13 = arith.constant 0 : index
    %16 = vector.load %arg10[%c15, %c0_13] : memref<320x128xbf16, #tpu.memory_space<vmem>>, vector<256x128xbf16>
    %c0_14 = arith.constant 0 : index
    %c0_15 = arith.constant 0 : index
    %c0_16 = arith.constant 0 : index
    %17 = vector.load %arg2[%c0_14, %c0_15, %c0_16] : memref<2x256x128xbf16, #tpu.memory_space<vmem>>, vector<1x256x128xbf16>
    %18 = vector.shape_cast %17 : vector<1x256x128xbf16> to vector<256x128xbf16>
    %19 = arith.mulf %16, %18 : vector<256x128xbf16>
    %c16 = arith.constant 16 : index
    %c0_17 = arith.constant 0 : index
    %20 = vector.load %arg10[%c16, %c0_17] : memref<320x128xbf16, #tpu.memory_space<vmem>>, vector<256x128xbf16>
    %c17 = arith.constant 17 : index
    %c0_18 = arith.constant 0 : index
    %21 = vector.load %arg10[%c17, %c0_18] : memref<320x128xbf16, #tpu.memory_space<vmem>>, vector<256x128xbf16>
    %c1 = arith.constant 1 : index
    %c0_19 = arith.constant 0 : index
    %c0_20 = arith.constant 0 : index
    %22 = vector.load %arg2[%c1, %c0_19, %c0_20] : memref<2x256x128xbf16, #tpu.memory_space<vmem>>, vector<1x256x128xbf16>
    %23 = vector.shape_cast %22 : vector<1x256x128xbf16> to vector<256x128xbf16>
    %24 = arith.mulf %21, %23 : vector<256x128xbf16>
    %c31 = arith.constant 31 : index
    %c0_21 = arith.constant 0 : index
    %25 = vector.load %arg10[%c31, %c0_21] : memref<320x128xbf16, #tpu.memory_space<vmem>>, vector<256x128xbf16>
    %c0_22 = arith.constant 0 : index
    %c0_23 = arith.constant 0 : index
    %c0_24 = arith.constant 0 : index
    %26 = vector.load %arg2[%c0_22, %c0_23, %c0_24] : memref<2x256x128xbf16, #tpu.memory_space<vmem>>, vector<1x256x128xbf16>
    %27 = vector.shape_cast %26 : vector<1x256x128xbf16> to vector<256x128xbf16>
    %28 = arith.mulf %25, %27 : vector<256x128xbf16>
    %c33 = arith.constant 33 : index
    %c0_25 = arith.constant 0 : index
    %29 = vector.load %arg10[%c33, %c0_25] : memref<320x128xbf16, #tpu.memory_space<vmem>>, vector<256x128xbf16>
    %c1_26 = arith.constant 1 : index
    %c0_27 = arith.constant 0 : index
    %c0_28 = arith.constant 0 : index
    %30 = vector.load %arg2[%c1_26, %c0_27, %c0_28] : memref<2x256x128xbf16, #tpu.memory_space<vmem>>, vector<1x256x128xbf16>
    %31 = vector.shape_cast %30 : vector<1x256x128xbf16> to vector<256x128xbf16>
    %32 = arith.mulf %29, %31 : vector<256x128xbf16>
    %c47 = arith.constant 47 : index
    %c0_29 = arith.constant 0 : index
    %33 = vector.load %arg10[%c47, %c0_29] : memref<320x128xbf16, #tpu.memory_space<vmem>>, vector<256x128xbf16>
    %c0_30 = arith.constant 0 : index
    %c0_31 = arith.constant 0 : index
    %c0_32 = arith.constant 0 : index
    %34 = vector.load %arg2[%c0_30, %c0_31, %c0_32] : memref<2x256x128xbf16, #tpu.memory_space<vmem>>, vector<1x256x128xbf16>
    %35 = vector.shape_cast %34 : vector<1x256x128xbf16> to vector<256x128xbf16>
    %36 = arith.mulf %33, %35 : vector<256x128xbf16>
    %c48 = arith.constant 48 : index
    %c0_33 = arith.constant 0 : index
    %37 = vector.load %arg10[%c48, %c0_33] : memref<320x128xbf16, #tpu.memory_space<vmem>>, vector<256x128xbf16>
    %c49 = arith.constant 49 : index
    %c0_34 = arith.constant 0 : index
    %38 = vector.load %arg10[%c49, %c0_34] : memref<320x128xbf16, #tpu.memory_space<vmem>>, vector<256x128xbf16>
    %c1_35 = arith.constant 1 : index
    %c0_36 = arith.constant 0 : index
    %c0_37 = arith.constant 0 : index
    %39 = vector.load %arg2[%c1_35, %c0_36, %c0_37] : memref<2x256x128xbf16, #tpu.memory_space<vmem>>, vector<1x256x128xbf16>
    %40 = vector.shape_cast %39 : vector<1x256x128xbf16> to vector<256x128xbf16>
    %41 = arith.mulf %38, %40 : vector<256x128xbf16>
    %42 = tpu.concatenate %19, %20, %24, %28, %14, %32, %36, %37, %41 in 1 : vector<256x128xbf16>, vector<256x128xbf16>, vector<256x128xbf16>, vector<256x128xbf16>, vector<256x128xbf16>, vector<256x128xbf16>, vector<256x128xbf16>, vector<256x128xbf16>, vector<256x128xbf16> -> vector<256x1152xbf16>
    %c0_38 = arith.constant 0 : index
    %c0_39 = arith.constant 0 : index
    %43 = vector.load %arg5[%c0_38, %c0_39] : memref<1152x128xbf16, #tpu.memory_space<vmem>>, vector<1152x128xbf16>
    %cst_40 = arith.constant dense<0.000000e+00> : vector<256x128xf32>
    %44 = tpu.matmul %42, %43, %cst_40 {dimension_numbers = #tpu.dot_dimension_numbers<[1], [0], [0], [1], [0, 0, 1, 1], [], []>} : vector<256x1152xbf16>, vector<1152x128xbf16>, vector<256x128xf32> -> vector<256x128xf32>
    %c0_41 = arith.constant 0 : index
    %c0_42 = arith.constant 0 : index
    %45 = vector.load %arg6[%c0_41, %c0_42] : memref<1x128xf32, #tpu.memory_space<vmem>>, vector<1x128xf32>
    %46 = vector.broadcast %45 : vector<1x128xf32> to vector<256x128xf32>
    %47 = arith.addf %44, %46 : vector<256x128xf32>
    %cst_43 = arith.constant 0.000000e+00 : f32
    %48 = vector.broadcast %cst_43 : f32 to vector<256x128xf32>
    %49 = arith.maximumf %47, %48 : vector<256x128xf32>
    %50 = arith.truncf %49 : vector<256x128xf32> to vector<256x128xbf16>
    %c0_44 = arith.constant 0 : index
    %c0_45 = arith.constant 0 : index
    %51 = vector.load %arg7[%c0_44, %c0_45] : memref<128x128xbf16, #tpu.memory_space<vmem>>, vector<128x128xbf16>
    %cst_46 = arith.constant dense<0.000000e+00> : vector<256x128xf32>
    %52 = tpu.matmul %50, %51, %cst_46 {dimension_numbers = #tpu.dot_dimension_numbers<[1], [0], [0], [1], [0, 0, 1, 1], [], []>} : vector<256x128xbf16>, vector<128x128xbf16>, vector<256x128xf32> -> vector<256x128xf32>
    %c0_47 = arith.constant 0 : index
    %c0_48 = arith.constant 0 : index
    %53 = vector.load %arg8[%c0_47, %c0_48] : memref<1x128xf32, #tpu.memory_space<vmem>>, vector<1x128xf32>
    %54 = vector.broadcast %53 : vector<1x128xf32> to vector<256x128xf32>
    %55 = arith.addf %52, %54 : vector<256x128xf32>
    %c0_49 = arith.constant 0 : index
    %c0_50 = arith.constant 0 : index
    %c0_51 = arith.constant 0 : index
    %56 = vector.load %arg1[%c0_49, %c0_50, %c0_51] : memref<1x256x128xf32, #tpu.memory_space<vmem>>, vector<1x256x128xf32>
    %57 = vector.shape_cast %56 : vector<1x256x128xf32> to vector<256x128xf32>
    %58 = arith.addf %55, %57 : vector<256x128xf32>
    %cst_52 = arith.constant 0.000000e+00 : f32
    %59 = vector.broadcast %cst_52 : f32 to vector<256x128xf32>
    %60 = arith.maximumf %58, %59 : vector<256x128xf32>
    %c0_53 = arith.constant 0 : index
    %c0_54 = arith.constant 0 : index
    %c0_55 = arith.constant 0 : index
    %61 = vector.load %arg9[%c0_53, %c0_54, %c0_55] : memref<1x256x128xf32, #tpu.memory_space<vmem>>, vector<1x256x128xf32>
    %62 = vector.shape_cast %61 : vector<1x256x128xf32> to vector<256x128xf32>
    %63 = vector.shape_cast %60 : vector<256x128xf32> to vector<1x256x128xf32>
    tpu.vector_store %arg9[%c0_53, %c0_54, %c0_55], %63 {strides = array<i32>} : memref<1x256x128xf32, #tpu.memory_space<vmem>>, vector<1x256x128xf32>,
    return
  }
  func.func @transform_0(%arg0: i32) -> (i32, i32, i32) {
    %c0_i32 = arith.constant 0 : i32
    %c0_i32_0 = arith.constant 0 : i32
    %c0_i32_1 = arith.constant 0 : i32
    return %arg0, %c0_i32, %c0_i32_0 : i32, i32, i32
  }
  func.func @transform_1(%arg0: i32) -> (i32, i32, i32) {
    %c0_i32 = arith.constant 0 : i32
    %c0_i32_0 = arith.constant 0 : i32
    %c0_i32_1 = arith.constant 0 : i32
    %c0_i32_2 = arith.constant 0 : i32
    return %c0_i32, %c0_i32_0, %c0_i32_1 : i32, i32, i32
  }
  func.func @transform_2(%arg0: i32) -> (i32, i32) {
    %c0_i32 = arith.constant 0 : i32
    %c0_i32_0 = arith.constant 0 : i32
    %c0_i32_1 = arith.constant 0 : i32
    return %c0_i32, %c0_i32_0 : i32, i32
  }
  func.func @transform_3(%arg0: i32) -> (i32, i32) {
    %c0_i32 = arith.constant 0 : i32
    %c0_i32_0 = arith.constant 0 : i32
    %c0_i32_1 = arith.constant 0 : i32
    return %c0_i32, %c0_i32_0 : i32, i32
  }
  func.func @transform_4(%arg0: i32) -> (i32, i32) {
    %c0_i32 = arith.constant 0 : i32
    %c0_i32_0 = arith.constant 0 : i32
    %c0_i32_1 = arith.constant 0 : i32
    return %c0_i32, %c0_i32_0 : i32, i32
  }
  func.func @transform_5(%arg0: i32) -> (i32, i32) {
    %c0_i32 = arith.constant 0 : i32
    %c0_i32_0 = arith.constant 0 : i32
    %c0_i32_1 = arith.constant 0 : i32
    return %c0_i32, %c0_i32_0 : i32, i32
  }
  func.func @transform_6(%arg0: i32) -> (i32, i32) {
    %c0_i32 = arith.constant 0 : i32
    %c0_i32_0 = arith.constant 0 : i32
    %c0_i32_1 = arith.constant 0 : i32
    return %c0_i32, %c0_i32_0 : i32, i32
  }
  func.func @transform_7(%arg0: i32) -> (i32, i32) {
    %c0_i32 = arith.constant 0 : i32
    %c0_i32_0 = arith.constant 0 : i32
    %c0_i32_1 = arith.constant 0 : i32
    return %c0_i32, %c0_i32_0 : i32, i32
  }
  func.func @transform_8(%arg0: i32) -> (i32, i32, i32) {
    %c0_i32 = arith.constant 0 : i32
    %c0_i32_0 = arith.constant 0 : i32
    %c0_i32_1 = arith.constant 0 : i32
    return %arg0, %c0_i32, %c0_i32_0 : i32, i32, i32
  }
}

</mosaic_0001>

<bundles_post_ra>
// kernel: tpu_custom_call.1
= control target key start
LH: loop header
LB: loop body
LE: loop exit
PB: predicated region body
PF: predicated region fallthrough
CT: control target
= control target key end

     0   :  { %s9990_s0 = inlined_call_operand.hbm [shape: f32[2,256,128], index: 0, kind: input, shape index: {}]   ;;  %s9991_s1 = inlined_call_operand.hbm [shape: bf16[2,256,128], index: 1, kind: input, shape index: {}]   ;;  %s9992_s2 = inlined_call_operand.hbm [shape: bf16[128,128], index: 2, kind: input, shape index: {}]   ;;  %s9993_s3 = inlined_call_operand.vmem [shape: f32[1,128], index: 3, kind: input, shape index: {}]   ;;  %s9994_s4 = inlined_call_operand.hbm [shape: bf16[1152,128], index: 4, kind: input, shape index: {}]   ;;  %s9995_s5 = inlined_call_operand.vmem [shape: f32[1,128], index: 5, kind: input, shape index: {}]   ;;  %s9996_s6 = inlined_call_operand.hbm [shape: bf16[128,128], index: 6, kind: input, shape index: {}]   ;;  %s9997_s7 = inlined_call_operand.vmem [shape: f32[1,128], index: 7, kind: input, shape index: {}]   ;;  %s9998_s8 = inlined_call_operand.hbm [shape: f32[2,256,128], index: 8, kind: output, shape index: {}]  }
   0x1   :  { %10157 = sst [smem:[#allocation181_spill]] %s9991_s1 }
   0x2   :  { %10158 = sst [smem:[#allocation182_spill]] %s9992_s2 }
   0x3   :  { %13 = vsyncpa [#allocation4], 0 }
   0x4   :  { %15 = vsyncpa [#allocation4 + $0x1], 0 }
   0x5   :  { %16 = vsyncpa [#allocation7], 0 }
   0x6   :  { %17 = vsyncpa [#allocation10], 0 }
   0x7   :  { %18 = vsyncpa [#allocation5], 0 }
   0x8   :  { %20 = vsyncpa [#allocation5 + $0x1], 0  ;;  %s7084_s27 = smov 0   ;;  %s7086_s28 = smov 0  }
   0x9   :  { %s7088_s29 = smov 0   ;;  %s7090_s30 = smov 0  }
   0xa LB: > { %s7105_s9 = sadd.s32 4294967295, %s7026_s30   ;;  %s5868_s10 = sadd.s32 4294967294, %s7026_s30   ;;  %s7026_s30 = sphi %s7090_s30, %s10732_s30   ;;  %s7022_s29 = sphi %s7088_s29, %s10731_s29   ;;  %s7018_s28 = sphi %s7086_s28, %s10730_s28   ;;  %s7014_s27 = sphi %s7084_s27, %s10729_s27  }
   0xb   : > { %p46_p0 = scmp.ne.s32.totalorder %s7018_s28, %s7014_s27  ;;  %p47_p1 = scmp.eq.s32.totalorder %s7105_s9, 0 }
   0xc   : > { %p217_p2 = scmp.eq.s32.totalorder %s7105_s9, 1  ;;  %p223_p3 = scmp.eq.s32.totalorder %s5868_s10, 1 }
   0xd   : > { %p7114_p4 = por %p47_p1, %p46_p0  ;;  %p5869_p5 = scmp.ge.s32.totalorder %s7026_s30, 1 }
   0xe   : > { %p7119_p6 = por %p223_p3, %p46_p0  ;;  %p230_p7 = scmp.lt.s32.totalorder %s7026_s30, 3 }
   0xf   : > { %s10161_s1 = sld [smem:[#allocation181_spill]]  ;;  %s7028_s17 = smov [#allocation6]  }
  0x10   : > { %p7127_p8 = pnand %p5869_p5, %p230_p7  ;;  %s243_s18 = sshll.u32 %s7028_s17, 4  ;;  %s244_s18 = int_to_ptr.vmem [resolvable:$true] %s243_s18 }
  0x11   : > { %s272_s22 = sshll.u32 %s9994_s4, 4  ;;  %s7029_s23 = smov 64   ;;  %s273_s22 = int_to_ptr.hbm [resolvable:$true] %s272_s22 }
  0x12   : > { %p6720_p9 = pneg %p7127_p8  ;;  %s7030_s24 = smov 4  }
  0x13   : > { %s7031_s25 = smov [#allocation9]   ;;  %s10164_s2 = sld [smem:[#allocation182_spill]] }
  0x14   : > { %p7135_p10 = pnand %p6720_p9, %p47_p1  ;;  %s274_s26 = sshll.u32 %s7031_s25, 4  ;;  %s275_s26 = int_to_ptr.vmem [resolvable:$true] %s274_s26 }
  0x15   : > { %s241_s15 = sshll.u32 %s10161_s1, 4  ;;  %s7033_s25 = smov [#allocation11]   ;;  %s242_s15 = int_to_ptr.hbm [resolvable:$true] %s241_s15 }
  0x16   : > { %6723 = dma.hbm_to_vmem [thread:$0]  (!%p7135_p10), %s242_s15, 4096, %s244_s18, [#allocation7], %s7029_s23, %s7029_s23, %s7030_s24  }
  0x17   : > { %6729 = dma.hbm_to_vmem [thread:$0]  (!%p7135_p10), %s273_s22, 9216, %s275_s26, [#allocation10], %s7029_s23, %s7029_s23, %s7030_s24  }
  0x18   : > { %s289_s15 = sshll.u32 %s9996_s6, 4  ;;  %s7032_s18 = smov [#allocation8]   ;;  %s290_s15 = int_to_ptr.hbm [resolvable:$true] %s289_s15 }
  0x19   : > { %s255_s14 = sshll.u32 %s10164_s2, 4  ;;  %s257_s21 = sshll.u32 %s7032_s18, 4  ;;  %s256_s14 = int_to_ptr.hbm [resolvable:$true] %s255_s14  ;;  %s258_s21 = int_to_ptr.vmem [resolvable:$true] %s257_s21 }
  0x1a   : > { %6726 = dma.hbm_to_vmem [thread:$0]  (!%p7135_p10), %s256_s14, 1024, %s258_s21, [#allocation7], %s7029_s23, %s7029_s23, %s7030_s24  }
  0x1b   : > { %s291_s10 = sshll.u32 %s7033_s25, 4  ;;  %s7158_s22 = sadd.s32 1, %s7026_s30   ;;  %s292_s10 = int_to_ptr.vmem [resolvable:$true] %s291_s10 }
  0x1c   : > { %6732 = dma.hbm_to_vmem [thread:$0]  (!%p7135_p10), %s290_s15, 1024, %s292_s10, [#allocation10], %s7029_s23, %s7029_s23, %s7030_s24  }
  0x1d   : > { %s33_s26 = sadd.s32 1, %s7022_s29  ;;  %s30_s13 = ssub.s32 %s7026_s30, %s7158_s22 }
  0x1e   : > { %p40_p12 = scmp.ne.s32.totalorder %s7022_s29, %s7018_s28  ;;  %p31_p13 = scmp.eq.s32.totalorder %s30_s13, 0 }
  0x1f   : > { %p41_p0 = scmp.eq.s32.totalorder %s7026_s30, 0  ;;  %p6745_p5 = scmp.lt.s32.totalorder %s7026_s30, 2 }
  0x20   : > { %p7168_p3 = por %p217_p2, %p40_p12  ;;  %s308_s20 = sand.u32 1, %s7022_s29  }
  0x21   : > { %s7174_s14 = scalar_select %p31_p13, %s7022_s29, %s33_s26  }
  0x22   : > { %p42_p7 = por %p41_p0, %p40_p12  ;;  %s5875_s19 = sshll.u32 %s308_s20, 8 }
  0x23   : > { %s6314_s23 = sshll.u32 %s7026_s30, 8  ;;  %s312_s21 = scalar_lea.vmem [#allocation3], %s5875_s19 }
  0x24   : > { %s317_s18 = scalar_lea.hbm %s9990_s0, %s6314_s23  ;;  %s320_s25 = sshll.u32 %s312_s21, 4  ;;  %s321_s25 = int_to_ptr.vmem [resolvable:$true] %s320_s25 }
  0x25   : > { %s318_s10 = sshll.u32 %s317_s18, 4  ;;  %p7181_p2 = pnand %p6745_p5, %p42_p7  ;;  %s319_s10 = int_to_ptr.hbm [resolvable:$true] %s318_s10 }
  0x26   : > { %s309_s26 = scalar_lea.sflag [#allocation4], %s308_s20  ;;  %s6922_s1 = sshra.s32 %s319_s10, 4  ;;  %s6923_s1 = int_to_ptr.hbm [resolvable:$true] %s6922_s1 }
  0x27   : > { %s6924_s2 = scalar_lea.hbm %s6923_s1, 256  ;;  %p6926_p10 = pneg %p7181_p2 }
  0x28   : > { %p6925_p9 = scmp.ne.s32.totalorder %s6923_s1, %s6924_s2  ;;  %s6929_s24 = scalar_lea.hbm %s9990_s0, 512 }
  0x29   : > { %p6930_p0 = scmp.lt.s32.totalorder %s6923_s1, %s9990_s0  ;;  %p6931_p5 = scmp.lt.s32.totalorder %s6929_s24, %s6924_s2 }
  0x2a   : > { %p6927_p12 = pnand %p6926_p10, %p6925_p9 }
  0x2b   : > { %p6932_p7 = por %p6931_p5, %p6930_p0 }
  0x2c   : > { %p6928_p13 = pneg %p6927_p12 }
  0x2e   : > { %p6933_p11 = pnand %p6932_p7, %p6928_p13 }
  0x30   : > { %6936 = shalt.err (!%p6933_p11)
}
  0x31   : > { %s7034_s20 = smov 128   ;;  %s7035_s21 = smov 8  }
  0x32   : > { %6736 = dma.hbm_to_vmem [thread:$0]  (!%p7181_p2), %s319_s10, 4096, %s321_s25, %s309_s26, %s7034_s20, %s7034_s20, %s7035_s21  }
  0x33   : > { %332 = sbr.rel (%p7127_p8) target bundleno = 1380 (0x564), region = 52 }
  0x38   : > { %s7198_s23 = sand.u32 1, %s7018_s28  }
  0x39   : > { %s5879_s1 = sshll.u32 %s7198_s23, 8  ;;  %s335_s2 = scalar_lea.sflag [#allocation4], %s7198_s23 }
  0x3a   : > { %s7204_s19 = scalar_lea.vmem [#allocation3], %s5879_s1 }
  0x3b   : > { %6997 = dma.done.wait (%p7114_p4), %s335_s2, 4096  }
  0x3c   : > { %6999 = vsyncadd (%p7114_p4), %s335_s2, 4294963200 }
  0x3d   : > { %7001 = dma.done.wait (%p47_p1), [#allocation7], 5120  }
  0x3e   : > { %7003 = vsyncadd (%p47_p1), [#allocation7], 4294962176 }
  0x3f   : > { %7005 = dma.done.wait (%p47_p1), [#allocation10], 10240  }
  0x40   : > { %7007 = vsyncadd (%p47_p1), [#allocation10], 4294957056  ;;  %v6322_v0 = vld [vmem:[#allocation8 + $0x38] sm:$0xff]  ;;  %v6321_v1 = vld [vmem:[#allocation8 + $0x30] sm:$0xff]  ;;  %v7036_v44 = vmov 0   ;;  %vm864_vm0 = vcmask 1046528  }
  0x41   : > { %517 = vmatpush.bf16.msra.mxu0 %v6322_v0  ;;  %6676 = vmatpush.bf16.msra.mxu3 %v6322_v0  ;;  %v6320_v2 = vld [vmem:[#allocation8 + $0x28] sm:$0xff]  ;;  %v6319_v3 = vld [vmem:[#allocation8 + $0x20] sm:$0xff]  ;;  %v6318_v4 = vld [vmem:[#allocation8 + $0x18] sm:$0xff]  ;;  %395 = vst [vmem:[#allocation2 + $0x8] sm:$0xf] %v7036_v44  ;;  %vm1126_vm3 = vcmask 1040384  }
  0x42   : > { %v6317_v5 = vld [vmem:[#allocation8 + $0x10] sm:$0xff]  ;;  %v6316_v6 = vld [vmem:[#allocation8 + $0x8] sm:$0xff]  ;;  %v6315_v7 = vld [vmem:[#allocation8] sm:$0xff]  ;;  %396 = vst [vmem:[#allocation2 + $0xc] sm:$0xf] %v7036_v44  ;;  %vm1959_vm4 = vcmask 1042432  }
  0x43   : > { %v401_v8 = vld [vmem:[%s7204_s19] sm:$0xff]  ;;  %v402_v9 = vld [vmem:[%s7204_s19 + $0x8] sm:$0xff]  ;;  %v403_v11 = vld [vmem:[%s7204_s19 + $0x10] sm:$0xff]  ;;  %394 = vst [vmem:[#allocation2 + $0x4] sm:$0xf] %v7036_v44  ;;  %s9814_s13 = scalar_lea.vmem [#allocation12], %s5879_s1 }
  0x44   : > { %v433_v10 = vpack.c.bf16 %v402_v9, %v401_v8  ;;  %v404_v12 = vld [vmem:[%s7204_s19 + $0x18] sm:$0xff]  ;;  %v405_v14 = vld [vmem:[%s7204_s19 + $0x20] sm:$0xff]  ;;  %v406_v15 = vld [vmem:[%s7204_s19 + $0x28] sm:$0xff]  ;;  %397 = vst [vmem:[#allocation2 + $0x90] sm:$0xf] %v7036_v44  ;;  %s6421_s1 = sshll.u32 %s7105_s9, 8 }
  0x45   : > { %518 = vmatpush.bf16.msra.mxu0 %v6321_v1  ;;  %6677 = vmatpush.bf16.msra.mxu3 %v6321_v1  ;;  %v434_v13 = vpack.c.bf16 %v404_v12, %v403_v11  ;;  %v435_v16 = vpack.c.bf16 %v406_v15, %v405_v14  ;;  %v407_v17 = vld [vmem:[%s7204_s19 + $0x30] sm:$0xff]  ;;  %v408_v18 = vld [vmem:[%s7204_s19 + $0x38] sm:$0xff]  ;;  %v409_v20 = vld [vmem:[%s7204_s19 + $0x40] sm:$0xff]  ;;  %398 = vst [vmem:[#allocation2 + $0x94] sm:$0xf] %v7036_v44  ;;  %s5753_s15 = scalar_lea.hbm %s9998_s8, %s6421_s1  ;;  %s5754_s18 = sshll.u32 %s9814_s13, 4  ;;  %s5755_s18 = int_to_ptr.vmem [resolvable:$true] %s5754_s18 }
  0x46   : > { %v436_v19 = vpack.c.bf16 %v408_v18, %v407_v17  ;;  %v410_v21 = vld [vmem:[%s7204_s19 + $0x48] sm:$0xff]  ;;  %v411_v23 = vld [vmem:[%s7204_s19 + $0x50] sm:$0xff]  ;;  %v412_v24 = vld [vmem:[%s7204_s19 + $0x58] sm:$0xff]  ;;  %399 = vst [vmem:[#allocation2 + $0x98] sm:$0xf] %v7036_v44  ;;  %s5756_s20 = sshll.u32 %s5753_s15, 4  ;;  %s5757_s20 = int_to_ptr.hbm [resolvable:$true] %s5756_s20 }
  0x47   : > { %v437_v22 = vpack.c.bf16 %v410_v21, %v409_v20  ;;  %v438_v25 = vpack.c.bf16 %v412_v24, %v411_v23  ;;  %v425_v26 = vld [vmem:[%s7204_s19 + $0xc0] sm:$0xff]  ;;  %v426_v27 = vld [vmem:[%s7204_s19 + $0xc8] sm:$0xff]  ;;  %v427_v32 = vld [vmem:[%s7204_s19 + $0xd0] sm:$0xff]  ;;  %vm1732_vm1 = vsmask.f32 3328  ;;  %s5742_s21 = scalar_lea.sflag [#allocation5], %s7198_s23 }
  0x48   : > { %v445_v28 = vpack.c.bf16 %v426_v27, %v425_v26  ;;  %v413_v29 = vld [vmem:[%s7204_s19 + $0x60] sm:$0xff]  ;;  %v414_v30 = vld [vmem:[%s7204_s19 + $0x68] sm:$0xff]  ;;  %v428_v33 = vld [vmem:[%s7204_s19 + $0xd8] sm:$0xff]  ;;  %vm2790_vm2 = vsmask.f32 4352  ;;  %s6966_s9 = sshra.s32 %s5757_s20, 4  ;;  %s6967_s9 = int_to_ptr.hbm [resolvable:$true] %s6966_s9 }
  0x49   : > { %519 = vmatpush.bf16.msra.mxu0 %v6320_v2  ;;  %6678 = vmatpush.bf16.msra.mxu3 %v6320_v2  ;;  %v439_v31 = vpack.c.bf16 %v414_v30, %v413_v29  ;;  %v446_v34 = vpack.c.bf16 %v428_v33, %v427_v32  ;;  %v7236_v35 = vld [vmem:[#allocation9 + $0x78] sm:$0xff]  ;;  %v7239_v37 = vld [vmem:[#allocation9 + $0x70] sm:$0xff]  ;;  %v7244_v41 = vld [vmem:[#allocation9 + $0x68] sm:$0xff]  ;;  %s6968_s2 = scalar_lea.hbm %s6967_s9, 256  ;;  %p6973_p11 = scmp.lt.s32.totalorder %s6967_s9, %s9998_s8 }
  0x4a   : > { %4696 = vmatpush.bf16.msra.mxu2 %v7236_v35  ;;  %v6348_v36 = vld [vmem:[#allocation9 + $0x38] sm:$0xff]  ;;  %v6347_v38 = vld [vmem:[#allocation9 + $0x30] sm:$0xff]  ;;  %v6346_v43 = vld [vmem:[#allocation9 + $0x28] sm:$0xff]  ;;  %p6969_p1 = scmp.ne.s32.totalorder %s6967_s9, %s6968_s2 }
  0x4b   : > { %4607 = vmatpush.bf16.msra.mxu1 %v6348_v36  ;;  %v415_v39 = vld [vmem:[%s7204_s19 + $0x70] sm:$0xff]  ;;  %v416_v40 = vld [vmem:[%s7204_s19 + $0x78] sm:$0xff]  ;;  %v7247_v45 = vld [vmem:[#allocation9 + $0x60] sm:$0xff] }
  0x4c   : > { %v440_v42 = vpack.c.bf16 %v416_v40, %v415_v39  ;;  %v429_v46 = vld [vmem:[%s7204_s19 + $0xe0] sm:$0xff]  ;;  %v430_v47 = vld [vmem:[%s7204_s19 + $0xe8] sm:$0xff]  ;;  %v7252_v50 = vld [vmem:[#allocation9 + $0x58] sm:$0xff]  ;;  %p6970_p4 = pnand %p6969_p1, %p7168_p3 }
  0x4d   : > { %520 = vmatpush.bf16.msra.mxu0 %v6319_v3  ;;  %6679 = vmatpush.bf16.msra.mxu3 %v6319_v3  ;;  %v6345_v48 = vld [vmem:[#allocation9 + $0x20] sm:$0xff]  ;;  %v447_v49 = vpack.c.bf16 %v430_v47, %v429_v46  ;;  %v6344_v51 = vld [vmem:[#allocation9 + $0x18] sm:$0xff]  ;;  %v7255_v52 = vld [vmem:[#allocation9 + $0x50] sm:$0xff] }
  0x4e   : > { %4697 = vmatpush.bf16.msra.mxu2 %v7239_v37  ;;  %v6343_v53 = vld [vmem:[#allocation9 + $0x10] sm:$0xff]  ;;  %v417_v54 = vld [vmem:[%s7204_s19 + $0x80] sm:$0xff]  ;;  %v418_v55 = vld [vmem:[%s7204_s19 + $0x88] sm:$0xff]  ;;  %p6971_p8 = pneg %p6970_p4 }
  0x4f   : > { %4608 = vmatpush.bf16.msra.mxu1 %v6347_v38  ;;  %v7260_v56 = vld [vmem:[#allocation9 + $0x48] sm:$0xff]  ;;  %v6503_v57 = vld [vmem:[#allocation6] sm:$0xff]   ;;  %v441_v59 = vpack.c.bf16 %v418_v55, %v417_v54  ;;  %v6372_v1 = vld [vmem:[#allocation9 + $0xf8] sm:$0xff] }
  0x50   : > { %v7265_v58 = vld [vmem:[%s9993_s3] ss:$0 sm:$0xff]  ;;  %v6342_v60 = vld [vmem:[#allocation9 + $0x8] sm:$0xff]  ;;  %v6504_v63 = vunpack.c.l.bf16 %v6503_v57  ;;  %v6505_v0 = vunpack.c.h.bf16 %v6503_v57  ;;  %v6371_v14 = vld [vmem:[#allocation9 + $0xf0] sm:$0xff] }
  0x51   : > { %521 = vmatpush.bf16.msra.mxu0 %v6318_v4  ;;  %6680 = vmatpush.bf16.msra.mxu3 %v6318_v4  ;;  %v7268_v62 = vld [vmem:[#allocation9 + $0x40] sm:$0xff]  ;;  %v431_v4 = vld [vmem:[%s7204_s19 + $0xf0] sm:$0xff]  ;;  %v7274_v8 = vld [vmem:[#allocation2 + $0x8] sm:$0xff]  }
  0x52   : > { %4698 = vmatpush.bf16.msra.mxu2 %v7244_v41  ;;  %v6341_v3 = vld [vmem:[#allocation9] sm:$0xff]  ;;  %v6646_v9 = vld [vmem:[#allocation6 + $0x8] sm:$0xff]   ;;  %v866_v11 = vrot.slane %v6505_v0, 1  ;;  %v10000_v18 = vunpack.c.l.bf16 %v7274_v8  ;;  %v419_v23 = vld [vmem:[%s7204_s19 + $0x90] sm:$0xff] }
  0x53   : > { %4609 = vmatpush.bf16.msra.mxu1 %v6346_v43  ;;  %v420_v24 = vld [vmem:[%s7204_s19 + $0x98] sm:$0xff]  ;;  %v6370_v27 = vld [vmem:[#allocation9 + $0xe8] sm:$0xff] }
  0x54   : > { %v442_v33 = vpack.c.bf16 %v420_v24, %v419_v23  ;;  %v1289_v54 = vld [vmem:[#allocation2 + $0xc] sm:$0x8] }
  0x55   : > { %522 = vmatpush.bf16.msra.mxu0 %v6317_v5  ;;  %6681 = vmatpush.bf16.msra.mxu3 %v6317_v5  ;;  %v432_v5 = vld [vmem:[%s7204_s19 + $0xf8] sm:$0xff] }
  0x56   : > { %4699 = vmatpush.bf16.msra.mxu2 %v7247_v45 }
  0x57   : > { %4610 = vmatpush.bf16.msra.mxu1 %v6345_v48 }
  0x59   : > { %523 = vmatpush.bf16.msra.mxu0 %v6316_v6  ;;  %6682 = vmatpush.bf16.msra.mxu3 %v6316_v6  ;;  %v448_v6 = vpack.c.bf16 %v432_v5, %v431_v4 }
  0x5a   : > { %4700 = vmatpush.bf16.msra.mxu2 %v7252_v50 }
  0x5b   : > { %4611 = vmatpush.bf16.msra.mxu1 %v6344_v51 }
  0x5d   : > { %524 = vmatpush.bf16.msra.mxu0 %v6315_v7  ;;  %6683 = vmatpush.bf16.msra.mxu3 %v6315_v7  ;;  %v702_v7 = vld [vmem:[#allocation2 + $0x4] sm:$0x8] }
  0x5e   : > { %4701 = vmatpush.bf16.msra.mxu2 %v7255_v52  ;;  %v767_v17 = vunpack.c.l.bf16 %v702_v7  ;;  %v6367_v7 = vld [vmem:[#allocation9 + $0xd0] sm:$0xff] }
  0x5f   : > { %4612 = vmatpush.bf16.msra.mxu1 %v6343_v53 }
  0x60   : > { %525 = vmatmul.bf16.vlgmr.msra.gmra.mxu0 %v433_v10  ;;  %585 = vmatmul.bf16.vlgmr.msra.gmra.mxu3 %v445_v28  ;;  %v7276_v10 = vrot.slane %v6504_v63, 1  ;;  %v1292_v63 = vunpack.c.l.bf16 %v1289_v54 }
  0x61   : > { %6684 = vmatpush.bf16.msrb.mxu3 %v6348_v36  ;;  %4874 = vmatpush.bf16.msrb.mxu0 %v6372_v1  ;;  %v7293_v36 = vld [vmem:[#allocation6 + $0x10] sm:$0xff]  }
  0x62   : > { %4702 = vmatpush.bf16.msra.mxu2 %v7260_v56  ;;  %10167 = vst [vmem:[#allocation17_spill] sm:$0xff] %v7276_v10  ;;  %v7283_v20 = vsel %vm864_vm0, %v7276_v10, %v866_v11  ;;  %v961_v29 = vmul.f32 %v7276_v10, %v767_v17  ;;  %v7323_v17 = vmul.f32 %v1292_v63, %v7276_v10 }
  0x63   : > { %4613 = vmatpush.bf16.msra.mxu1 %v6342_v60  ;;  %10168 = vst [vmem:[#allocation18_spill] sm:$0xff] %v7283_v20  ;;  %v962_v30 = vmul.f32 %v7283_v20, %v10000_v18 }
  0x65   : > { %6685 = vmatpush.bf16.msrb.mxu3 %v6347_v38  ;;  %4875 = vmatpush.bf16.msrb.mxu0 %v6371_v14  ;;  %v995_v47 = vpack.c.bf16 %v962_v30, %v962_v30 }
  0x66   : > { %4703 = vmatpush.bf16.msra.mxu2 %v7268_v62 }
  0x67   : > { %4614 = vmatpush.bf16.msra.mxu1 %v6341_v3 }
  0x69   : > { %6686 = vmatpush.bf16.msrb.mxu3 %v6346_v43  ;;  %4876 = vmatpush.bf16.msrb.mxu0 %v6370_v27  ;;  %v6369_v43 = vld [vmem:[#allocation9 + $0xe0] sm:$0xff] }
  0x6d   : > { %6687 = vmatpush.bf16.msrb.mxu3 %v6345_v48  ;;  %4877 = vmatpush.bf16.msrb.mxu0 %v6369_v43  ;;  %v6513_v43 = vunpack.c.h.bf16 %v7293_v36 }
  0x70   : > { %530 = vmatmul.bf16.gmra.mxu0 %v434_v13  ;;  %590 = vmatmul.bf16.gmra.mxu3 %v446_v34  ;;  %v6323_v13 = vld [vmem:[#allocation2 + $0x8] sm:$0xff]  ;;  %v6509_v34 = vunpack.c.h.bf16 %v6646_v9 }
  0x71   : > { %6688 = vmatpush.bf16.msrb.mxu3 %v6344_v51  ;;  %v1737_v26 = vshll.u32 %v6323_v13, 16 }
  0x75   : > { %6689 = vmatpush.bf16.msrb.mxu3 %v6343_v53  ;;  %v870_v53 = vrot.slane %v6509_v34, 1 }
  0x79   : > { %6690 = vmatpush.bf16.msrb.mxu3 %v6342_v60 }
  0x7d   : > { %6691 = vmatpush.bf16.msrb.mxu3 %v6341_v3 }
  0x80   : > { %535 = vmatmul.bf16.gmra.mxu0 %v435_v16  ;;  %595 = vmatmul.bf16.gmra.mxu3 %v447_v49  ;;  %v6508_v16 = vunpack.c.l.bf16 %v6646_v9  ;;  %v6512_v49 = vunpack.c.l.bf16 %v7293_v36 }
  0x81   : > { %6692 = vmatpush.bf16.msra.mxu3 %v7236_v35  ;;  %v9999_v35 = vunpack.c.h.bf16 %v7274_v8 }
  0x82   : > { %v868_v28 = vrot.slane %v6508_v16, 1 }
  0x84   : > { %v7296_v46 = vsel %vm864_vm0, %v866_v11, %v868_v28  ;;  %v7310_v3 = vsel %vm864_vm0, %v868_v28, %v870_v53  ;;  %v6366_v28 = vld [vmem:[#allocation9 + $0xc8] sm:$0xff] }
  0x85   : > { %6693 = vmatpush.bf16.msra.mxu3 %v7239_v37  ;;  %10169 = vst [vmem:[#allocation19_spill] sm:$0xff] %v7296_v46  ;;  %v994_v37 = vpack.c.bf16 %v961_v29, %v961_v29  ;;  %v963_v57 = vmul.f32 %v7296_v46, %v9999_v35 }
  0x86   : > { %10170 = vst [vmem:[#allocation20_spill] sm:$0xff] %v7310_v3 }
  0x87   : > { %v1602_v60 = vunpack.c.l.b16 %v994_v37 }
  0x89   : > { %6694 = vmatpush.bf16.msra.mxu3 %v7244_v41  ;;  %v7307_v41 = vrot.slane %v6512_v49, 1 }
  0x8b   : > { %v7320_v16 = vsel %vm864_vm0, %v870_v53, %v7307_v41  ;;  %v6365_v53 = vld [vmem:[#allocation9 + $0xc0] sm:$0xff] }
  0x8c   : > { %10172 = vst [vmem:[#allocation22_spill] sm:$0xff] %v7320_v16 }
  0x8d   : > { %6695 = vmatpush.bf16.msra.mxu3 %v7247_v45 }
  0x90   : > { %540 = vmatmul.bf16.gmra.mxu0 %v436_v19  ;;  %600 = vmatmul.bf16.gmra.mxu3 %v448_v6  ;;  %v996_v6 = vpack.c.bf16 %v963_v57, %v963_v57 }
  0x91   : > { %6696 = vmatpush.bf16.msra.mxu3 %v7252_v50 }
  0x92   : > { %v1604_v27 = vunpack.c.l.b16 %v996_v6 }
  0x95   : > { %6697 = vmatpush.bf16.msra.mxu3 %v7255_v52 }
  0x99   : > { %6698 = vmatpush.bf16.msra.mxu3 %v7260_v56 }
  0x9d   : > { %6699 = vmatpush.bf16.msra.mxu3 %v7268_v62 }
  0xa0   : > { %545 = vmatmul.bf16.gmra.mxu0 %v437_v22 }
  0xb0   : > { %550 = vmatmul.bf16.gmra.mxu0 %v438_v25  ;;  %v1734_v25 = vshrl.u32 %v6323_v13, 16 }
  0xb2   : > { %v1736_v40 = vrot.slane %v1734_v25, 4 }
  0xc0   : > { %555 = vmatmul.bf16.gmra.mxu0 %v439_v31 }
  0xd0   : > { %560 = vmatmul.bf16.gmra.mxu0 %v440_v42  ;;  %v1739_v42 = vrot.slane %v1737_v26, 5 }
  0xd2   : > { %v1740_v55 = vor.u32 %v1739_v42, %v1736_v40 }
  0xd4   : > { %v2809_v4 = vshrl.u32 %v1740_v55, 16 }
  0xd6   : > { %v2811_v25 = vrot.slane %v2809_v4, 3  ;;  %v7341_v4 = vld [vmem:[#allocation6 + $0x18] sm:$0xff]  }
  0xdd   : > { %v526_v61 = vpop.f32.mrf.mxu0 }
  0xde   : > { %v527_v2 = vadd.f32 %v7265_v58, %v526_v61  ;;  %v1603_v61 = vunpack.c.l.b16 %v995_v47 }
  0xe0   : > { %565 = vmatmul.bf16.gmra.mxu0 %v441_v59  ;;  %v606_v12 = vmax.f32 %v527_v2, 0.0  ;;  %v6368_v59 = vld [vmem:[#allocation9 + $0xd8] sm:$0xff]  ;;  %v1635_v13 = vpack.c.b16 %v1603_v61, %v1602_v60 }
  0xe1   : > { %4878 = vmatpush.bf16.msrb.mxu0 %v6368_v59 }
  0xe2   : > { %v638_v21 = vpack.c.bf16 %v606_v12, %v606_v12 }
  0xe4   : > { %v2108_v38 = vunpack.c.l.b16 %v638_v21  ;;  %v421_v21 = vld [vmem:[%s7204_s19 + $0xa0] sm:$0xff] }
  0xe5   : > { %v528_v15 = vpop.f32.mrf.mxu0  ;;  %4879 = vmatpush.bf16.msrb.mxu0 %v6367_v7  ;;  %v1328_v7 = vpack.c.bf16 %v7323_v17, %v7323_v17 }
  0xe6   : > { %v529_v19 = vadd.f32 %v7265_v58, %v528_v15 }
  0xe8   : > { %v607_v22 = vmax.f32 %v529_v19, 0.0 }
  0xe9   : > { %4880 = vmatpush.bf16.msrb.mxu0 %v6366_v28  ;;  %v424_v28 = vld [vmem:[%s7204_s19 + $0xb8] sm:$0xff] }
  0xea   : > { %v639_v31 = vpack.c.bf16 %v607_v22, %v607_v22  ;;  %v6425_v32 = vpack.c.bf16 %v607_v22, %v606_v12  ;;  %v2812_v12 = vshll.u32 %v1740_v55, 16  ;;  %v422_v22 = vld [vmem:[%s7204_s19 + $0xa8] sm:$0xff] }
  0xec   : > { %6630 = vst [vmem:[#allocation2 + $0x10] sm:$0xff] %v6425_v32   ;;  %v2109_v39 = vunpack.c.l.b16 %v639_v31  ;;  %v2814_v30 = vrot.slane %v2812_v12, 4  ;;  %v2792_v31 = vshrl.u32 %v1635_v13, 16  ;;  %v2795_v32 = vshll.u32 %v1635_v13, 16 }
  0xed   : > { %v531_v44 = vpop.f32.mrf.mxu0  ;;  %4881 = vmatpush.bf16.msrb.mxu0 %v6365_v53 }
  0xee   : > { %v7299_v48 = vpack.c.b16 %v2109_v39, %v2108_v38  ;;  %v532_v51 = vadd.f32 %v7265_v58, %v531_v44  ;;  %v443_v38 = vpack.c.bf16 %v422_v22, %v421_v21  ;;  %v2815_v54 = vor.u32 %v2814_v30, %v2811_v25 }
  0xef   : > { %v2794_v57 = vrot.slane %v2792_v31, 3  ;;  %v2797_v59 = vrot.slane %v2795_v32, 4 }
  0xf0   : > { %570 = vmatmul.bf16.gmra.mxu0 %v442_v33  ;;  %v608_v0 = vmax.f32 %v532_v51, 0.0 }
  0xf2   : > { %v640_v19 = vpack.c.bf16 %v608_v0, %v608_v0 }
  0xf3   : > { %v6324_v1 = vld [vmem:[#allocation2 + $0x10] sm:$0xff] }
  0xf4   : > { %v705_v2 = vld [vmem:[#allocation2 + $0x10] sm:$0xff]   ;;  %v1742_v11 = vshrl.u32 %v6324_v1, 16  ;;  %v1745_v45 = vshll.u32 %v6324_v1, 16  ;;  %v2110_v40 = vunpack.c.l.b16 %v640_v19 }
  0xf5   : > { %v7312_v5 = vunpack.c.l.bf16 %v705_v2  ;;  %v533_v9 = vpop.f32.mrf.mxu0  ;;  %v7333_v44 = vunpack.c.h.bf16 %v705_v2  ;;  %v874_v2 = vrot.slane %v6513_v43, 1 }
  0xf6   : > { %v534_v14 = vadd.f32 %v7265_v58, %v533_v9  ;;  %v1744_v23 = vrot.slane %v1742_v11, 4  ;;  %v1747_v24 = vrot.slane %v1745_v45, 5  ;;  %v2798_v9 = vor.u32 %v2797_v59, %v2794_v57 }
  0xf7   : > { %10171 = vst [vmem:[#allocation21_spill] sm:$0xff] %v7312_v5  ;;  %v964_v15 = vmul.f32 %v7310_v3, %v7312_v5  ;;  %v1296_v36 = vmul.f32 %v7283_v20, %v7312_v5  ;;  %v965_v56 = vmul.f32 %v7320_v16, %v7333_v44  ;;  %v1297_v12 = vmul.f32 %v7296_v46, %v7333_v44 }
  0xf8   : > { %v609_v50 = vmax.f32 %v534_v14, 0.0  ;;  %v7327_v29 = vor.u32 %v1747_v24, %v1744_v23  ;;  %10173 = vst [vmem:[#allocation23_spill] sm:$0xff] %v7333_v44  ;;  %v7359_v23 = vsel %vm864_vm0, %v7307_v41, %v874_v2 }
  0xf9   : > { %v997_v26 = vpack.c.bf16 %v964_v15, %v964_v15  ;;  %v1329_v14 = vpack.c.bf16 %v1296_v36, %v1296_v36  ;;  %v6516_v15 = vunpack.c.l.bf16 %v7341_v4  ;;  %10174 = vst [vmem:[#allocation24_spill] sm:$0xff] %v7359_v23  ;;  %v998_v62 = vpack.c.bf16 %v965_v56, %v965_v56 }
  0xfa   : > { %v641_v33 = vpack.c.bf16 %v609_v50, %v609_v50  ;;  %v6430_v34 = vpack.c.bf16 %v609_v50, %v608_v0  ;;  %v1749_v42 = vsel %vm1732_vm1, %v1740_v55, %v7327_v29  ;;  %v2026_v50 = vunpack.c.l.b16 %v1328_v7 }
  0xfb   : > { %v1605_v39 = vunpack.c.l.b16 %v997_v26  ;;  %v2817_v47 = vshrl.u32 %v1749_v42, 16  ;;  %v2820_v49 = vshll.u32 %v1749_v42, 16  ;;  %v1330_v32 = vpack.c.bf16 %v1297_v12, %v1297_v12 }
  0xfc   : > { %6631 = vst [vmem:[#allocation2 + $0x18] sm:$0xff] %v6430_v34   ;;  %v2111_v37 = vunpack.c.l.b16 %v641_v33  ;;  %v2027_v34 = vunpack.c.l.b16 %v1329_v14 }
  0xfd   : > { %v1636_v51 = vpack.c.b16 %v1605_v39, %v1604_v27  ;;  %v536_v52 = vpop.f32.mrf.mxu0  ;;  %v2819_v55 = vrot.slane %v2817_v47, 3  ;;  %v2822_v61 = vrot.slane %v2820_v49, 4  ;;  %v423_v27 = vld [vmem:[%s7204_s19 + $0xb0] sm:$0xff]  ;;  %v2028_v57 = vunpack.c.l.b16 %v1330_v32 }
  0xfe   : > { %v7336_v60 = vpack.c.b16 %v2111_v37, %v2110_v40  ;;  %v537_v63 = vadd.f32 %v7265_v58, %v536_v52  ;;  %v444_v47 = vpack.c.bf16 %v424_v28, %v423_v27  ;;  %v1606_v52 = vunpack.c.l.b16 %v998_v62 }
  0xff   : > { %v2800_v0 = vshrl.u32 %v1636_v51, 16  ;;  %v2803_v1 = vshll.u32 %v1636_v51, 16  ;;  %v7343_v6 = vor.u32 %v2822_v61, %v2819_v55  ;;  %v6517_v51 = vunpack.c.h.bf16 %v7341_v4 }
 0x100   : > { %575 = vmatmul.bf16.gmra.mxu0 %v443_v38  ;;  %v610_v19 = vmax.f32 %v537_v63, 0.0  ;;  %v876_v38 = vrot.slane %v6516_v15, 1  ;;  %v2059_v36 = vpack.c.b16 %v2027_v34, %v2026_v50 }
 0x101   : > { %v2802_v11 = vrot.slane %v2800_v0, 3  ;;  %v2805_v45 = vrot.slane %v2803_v1, 4  ;;  %v2824_v13 = vsel %vm2790_vm2, %v2815_v54, %v7343_v6 }
 0x102   : > { %4704 = vmatmul.bf16.vlgmr.msra.gmra.mxu2 %v2824_v13  ;;  %v642_v39 = vpack.c.bf16 %v610_v19, %v610_v19  ;;  %v7381_v12 = vsel %vm864_vm0, %v874_v2, %v876_v38 }
 0x103   : > { %v707_v21 = vld [vmem:[#allocation2 + $0x18] sm:$0xff]   ;;  %v7355_v17 = vor.u32 %v2805_v45, %v2802_v11  ;;  %10178 = vst [vmem:[#allocation28_spill] sm:$0xff] %v7381_v12 }
 0x104   : > { %v6325_v22 = vld [vmem:[#allocation2 + $0x18] sm:$0xff]  ;;  %v7361_v24 = vunpack.c.l.bf16 %v707_v21  ;;  %v2112_v63 = vunpack.c.l.b16 %v642_v39  ;;  %v7375_v0 = vunpack.c.h.bf16 %v707_v21 }
 0x105   : > { %v538_v25 = vpop.f32.mrf.mxu0  ;;  %v2807_v26 = vsel %vm2790_vm2, %v2798_v9, %v7355_v17  ;;  %v1751_v30 = vshrl.u32 %v6325_v22, 16  ;;  %v1754_v31 = vshll.u32 %v6325_v22, 16 }
 0x106   : > { %10175 = vst [vmem:[#allocation25_spill] sm:$0xff] %v7361_v24  ;;  %v539_v33 = vadd.f32 %v7265_v58, %v538_v25  ;;  %4615 = vmatmul.bf16.vlgmr.msra.gmra.mxu1 %v2807_v26  ;;  %v966_v41 = vmul.f32 %v7359_v23, %v7361_v24  ;;  %v1298_v43 = vmul.f32 %v7310_v3, %v7361_v24  ;;  %v2843_v25 = vshrl.u32 %v2059_v36, 16 }
 0x107   : > { %v1753_v40 = vrot.slane %v1751_v30, 4  ;;  %v1756_v42 = vrot.slane %v1754_v31, 5  ;;  %10177 = vst [vmem:[#allocation27_spill] sm:$0xff] %v7375_v0  ;;  %v967_v26 = vmul.f32 %v7381_v12, %v7375_v0  ;;  %v1299_v28 = vmul.f32 %v7320_v16, %v7375_v0  ;;  %v586_v16 = vpop.f32.mrf.mxu3 }
 0x108   : > { %v611_v37 = vmax.f32 %v539_v33, 0.0  ;;  %v999_v49 = vpack.c.bf16 %v966_v41, %v966_v41  ;;  %v1331_v54 = vpack.c.bf16 %v1298_v43, %v1298_v43  ;;  %v2845_v43 = vrot.slane %v2843_v25, 3 }
 0x109   : > { %v7373_v53 = vor.u32 %v1756_v42, %v1753_v40 }
 0x10a   : > { %v643_v59 = vpack.c.bf16 %v611_v37, %v611_v37  ;;  %v6435_v55 = vpack.c.bf16 %v611_v37, %v610_v19  ;;  %v1607_v61 = vunpack.c.l.b16 %v999_v49  ;;  %v2029_v56 = vunpack.c.l.b16 %v1331_v54 }
 0x10b   : > { %10176 = vst [vmem:[#allocation26_spill] sm:$0xff] %v7373_v53  ;;  %v1758_v1 = vsel %vm1732_vm1, %v7327_v29, %v7373_v53  ;;  %v7386_v29 = vrot.slane %v6517_v51, 1  ;;  %v2846_v37 = vshll.u32 %v2059_v36, 16  ;;  %v1332_v54 = vpack.c.bf16 %v1299_v28, %v1299_v28 }
 0x10c   : > { %6632 = vst [vmem:[#allocation2 + $0x20] sm:$0xff] %v6435_v55   ;;  %v2113_v7 = vunpack.c.l.b16 %v643_v59  ;;  %v2954_v4 = vshrl.u32 %v1758_v1, 16  ;;  %v2957_v9 = vshll.u32 %v1758_v1, 16  ;;  %v1637_v11 = vpack.c.b16 %v1607_v61, %v1606_v52  ;;  %v6649_v61 = vld [vmem:[#allocation6 + $0x20] sm:$0xff]  }
 0x10d   : > { %v541_v45 = vpop.f32.mrf.mxu0  ;;  %v2060_v19 = vpack.c.b16 %v2029_v56, %v2028_v57  ;;  %v7401_v40 = vsel %vm864_vm0, %v876_v38, %v7386_v29 }
 0x10e   : > { %v7383_v13 = vpack.c.b16 %v2113_v7, %v2112_v63  ;;  %v2956_v14 = vrot.slane %v2954_v4, 3  ;;  %v2959_v15 = vrot.slane %v2957_v9, 4  ;;  %v542_v21 = vadd.f32 %v7265_v58, %v541_v45  ;;  %10179 = vst [vmem:[#allocation29_spill] sm:$0xff] %v7401_v40 }
 0x10f   : > { %v2945_v22 = vshrl.u32 %v1637_v11, 16  ;;  %v2948_v62 = vshll.u32 %v1637_v11, 16  ;;  %v2851_v31 = vshrl.u32 %v2060_v19, 16  ;;  %v2854_v34 = vshll.u32 %v2060_v19, 16 }
 0x110   : > { %580 = vmatmul.bf16.gmra.mxu0 %v444_v47  ;;  %v7388_v50 = vor.u32 %v2959_v15, %v2956_v14  ;;  %v612_v33 = vmax.f32 %v542_v21, 0.0  ;;  %v1000_v47 = vpack.c.bf16 %v967_v26, %v967_v26  ;;  %v6520_v14 = vunpack.c.l.bf16 %v6649_v61 }
 0x111   : > { %v2947_v2 = vrot.slane %v2945_v22, 3  ;;  %v2950_v27 = vrot.slane %v2948_v62, 4  ;;  %v2853_v59 = vrot.slane %v2851_v31, 3  ;;  %v2856_v63 = vrot.slane %v2854_v34, 4 }
 0x112   : > { %v2961_v30 = vsel %vm2790_vm2, %v7343_v6, %v7388_v50  ;;  %v644_v36 = vpack.c.bf16 %v612_v33, %v612_v33  ;;  %v1608_v45 = vunpack.c.l.b16 %v1000_v47  ;;  %v6521_v15 = vunpack.c.h.bf16 %v6649_v61 }
 0x113   : > { %v709_v32 = vld [vmem:[#allocation2 + $0x20] sm:$0xf]  ;;  %4709 = vmatmul.bf16.gmra.mxu2 %v2961_v30  ;;  %v7397_v41 = vor.u32 %v2950_v27, %v2947_v2  ;;  %v7415_v26 = vor.u32 %v2856_v63, %v2853_v59  ;;  %v2030_v27 = vunpack.c.l.b16 %v1332_v54  ;;  %v880_v47 = vrot.slane %v6520_v14, 1  ;;  %v6650_v63 = vld [vmem:[#allocation6 + $0x28] sm:$0xff]  }
 0x114   : > { %v6326_v39 = vld [vmem:[#allocation2 + $0x20] sm:$0xff]  ;;  %v7403_v42 = vunpack.c.l.bf16 %v709_v32  ;;  %v2114_v25 = vunpack.c.l.b16 %v644_v36 }
 0x115   : > { %v543_v49 = vpop.f32.mrf.mxu0  ;;  %v2952_v6 = vsel %vm2790_vm2, %v7355_v17, %v7397_v41  ;;  %v1760_v51 = vshrl.u32 %v6326_v39, 16  ;;  %v1763_v52 = vshll.u32 %v6326_v39, 16  ;;  %v2848_v17 = vrot.slane %v2846_v37, 4 }
 0x116   : > { %v544_v57 = vadd.f32 %v7265_v58, %v543_v49  ;;  %4620 = vmatmul.bf16.gmra.mxu1 %v2952_v6  ;;  %v968_v38 = vmul.f32 %v7401_v40, %v7403_v42  ;;  %v1300_v55 = vmul.f32 %v7359_v23, %v7403_v42 }
 0x117   : > { %v1762_v1 = vrot.slane %v1760_v51, 4  ;;  %v1765_v56 = vrot.slane %v1763_v52, 5  ;;  %v2849_v39 = vor.u32 %v2848_v17, %v2845_v43  ;;  %v7422_v51 = vrot.slane %v6521_v15, 1 }
 0x118   : > { %v613_v7 = vmax.f32 %v544_v57, 0.0  ;;  %v1001_v4 = vpack.c.bf16 %v968_v38, %v968_v38  ;;  %v1333_v9 = vpack.c.bf16 %v1300_v55, %v1300_v55 }
 0x119   : > { %v7413_v11 = vor.u32 %v1765_v56, %v1762_v1  ;;  %v2858_v54 = vsel %vm2790_vm2, %v2849_v39, %v7415_v26 }
 0x11a   : > { %v645_v19 = vpack.c.bf16 %v613_v7, %v613_v7  ;;  %v6440_v21 = vpack.c.bf16 %v613_v7, %v612_v33  ;;  %v1609_v22 = vunpack.c.l.b16 %v1001_v4  ;;  %v2031_v62 = vunpack.c.l.b16 %v1333_v9 }
 0x11b   : > { %v1767_v2 = vsel %vm1732_vm1, %v7373_v53, %v7413_v11  ;;  %v7436_v9 = vsel %vm864_vm0, %v7386_v29, %v880_v47 }
 0x11c   : > { %6633 = vst [vmem:[#allocation2 + $0x28] sm:$0xff] %v6440_v21   ;;  %v2115_v28 = vunpack.c.l.b16 %v645_v19  ;;  %v2919_v30 = vshrl.u32 %v1767_v2, 16  ;;  %v2922_v31 = vshll.u32 %v1767_v2, 16  ;;  %v1638_v32 = vpack.c.b16 %v1609_v22, %v1608_v45 }
 0x11d   : > { %v546_v34 = vpop.f32.mrf.mxu0  ;;  %v2061_v37 = vpack.c.b16 %v2031_v62, %v2030_v27  ;;  %10181 = vst [vmem:[#allocation31_spill] sm:$0xff] %v7436_v9  ;;  %v7440_v45 = vsel %vm864_vm0, %v880_v47, %v7422_v51 }
 0x11e   : > { %v7420_v33 = vpack.c.b16 %v2115_v28, %v2114_v25  ;;  %v2921_v49 = vrot.slane %v2919_v30, 3  ;;  %v2924_v6 = vrot.slane %v2922_v31, 4  ;;  %v547_v52 = vadd.f32 %v7265_v58, %v546_v34  ;;  %10182 = vst [vmem:[#allocation32_spill] sm:$0xff] %v7440_v45 }
 0x11f   : > { %v3026_v57 = vshrl.u32 %v1638_v32, 16  ;;  %v3029_v59 = vshll.u32 %v1638_v32, 16  ;;  %v2972_v55 = vshrl.u32 %v2061_v37, 16  ;;  %v2975_v36 = vshll.u32 %v2061_v37, 16 }
 0x120   : > { %4882 = vmatmul.bf16.vlgmr.msrb.gmra.mxu0 %v2858_v54  ;;  %v7427_v38 = vor.u32 %v2924_v6, %v2921_v49  ;;  %v614_v56 = vmax.f32 %v547_v52, 0.0 }
 0x121   : > { %v3028_v43 = vrot.slane %v3026_v57, 3  ;;  %v3031_v61 = vrot.slane %v3029_v59, 4  ;;  %v2974_v14 = vrot.slane %v2972_v55, 3  ;;  %v2977_v62 = vrot.slane %v2975_v36, 4  ;;  %v7462_v59 = vld [vmem:[#allocation6 + $0x80] sm:$0xff]  }
 0x122   : > { %10180 = vst [vmem:[#allocation30_spill] sm:$0xff] %v7427_v38  ;;  %v3034_v1 = vsel %vm2790_vm2, %v7388_v50, %v7427_v38  ;;  %v6524_v50 = vunpack.c.l.bf16 %v6650_v63  ;;  %v646_v31 = vpack.c.bf16 %v614_v56, %v614_v56  ;;  %v6525_v57 = vunpack.c.h.bf16 %v6650_v63 }
 0x123   : > { %4714 = vmatmul.bf16.gmra.mxu2 %v3034_v1  ;;  %v7432_v7 = vor.u32 %v3031_v61, %v3028_v43  ;;  %v6327_v17 = vld [vmem:[#allocation2 + $0x28] sm:$0xff]  ;;  %v7458_v6 = vor.u32 %v2977_v62, %v2974_v14  ;;  %v6568_v63 = vunpack.c.l.bf16 %v7462_v59 }
 0x124   : > { %v710_v4 = vld [vmem:[#allocation2 + $0x24] sm:$0xff]   ;;  %v1769_v25 = vshrl.u32 %v6327_v17, 16  ;;  %v1772_v2 = vshll.u32 %v6327_v17, 16  ;;  %v2116_v1 = vunpack.c.l.b16 %v646_v31  ;;  %v7470_v31 = vrot.slane %v6525_v57, 1 }
 0x125   : > { %v7442_v15 = vunpack.c.l.bf16 %v710_v4  ;;  %v7444_v19 = vunpack.c.h.bf16 %v710_v4  ;;  %v548_v21 = vpop.f32.mrf.mxu0  ;;  %v3033_v22 = vsel %vm2790_vm2, %v7397_v41, %v7432_v7  ;;  %v7479_v57 = vrot.slane %v6568_v63, 7 }
 0x126   : > { %v549_v29 = vadd.f32 %v7265_v58, %v548_v21  ;;  %4625 = vmatmul.bf16.gmra.mxu1 %v3033_v22  ;;  %v1771_v32 = vrot.slane %v1769_v25, 4  ;;  %v1774_v34 = vrot.slane %v1772_v2, 5 }
 0x127   : > { %10183 = vst [vmem:[#allocation33_spill] sm:$0xff] %v7442_v15  ;;  %v969_v27 = vmul.f32 %v7436_v9, %v7442_v15  ;;  %v970_v28 = vmul.f32 %v7440_v45, %v7444_v19  ;;  %v1301_v30 = vmul.f32 %v7381_v12, %v7442_v15  ;;  %v1302_v41 = vmul.f32 %v7401_v40, %v7444_v19  ;;  %v7517_v40 = vld [vmem:[#allocation6 + $0x88] sm:$0xff]  }
 0x128   : > { %v615_v39 = vmax.f32 %v549_v29, 0.0  ;;  %v7460_v52 = vor.u32 %v1774_v34, %v1771_v32  ;;  %v2979_v32 = vsel %vm2790_vm2, %v7415_v26, %v7458_v6  ;;  %10184 = vst [vmem:[#allocation34_spill] sm:$0xff] %v7479_v57 }
 0x129   : > { %v1002_v37 = vpack.c.bf16 %v969_v27, %v969_v27  ;;  %v1003_v47 = vpack.c.bf16 %v970_v28, %v970_v28  ;;  %v1334_v49 = vpack.c.bf16 %v1301_v30, %v1301_v30  ;;  %v1335_v54 = vpack.c.bf16 %v1302_v41, %v1302_v41 }
 0x12a   : > { %v647_v55 = vpack.c.bf16 %v615_v39, %v615_v39  ;;  %v6445_v43 = vpack.c.bf16 %v615_v39, %v614_v56  ;;  %v1776_v17 = vsel %vm1732_vm1, %v7413_v11, %v7460_v52  ;;  %v884_v27 = vrot.slane %v6524_v50, 1 }
 0x12b   : > { %v1610_v61 = vunpack.c.l.b16 %v1002_v37  ;;  %v1611_v36 = vunpack.c.l.b16 %v1003_v47  ;;  %v2032_v4 = vunpack.c.l.b16 %v1334_v49  ;;  %v2033_v21 = vunpack.c.l.b16 %v1335_v54  ;;  %v6651_v54 = vld [vmem:[#allocation6 + $0x30] sm:$0xff]  }
 0x12c   : > { %6634 = vst [vmem:[#allocation2 + $0x30] sm:$0xff] %v6445_v43   ;;  %v2117_v14 = vunpack.c.l.b16 %v647_v55  ;;  %v3008_v22 = vshrl.u32 %v1776_v17, 16  ;;  %v3011_v62 = vshll.u32 %v1776_v17, 16  ;;  %v6569_v55 = vunpack.c.h.bf16 %v7462_v59 }
 0x12d   : > { %v1639_v25 = vpack.c.b16 %v1611_v36, %v1610_v61  ;;  %v551_v2 = vpop.f32.mrf.mxu0  ;;  %v2062_v29 = vpack.c.b16 %v2033_v21, %v2032_v4  ;;  %v7491_v17 = vsel %vm864_vm0, %v7422_v51, %v884_v27  ;;  %v7495_v59 = vsel %vm864_vm0, %v884_v27, %v7470_v31 }
 0x12e   : > { %v7468_v56 = vpack.c.b16 %v2117_v14, %v2116_v1  ;;  %v3010_v28 = vrot.slane %v3008_v22, 3  ;;  %v3013_v30 = vrot.slane %v3011_v62, 4  ;;  %v552_v11 = vadd.f32 %v7265_v58, %v551_v2  ;;  %10186 = vst [vmem:[#allocation36_spill] sm:$0xff] %v7491_v17 }
 0x12f   : > { %v3099_v34 = vshrl.u32 %v1639_v25, 16  ;;  %v3102_v41 = vshll.u32 %v1639_v25, 16  ;;  %v3045_v37 = vshrl.u32 %v2062_v29, 16  ;;  %v3048_v49 = vshll.u32 %v2062_v29, 16  ;;  %10187 = vst [vmem:[#allocation37_spill] sm:$0xff] %v7495_v59 }
 0x130   : > { %4887 = vmatmul.bf16.gmra.mxu0 %v2979_v32  ;;  %v7476_v39 = vor.u32 %v3013_v30, %v3010_v28  ;;  %v616_v26 = vmax.f32 %v552_v11, 0.0  ;;  %v6528_v22 = vunpack.c.l.bf16 %v6651_v54 }
 0x131   : > { %v3101_v47 = vrot.slane %v3099_v34, 3  ;;  %v3104_v50 = vrot.slane %v3102_v41, 4  ;;  %v3047_v4 = vrot.slane %v3045_v37, 3  ;;  %v3050_v63 = vrot.slane %v3048_v49, 4 }
 0x132   : > { %v7484_v43 = vsel %vm2790_vm2, %v7427_v38, %v7476_v39  ;;  %v648_v11 = vpack.c.bf16 %v616_v26, %v616_v26 }
 0x133   : > { %10185 = vst [vmem:[#allocation35_spill] sm:$0xff] %v7484_v43  ;;  %4719 = vmatmul.bf16.gmra.mxu2 %v7484_v43  ;;  %v7487_v61 = vor.u32 %v3104_v50, %v3101_v47  ;;  %v6328_v36 = vld [vmem:[#allocation2 + $0x30] sm:$0xff]  ;;  %v7513_v49 = vor.u32 %v3050_v63, %v3047_v4 }
 0x134   : > { %v712_v1 = vld [vmem:[#allocation2 + $0x2c] sm:$0xff]   ;;  %v1778_v2 = vshrl.u32 %v6328_v36, 16  ;;  %v1781_v29 = vshll.u32 %v6328_v36, 16 }
 0x135   : > { %v7497_v21 = vunpack.c.l.bf16 %v712_v1  ;;  %v7499_v14 = vunpack.c.h.bf16 %v712_v1  ;;  %v553_v62 = vpop.f32.mrf.mxu0  ;;  %v3106_v25 = vsel %vm2790_vm2, %v7432_v7, %v7487_v61 }
 0x136   : > { %v554_v51 = vadd.f32 %v7265_v58, %v553_v62  ;;  %4630 = vmatmul.bf16.gmra.mxu1 %v3106_v25  ;;  %v1780_v32 = vrot.slane %v1778_v2, 4  ;;  %v1783_v34 = vrot.slane %v1781_v29, 5  ;;  %v6529_v62 = vunpack.c.h.bf16 %v6651_v54 }
 0x137   : > { %v971_v27 = vmul.f32 %v7491_v17, %v7497_v21  ;;  %v972_v28 = vmul.f32 %v7495_v59, %v7499_v14  ;;  %v1303_v30 = vmul.f32 %v7436_v9, %v7497_v21  ;;  %v1304_v7 = vmul.f32 %v7440_v45, %v7499_v14 }
 0x138   : > { %v617_v41 = vmax.f32 %v554_v51, 0.0  ;;  %v7515_v36 = vor.u32 %v1783_v34, %v1780_v32  ;;  %v2118_v2 = vunpack.c.l.b16 %v648_v11  ;;  %v7522_v32 = vrot.slane %v6569_v55, 7 }
 0x139   : > { %v1004_v37 = vpack.c.bf16 %v971_v27, %v971_v27  ;;  %v1005_v47 = vpack.c.bf16 %v972_v28, %v972_v28  ;;  %v1336_v50 = vpack.c.bf16 %v1303_v30, %v1303_v30  ;;  %v1337_v1 = vpack.c.bf16 %v1304_v7, %v1304_v7 }
 0x13a   : > { %v649_v25 = vpack.c.bf16 %v617_v41, %v617_v41  ;;  %v6450_v35 = vpack.c.bf16 %v617_v41, %v616_v26  ;;  %v1785_v29 = vsel %vm1732_vm1, %v7460_v52, %v7515_v36  ;;  %v888_v34 = vrot.slane %v6528_v22, 1 }
 0x13b   : > { %v1612_v18 = vunpack.c.l.b16 %v1004_v37  ;;  %v1613_v9 = vunpack.c.l.b16 %v1005_v47  ;;  %v2034_v51 = vunpack.c.l.b16 %v1336_v50  ;;  %v2035_v27 = vunpack.c.l.b16 %v1337_v1 }
 0x13c   : > { %6635 = vst [vmem:[#allocation2 + $0x38] sm:$0xff] %v6450_v35   ;;  %v2119_v4 = vunpack.c.l.b16 %v649_v25  ;;  %v3081_v63 = vshrl.u32 %v1785_v29, 16  ;;  %v3084_v28 = vshll.u32 %v1785_v29, 16  ;;  %v6572_v7 = vunpack.c.l.bf16 %v7517_v40 }
 0x13d   : > { %v1640_v30 = vpack.c.b16 %v1613_v9, %v1612_v18  ;;  %v556_v54 = vpop.f32.mrf.mxu0  ;;  %v2063_v26 = vpack.c.b16 %v2035_v27, %v2034_v51  ;;  %v7527_v47 = vrot.slane %v6529_v62, 1  ;;  %v3052_v35 = vsel %vm2790_vm2, %v7458_v6, %v7513_v49 }
 0x13e   : > { %v7525_v41 = vpack.c.b16 %v2119_v4, %v2118_v2  ;;  %v3083_v11 = vrot.slane %v3081_v63, 3  ;;  %v3086_v37 = vrot.slane %v3084_v28, 4  ;;  %v557_v52 = vadd.f32 %v7265_v58, %v556_v54  ;;  %v6652_v2 = vld [vmem:[#allocation6 + $0x38] sm:$0xff]  }
 0x13f   : > { %v3171_v18 = vshrl.u32 %v1640_v30, 16  ;;  %v3174_v9 = vshll.u32 %v1640_v30, 16  ;;  %v3117_v22 = vshrl.u32 %v2063_v26, 16  ;;  %v3120_v25 = vshll.u32 %v2063_v26, 16 }
 0x140   : > { %4892 = vmatmul.bf16.gmra.mxu0 %v3052_v35  ;;  %v7533_v55 = vor.u32 %v3086_v37, %v3083_v11  ;;  %v7538_v62 = vsel %vm1126_vm3, %v7479_v57, %v7522_v32  ;;  %v7546_v51 = vrot.slane %v6572_v7, 7  ;;  %v618_v27 = vmax.f32 %v557_v52, 0.0 }
 0x141   : > { %v3173_v50 = vrot.slane %v3171_v18, 3  ;;  %v3176_v1 = vrot.slane %v3174_v9, 4  ;;  %10188 = vst [vmem:[#allocation38_spill] sm:$0xff] %v7538_v62  ;;  %v7553_v30 = vsel %vm864_vm0, %v7470_v31, %v888_v34  ;;  %v7557_v54 = vsel %vm864_vm0, %v888_v34, %v7527_v47 }
 0x142   : > { %v7543_v29 = vsel %vm2790_vm2, %v7476_v39, %v7533_v55  ;;  %10190 = vst [vmem:[#allocation40_spill] sm:$0xff] %v7553_v30  ;;  %v3119_v39 = vrot.slane %v3117_v22, 3  ;;  %v6532_v11 = vunpack.c.l.bf16 %v6652_v2  ;;  %v3122_v35 = vrot.slane %v3120_v25, 4 }
 0x143   : > { %10189 = vst [vmem:[#allocation39_spill] sm:$0xff] %v7543_v29  ;;  %4724 = vmatmul.bf16.gmra.mxu2 %v7543_v29  ;;  %v7549_v4 = vor.u32 %v3176_v1, %v3173_v50  ;;  %v6329_v63 = vld [vmem:[#allocation2 + $0x38] sm:$0xff]  ;;  %v650_v1 = vpack.c.bf16 %v618_v27, %v618_v27  ;;  %v6533_v10 = vunpack.c.h.bf16 %v6652_v2 }
 0x144   : > { %v714_v28 = vld [vmem:[#allocation2 + $0x34] sm:$0xff]   ;;  %10191 = vst [vmem:[#allocation41_spill] sm:$0xff] %v7557_v54  ;;  %v1787_v18 = vshrl.u32 %v6329_v63, 16  ;;  %v1790_v9 = vshll.u32 %v6329_v63, 16 }
 0x145   : > { %v7559_v26 = vunpack.c.l.bf16 %v714_v28  ;;  %v7561_v7 = vunpack.c.h.bf16 %v714_v28  ;;  %v558_v37 = vpop.f32.mrf.mxu0  ;;  %v3178_v52 = vsel %vm2790_vm2, %v7487_v61, %v7549_v4 }
 0x146   : > { %v559_v31 = vadd.f32 %v7265_v58, %v558_v37  ;;  %4635 = vmatmul.bf16.gmra.mxu1 %v3178_v52  ;;  %v1789_v28 = vrot.slane %v1787_v18, 4  ;;  %v1792_v6 = vrot.slane %v1790_v9, 5  ;;  %v7575_v52 = vor.u32 %v3122_v35, %v3119_v39 }
 0x147   : > { %10192 = vst [vmem:[#allocation42_spill] sm:$0xff] %v7559_v26  ;;  %v973_v34 = vmul.f32 %v7553_v30, %v7559_v26  ;;  %v974_v22 = vmul.f32 %v7557_v54, %v7561_v7  ;;  %v1305_v50 = vmul.f32 %v7491_v17, %v7559_v26  ;;  %v1306_v61 = vmul.f32 %v7495_v59, %v7561_v7 }
 0x148   : > { %10193 = vst [vmem:[#allocation43_spill] sm:$0xff] %v7561_v7  ;;  %v619_v25 = vmax.f32 %v559_v31, 0.0  ;;  %v7577_v12 = vor.u32 %v1792_v6, %v1789_v28  ;;  %v2120_v18 = vunpack.c.l.b16 %v650_v1  ;;  %v3124_v2 = vsel %vm2790_vm2, %v7513_v49, %v7575_v52  ;;  %v7593_v49 = vld [vmem:[#allocation6 + $0x40] sm:$0xff]  }
 0x149   : > { %v1006_v63 = vpack.c.bf16 %v973_v34, %v973_v34  ;;  %v1007_v45 = vpack.c.bf16 %v974_v22, %v974_v22  ;;  %v1338_v37 = vpack.c.bf16 %v1305_v50, %v1305_v50  ;;  %v1339_v23 = vpack.c.bf16 %v1306_v61, %v1306_v61 }
 0x14a   : > { %v651_v20 = vpack.c.bf16 %v619_v25, %v619_v25  ;;  %v6455_v46 = vpack.c.bf16 %v619_v25, %v618_v27  ;;  %v1794_v9 = vsel %vm1732_vm1, %v7515_v36, %v7577_v12  ;;  %v892_v28 = vrot.slane %v6532_v11, 1 }
 0x14b   : > { %v1614_v17 = vunpack.c.l.b16 %v1006_v63  ;;  %v1615_v3 = vunpack.c.l.b16 %v1007_v45  ;;  %v2036_v31 = vunpack.c.l.b16 %v1338_v37  ;;  %v2037_v34 = vunpack.c.l.b16 %v1339_v23 }
 0x14c   : > { %6636 = vst [vmem:[#allocation2 + $0x40] sm:$0xff] %v6455_v46   ;;  %v2121_v22 = vunpack.c.l.b16 %v651_v20  ;;  %v3153_v39 = vshrl.u32 %v1794_v9, 16  ;;  %v3156_v35 = vshll.u32 %v1794_v9, 16  ;;  %v7585_v45 = vrot.slane %v6533_v10, 1 }
 0x14d   : > { %v1641_v6 = vpack.c.b16 %v1615_v3, %v1614_v17  ;;  %v561_v50 = vpop.f32.mrf.mxu0  ;;  %v2064_v27 = vpack.c.b16 %v2037_v34, %v2036_v31  ;;  %v10194_v10 = vunpack.c.h.bf16 %v7517_v40 }
 0x14e   : > { %v7587_v1 = vpack.c.b16 %v2121_v22, %v2120_v18  ;;  %v562_v36 = vadd.f32 %v7265_v58, %v561_v50  ;;  %v3155_v61 = vrot.slane %v3153_v39, 3  ;;  %v3158_v23 = vrot.slane %v3156_v35, 4 }
 0x14f   : > { %v3243_v46 = vshrl.u32 %v1641_v6, 16  ;;  %v3246_v20 = vshll.u32 %v1641_v6, 16  ;;  %v3189_v25 = vshrl.u32 %v2064_v27, 16  ;;  %v3192_v63 = vshll.u32 %v2064_v27, 16 }
 0x150   : > { %v620_v17 = vmax.f32 %v562_v36, 0.0  ;;  %4897 = vmatmul.bf16.gmra.mxu0 %v3124_v2  ;;  %v7591_v37 = vor.u32 %v3158_v23, %v3155_v61  ;;  %v7597_v11 = vrot.slane %v10194_v10, 7  ;;  %v7607_v35 = vmul.f32 %v7479_v57, %v7312_v5  ;;  %v7626_v23 = vld [vmem:[%s9993_s3] ss:$0 sm:$0xff] }
 0x151   : > { %v3245_v18 = vrot.slane %v3243_v46, 3  ;;  %v3248_v58 = vrot.slane %v3246_v20, 4  ;;  %v3191_v9 = vrot.slane %v3189_v25, 3  ;;  %v3194_v31 = vrot.slane %v3192_v63, 4 }
 0x152   : > { %v652_v22 = vpack.c.bf16 %v620_v17, %v620_v17  ;;  %v7603_v39 = vsel %vm2790_vm2, %v7533_v55, %v7591_v37  ;;  %v7614_v2 = vsel %vm864_vm0, %v7527_v47, %v892_v28  ;;  %v7618_v27 = vsel %vm864_vm0, %v892_v28, %v7585_v45  ;;  %v588_v55 = vpop.f32.mrf.mxu3 }
 0x153   : > { %10195 = vst [vmem:[#allocation44_spill] sm:$0xff] %v7603_v39  ;;  %4729 = vmatmul.bf16.gmra.mxu2 %v7603_v39  ;;  %v7610_v40 = vor.u32 %v3248_v58, %v3245_v18  ;;  %v6330_v6 = vld [vmem:[#allocation2 + $0x40] sm:$0xff]  ;;  %v6536_v36 = vunpack.c.l.bf16 %v7593_v49  ;;  %v7621_v61 = vor.u32 %v3194_v31, %v3191_v9  ;;  %v587_v46 = vadd.f32 %v7626_v23, %v586_v16 }
 0x154   : > { %v716_v50 = vld [vmem:[#allocation2 + $0x3c] sm:$0xff]   ;;  %10196 = vst [vmem:[#allocation45_spill] sm:$0xff] %v7614_v2  ;;  %v6537_v47 = vunpack.c.h.bf16 %v7593_v49  ;;  %v2122_v25 = vunpack.c.l.b16 %v652_v22  ;;  %v1796_v10 = vshrl.u32 %v6330_v6, 16  ;;  %v1799_v18 = vshll.u32 %v6330_v6, 16 }
 0x155   : > { %10197 = vst [vmem:[#allocation46_spill] sm:$0xff] %v7618_v27  ;;  %v7629_v20 = vunpack.c.l.bf16 %v716_v50  ;;  %v563_v63 = vpop.f32.mrf.mxu0  ;;  %v3250_v28 = vsel %vm2790_vm2, %v7549_v4, %v7610_v40  ;;  %v630_v9 = vmax.f32 %v587_v46, 0.0  ;;  %v7636_v31 = vunpack.c.h.bf16 %v716_v50 }
 0x156   : > { %v564_v58 = vadd.f32 %v7626_v23, %v563_v63  ;;  %4640 = vmatmul.bf16.gmra.mxu1 %v3250_v28  ;;  %v1798_v34 = vrot.slane %v1796_v10, 4  ;;  %v1801_v3 = vrot.slane %v1799_v18, 5  ;;  %v589_v49 = vadd.f32 %v7626_v23, %v588_v55 }
 0x157   : > { %10198 = vst [vmem:[#allocation47_spill] sm:$0xff] %v7629_v20  ;;  %v975_v16 = vmul.f32 %v7614_v2, %v7629_v20  ;;  %v1307_v22 = vmul.f32 %v7553_v30, %v7629_v20  ;;  %v662_v4 = vpack.c.bf16 %v630_v9, %v630_v9  ;;  %v976_v6 = vmul.f32 %v7618_v27, %v7636_v31 }
 0x158   : > { %10199 = vst [vmem:[#allocation48_spill] sm:$0xff] %v7636_v31  ;;  %v621_v59 = vmax.f32 %v564_v58, 0.0  ;;  %v7645_v28 = vor.u32 %v1801_v3, %v1798_v34  ;;  %v631_v50 = vmax.f32 %v589_v49, 0.0  ;;  %v1308_v46 = vmul.f32 %v7557_v54, %v7636_v31 }
 0x159   : > { %v1008_v63 = vpack.c.bf16 %v975_v16, %v975_v16  ;;  %v1340_v39 = vpack.c.bf16 %v1307_v22, %v1307_v22  ;;  %v2132_v29 = vunpack.c.l.b16 %v662_v4  ;;  %v1009_v55 = vpack.c.bf16 %v976_v6, %v976_v6 }
 0x15a   : > { %v653_v10 = vpack.c.bf16 %v621_v59, %v621_v59  ;;  %v6460_v18 = vpack.c.bf16 %v621_v59, %v620_v17  ;;  %v1803_v58 = vsel %vm1732_vm1, %v7577_v12, %v7645_v28  ;;  %v663_v43 = vpack.c.bf16 %v631_v50, %v631_v50  ;;  %v591_v53 = vpop.f32.mrf.mxu3 }
 0x15b   : > { %v1616_v30 = vunpack.c.l.b16 %v1008_v63  ;;  %v6485_v38 = vpack.c.bf16 %v631_v50, %v630_v9  ;;  %v3225_v3 = vshrl.u32 %v1803_v58, 16  ;;  %v3228_v34 = vshll.u32 %v1803_v58, 16 }
 0x15c   : > { %6637 = vst [vmem:[#allocation2 + $0x48] sm:$0xff] %v6460_v18   ;;  %v2123_v16 = vunpack.c.l.b16 %v653_v10  ;;  %v1617_v49 = vunpack.c.l.b16 %v1009_v55  ;;  %v2133_v54 = vunpack.c.l.b16 %v663_v43  ;;  %v1341_v22 = vpack.c.bf16 %v1308_v46, %v1308_v46 }
 0x15d   : > { %v566_v5 = vpop.f32.mrf.mxu0  ;;  %6642 = vst [vmem:[#allocation2 + $0x70] sm:$0xff] %v6485_v38   ;;  %v896_v59 = vrot.slane %v6536_v36, 1  ;;  %v7654_v17 = vmul.f32 %v7538_v62, %v7333_v44  ;;  %v3227_v9 = vrot.slane %v3225_v3, 3  ;;  %v3230_v6 = vrot.slane %v3228_v34, 4 }
 0x15e   : > { %v7656_v4 = vpack.c.b16 %v2123_v16, %v2122_v25  ;;  %v567_v12 = vadd.f32 %v7626_v23, %v566_v5  ;;  %v3196_v63 = vsel %vm2790_vm2, %v7575_v52, %v7621_v61  ;;  %v1642_v50 = vpack.c.b16 %v1617_v49, %v1616_v30 }
 0x15f   : > { %v7662_v38 = vpack.c.b16 %v2133_v54, %v2132_v29  ;;  %v7664_v43 = vrot.slane %v6537_v47, 1  ;;  %v7666_v46 = vor.u32 %v3230_v6, %v3227_v9  ;;  %v2038_v10 = vunpack.c.l.b16 %v1340_v39 }
 0x160   : > { %10200 = vst [vmem:[#allocation49_spill] sm:$0xff] %v7656_v4  ;;  %v622_v36 = vmax.f32 %v567_v12, 0.0  ;;  %4902 = vmatmul.bf16.gmra.mxu0 %v3196_v63  ;;  %v2039_v25 = vunpack.c.l.b16 %v1341_v22  ;;  %v10202_v18 = vshrl.u32 %v7299_v48, 16  ;;  %v10203_v55 = vshll.u32 %v7299_v48, 16  ;;  %v6380_v63 = vld [vmem:[#allocation9 + $0x138] sm:$0xff] }
 0x161   : > { %10201 = vst [vmem:[#allocation50_spill] sm:$0xff] %v7662_v38  ;;  %v3315_v52 = vshrl.u32 %v1642_v50, 16  ;;  %v3318_v30 = vshll.u32 %v1642_v50, 16  ;;  %v7679_v54 = vsel %vm2790_vm2, %v7591_v37, %v7666_v46  ;;  %v2168_v48 = vshll.u32 %v7336_v60, 16  ;;  %4963 = vmatpush.bf16.msrb.mxu1 %v6380_v63 }
 0x162   : > { %v7670_v5 = vrot.slane %v10202_v18, 4  ;;  %v7674_v58 = vrot.slane %v10203_v55, 5  ;;  %v654_v29 = vpack.c.bf16 %v622_v36, %v622_v36  ;;  %10204 = vst [vmem:[#allocation51_spill] sm:$0xff] %v7679_v54  ;;  %v2065_v22 = vpack.c.b16 %v2039_v25, %v2038_v10 }
 0x163   : > { %4734 = vmatmul.bf16.gmra.mxu2 %v7679_v54  ;;  %v3317_v3 = vrot.slane %v3315_v52, 3  ;;  %v3320_v34 = vrot.slane %v3318_v30, 4  ;;  %v6331_v49 = vld [vmem:[#allocation2 + $0x48] sm:$0xff]  ;;  %v592_v12 = vadd.f32 %v7626_v23, %v591_v53  ;;  %v7691_v9 = vsel %vm864_vm0, %v7585_v45, %v896_v59 }
 0x164   : > { %v718_v37 = vld [vmem:[#allocation2 + $0x44] sm:$0xff]   ;;  %10205 = vst [vmem:[#allocation52_spill] sm:$0xff] %v7691_v9  ;;  %v7695_v6 = vsel %vm864_vm0, %v896_v59, %v7664_v43  ;;  %v2124_v50 = vunpack.c.l.b16 %v654_v29  ;;  %v1805_v52 = vshrl.u32 %v6331_v49, 16  ;;  %v1808_v30 = vshll.u32 %v6331_v49, 16  ;;  %v593_v29 = vpop.f32.mrf.mxu3 }
 0x165   : > { %10206 = vst [vmem:[#allocation53_spill] sm:$0xff] %v7695_v6  ;;  %v568_v18 = vpop.f32.mrf.mxu0  ;;  %v7697_v55 = vor.u32 %v3320_v34, %v3317_v3  ;;  %v3261_v25 = vshrl.u32 %v2065_v22, 16  ;;  %v3264_v53 = vshll.u32 %v2065_v22, 16  ;;  %v632_v47 = vmax.f32 %v592_v12, 0.0 }
 0x166   : > { %v569_v10 = vadd.f32 %v7626_v23, %v568_v18  ;;  %v1807_v39 = vrot.slane %v1805_v52, 4  ;;  %v1810_v59 = vrot.slane %v1808_v30, 5  ;;  %v7703_v16 = vunpack.c.l.bf16 %v718_v37 }
 0x167   : > { %v3322_v45 = vsel %vm2790_vm2, %v7610_v40, %v7697_v55  ;;  %v3263_v3 = vrot.slane %v3261_v25, 3  ;;  %v3266_v34 = vrot.slane %v3264_v53, 4  ;;  %v664_v49 = vpack.c.bf16 %v632_v47, %v632_v47 }
 0x168   : > { %10207 = vst [vmem:[#allocation54_spill] sm:$0xff] %v7703_v16  ;;  %v623_v54 = vmax.f32 %v569_v10, 0.0  ;;  %4645 = vmatmul.bf16.gmra.mxu1 %v3322_v45  ;;  %v7705_v38 = vor.u32 %v1810_v59, %v1807_v39  ;;  %v7707_v18 = vunpack.c.h.bf16 %v718_v37  ;;  %v977_v22 = vmul.f32 %v7691_v9, %v7703_v16 }
 0x169   : > { %v594_v12 = vadd.f32 %v7626_v23, %v593_v29  ;;  %v7712_v52 = vor.u32 %v3266_v34, %v3263_v3  ;;  %v2134_v30 = vunpack.c.l.b16 %v664_v49 }
 0x16a   : > { %10208 = vst [vmem:[#allocation55_spill] sm:$0xff] %v7707_v18  ;;  %v655_v40 = vpack.c.bf16 %v623_v54, %v623_v54  ;;  %v6465_v63 = vpack.c.bf16 %v623_v54, %v622_v36  ;;  %v1812_v10 = vsel %vm1732_vm1, %v7645_v28, %v7705_v38  ;;  %v978_v39 = vmul.f32 %v7695_v6, %v7707_v18 }
 0x16b   : > { %v1010_v25 = vpack.c.bf16 %v977_v22, %v977_v22  ;;  %v633_v37 = vmax.f32 %v594_v12, 0.0  ;;  %v3268_v45 = vsel %vm2790_vm2, %v7621_v61, %v7712_v52  ;;  %v3297_v59 = vshrl.u32 %v1812_v10, 16 }
 0x16c   : > { %6638 = vst [vmem:[#allocation2 + $0x50] sm:$0xff] %v6465_v63   ;;  %v2125_v53 = vunpack.c.l.b16 %v655_v40  ;;  %v3300_v36 = vshll.u32 %v1812_v10, 16  ;;  %v1011_v29 = vpack.c.bf16 %v978_v39, %v978_v39  ;;  %v1309_v63 = vmul.f32 %v7614_v2, %v7703_v16 }
 0x16d   : > { %v571_v54 = vpop.f32.mrf.mxu0  ;;  %v1618_v3 = vunpack.c.l.b16 %v1010_v25  ;;  %v665_v34 = vpack.c.bf16 %v633_v37, %v633_v37  ;;  %v6490_v49 = vpack.c.bf16 %v633_v37, %v632_v47  ;;  %v3299_v4 = vrot.slane %v3297_v59, 3 }
 0x16e   : > { %v7722_v44 = vpack.c.b16 %v2125_v53, %v2124_v50  ;;  %v572_v28 = vadd.f32 %v7626_v23, %v571_v54  ;;  %v3302_v22 = vrot.slane %v3300_v36, 4  ;;  %v1619_v12 = vunpack.c.l.b16 %v1011_v29  ;;  %v596_v54 = vpop.f32.mrf.mxu3 }
 0x16f   : > { %6643 = vst [vmem:[#allocation2 + $0x78] sm:$0xff] %v6490_v49   ;;  %v2135_v40 = vunpack.c.l.b16 %v665_v34  ;;  %v1310_v61 = vmul.f32 %v7618_v27, %v7707_v18  ;;  %v10210_v10 = vshrl.u32 %v7336_v60, 16  ;;  %v2170_v25 = vrot.slane %v2168_v48, 5  ;;  %v6654_v34 = vld [vmem:[#allocation6 + $0x48] sm:$0xff]  }
 0x170   : > { %10209 = vst [vmem:[#allocation56_spill] sm:$0xff] %v7722_v44  ;;  %v624_v47 = vmax.f32 %v572_v28, 0.0  ;;  %4907 = vmatmul.bf16.gmra.mxu0 %v3268_v45  ;;  %v7731_v50 = vor.u32 %v3302_v22, %v3299_v4  ;;  %v1643_v37 = vpack.c.b16 %v1619_v12, %v1618_v3  ;;  %v1342_v59 = vpack.c.bf16 %v1309_v63, %v1309_v63 }
 0x171   : > { %v2167_v39 = vrot.slane %v10210_v10, 4  ;;  %v7733_v53 = vpack.c.b16 %v2135_v40, %v2134_v30  ;;  %v1343_v36 = vpack.c.bf16 %v1310_v61, %v1310_v61  ;;  %v7743_v60 = vsel %vm1126_vm3, %v7522_v32, %v7546_v51 }
 0x172   : > { %v7738_v29 = vsel %vm2790_vm2, %v7666_v46, %v7731_v50  ;;  %10213 = vst [vmem:[#allocation59_spill] sm:$0xff] %v7743_v60  ;;  %v7748_v4 = vsel %vm1126_vm3, %v7546_v51, %v7597_v11  ;;  %v7752_v48 = vor.u32 %v7674_v58, %v7670_v5  ;;  %v656_v30 = vpack.c.bf16 %v624_v47, %v624_v47 }
 0x173   : > { %10211 = vst [vmem:[#allocation57_spill] sm:$0xff] %v7733_v53  ;;  %4739 = vmatmul.bf16.gmra.mxu2 %v7738_v29  ;;  %v3387_v46 = vshrl.u32 %v1643_v37, 16  ;;  %v3390_v45 = vshll.u32 %v1643_v37, 16  ;;  %v6332_v3 = vld [vmem:[#allocation2 + $0x50] sm:$0xff]  ;;  %v2040_v49 = vunpack.c.l.b16 %v1342_v59  ;;  %v2041_v28 = vunpack.c.l.b16 %v1343_v36 }
 0x174   : > { %10212 = vst [vmem:[#allocation58_spill] sm:$0xff] %v7738_v29  ;;  %v10215_v32 = vpack.c.bf16 %v7607_v35, %v7607_v35  ;;  %v10216_v51 = vpack.c.bf16 %v7654_v17, %v7654_v17  ;;  %v7765_v5 = vor.u32 %v2170_v25, %v2167_v39  ;;  %v6540_v61 = vunpack.c.l.bf16 %v6654_v34  ;;  %v720_v27 = vld [vmem:[#allocation2 + $0x4c] sm:$0xff]  }
 0x175   : > { %10214 = vst [vmem:[#allocation60_spill] sm:$0xff] %v7748_v4  ;;  %v573_v58 = vpop.f32.mrf.mxu0  ;;  %v3389_v40 = vrot.slane %v3387_v46, 3  ;;  %v3392_v63 = vrot.slane %v3390_v45, 4  ;;  %v2066_v37 = vpack.c.b16 %v2041_v28, %v2040_v49  ;;  %v1814_v59 = vshrl.u32 %v6332_v3, 16 }
 0x176   : > { %v7758_v22 = vunpack.c.l.b16 %v10215_v32  ;;  %v7763_v12 = vunpack.c.l.b16 %v10216_v51  ;;  %v574_v10 = vadd.f32 %v7626_v23, %v573_v58  ;;  %v1817_v36 = vshll.u32 %v6332_v3, 16 }
 0x177   : > { %v2126_v35 = vunpack.c.l.b16 %v656_v30  ;;  %v7768_v32 = vor.u32 %v3392_v63, %v3389_v40  ;;  %v597_v2 = vadd.f32 %v7626_v23, %v596_v54  ;;  %v6541_v17 = vunpack.c.h.bf16 %v6654_v34 }
 0x178   : > { %v625_v51 = vmax.f32 %v574_v10, 0.0  ;;  %v3333_v29 = vshrl.u32 %v2066_v37, 16  ;;  %v3336_v39 = vshll.u32 %v2066_v37, 16  ;;  %v1816_v25 = vrot.slane %v1814_v59, 4  ;;  %v598_v37 = vpop.f32.mrf.mxu3 }
 0x179   : > { %v3394_v46 = vsel %vm2790_vm2, %v7697_v55, %v7768_v32  ;;  %v1819_v45 = vrot.slane %v1817_v36, 5  ;;  %v634_v58 = vmax.f32 %v597_v2, 0.0  ;;  %v7774_v49 = vunpack.c.l.bf16 %v720_v27 }
 0x17a   : > { %v657_v3 = vpack.c.bf16 %v625_v51, %v625_v51  ;;  %v6470_v28 = vpack.c.bf16 %v625_v51, %v624_v47  ;;  %4650 = vmatmul.bf16.gmra.mxu1 %v3394_v46  ;;  %v3335_v30 = vrot.slane %v3333_v29, 3  ;;  %v3338_v40 = vrot.slane %v3336_v39, 4 }
 0x17b   : > { %10217 = vst [vmem:[#allocation61_spill] sm:$0xff] %v7774_v49  ;;  %v7776_v63 = vor.u32 %v1819_v45, %v1816_v25  ;;  %v7778_v54 = vunpack.c.h.bf16 %v720_v27  ;;  %v900_v34 = vrot.slane %v6540_v61, 1  ;;  %v7780_v10 = vrot.slane %v6541_v17, 1 }
 0x17c   : > { %6639 = vst [vmem:[#allocation2 + $0x58] sm:$0xff] %v6470_v28   ;;  %v2127_v59 = vunpack.c.l.b16 %v657_v3  ;;  %v7782_v55 = vor.u32 %v3338_v40, %v3335_v30  ;;  %v666_v2 = vpack.c.bf16 %v634_v58, %v634_v58  ;;  %v599_v36 = vadd.f32 %v7626_v23, %v598_v37 }
 0x17d   : > { %10218 = vst [vmem:[#allocation62_spill] sm:$0xff] %v7778_v54  ;;  %v576_v53 = vpop.f32.mrf.mxu0  ;;  %v1821_v47 = vsel %vm1732_vm1, %v7705_v38, %v7776_v63  ;;  %v7790_v27 = vsel %vm864_vm0, %v7664_v43, %v900_v34  ;;  %v7794_v29 = vsel %vm864_vm0, %v900_v34, %v7780_v10  ;;  %v1365_v61 = vmul.f32 %v7743_v60, %v7361_v24 }
 0x17e   : > { %10219 = vst [vmem:[#allocation63_spill] sm:$0xff] %v7790_v27  ;;  %v7798_v17 = vpack.c.b16 %v2127_v59, %v2126_v35  ;;  %v3340_v51 = vsel %vm2790_vm2, %v7712_v52, %v7782_v55  ;;  %v3369_v39 = vshrl.u32 %v1821_v47, 16  ;;  %v1366_v38 = vmul.f32 %v7748_v4, %v7375_v0  ;;  %v7813_v35 = vld [vmem:[%s9995_s5] ss:$0 sm:$0xff] }
 0x17f   : > { %10220 = vst [vmem:[#allocation64_spill] sm:$0xff] %v7794_v29  ;;  %v3372_v25 = vshll.u32 %v1821_v47, 16  ;;  %v979_v43 = vmul.f32 %v7790_v27, %v7774_v49  ;;  %v980_v46 = vmul.f32 %v7794_v29, %v7778_v54  ;;  %v635_v45 = vmax.f32 %v599_v36, 0.0 }
 0x180   : > { %10221 = vst [vmem:[#allocation65_spill] sm:$0xff] %v7798_v17  ;;  %v577_v3 = vadd.f32 %v7626_v23, %v576_v53  ;;  %4912 = vmatmul.bf16.gmra.mxu0 %v3340_v51  ;;  %v3371_v52 = vrot.slane %v3369_v39, 3  ;;  %v2136_v28 = vunpack.c.l.b16 %v666_v2  ;;  %v1311_v30 = vmul.f32 %v7691_v9, %v7774_v49 }
 0x181   : > { %v3374_v40 = vrot.slane %v3372_v25, 4  ;;  %v1012_v34 = vpack.c.bf16 %v979_v43, %v979_v43  ;;  %v1013_v37 = vpack.c.bf16 %v980_v46, %v980_v46  ;;  %v667_v59 = vpack.c.bf16 %v635_v45, %v635_v45 }
 0x182   : > { %v2174_v47 = vshrl.u32 %v7383_v13, 16  ;;  %v2177_v36 = vshll.u32 %v7383_v13, 16  ;;  %v6495_v53 = vpack.c.bf16 %v635_v45, %v634_v58  ;;  %v1398_v51 = vpack.c.bf16 %v1365_v61, %v1365_v61 }
 0x183   : > { %v4616_v0 = vpop.f32.mrf.mxu1  ;;  %v7819_v24 = vor.u32 %v3374_v40, %v3371_v52  ;;  %v1620_v17 = vunpack.c.l.b16 %v1012_v34  ;;  %v1621_v4 = vunpack.c.l.b16 %v1013_v37  ;;  %v2137_v39 = vunpack.c.l.b16 %v667_v59  ;;  %v6333_v2 = vld [vmem:[#allocation2 + $0x58] sm:$0xff]  ;;  %v6379_v34 = vld [vmem:[#allocation9 + $0x130] sm:$0xff] }
 0x184   : > { %v626_v60 = vmax.f32 %v577_v3, 0.0  ;;  %v4617_v9 = vadd.f32 %v7813_v35, %v4616_v0  ;;  %6644 = vst [vmem:[#allocation2 + $0x80] sm:$0xff] %v6495_v53   ;;  %v1312_v25 = vmul.f32 %v7695_v6, %v7778_v54  ;;  %v1399_v43 = vpack.c.bf16 %v1366_v38, %v1366_v38  ;;  %4964 = vmatpush.bf16.msrb.mxu1 %v6379_v34 }
 0x185   : > { %v7827_v13 = vsel %vm2790_vm2, %v7731_v50, %v7819_v24  ;;  %v578_v58 = vpop.f32.mrf.mxu0  ;;  %v1644_v61 = vpack.c.b16 %v1621_v4, %v1620_v17  ;;  %v7829_v46 = vpack.c.b16 %v2137_v39, %v2136_v28  ;;  %v1344_v45 = vpack.c.bf16 %v1311_v30, %v1311_v30  ;;  %v4705_v0 = vpop.f32.mrf.mxu2 }
 0x186   : > { %10222 = vst [vmem:[#allocation66_spill] sm:$0xff] %v7827_v13  ;;  %4744 = vmatmul.bf16.gmra.mxu2 %v7827_v13  ;;  %v579_v3 = vadd.f32 %v7626_v23, %v578_v58  ;;  %v1345_v52 = vpack.c.bf16 %v1312_v25, %v1312_v25  ;;  %v1823_v40 = vshrl.u32 %v6333_v2, 16  ;;  %v2334_v37 = vunpack.c.l.b16 %v1398_v51  ;;  %v601_v28 = vpop.f32.mrf.mxu3 }
 0x187   : > { %10223 = vst [vmem:[#allocation67_spill] sm:$0xff] %v7829_v46  ;;  %v3459_v38 = vshrl.u32 %v1644_v61, 16  ;;  %v3462_v59 = vshll.u32 %v1644_v61, 16  ;;  %v7833_v53 = vadd.f32 %v4705_v0, %v4617_v9  ;;  %v1826_v50 = vshll.u32 %v6333_v2, 16 }
 0x188   : > { %v658_v6 = vpack.c.bf16 %v626_v60, %v626_v60  ;;  %v627_v54 = vmax.f32 %v579_v3, 0.0  ;;  %v2042_v4 = vunpack.c.l.b16 %v1344_v45  ;;  %v2043_v17 = vunpack.c.l.b16 %v1345_v52  ;;  %v6655_v52 = vld [vmem:[#allocation6 + $0x50] sm:$0xff]  }
 0x189   : > { %10224 = vst [vmem:[#allocation68_spill] sm:$0xff] %v7833_v53  ;;  %v3461_v30 = vrot.slane %v3459_v38, 3  ;;  %v3464_v39 = vrot.slane %v3462_v59, 4  ;;  %v1825_v13 = vrot.slane %v1823_v40, 4  ;;  %v2335_v58 = vunpack.c.l.b16 %v1399_v43 }
 0x18a   : > { %v2176_v46 = vrot.slane %v2174_v47, 4  ;;  %v659_v25 = vpack.c.bf16 %v627_v54, %v627_v54  ;;  %v6475_v49 = vpack.c.bf16 %v627_v54, %v626_v60  ;;  %v2067_v18 = vpack.c.b16 %v2043_v17, %v2042_v4 }
 0x18b   : > { %v2179_v51 = vrot.slane %v2177_v36, 5  ;;  %v7835_v44 = vor.u32 %v3464_v39, %v3461_v30  ;;  %v7837_v9 = vpop.f32.mrf.mxu1  ;;  %v1828_v2 = vrot.slane %v1826_v50, 5  ;;  %v602_v61 = vadd.f32 %v7626_v23, %v601_v28 }
 0x18c   : > { %10225 = vst [vmem:[#allocation69_spill] sm:$0xff] %v7837_v9  ;;  %v2128_v45 = vunpack.c.l.b16 %v658_v6  ;;  %v2129_v3 = vunpack.c.l.b16 %v659_v25  ;;  %v3405_v0 = vshrl.u32 %v2067_v18, 16  ;;  %v2365_v43 = vpack.c.b16 %v7763_v12, %v7758_v22  ;;  %v722_v22 = vld [vmem:[#allocation2 + $0x54] sm:$0xff]   ;;  %v6377_v9 = vld [vmem:[#allocation9 + $0x120] sm:$0xff] }
 0x18d   : > { %6640 = vst [vmem:[#allocation2 + $0x60] sm:$0xff] %v6475_v49   ;;  %v3466_v60 = vsel %vm2790_vm2, %v7768_v32, %v7835_v44  ;;  %v581_v54 = vpop.f32.mrf.mxu0  ;;  %v3408_v47 = vshll.u32 %v2067_v18, 16  ;;  %v7845_v36 = vor.u32 %v1828_v2, %v1825_v13  ;;  %v2366_v40 = vpack.c.b16 %v2335_v58, %v2334_v37  ;;  %v7850_v49 = vpop.f32.mrf.mxu2 }
 0x18e   : > { %v7847_v34 = vpack.c.b16 %v2129_v3, %v2128_v45  ;;  %4655 = vmatmul.bf16.gmra.mxu1 %v3466_v60  ;;  %v582_v6 = vadd.f32 %v7626_v23, %v581_v54  ;;  %10227 = vst [vmem:[#allocation71_spill] sm:$0xff] %v7850_v49  ;;  %v3407_v38 = vrot.slane %v3405_v0, 3  ;;  %v7852_v59 = vmax.f32 %v602_v61, 0.0 }
 0x18f   : > { %v7854_v12 = vor.u32 %v2179_v51, %v2176_v46  ;;  %v3410_v50 = vrot.slane %v3408_v47, 4  ;;  %v1830_v18 = vsel %vm1732_vm1, %v7776_v63, %v7845_v36  ;;  %v6544_v32 = vunpack.c.l.bf16 %v6655_v52  ;;  %v603_v51 = vpop.f32.mrf.mxu3 }
 0x190   : > { %10226 = vst [vmem:[#allocation70_spill] sm:$0xff] %v7847_v34  ;;  %v7859_v13 = vmax.f32 %v582_v6, 0.0  ;;  %v3441_v37 = vshrl.u32 %v1830_v18, 16  ;;  %v668_v4 = vpack.c.bf16 %v7852_v59, %v7852_v59  ;;  %v6545_v17 = vunpack.c.h.bf16 %v6655_v52 }
 0x191   : > { %v2183_v28 = vshrl.u32 %v7420_v33, 16  ;;  %v7864_v30 = vor.u32 %v3410_v50, %v3407_v38  ;;  %v3444_v39 = vshll.u32 %v1830_v18, 16  ;;  %v7866_v46 = vunpack.c.l.bf16 %v722_v22 }
 0x192   : > { %v2186_v58 = vshll.u32 %v7420_v33, 16  ;;  %v3443_v25 = vrot.slane %v3441_v37, 3  ;;  %v7869_v63 = vrot.slane %v2365_v43, 5  ;;  %v7871_v2 = vrot.slane %v2366_v40, 5 }
 0x193   : > { %10228 = vst [vmem:[#allocation72_spill] sm:$0xff] %v7866_v46  ;;  %v3412_v61 = vsel %vm2790_vm2, %v7782_v55, %v7864_v30  ;;  %v4621_v45 = vpop.f32.mrf.mxu1  ;;  %v3446_v3 = vrot.slane %v3444_v39, 4  ;;  %v7876_v0 = vunpack.c.h.bf16 %v722_v22  ;;  %v904_v52 = vrot.slane %v6544_v32, 1 }
 0x194   : > { %v660_v60 = vpack.c.bf16 %v7859_v13, %v7859_v13  ;;  %4917 = vmatmul.bf16.gmra.mxu0 %v3412_v61  ;;  %v4622_v33 = vadd.f32 %v7813_v35, %v4621_v45  ;;  %v2138_v54 = vunpack.c.l.b16 %v668_v4  ;;  %v7881_v43 = vrot.slane %v6545_v17, 1  ;;  %v6334_v22 = vld [vmem:[#allocation2 + $0x60] sm:$0xff]  ;;  %v6388_v4 = vld [vmem:[#allocation9 + $0x178] sm:$0xff] }
 0x195   : > { %10229 = vst [vmem:[#allocation73_spill] sm:$0xff] %v7876_v0  ;;  %v7883_v47 = vor.u32 %v3446_v3, %v3443_v25  ;;  %v583_v40 = vpop.f32.mrf.mxu0  ;;  %v7887_v55 = vsel %vm864_vm0, %v7780_v10, %v904_v52  ;;  %v604_v6 = vadd.f32 %v7626_v23, %v603_v51  ;;  %v1313_v38 = vmul.f32 %v7790_v27, %v7866_v46  ;;  %v6378_v51 = vld [vmem:[#allocation9 + $0x128] sm:$0xff] }
 0x196   : > { %10230 = vst [vmem:[#allocation74_spill] sm:$0xff] %v7887_v55  ;;  %v584_v50 = vadd.f32 %v7626_v23, %v583_v40  ;;  %v7895_v18 = vsel %vm864_vm0, %v904_v52, %v7881_v43  ;;  %v981_v32 = vmul.f32 %v7887_v55, %v7866_v46  ;;  %v4710_v37 = vpop.f32.mrf.mxu2  ;;  %v1314_v10 = vmul.f32 %v7794_v29, %v7876_v0 }
 0x197   : > { %10231 = vst [vmem:[#allocation75_spill] sm:$0xff] %v7895_v18  ;;  %v7904_v17 = vsel %vm2790_vm2, %v7819_v24, %v7883_v47  ;;  %v982_v23 = vmul.f32 %v7895_v18, %v7876_v0  ;;  %v7908_v39 = vadd.f32 %v4710_v37, %v4622_v33  ;;  %v637_v25 = vmax.f32 %v604_v6, 0.0  ;;  %5052 = vmatpush.bf16.msrb.mxu2 %v6388_v4  ;;  %v6387_v24 = vld [vmem:[#allocation9 + $0x170] sm:$0xff] }
 0x198   : > { %10232 = vst [vmem:[#allocation76_spill] sm:$0xff] %v7904_v17  ;;  %4749 = vmatmul.bf16.gmra.mxu2 %v7904_v17  ;;  %v629_v61 = vmax.f32 %v584_v50, 0.0  ;;  %v1014_v45 = vpack.c.bf16 %v981_v32, %v981_v32  ;;  %v1346_v3 = vpack.c.bf16 %v1313_v38, %v1313_v38  ;;  %v1347_v52 = vpack.c.bf16 %v1314_v10, %v1314_v10 }
 0x199   : > { %10233 = vst [vmem:[#allocation77_spill] sm:$0xff] %v7908_v39  ;;  %v1015_v40 = vpack.c.bf16 %v982_v23, %v982_v23  ;;  %v669_v29 = vpack.c.bf16 %v637_v25, %v637_v25  ;;  %v6500_v27 = vpack.c.bf16 %v637_v25, %v7852_v59  ;;  %v1832_v49 = vshrl.u32 %v6334_v22, 16  ;;  %4965 = vmatpush.bf16.msrb.mxu1 %v6378_v51  ;;  %v6656_v25 = vld [vmem:[#allocation6 + $0x58] sm:$0xff]  }
 0x19a   : > { %v661_v53 = vpack.c.bf16 %v629_v61, %v629_v61  ;;  %v6480_v33 = vpack.c.bf16 %v629_v61, %v7859_v13  ;;  %v1622_v6 = vunpack.c.l.b16 %v1014_v45  ;;  %v2044_v37 = vunpack.c.l.b16 %v1346_v3 }
 0x19b   : > { %v2185_v39 = vrot.slane %v2183_v28, 4  ;;  %v1623_v17 = vunpack.c.l.b16 %v1015_v40  ;;  %v7913_v50 = vpop.f32.mrf.mxu1  ;;  %6645 = vst [vmem:[#allocation2 + $0x88] sm:$0xff] %v6500_v27   ;;  %v2139_v38 = vunpack.c.l.b16 %v669_v29  ;;  %v2045_v32 = vunpack.c.l.b16 %v1347_v52  ;;  %5053 = vmatpush.bf16.msrb.mxu2 %v6387_v24  ;;  %v6386_v28 = vld [vmem:[#allocation9 + $0x168] sm:$0xff] }
 0x19c   : > { %10234 = vst [vmem:[#allocation78_spill] sm:$0xff] %v7913_v50  ;;  %v2188_v10 = vrot.slane %v2186_v58, 5  ;;  %v2130_v23 = vunpack.c.l.b16 %v660_v60  ;;  %v2131_v59 = vunpack.c.l.b16 %v661_v53  ;;  %v1835_v4 = vshll.u32 %v6334_v22, 16  ;;  %v724_v58 = vld [vmem:[#allocation2 + $0x5c] sm:$0xff]   ;;  %v6383_v50 = vld [vmem:[#allocation9 + $0x150] sm:$0xff] }
 0x19d   : > { %6641 = vst [vmem:[#allocation2 + $0x68] sm:$0xff] %v6480_v33   ;;  %v1645_v51 = vpack.c.b16 %v1623_v17, %v1622_v6  ;;  %v7915_v0 = vpack.c.b16 %v2139_v38, %v2138_v54  ;;  %v7917_v34 = vpop.f32.mrf.mxu0  ;;  %v2068_v13 = vpack.c.b16 %v2045_v32, %v2044_v37  ;;  %4966 = vmatpush.bf16.msrb.mxu1 %v6377_v9  ;;  %v1834_v29 = vrot.slane %v1832_v49, 4  ;;  %v6385_v37 = vld [vmem:[#allocation9 + $0x160] sm:$0xff] }
 0x19e   : > { %10236 = vst [vmem:[#allocation80_spill] sm:$0xff] %v7917_v34  ;;  %v7919_v61 = vpack.c.b16 %v2131_v59, %v2130_v23  ;;  %v7921_v27 = vpop.f32.mrf.mxu2  ;;  %v7926_v53 = vsel %vm1959_vm4, %v7869_v63, %v7871_v2  ;;  %v2877_v60 = vshrl.u32 %v7869_v63, 16  ;;  %v1837_v17 = vrot.slane %v1835_v4, 5 }
 0x19f   : > { %10235 = vst [vmem:[#allocation79_spill] sm:$0xff] %v7915_v0  ;;  %v3531_v54 = vshrl.u32 %v1645_v51, 16  ;;  %v3534_v22 = vshll.u32 %v1645_v51, 16  ;;  %v6548_v45 = vunpack.c.l.bf16 %v6656_v25  ;;  %v7929_v3 = vor.u32 %v2188_v10, %v2185_v39  ;;  %5054 = vmatpush.bf16.msrb.mxu2 %v6386_v28 }
 0x1a0   : > { %10237 = vst [vmem:[#allocation81_spill] sm:$0xff] %v7919_v61  ;;  %v3477_v9 = vshrl.u32 %v2068_v13, 16  ;;  %v6549_v52 = vunpack.c.h.bf16 %v6656_v25  ;;  %v2880_v40 = vshll.u32 %v7869_v63, 16  ;;  %v7933_v6 = vunpack.c.l.bf16 %v724_v58 }
 0x1a1   : > { %10238 = vst [vmem:[#allocation82_spill] sm:$0xff] %v7921_v27  ;;  %v3533_v24 = vrot.slane %v3531_v54, 3  ;;  %v3536_v33 = vrot.slane %v3534_v22, 4  ;;  %v3480_v32 = vshll.u32 %v2068_v13, 16  ;;  %v7935_v23 = vrot.slane %v2877_v60, 3 }
 0x1a2   : > { %10239 = vst [vmem:[#allocation83_spill] sm:$0xff] %v7933_v6  ;;  %v3479_v38 = vrot.slane %v3477_v9, 3  ;;  %v2885_v59 = vshrl.u32 %v7926_v53, 16  ;;  %v7940_v4 = vor.u32 %v1837_v17, %v1834_v29  ;;  %v7942_v63 = vunpack.c.h.bf16 %v724_v58 }
 0x1a3   : > { %v7938_v39 = vor.u32 %v3536_v33, %v3533_v24  ;;  %v4626_v10 = vpop.f32.mrf.mxu1  ;;  %v908_v25 = vrot.slane %v6548_v45, 1  ;;  %v3482_v51 = vrot.slane %v3480_v32, 4  ;;  %v7945_v22 = vrot.slane %v6549_v52, 1  ;;  %5055 = vmatpush.bf16.msrb.mxu2 %v6385_v37 }
 0x1a4   : > { %10240 = vst [vmem:[#allocation84_spill] sm:$0xff] %v7942_v63  ;;  %v4627_v54 = vadd.f32 %v7813_v35, %v4626_v10  ;;  %v7947_v28 = vrot.slane %v2880_v40, 4  ;;  %v1839_v60 = vsel %vm1732_vm1, %v7845_v36, %v7940_v4  ;;  %v1315_v17 = vmul.f32 %v7887_v55, %v7933_v6  ;;  %v6335_v45 = vld [vmem:[#allocation2 + $0x68] sm:$0xff] }
 0x1a5   : > { %v3538_v13 = vsel %vm2790_vm2, %v7835_v44, %v7938_v39  ;;  %v7957_v29 = vsel %vm864_vm0, %v7881_v43, %v908_v25  ;;  %v7959_v58 = vpop.f32.mrf.mxu0  ;;  %v7963_v9 = vor.u32 %v3482_v51, %v3479_v38  ;;  %v3513_v52 = vshrl.u32 %v1839_v60, 16  ;;  %v6657_v38 = vld [vmem:[#allocation6 + $0x60] sm:$0xff]  }
 0x1a6   : > { %10241 = vst [vmem:[#allocation85_spill] sm:$0xff] %v7957_v29  ;;  %4660 = vmatmul.bf16.gmra.mxu1 %v3538_v13  ;;  %v3516_v44 = vshll.u32 %v1839_v60, 16  ;;  %v7967_v40 = vsel %vm864_vm0, %v908_v25, %v7945_v22  ;;  %v4715_v36 = vpop.f32.mrf.mxu2  ;;  %v983_v43 = vmul.f32 %v7957_v29, %v7933_v6  ;;  %v1316_v37 = vmul.f32 %v7895_v18, %v7942_v63  ;;  %v6384_v13 = vld [vmem:[#allocation9 + $0x158] sm:$0xff]  ;;  %v726_v18 = vld [vmem:[#allocation2 + $0x64] sm:$0xff]  }
 0x1a7   : > { %10242 = vst [vmem:[#allocation86_spill] sm:$0xff] %v7959_v58  ;;  %v984_v24 = vmul.f32 %v7967_v40, %v7942_v63  ;;  %v7973_v33 = vadd.f32 %v4715_v36, %v4627_v54  ;;  %v3484_v32 = vsel %vm2790_vm2, %v7864_v30, %v7963_v9  ;;  %v3515_v10 = vrot.slane %v3513_v52, 3  ;;  %v6376_v60 = vld [vmem:[#allocation9 + $0x118] sm:$0xff]  ;;  %5056 = vmatpush.bf16.msrb.mxu2 %v6384_v13  ;;  %v6375_v30 = vld [vmem:[#allocation9 + $0x110] sm:$0xff] }
 0x1a8   : > { %10243 = vst [vmem:[#allocation87_spill] sm:$0xff] %v7967_v40  ;;  %v3518_v25 = vrot.slane %v3516_v44, 4  ;;  %v1348_v51 = vpack.c.bf16 %v1315_v17, %v1315_v17  ;;  %4922 = vmatmul.bf16.gmra.mxu0 %v3484_v32  ;;  %v1016_v49 = vpack.c.bf16 %v983_v43, %v983_v43  ;;  %v1349_v34 = vpack.c.bf16 %v1316_v37, %v1316_v37 }
 0x1a9   : > { %10244 = vst [vmem:[#allocation88_spill] sm:$0xff] %v7973_v33  ;;  %v1017_v58 = vpack.c.bf16 %v984_v24, %v984_v24  ;;  %v1841_v55 = vshrl.u32 %v6335_v45, 16  ;;  %v1844_v33 = vshll.u32 %v6335_v45, 16  ;;  %v6552_v27 = vunpack.c.l.bf16 %v6657_v38  ;;  %4967 = vmatpush.bf16.msrb.mxu1 %v6376_v60  ;;  %v6658_v45 = vld [vmem:[#allocation6 + $0x68] sm:$0xff]  }
 0x1aa   : > { %v7980_v54 = vor.u32 %v3518_v25, %v3515_v10  ;;  %v2046_v36 = vunpack.c.l.b16 %v1348_v51  ;;  %v1624_v52 = vunpack.c.l.b16 %v1016_v49  ;;  %v2047_v0 = vunpack.c.l.b16 %v1349_v34  ;;  %v6374_v60 = vld [vmem:[#allocation9 + $0x108] sm:$0xff] }
 0x1ab   : > { %v1625_v44 = vunpack.c.l.b16 %v1017_v58  ;;  %v7982_v17 = vpop.f32.mrf.mxu1  ;;  %v1843_v32 = vrot.slane %v1841_v55, 4  ;;  %v1846_v24 = vrot.slane %v1844_v33, 5  ;;  %v6553_v37 = vunpack.c.h.bf16 %v6657_v38  ;;  %5057 = vmatpush.bf16.msrb.mxu2 %v6383_v50  ;;  %v728_v50 = vld [vmem:[#allocation2 + $0x6c] sm:$0xff]  }
 0x1ac   : > { %10245 = vst [vmem:[#allocation89_spill] sm:$0xff] %v7982_v17  ;;  %v7987_v43 = vsel %vm2790_vm2, %v7883_v47, %v7980_v54  ;;  %v7989_v10 = vrot.slane %v2885_v59, 3  ;;  %v2069_v49 = vpack.c.b16 %v2047_v0, %v2046_v36  ;;  %v7994_v58 = vunpack.c.l.bf16 %v726_v18  ;;  %v6382_v59 = vld [vmem:[#allocation9 + $0x148] sm:$0xff] }
 0x1ad   : > { %10246 = vst [vmem:[#allocation90_spill] sm:$0xff] %v7987_v43  ;;  %4754 = vmatmul.bf16.gmra.mxu2 %v7987_v43  ;;  %v1646_v25 = vpack.c.b16 %v1625_v44, %v1624_v52  ;;  %v7992_v51 = vpop.f32.mrf.mxu0  ;;  %v7999_v13 = vor.u32 %v1846_v24, %v1843_v32  ;;  %v8001_v47 = vunpack.c.h.bf16 %v726_v18  ;;  %v912_v33 = vrot.slane %v6552_v27, 1  ;;  %4968 = vmatpush.bf16.msrb.mxu1 %v6375_v30 }
 0x1ae   : > { %10247 = vst [vmem:[#allocation91_spill] sm:$0xff] %v7992_v51  ;;  %v7997_v55 = vpop.f32.mrf.mxu2  ;;  %v914_v38 = vrot.slane %v6553_v37, 1  ;;  %v3549_v17 = vshrl.u32 %v2069_v49, 16  ;;  %v6556_v0 = vunpack.c.l.bf16 %v6658_v45  ;;  %v3552_v36 = vshll.u32 %v2069_v49, 16 }
 0x1af   : > { %10248 = vst [vmem:[#allocation92_spill] sm:$0xff] %v7994_v58  ;;  %v3603_v52 = vshrl.u32 %v1646_v25, 16  ;;  %v3606_v44 = vshll.u32 %v1646_v25, 16  ;;  %v1848_v34 = vsel %vm1732_vm1, %v7940_v4, %v7999_v13  ;;  %v8008_v32 = vsel %vm864_vm0, %v7945_v22, %v912_v33  ;;  %5058 = vmatpush.bf16.msrb.mxu2 %v6382_v59  ;;  %v6381_v22 = vld [vmem:[#allocation9 + $0x140] sm:$0xff] }
 0x1b0   : > { %10249 = vst [vmem:[#allocation93_spill] sm:$0xff] %v7997_v55  ;;  %v8011_v18 = vsel %vm864_vm0, %v912_v33, %v914_v38  ;;  %v3551_v24 = vrot.slane %v3549_v17, 3  ;;  %v3585_v37 = vshrl.u32 %v1848_v34, 16  ;;  %v3554_v25 = vrot.slane %v3552_v36, 4  ;;  %v6373_v17 = vld [vmem:[#allocation9 + $0x100] sm:$0xff] }
 0x1b1   : > { %10250 = vst [vmem:[#allocation94_spill] sm:$0xff] %v8001_v47  ;;  %v3605_v27 = vrot.slane %v3603_v52, 3  ;;  %v3608_v30 = vrot.slane %v3606_v44, 4  ;;  %v3588_v55 = vshll.u32 %v1848_v34, 16  ;;  %v985_v49 = vmul.f32 %v8008_v32, %v7994_v58  ;;  %4969 = vmatpush.bf16.msrb.mxu1 %v6374_v60 }
 0x1b2   : > { %10251 = vst [vmem:[#allocation95_spill] sm:$0xff] %v8008_v32  ;;  %v986_v4 = vmul.f32 %v8011_v18, %v8001_v47  ;;  %v3587_v43 = vrot.slane %v3585_v37, 3  ;;  %v6557_v61 = vunpack.c.h.bf16 %v6658_v45  ;;  %v8019_v52 = vunpack.c.l.bf16 %v728_v50 }
 0x1b3   : > { %10252 = vst [vmem:[#allocation96_spill] sm:$0xff] %v8011_v18  ;;  %v8017_v51 = vor.u32 %v3608_v30, %v3605_v27  ;;  %v4631_v33 = vpop.f32.mrf.mxu1  ;;  %v8021_v44 = vor.u32 %v3554_v25, %v3551_v24  ;;  %v3590_v36 = vrot.slane %v3588_v55, 4  ;;  %v1018_v63 = vpack.c.bf16 %v985_v49, %v985_v49  ;;  %5059 = vmatpush.bf16.msrb.mxu2 %v6381_v22 }
 0x1b4   : > { %10253 = vst [vmem:[#allocation97_spill] sm:$0xff] %v8019_v52  ;;  %v4632_v34 = vadd.f32 %v7813_v35, %v4631_v33  ;;  %v1019_v60 = vpack.c.bf16 %v986_v4, %v986_v4  ;;  %v8027_v6 = vunpack.c.h.bf16 %v728_v50  ;;  %v916_v27 = vrot.slane %v6556_v0, 1  ;;  %v6659_v4 = vld [vmem:[#allocation6 + $0x70] sm:$0xff]  }
 0x1b5   : > { %v3610_v59 = vsel %vm2790_vm2, %v7938_v39, %v8017_v51  ;;  %v8029_v30 = vpop.f32.mrf.mxu0  ;;  %v3556_v45 = vsel %vm2790_vm2, %v7963_v9, %v8021_v44  ;;  %v8034_v24 = vor.u32 %v3590_v36, %v3587_v43  ;;  %v1626_v37 = vunpack.c.l.b16 %v1018_v63  ;;  %4970 = vmatpush.bf16.msrb.mxu1 %v6373_v17 }
 0x1b6   : > { %10254 = vst [vmem:[#allocation98_spill] sm:$0xff] %v8027_v6  ;;  %4665 = vmatmul.bf16.gmra.mxu1 %v3610_v59  ;;  %v918_v55 = vrot.slane %v6557_v61, 1  ;;  %v4720_v25 = vpop.f32.mrf.mxu2  ;;  %v1627_v49 = vunpack.c.l.b16 %v1019_v60  ;;  %v8037_v39 = vsel %vm864_vm0, %v914_v38, %v916_v27  ;;  %v1317_v0 = vmul.f32 %v7957_v29, %v7994_v58 }
 0x1b7   : > { %10255 = vst [vmem:[#allocation99_spill] sm:$0xff] %v8029_v30  ;;  %v8039_v50 = vadd.f32 %v4720_v25, %v4632_v34  ;;  %v8046_v9 = vsel %vm2790_vm2, %v7980_v54, %v8034_v24  ;;  %v987_v63 = vmul.f32 %v8037_v39, %v8019_v52  ;;  %v1318_v43 = vmul.f32 %v7967_v40, %v8001_v47  ;;  %v730_v40 = vld [vmem:[#allocation2 + $0x74] sm:$0xff]  }
 0x1b8   : > { %10256 = vst [vmem:[#allocation100_spill] sm:$0xff] %v8037_v39  ;;  %v8049_v61 = vsel %vm864_vm0, %v916_v27, %v918_v55  ;;  %4927 = vmatmul.bf16.gmra.mxu0 %v3556_v45  ;;  %v1647_v38 = vpack.c.b16 %v1627_v49, %v1626_v37  ;;  %v1350_v33 = vpack.c.bf16 %v1317_v0, %v1317_v0  ;;  %v10260_v17 = vshll.u32 %v7926_v53, 16 }
 0x1b9   : > { %10257 = vst [vmem:[#allocation101_spill] sm:$0xff] %v8039_v50  ;;  %v988_v22 = vmul.f32 %v8049_v61, %v8027_v6  ;;  %v1020_v54 = vpack.c.bf16 %v987_v63, %v987_v63  ;;  %v1351_v36 = vpack.c.bf16 %v1318_v43, %v1318_v43  ;;  %v6560_v59 = vunpack.c.l.bf16 %v6659_v4 }
 0x1ba   : > { %10258 = vst [vmem:[#allocation102_spill] sm:$0xff] %v8046_v9  ;;  %v2890_v34 = vrot.slane %v10260_v17, 4  ;;  %v6561_v60 = vunpack.c.h.bf16 %v6659_v4  ;;  %v3675_v27 = vshrl.u32 %v1647_v38, 16  ;;  %v3678_v25 = vshll.u32 %v1647_v38, 16 }
 0x1bb   : > { %10259 = vst [vmem:[#allocation103_spill] sm:$0xff] %v8049_v61  ;;  %v1021_v30 = vpack.c.bf16 %v988_v22, %v988_v22  ;;  %v8059_v29 = vpop.f32.mrf.mxu1  ;;  %v2048_v50 = vunpack.c.l.b16 %v1350_v33  ;;  %v10262_v45 = vshrl.u32 %v7468_v56, 16  ;;  %v1628_v0 = vunpack.c.l.b16 %v1020_v54 }
 0x1bc   : > { %10261 = vst [vmem:[#allocation104_spill] sm:$0xff] %v8059_v29  ;;  %v2049_v53 = vunpack.c.l.b16 %v1351_v36  ;;  %v3677_v63 = vrot.slane %v3675_v27, 3  ;;  %v3680_v43 = vrot.slane %v3678_v25, 4  ;;  %v2883_v38 = vor.u32 %v7947_v28, %v7935_v23 }
 0x1bd   : > { %v8063_v37 = vrot.slane %v10262_v45, 4  ;;  %4759 = vmatmul.bf16.gmra.mxu2 %v8046_v9  ;;  %v1629_v4 = vunpack.c.l.b16 %v1021_v30  ;;  %v8067_v17 = vpop.f32.mrf.mxu0  ;;  %v8073_v29 = vunpack.c.l.bf16 %v730_v40  ;;  %v8075_v45 = vunpack.c.h.bf16 %v730_v40 }
 0x1be   : > { %10263 = vst [vmem:[#allocation105_spill] sm:$0xff] %v8067_v17  ;;  %v8071_v22 = vpop.f32.mrf.mxu2  ;;  %v2070_v33 = vpack.c.b16 %v2049_v53, %v2048_v50  ;;  %v920_v49 = vrot.slane %v6560_v59, 1  ;;  %v3681_v54 = vor.u32 %v3680_v43, %v3677_v63  ;;  %v8078_v9 = vor.u32 %v2890_v34, %v7989_v10 }
 0x1bf   : > { %10264 = vst [vmem:[#allocation106_spill] sm:$0xff] %v8071_v22  ;;  %v1648_v36 = vpack.c.b16 %v1629_v4, %v1628_v0  ;;  %v8080_v27 = vrot.slane %v6561_v60, 1  ;;  %v2172_v23 = vsel %vm1732_vm1, %v7752_v48, %v7765_v5  ;;  %v2860_v43 = vshrl.u32 %v7752_v48, 16 }
 0x1c0   : > { %10265 = vst [vmem:[#allocation107_spill] sm:$0xff] %v8073_v29  ;;  %v3621_v30 = vshrl.u32 %v2070_v33, 16  ;;  %v3624_v25 = vshll.u32 %v2070_v33, 16  ;;  %v8083_v17 = vsel %vm864_vm0, %v918_v55, %v920_v49  ;;  %v3682_v28 = vsel %vm2790_vm2, %v8017_v51, %v3681_v54 }
 0x1c1   : > { %10266 = vst [vmem:[#allocation108_spill] sm:$0xff] %v8075_v45  ;;  %v3747_v40 = vshrl.u32 %v1648_v36, 16  ;;  %v3750_v50 = vshll.u32 %v1648_v36, 16  ;;  %v8092_v10 = vsel %vm864_vm0, %v920_v49, %v8080_v27  ;;  %v989_v60 = vmul.f32 %v8083_v17, %v8073_v29 }
 0x1c2   : > { %10267 = vst [vmem:[#allocation109_spill] sm:$0xff] %v8083_v17  ;;  %v3623_v34 = vrot.slane %v3621_v30, 3  ;;  %v3626_v59 = vrot.slane %v3624_v25, 4  ;;  %v990_v55 = vmul.f32 %v8092_v10, %v8075_v45  ;;  %v2863_v51 = vshll.u32 %v7752_v48, 16 }
 0x1c3   : > { %10268 = vst [vmem:[#allocation110_spill] sm:$0xff] %v8092_v10  ;;  %v3749_v0 = vrot.slane %v3747_v40, 3  ;;  %v3752_v53 = vrot.slane %v3750_v50, 4  ;;  %v4636_v63 = vpop.f32.mrf.mxu1  ;;  %v1022_v33 = vpack.c.bf16 %v989_v60, %v989_v60  ;;  %v2862_v22 = vrot.slane %v2860_v43, 3 }
 0x1c4   : > { %v8100_v4 = vor.u32 %v3626_v59, %v3623_v34  ;;  %v4637_v49 = vadd.f32 %v7813_v35, %v4636_v63  ;;  %v1023_v36 = vpack.c.bf16 %v990_v55, %v990_v55  ;;  %v2865_v47 = vrot.slane %v2863_v51, 4  ;;  %v6662_v34 = vld [vmem:[#allocation6 + $0x90] sm:$0xff]   ;;  %v6660_v59 = vld [vmem:[#allocation6 + $0x78] sm:$0xff]  }
 0x1c5   : > { %v3753_v30 = vor.u32 %v3752_v53, %v3749_v0  ;;  %v8103_v25 = vpop.f32.mrf.mxu0  ;;  %v2868_v58 = vshrl.u32 %v2172_v23, 16  ;;  %v2892_v40 = vsel %vm2790_vm2, %v2883_v38, %v8078_v9  ;;  %v1630_v50 = vunpack.c.l.b16 %v1022_v33  ;;  %v732_v33 = vld [vmem:[#allocation2 + $0x7c] sm:$0xff]  }
 0x1c6   : > { %10269 = vst [vmem:[#allocation111_spill] sm:$0xff] %v8103_v25  ;;  %4670 = vmatmul.bf16.gmra.mxu1 %v3682_v28  ;;  %v1631_v46 = vunpack.c.l.b16 %v1023_v36  ;;  %v2871_v16 = vshll.u32 %v2172_v23, 16  ;;  %v4725_v48 = vpop.f32.mrf.mxu2  ;;  %v3628_v60 = vsel %vm2790_vm2, %v8021_v44, %v8100_v4  ;;  %v1319_v38 = vmul.f32 %v8008_v32, %v8019_v52 }
 0x1c7   : > { %v3754_v63 = vsel %vm2790_vm2, %v3681_v54, %v3753_v30  ;;  %v2870_v55 = vrot.slane %v2868_v58, 3  ;;  %v8111_v0 = vadd.f32 %v4725_v48, %v4637_v49  ;;  %v1320_v23 = vmul.f32 %v8011_v18, %v8027_v6  ;;  %v6663_v6 = vld [vmem:[#allocation6 + $0x98] sm:$0xff]  }
 0x1c8   : > { %4675 = vmatmul.bf16.vlgmr.msrb.gmra.mxu3 %v3754_v63  ;;  %v1649_v28 = vpack.c.b16 %v1631_v46, %v1630_v50  ;;  %v2873_v53 = vrot.slane %v2871_v16, 4  ;;  %4932 = vmatmul.bf16.gmra.mxu0 %v3628_v60  ;;  %v2866_v43 = vor.u32 %v2865_v47, %v2862_v22  ;;  %v6576_v51 = vunpack.c.l.bf16 %v6662_v34 }
 0x1c9   : > { %10270 = vst [vmem:[#allocation112_spill] sm:$0xff] %v8111_v0  ;;  %v6577_v54 = vunpack.c.h.bf16 %v6662_v34  ;;  %v6564_v36 = vunpack.c.l.bf16 %v6660_v59  ;;  %v1352_v49 = vpack.c.bf16 %v1319_v38, %v1319_v38  ;;  %v1353_v16 = vpack.c.bf16 %v1320_v23, %v1320_v23 }
 0x1ca   : > { %v3819_v25 = vshrl.u32 %v1649_v28, 16  ;;  %v3822_v44 = vshll.u32 %v1649_v28, 16  ;;  %v8117_v58 = vor.u32 %v2873_v53, %v2870_v55  ;;  %v1134_v46 = vrot.slane %v6576_v51, 7 }
 0x1cb   : > { %v8119_v48 = vpop.f32.mrf.mxu1  ;;  %v8121_v50 = vrot.slane %v6577_v54, 7  ;;  %v6565_v63 = vunpack.c.h.bf16 %v6660_v59  ;;  %v8125_v22 = vunpack.c.l.bf16 %v732_v33  ;;  %v2050_v34 = vunpack.c.l.b16 %v1352_v49 }
 0x1cc   : > { %10271 = vst [vmem:[#allocation113_spill] sm:$0xff] %v8119_v48  ;;  %v3821_v32 = vrot.slane %v3819_v25, 3  ;;  %v3824_v18 = vrot.slane %v3822_v44, 4  ;;  %v2875_v47 = vsel %vm2790_vm2, %v2866_v43, %v8117_v58  ;;  %v2051_v60 = vunpack.c.l.b16 %v1353_v16 }
 0x1cd   : > { %10272 = vst [vmem:[#allocation114_spill] sm:$0xff] %v8125_v22  ;;  %5060 = vmatmul.bf16.vlgmr.msrb.gmra.mxu2 %v2892_v40  ;;  %v8129_v55 = vsel %vm1126_vm3, %v7597_v11, %v1134_v46  ;;  %v8133_v28 = vsel %vm1126_vm3, %v1134_v46, %v8121_v50  ;;  %v8137_v25 = vpop.f32.mrf.mxu0  ;;  %v8145_v23 = vunpack.c.h.bf16 %v732_v33  ;;  %v10278_v11 = vshll.u32 %v7468_v56, 16 }
 0x1ce   : > { %10273 = vst [vmem:[#allocation115_spill] sm:$0xff] %v8129_v55  ;;  %v8135_v53 = vor.u32 %v3824_v18, %v3821_v32  ;;  %v8139_v59 = vpop.f32.mrf.mxu2  ;;  %v1367_v38 = vmul.f32 %v8129_v55, %v7403_v42  ;;  %v1368_v40 = vmul.f32 %v8133_v28, %v7442_v15  ;;  %v2071_v51 = vpack.c.b16 %v2051_v60, %v2050_v34 }
 0x1cf   : > { %10274 = vst [vmem:[#allocation116_spill] sm:$0xff] %v8133_v28  ;;  %v2197_v43 = vrot.slane %v10278_v11, 5  ;;  %v924_v54 = vrot.slane %v6564_v36, 1  ;;  %v8149_v44 = vrot.slane %v6565_v63, 1  ;;  %v2181_v16 = vsel %vm1732_vm1, %v7765_v5, %v7854_v12 }
 0x1d0   : > { %10275 = vst [vmem:[#allocation117_spill] sm:$0xff] %v8137_v25  ;;  %v3826_v32 = vsel %vm2790_vm2, %v3753_v30, %v8135_v53  ;;  %v1400_v18 = vpack.c.bf16 %v1367_v38, %v1367_v38  ;;  %v1401_v49 = vpack.c.bf16 %v1368_v40, %v1368_v40  ;;  %v3693_v46 = vshrl.u32 %v2071_v51, 16 }
 0x1d1   : > { %10276 = vst [vmem:[#allocation118_spill] sm:$0xff] %v8139_v59  ;;  %v3696_v59 = vshll.u32 %v2071_v51, 16  ;;  %v8158_v33 = vsel %vm864_vm0, %v8080_v27, %v924_v54  ;;  %v8162_v56 = vsel %vm864_vm0, %v924_v54, %v8149_v44  ;;  %v2981_v40 = vshrl.u32 %v2181_v16, 16 }
 0x1d2   : > { %10277 = vst [vmem:[#allocation119_spill] sm:$0xff] %v8145_v23  ;;  %v2336_v36 = vunpack.c.l.b16 %v1400_v18  ;;  %v2337_v63 = vunpack.c.l.b16 %v1401_v49  ;;  %v991_v30 = vmul.f32 %v8158_v33, %v8125_v22  ;;  %v992_v34 = vmul.f32 %v8162_v56, %v8145_v23 }
 0x1d3   : > { %10279 = vst [vmem:[#allocation120_spill] sm:$0xff] %v8149_v44  ;;  %v3695_v60 = vrot.slane %v3693_v46, 3  ;;  %v3698_v5 = vrot.slane %v3696_v59, 4  ;;  %v4641_v38 = vpop.f32.mrf.mxu1  ;;  %v2984_v11 = vshll.u32 %v2181_v16, 16  ;;  %v2983_v18 = vrot.slane %v2981_v40, 3 }
 0x1d4   : > { %10280 = vst [vmem:[#allocation121_spill] sm:$0xff] %v8158_v33  ;;  %v4642_v27 = vadd.f32 %v7813_v35, %v4641_v38  ;;  %v2367_v51 = vpack.c.b16 %v2337_v63, %v2336_v36  ;;  %v1024_v48 = vpack.c.bf16 %v991_v30, %v991_v30  ;;  %v1025_v25 = vpack.c.bf16 %v992_v34, %v992_v34 }
 0x1d5   : > { %10281 = vst [vmem:[#allocation122_spill] sm:$0xff] %v8162_v56  ;;  %v8169_v54 = vor.u32 %v3698_v5, %v3695_v60  ;;  %v2986_v49 = vrot.slane %v2984_v11, 4  ;;  %v1321_v0 = vmul.f32 %v8037_v39, %v8073_v29  ;;  %v1322_v35 = vmul.f32 %v8049_v61, %v8075_v45  ;;  %v8189_v5 = vld [vmem:[#allocation2 + $0x84] sm:$0xff]  }
 0x1d6   : > { %4971 = vmatmul.bf16.vlgmr.msrb.gmra.mxu1 %v2875_v47  ;;  %v8173_v52 = vrot.slane %v2367_v51, 5  ;;  %v1632_v59 = vunpack.c.l.b16 %v1024_v48  ;;  %v1633_v46 = vunpack.c.l.b16 %v1025_v25  ;;  %v4730_v15 = vpop.f32.mrf.mxu2  ;;  %v8187_v25 = vpop.f32.mrf.mxu0  ;;  %v6580_v60 = vunpack.c.l.bf16 %v6663_v6 }
 0x1d7   : > { %v3700_v16 = vsel %vm2790_vm2, %v8100_v4, %v8169_v54  ;;  %v8180_v36 = vor.u32 %v2986_v49, %v2983_v18  ;;  %v8182_v63 = vadd.f32 %v4730_v15, %v4642_v27  ;;  %v1354_v30 = vpack.c.bf16 %v1321_v0, %v1321_v0  ;;  %10283 = vst [vmem:[#allocation124_spill] sm:$0xff] %v8187_v25 }
 0x1d8   : > { %4680 = vmatmul.bf16.gmra.mxu3 %v3826_v32  ;;  %v2386_v47 = vsel %vm1959_vm4, %v7871_v2, %v8173_v52  ;;  %v1650_v48 = vpack.c.b16 %v1633_v46, %v1632_v59  ;;  %v1355_v34 = vpack.c.bf16 %v1322_v35, %v1322_v35  ;;  %4937 = vmatmul.bf16.gmra.mxu0 %v3700_v16  ;;  %v6581_v27 = vunpack.c.h.bf16 %v6663_v6 }
 0x1d9   : > { %10282 = vst [vmem:[#allocation123_spill] sm:$0xff] %v8182_v63  ;;  %v2990_v38 = vshrl.u32 %v2386_v47, 16  ;;  %v2993_v4 = vshll.u32 %v2386_v47, 16  ;;  %v2988_v15 = vsel %vm2790_vm2, %v8117_v58, %v8180_v36  ;;  %v2052_v0 = vunpack.c.l.b16 %v1354_v30 }
 0x1da   : > { %v3891_v32 = vshrl.u32 %v1650_v48, 16  ;;  %v3894_v40 = vshll.u32 %v1650_v48, 16  ;;  %v2053_v11 = vunpack.c.l.b16 %v1355_v34  ;;  %v1138_v49 = vrot.slane %v6580_v60, 7 }
 0x1db   : > { %v2992_v2 = vrot.slane %v2990_v38, 3  ;;  %v2995_v51 = vrot.slane %v2993_v4, 4  ;;  %v8194_v18 = vpop.f32.mrf.mxu1  ;;  %v8197_v59 = vunpack.c.l.bf16 %v8189_v5  ;;  %v8200_v46 = vor.u32 %v2197_v43, %v8063_v37 }
 0x1dc   : > { %10284 = vst [vmem:[#allocation125_spill] sm:$0xff] %v8194_v18  ;;  %v2201_v35 = vshrl.u32 %v7525_v41, 16  ;;  %v2204_v58 = vshll.u32 %v7525_v41, 16  ;;  %v2072_v16 = vpack.c.b16 %v2053_v11, %v2052_v0  ;;  %v8208_v6 = vsel %vm1126_vm3, %v8121_v50, %v1138_v49  ;;  %v6664_v18 = vld [vmem:[#allocation6 + $0xa0] sm:$0xff]  }
 0x1dd   : > { %10285 = vst [vmem:[#allocation126_spill] sm:$0xff] %v8197_v59  ;;  %v8204_v30 = vor.u32 %v2995_v51, %v2992_v2  ;;  %v8210_v47 = vrot.slane %v6581_v27, 7  ;;  %v993_v48 = vmul.f32 %v8149_v44, %v8197_v59  ;;  %v3893_v34 = vrot.slane %v3891_v32, 3 }
 0x1de   : > { %10286 = vst [vmem:[#allocation127_spill] sm:$0xff] %v8208_v6  ;;  %v8214_v60 = vpop.f32.mrf.mxu2  ;;  %v3765_v37 = vshrl.u32 %v2072_v16, 16  ;;  %v3768_v43 = vshll.u32 %v2072_v16, 16  ;;  %v1369_v41 = vmul.f32 %v8208_v6, %v7444_v19  ;;  %v3896_v4 = vrot.slane %v3894_v40, 4 }
 0x1df   : > { %10287 = vst [vmem:[#allocation128_spill] sm:$0xff] %v8214_v60  ;;  %v2997_v38 = vsel %vm2790_vm2, %v8078_v9, %v8204_v30  ;;  %v8223_v50 = vsel %vm1126_vm3, %v1138_v49, %v8210_v47  ;;  %v1026_v0 = vpack.c.bf16 %v993_v48, %v993_v48  ;;  %v8225_v11 = vrot.slane %v2201_v35, 4  ;;  %v8236_v48 = vpop.f32.mrf.mxu0 }
 0x1e0   : > { %10288 = vst [vmem:[#allocation129_spill] sm:$0xff] %v8223_v50  ;;  %5065 = vmatmul.bf16.gmra.mxu2 %v2997_v38  ;;  %v3767_v32 = vrot.slane %v3765_v37, 3  ;;  %v3770_v27 = vrot.slane %v3768_v43, 4  ;;  %v1370_v2 = vmul.f32 %v8223_v50, %v7497_v21  ;;  %v1402_v51 = vpack.c.bf16 %v1369_v41, %v1369_v41 }
 0x1e1   : > { %v1634_v16 = vunpack.c.l.b16 %v1026_v0  ;;  %v2190_v9 = vsel %vm1732_vm1, %v7854_v12, %v7929_v3  ;;  %v1323_v40 = vmul.f32 %v8083_v17, %v8125_v22  ;;  %v8234_v49 = vrot.slane %v2204_v58, 5  ;;  %10289 = vst [vmem:[#allocation130_spill] sm:$0xff] %v8236_v48  ;;  %v6336_v22 = vld [vmem:[#allocation2 + $0x70] sm:$0xff] }
 0x1e2   : > { %v1403_v35 = vpack.c.bf16 %v1370_v2, %v1370_v2  ;;  %v3054_v38 = vshrl.u32 %v2190_v9, 16  ;;  %v3057_v37 = vshll.u32 %v2190_v9, 16  ;;  %v8238_v43 = vor.u32 %v3896_v4, %v3893_v34  ;;  %v8247_v34 = vld [vmem:[%s9995_s5] ss:$0 sm:$0xff] }
 0x1e3   : > { %v1651_v60 = vpack.c.b16 %v1634_v16, %v1634_v16  ;;  %v1324_v41 = vmul.f32 %v8092_v10, %v8145_v23  ;;  %v1356_v0 = vpack.c.bf16 %v1323_v40, %v1323_v40  ;;  %v2338_v25 = vunpack.c.l.b16 %v1402_v51 }
 0x1e4   : > { %v2339_v12 = vunpack.c.l.b16 %v1403_v35  ;;  %v3056_v61 = vrot.slane %v3054_v38, 3  ;;  %v3059_v39 = vrot.slane %v3057_v37, 4  ;;  %v8242_v17 = vor.u32 %v3770_v27, %v3767_v32  ;;  %v6364_v37 = vld [vmem:[#allocation9 + $0xb8] sm:$0xff] }
 0x1e5   : > { %v4646_v58 = vpop.f32.mrf.mxu1  ;;  %v3963_v63 = vshrl.u32 %v1651_v60, 16  ;;  %v1357_v48 = vpack.c.bf16 %v1324_v41, %v1324_v41  ;;  %v2054_v2 = vunpack.c.l.b16 %v1356_v0  ;;  %v6584_v40 = vunpack.c.l.bf16 %v6664_v18  ;;  %4785 = vmatpush.bf16.msrb.mxu3 %v6364_v37 }
 0x1e6   : > { %4976 = vmatmul.bf16.gmra.mxu1 %v2988_v15  ;;  %v4647_v4 = vadd.f32 %v8247_v34, %v4646_v58  ;;  %v2368_v16 = vpack.c.b16 %v2339_v12, %v2338_v25  ;;  %v8250_v51 = vor.u32 %v3059_v39, %v3056_v61  ;;  %v4735_v9 = vpop.f32.mrf.mxu2  ;;  %v3898_v32 = vsel %vm2790_vm2, %v8135_v53, %v8238_v43 }
 0x1e7   : > { %v3772_v15 = vsel %vm2790_vm2, %v8169_v54, %v8242_v17  ;;  %v2055_v27 = vunpack.c.l.b16 %v1357_v48  ;;  %v6585_v35 = vunpack.c.h.bf16 %v6664_v18  ;;  %v1142_v25 = vrot.slane %v6584_v40, 7  ;;  %v6404_v48 = vld [vmem:[#allocation9 + $0x1f8] sm:$0xff]  ;;  %v8281_v40 = vpop.f32.mrf.mxu0 }
 0x1e8   : > { %4685 = vmatmul.bf16.gmra.mxu3 %v3898_v32  ;;  %v8258_v38 = vrot.slane %v2368_v16, 5  ;;  %v8263_v39 = vsel %vm2790_vm2, %v8180_v36, %v8250_v51  ;;  %v8265_v61 = vadd.f32 %v4735_v9, %v4647_v4  ;;  %4942 = vmatmul.bf16.gmra.mxu0 %v3772_v15  ;;  %v3966_v53 = vshll.u32 %v1651_v60, 16  ;;  %v6363_v4 = vld [vmem:[#allocation9 + $0xb0] sm:$0xff]  ;;  %10292 = vst [vmem:[#allocation133_spill] sm:$0xff] %v8281_v40 }
 0x1e9   : > { %v2073_v41 = vpack.c.b16 %v2055_v27, %v2054_v2  ;;  %v8267_v0 = vrot.slane %v6585_v35, 7  ;;  %v1850_v54 = vshrl.u32 %v6336_v22, 16  ;;  %v8272_v12 = vrot.slane %v3963_v63, 3  ;;  %5230 = vmatpush.bf16.msra.mxu0 %v6404_v48  ;;  %4786 = vmatpush.bf16.msrb.mxu3 %v6363_v4 }
 0x1ea   : > { %10290 = vst [vmem:[#allocation131_spill] sm:$0xff] %v8265_v61  ;;  %v2388_v18 = vsel %vm1959_vm4, %v8173_v52, %v8258_v38  ;;  %v1853_v58 = vshll.u32 %v6336_v22, 16  ;;  %v2199_v36 = vsel %vm1732_vm1, %v7929_v3, %v8200_v46  ;;  %v8279_v9 = vsel %vm1126_vm3, %v8210_v47, %v1142_v25 }
 0x1eb   : > { %v3063_v16 = vshrl.u32 %v2388_v18, 16  ;;  %v3066_v60 = vshll.u32 %v2388_v18, 16  ;;  %v3837_v2 = vshrl.u32 %v2073_v41, 16  ;;  %10291 = vst [vmem:[#allocation132_spill] sm:$0xff] %v8279_v9  ;;  %v3840_v52 = vshll.u32 %v2073_v41, 16 }
 0x1ec   : > { %v8285_v22 = vsel %vm1126_vm3, %v1142_v25, %v8267_v0  ;;  %v1371_v63 = vmul.f32 %v8279_v9, %v7499_v14  ;;  %v1852_v3 = vrot.slane %v1850_v54, 4  ;;  %v3968_v27 = vrot.slane %v3966_v53, 4 }
 0x1ed   : > { %10293 = vst [vmem:[#allocation134_spill] sm:$0xff] %v8285_v22  ;;  %v3065_v32 = vrot.slane %v3063_v16, 3  ;;  %v3068_v15 = vrot.slane %v3066_v60, 4  ;;  %v8289_v35 = vpop.f32.mrf.mxu1  ;;  %v1372_v47 = vmul.f32 %v8285_v22, %v7559_v26  ;;  %v3839_v48 = vrot.slane %v3837_v2, 3 }
 0x1ee   : > { %10294 = vst [vmem:[#allocation135_spill] sm:$0xff] %v8289_v35  ;;  %v8293_v37 = vpop.f32.mrf.mxu2  ;;  %v3842_v41 = vrot.slane %v3840_v52, 4  ;;  %v1404_v18 = vpack.c.bf16 %v1371_v63, %v1371_v63  ;;  %v1855_v40 = vrot.slane %v1853_v58, 5  ;;  %v3126_v61 = vshrl.u32 %v2199_v36, 16  ;;  %v6665_v63 = vld [vmem:[#allocation6 + $0xa8] sm:$0xff]  }
 0x1ef   : > { %10295 = vst [vmem:[#allocation136_spill] sm:$0xff] %v8293_v37  ;;  %v8295_v25 = vor.u32 %v3068_v15, %v3065_v32  ;;  %v1405_v10 = vpack.c.bf16 %v1372_v47, %v1372_v47  ;;  %v3129_v54 = vshll.u32 %v2199_v36, 16  ;;  %v8299_v53 = vor.u32 %v8234_v49, %v8225_v11 }
 0x1f0   : > { %v2210_v16 = vshrl.u32 %v7587_v1, 16  ;;  %v2340_v60 = vunpack.c.l.b16 %v1404_v18  ;;  %v8302_v35 = vor.u32 %v1855_v40, %v1852_v3  ;;  %v3128_v4 = vrot.slane %v3126_v61, 3 }
 0x1f1   : > { %v3070_v2 = vsel %vm2790_vm2, %v8204_v30, %v8295_v25  ;;  %v2341_v58 = vunpack.c.l.b16 %v1405_v10  ;;  %v3131_v52 = vrot.slane %v3129_v54, 4  ;;  %v2213_v32 = vshll.u32 %v7587_v1, 16 }
 0x1f2   : > { %5070 = vmatmul.bf16.gmra.mxu2 %v3070_v2  ;;  %v1857_v11 = vsel %vm1732_vm1, %v7999_v13, %v8302_v35  ;;  %v8312_v49 = vunpack.c.h.bf16 %v8189_v5  ;;  %v1325_v36 = vmul.f32 %v8158_v33, %v8197_v59  ;;  %v3969_v40 = vor.u32 %v3968_v27, %v8272_v12  ;;  %v8331_v12 = vpop.f32.mrf.mxu0 }
 0x1f3   : > { %v8317_v30 = vor.u32 %v3842_v41, %v3839_v48  ;;  %v2369_v10 = vpack.c.b16 %v2341_v58, %v2340_v60  ;;  %v8319_v61 = vor.u32 %v3131_v52, %v3128_v4  ;;  %v6588_v15 = vunpack.c.l.bf16 %v6665_v63  ;;  %10297 = vst [vmem:[#allocation138_spill] sm:$0xff] %v8331_v12  ;;  %v6401_v12 = vld [vmem:[#allocation9 + $0x1e0] sm:$0xff] }
 0x1f4   : > { %10296 = vst [vmem:[#allocation137_spill] sm:$0xff] %v8312_v49  ;;  %v1326_v1 = vmul.f32 %v8312_v49, %v8162_v56  ;;  %v1358_v3 = vpack.c.bf16 %v1325_v36, %v1325_v36  ;;  %v6589_v47 = vunpack.c.h.bf16 %v6665_v63  ;;  %v2212_v13 = vrot.slane %v2210_v16, 4  ;;  %v6359_v49 = vld [vmem:[#allocation9 + $0x90] sm:$0xff] }
 0x1f5   : > { %v8323_v18 = vrot.slane %v2369_v10, 5  ;;  %v3657_v5 = vshrl.u32 %v1857_v11, 16  ;;  %v8328_v54 = vsel %vm2790_vm2, %v8250_v51, %v8319_v61  ;;  %v1146_v60 = vrot.slane %v6588_v15, 7 }
 0x1f6   : > { %4981 = vmatmul.bf16.gmra.mxu1 %v8263_v39  ;;  %v4740_v27 = vpop.f32.mrf.mxu2  ;;  %v1359_v48 = vpack.c.bf16 %v1326_v1, %v1326_v1  ;;  %v2056_v41 = vunpack.c.l.b16 %v1358_v3  ;;  %v8333_v2 = vrot.slane %v6589_v47, 7  ;;  %v3970_v16 = vsel %vm2790_vm2, %v8238_v43, %v3969_v40  ;;  %v6362_v1 = vld [vmem:[#allocation9 + $0xa8] sm:$0xff]  ;;  %v6403_v3 = vld [vmem:[#allocation9 + $0x1f0] sm:$0xff] }
 0x1f7   : > { %v3844_v58 = vsel %vm2790_vm2, %v8242_v17, %v8317_v30  ;;  %v4651_v4 = vpop.f32.mrf.mxu1  ;;  %v2390_v51 = vsel %vm1959_vm4, %v8258_v38, %v8323_v18  ;;  %v3660_v39 = vshll.u32 %v1857_v11, 16  ;;  %v2215_v15 = vrot.slane %v2213_v32, 5  ;;  %4787 = vmatpush.bf16.msrb.mxu3 %v6362_v1  ;;  %5231 = vmatpush.bf16.msra.mxu0 %v6403_v3  ;;  %v6361_v32 = vld [vmem:[#allocation9 + $0xa0] sm:$0xff]  ;;  %v6666_v1 = vld [vmem:[#allocation6 + $0xb0] sm:$0xff]  }
 0x1f8   : > { %4690 = vmatmul.bf16.gmra.mxu3 %v3970_v16  ;;  %v4652_v52 = vadd.f32 %v8247_v34, %v4651_v4  ;;  %v3135_v63 = vshrl.u32 %v2390_v51, 16  ;;  %v3138_v36 = vshll.u32 %v2390_v51, 16  ;;  %v2057_v10 = vunpack.c.l.b16 %v1359_v48  ;;  %4947 = vmatmul.bf16.gmra.mxu0 %v3844_v58  ;;  %v6337_v4 = vld [vmem:[#allocation2 + $0x78] sm:$0xff]  ;;  %v6402_v48 = vld [vmem:[#allocation9 + $0x1e8] sm:$0xff] }
 0x1f9   : > { %v3659_v43 = vrot.slane %v3657_v5, 3  ;;  %v8346_v17 = vsel %vm1126_vm3, %v8267_v0, %v1146_v60  ;;  %v8350_v40 = vsel %vm1126_vm3, %v1146_v60, %v8333_v2  ;;  %v3662_v58 = vrot.slane %v3660_v39, 4 }
 0x1fa   : > { %10298 = vst [vmem:[#allocation139_spill] sm:$0xff] %v8346_v17  ;;  %v3137_v38 = vrot.slane %v3135_v63, 3  ;;  %v3140_v11 = vrot.slane %v3138_v36, 4  ;;  %v8352_v47 = vadd.f32 %v4740_v27, %v4652_v52  ;;  %v2074_v16 = vpack.c.b16 %v2057_v10, %v2056_v41 }
 0x1fb   : > { %10299 = vst [vmem:[#allocation140_spill] sm:$0xff] %v8350_v40  ;;  %v1373_v5 = vmul.f32 %v8346_v17, %v7561_v7  ;;  %v1374_v0 = vmul.f32 %v8350_v40, %v7629_v20  ;;  %v2208_v60 = vsel %vm1732_vm1, %v8200_v46, %v8299_v53  ;;  %v1859_v39 = vshrl.u32 %v6337_v4, 16  ;;  %5232 = vmatpush.bf16.msra.mxu0 %v6402_v48 }
 0x1fc   : > { %10300 = vst [vmem:[#allocation141_spill] sm:$0xff] %v8352_v47  ;;  %v8361_v51 = vor.u32 %v3140_v11, %v3137_v38  ;;  %v3909_v27 = vshrl.u32 %v2074_v16, 16  ;;  %v3912_v41 = vshll.u32 %v2074_v16, 16  ;;  %v3198_v52 = vshrl.u32 %v2208_v60, 16  ;;  %4788 = vmatpush.bf16.msrb.mxu3 %v6361_v32  ;;  %v1291_v47 = vld [vmem:[#allocation2 + $0x8c] sm:$0xf] }
 0x1fd   : > { %v1406_v63 = vpack.c.bf16 %v1373_v5, %v1373_v5  ;;  %v1407_v36 = vpack.c.bf16 %v1374_v0, %v1374_v0  ;;  %v3201_v10 = vshll.u32 %v2208_v60, 16  ;;  %v1862_v3 = vshll.u32 %v6337_v4, 16  ;;  %v8372_v0 = vpop.f32.mrf.mxu0 }
 0x1fe   : > { %v3200_v37 = vrot.slane %v3198_v52, 3  ;;  %v8363_v56 = vor.u32 %v2215_v15, %v2212_v13  ;;  %v8365_v33 = vpop.f32.mrf.mxu2  ;;  %v3142_v16 = vsel %vm2790_vm2, %v8295_v25, %v8361_v51  ;;  %v8370_v5 = vor.u32 %v3662_v58, %v3659_v43  ;;  %10302 = vst [vmem:[#allocation143_spill] sm:$0xff] %v8372_v0 }
 0x1ff   : > { %10301 = vst [vmem:[#allocation142_spill] sm:$0xff] %v8365_v33  ;;  %v2342_v46 = vunpack.c.l.b16 %v1406_v63  ;;  %v2343_v38 = vunpack.c.l.b16 %v1407_v36  ;;  %v3203_v11 = vrot.slane %v3201_v10, 4  ;;  %v3911_v4 = vrot.slane %v3909_v27, 3  ;;  %v8374_v32 = vpop.f32.mrf.mxu1  ;;  %5233 = vmatpush.bf16.msra.mxu0 %v6401_v12  ;;  %v6400_v10 = vld [vmem:[#allocation9 + $0x1d8] sm:$0xff] }
 0x200   : > { %v3914_v48 = vrot.slane %v3912_v41, 4  ;;  %10303 = vst [vmem:[#allocation144_spill] sm:$0xff] %v8374_v32  ;;  %v8378_v15 = vunpack.c.l.bf16 %v1291_v47  ;;  %v6592_v52 = vunpack.c.l.bf16 %v6666_v1  ;;  %v1861_v63 = vrot.slane %v1859_v39, 4 }
 0x201   : > { %v2370_v60 = vpack.c.b16 %v2343_v38, %v2342_v46  ;;  %v8376_v13 = vor.u32 %v3203_v11, %v3200_v37  ;;  %v1864_v36 = vrot.slane %v1862_v3, 5  ;;  %v6593_v37 = vunpack.c.h.bf16 %v6666_v1 }
 0x202   : > { %10304 = vst [vmem:[#allocation145_spill] sm:$0xff] %v8378_v15  ;;  %5075 = vmatmul.bf16.gmra.mxu2 %v3142_v16  ;;  %v1327_v58 = vmul.f32 %v8378_v15, %v8149_v44  ;;  %v10305_v47 = vunpack.c.l.bf16 %v7274_v8  ;;  %v8394_v41 = vor.u32 %v3914_v48, %v3911_v4  ;;  %v1150_v12 = vrot.slane %v6592_v52, 7 }
 0x203   : > { %v8380_v25 = vrot.slane %v2370_v60, 5  ;;  %v8385_v43 = vsel %vm2790_vm2, %v8319_v61, %v8376_v13  ;;  %v2217_v39 = vsel %vm1732_vm1, %v8299_v53, %v8363_v56  ;;  %v8402_v61 = vsel %vm2790_vm2, %v8034_v24, %v8370_v5  ;;  %5234 = vmatpush.bf16.msra.mxu0 %v6400_v10  ;;  %v6338_v24 = vld [vmem:[#allocation2 + $0x80] sm:$0xff]  ;;  %v10311_v10 = vld [vmem:[#allocation54_spill] sm:$0xff] }
 0x204   : > { %v8392_v27 = vmul.f32 %v7479_v57, %v10305_v47  ;;  %10306 = vst [vmem:[#allocation146_spill] sm:$0xff] %v8402_v61  ;;  %v1360_v3 = vpack.c.bf16 %v1327_v58, %v1327_v58  ;;  %v8407_v46 = vrot.slane %v6593_v37, 7  ;;  %v8410_v16 = vor.u32 %v1864_v36, %v1861_v63  ;;  %v10310_v63 = vld [vmem:[#allocation49_spill] sm:$0xff]  ;;  %v6360_v37 = vld [vmem:[#allocation9 + $0x98] sm:$0xff]  ;;  %v6399_v47 = vld [vmem:[#allocation9 + $0x1d0] sm:$0xff] }
 0x205   : > { %v2392_v1 = vsel %vm1959_vm4, %v8323_v18, %v8380_v25  ;;  %v8414_v53 = vsel %vm1126_vm3, %v8333_v2, %v1150_v12  ;;  %v3270_v60 = vshrl.u32 %v2217_v39, 16  ;;  %v2219_v36 = vshrl.u32 %v10310_v63, 16  ;;  %4789 = vmatpush.bf16.msrb.mxu3 %v6360_v37 }
 0x206   : > { %4986 = vmatmul.bf16.gmra.mxu1 %v8328_v54  ;;  %v3207_v38 = vshrl.u32 %v2392_v1, 16  ;;  %v3210_v11 = vshll.u32 %v2392_v1, 16  ;;  %10307 = vst [vmem:[#allocation147_spill] sm:$0xff] %v8414_v53  ;;  %v2058_v4 = vunpack.c.l.b16 %v1360_v3  ;;  %v8418_v48 = vsel %vm1126_vm3, %v1150_v12, %v8407_v46 }
 0x207   : > { %10308 = vst [vmem:[#allocation148_spill] sm:$0xff] %v8418_v48  ;;  %v1375_v18 = vmul.f32 %v8414_v53, %v7636_v31  ;;  %v10309_v54 = vunpack.c.h.bf16 %v7274_v8  ;;  %v3916_v2 = vsel %vm2790_vm2, %v8317_v30, %v8394_v41  ;;  %v1376_v58 = vmul.f32 %v8418_v48, %v10311_v10  ;;  %5235 = vmatpush.bf16.msra.mxu0 %v6399_v47 }
 0x208   : > { %4764 = vmatmul.bf16.vlgmr.msra.gmra.mxu3 %v8402_v61  ;;  %4952 = vmatmul.bf16.gmra.mxu0 %v3916_v2  ;;  %v3209_v12 = vrot.slane %v3207_v38, 3  ;;  %v3212_v1 = vrot.slane %v3210_v11, 4  ;;  %v2075_v8 = vpack.c.b16 %v2058_v4, %v2058_v4  ;;  %v1866_v33 = vsel %vm1732_vm1, %v8302_v35, %v8410_v16  ;;  %v6398_v61 = vld [vmem:[#allocation9 + $0x1c8] sm:$0xff] }
 0x209   : > { %v1224_v52 = vmul.f32 %v7538_v62, %v10309_v54  ;;  %v4745_v3 = vpop.f32.mrf.mxu2  ;;  %v1408_v0 = vpack.c.bf16 %v1375_v18, %v1375_v18  ;;  %v8432_v54 = vpop.f32.mrf.mxu0  ;;  %v1409_v44 = vpack.c.bf16 %v1376_v58, %v1376_v58  ;;  %v1868_v32 = vshrl.u32 %v6338_v24, 16  ;;  %4790 = vmatpush.bf16.msrb.mxu3 %v6359_v49 }
 0x20a   : > { %10312 = vst [vmem:[#allocation49_spill] sm:$0xff] %v8432_v54  ;;  %v3273_v30 = vshll.u32 %v2217_v39, 16  ;;  %v3990_v57 = vshrl.u32 %v2075_v8, 16  ;;  %v3993_v2 = vshll.u32 %v2075_v8, 16  ;;  %v1871_v38 = vshll.u32 %v6338_v24, 16 }
 0x20b   : > { %v4656_v62 = vpop.f32.mrf.mxu1  ;;  %v3272_v11 = vrot.slane %v3270_v60, 3  ;;  %v2222_v4 = vshll.u32 %v10310_v63, 16  ;;  %v2344_v54 = vunpack.c.l.b16 %v1408_v0  ;;  %v2345_v15 = vunpack.c.l.b16 %v1409_v44  ;;  %5236 = vmatpush.bf16.msra.mxu0 %v6398_v61  ;;  %v6397_v60 = vld [vmem:[#allocation9 + $0x1c0] sm:$0xff] }
 0x20c   : > { %v4657_v18 = vadd.f32 %v8247_v34, %v4656_v62  ;;  %v8439_v59 = vor.u32 %v3212_v1, %v3209_v12  ;;  %v3729_v35 = vshrl.u32 %v1866_v33, 16  ;;  %v3732_v58 = vshll.u32 %v1866_v33, 16 }
 0x20d   : > { %v3275_v37 = vrot.slane %v3273_v30, 4  ;;  %v1256_v39 = vpack.c.bf16 %v8392_v27, %v8392_v27  ;;  %v2371_v8 = vpack.c.b16 %v2345_v15, %v2344_v54  ;;  %v1870_v24 = vrot.slane %v1868_v32, 4 }
 0x20e   : > { %v8443_v47 = vadd.f32 %v4745_v3, %v4657_v18  ;;  %v3992_v63 = vrot.slane %v3990_v57, 3  ;;  %v3995_v62 = vrot.slane %v3993_v2, 4  ;;  %v1873_v0 = vrot.slane %v1871_v38, 5  ;;  %v6667_v2 = vld [vmem:[#allocation6 + $0xb8] sm:$0xff]  }
 0x20f   : > { %v8445_v44 = vor.u32 %v3275_v37, %v3272_v11  ;;  %v1257_v12 = vpack.c.bf16 %v1224_v52, %v1224_v52  ;;  %v2221_v1 = vrot.slane %v2219_v36, 4  ;;  %v2224_v23 = vrot.slane %v2222_v4, 5  ;;  %5237 = vmatpush.bf16.msra.mxu0 %v6397_v60 }
 0x210   : > { %10313 = vst [vmem:[#allocation149_spill] sm:$0xff] %v8443_v47  ;;  %v8447_v33 = vrot.slane %v2371_v8, 5  ;;  %v3214_v27 = vsel %vm2790_vm2, %v8361_v51, %v8439_v59  ;;  %v3731_v3 = vrot.slane %v3729_v35, 3  ;;  %v3734_v15 = vrot.slane %v3732_v58, 4 }
 0x211   : > { %v8455_v49 = vsel %vm2790_vm2, %v8376_v13, %v8445_v44  ;;  %v8457_v57 = vpop.f32.mrf.mxu2  ;;  %v3996_v61 = vor.u32 %v3995_v62, %v3992_v63  ;;  %v8462_v52 = vor.u32 %v1873_v0, %v1870_v24  ;;  %v8464_v36 = vunpack.c.l.b16 %v1256_v39  ;;  %v8470_v30 = vpop.f32.mrf.mxu0  ;;  %v10320_v62 = vld [vmem:[#allocation56_spill] sm:$0xff] }
 0x212   : > { %5080 = vmatmul.bf16.gmra.mxu2 %v3214_v27  ;;  %10314 = vst [vmem:[#allocation150_spill] sm:$0xff] %v8457_v57  ;;  %v2394_v32 = vsel %vm1959_vm4, %v8380_v25, %v8447_v33  ;;  %v8466_v51 = vunpack.c.l.b16 %v1257_v12  ;;  %v8468_v54 = vor.u32 %v2224_v23, %v2221_v1  ;;  %v8472_v38 = vor.u32 %v3734_v15, %v3731_v3  ;;  %v10323_v15 = vld [vmem:[#allocation61_spill] sm:$0xff] }
 0x213   : > { %10315 = vst [vmem:[#allocation151_spill] sm:$0xff] %v8462_v52  ;;  %v3279_v13 = vshrl.u32 %v2394_v32, 16  ;;  %v3282_v11 = vshll.u32 %v2394_v32, 16  ;;  %v6596_v4 = vunpack.c.l.bf16 %v6667_v2  ;;  %v6597_v25 = vunpack.c.h.bf16 %v6667_v2  ;;  %v8493_v24 = vpop.f32.mrf.mxu1 }
 0x214   : > { %10316 = vst [vmem:[#allocation152_spill] sm:$0xff] %v8470_v30  ;;  %v8478_v18 = vsel %vm2790_vm2, %v8370_v5, %v8472_v38  ;;  %v3997_v23 = vsel %vm2790_vm2, %v8394_v41, %v3996_v61  ;;  %v1875_v35 = vsel %vm1732_vm1, %v8410_v16, %v8462_v52  ;;  %v2226_v8 = vsel %vm1732_vm1, %v8363_v56, %v8468_v54  ;;  %v10322_v56 = vld [vmem:[#allocation55_spill] sm:$0xff] }
 0x215   : > { %10317 = vst [vmem:[#allocation153_spill] sm:$0xff] %v8478_v18  ;;  %v1154_v58 = vrot.slane %v6596_v4, 7  ;;  %v3281_v37 = vrot.slane %v3279_v13, 3  ;;  %v8486_v39 = vrot.slane %v6597_v25, 7  ;;  %v3284_v41 = vrot.slane %v3282_v11, 4  ;;  %v10324_v11 = vld [vmem:[#allocation26_spill] sm:$0xff] }
 0x216   : > { %4991 = vmatmul.bf16.gmra.mxu1 %v8385_v43  ;;  %v6358_v43 = vld [vmem:[#allocation9 + $0x88] sm:$0xff]  ;;  %10318 = vst [vmem:[#allocation154_spill] sm:$0xff] %v8493_v24  ;;  %v3342_v60 = vshrl.u32 %v2226_v8, 16  ;;  %v3345_v63 = vshll.u32 %v2226_v8, 16  ;;  %v2228_v0 = vshrl.u32 %v10320_v62, 16  ;;  %v3801_v12 = vshrl.u32 %v1875_v35, 16 }
 0x217   : > { %v8497_v16 = vsel %vm1126_vm3, %v8407_v46, %v1154_v58  ;;  %v8502_v1 = vsel %vm1126_vm3, %v1154_v58, %v8486_v39  ;;  %4791 = vmatpush.bf16.msrb.mxu3 %v6358_v43  ;;  %v3804_v3 = vshll.u32 %v1875_v35, 16  ;;  %v2231_v13 = vshll.u32 %v10320_v62, 16  ;;  %v6357_v58 = vld [vmem:[#allocation9 + $0x80] sm:$0xff] }
 0x218   : > { %4769 = vmatmul.bf16.gmra.mxu3 %v8478_v18  ;;  %4957 = vmatmul.bf16.gmra.mxu0 %v3997_v23  ;;  %10319 = vst [vmem:[#allocation155_spill] sm:$0xff] %v8497_v16  ;;  %v1377_v27 = vmul.f32 %v8497_v16, %v10322_v56  ;;  %v1378_v32 = vmul.f32 %v8502_v1, %v10323_v15  ;;  %v3344_v61 = vrot.slane %v3342_v60, 3  ;;  %v3347_v46 = vrot.slane %v3345_v63, 4 }
 0x219   : > { %10321 = vst [vmem:[#allocation56_spill] sm:$0xff] %v8502_v1  ;;  %v2911_v4 = vshrl.u32 %v10324_v11, 16  ;;  %v2914_v25 = vshll.u32 %v10324_v11, 16  ;;  %v8511_v8 = vor.u32 %v3284_v41, %v3281_v37  ;;  %v8515_v35 = vpop.f32.mrf.mxu0  ;;  %v3803_v43 = vrot.slane %v3801_v12, 3  ;;  %v10327_v12 = vld [vmem:[#allocation59_spill] sm:$0xff] }
 0x21a   : > { %v1410_v23 = vpack.c.bf16 %v1377_v27, %v1377_v27  ;;  %v1411_v5 = vpack.c.bf16 %v1378_v32, %v1378_v32  ;;  %v8513_v30 = vor.u32 %v3347_v46, %v3344_v61  ;;  %10325 = vst [vmem:[#allocation61_spill] sm:$0xff] %v8515_v35  ;;  %v3806_v60 = vrot.slane %v3804_v3, 4  ;;  %v10326_v61 = vld [vmem:[#allocation21_spill] sm:$0xff]  ;;  %v10328_v3 = vld [vmem:[#allocation23_spill] sm:$0xff] }
 0x21b   : > { %v4750_v2 = vpop.f32.mrf.mxu2  ;;  %4792 = vmatpush.bf16.msrb.mxu3 %v6357_v58  ;;  %v2230_v11 = vrot.slane %v2228_v0, 4  ;;  %v2233_v27 = vrot.slane %v2231_v13, 5  ;;  %v2913_v24 = vrot.slane %v2911_v4, 3  ;;  %v2916_v37 = vrot.slane %v2914_v25, 4  ;;  %v10331_v13 = vld [vmem:[#allocation65_spill] sm:$0xff] }
 0x21c   : > { %v2346_v63 = vunpack.c.l.b16 %v1410_v23  ;;  %v2347_v57 = vunpack.c.l.b16 %v1411_v5  ;;  %v8520_v62 = vsel %vm2790_vm2, %v8445_v44, %v8513_v30  ;;  %v3286_v41 = vsel %vm2790_vm2, %v8439_v59, %v8511_v8  ;;  %v10329_v5 = vld [vmem:[#allocation60_spill] sm:$0xff] }
 0x21d   : > { %v1225_v46 = vmul.f32 %v10327_v12, %v10326_v61  ;;  %v1226_v23 = vmul.f32 %v10329_v5, %v10328_v3  ;;  %v8529_v35 = vor.u32 %v3806_v60, %v3803_v43  ;;  %v8533_v0 = vor.u32 %v2233_v27, %v2230_v11 }
 0x21e   : > { %v2372_v32 = vpack.c.b16 %v2347_v57, %v2346_v63  ;;  %v2237_v4 = vshrl.u32 %v10331_v13, 16  ;;  %v2917_v59 = vor.u32 %v2916_v37, %v2913_v24  ;;  %v6668_v57 = vld [vmem:[#allocation6 + $0xc0] sm:$0xff]   ;;  %v10334_v37 = vld [vmem:[#allocation30_spill] sm:$0xff] }
 0x21f   : > { %10330 = vst [vmem:[#allocation26_spill] sm:$0xff] %v8529_v35  ;;  %v6601_v61 = vunpack.c.h.bf16 %v6668_v57  ;;  %v1258_v3 = vpack.c.bf16 %v1225_v46, %v1225_v46  ;;  %v8546_v24 = vsel %vm2790_vm2, %v8472_v38, %v8529_v35  ;;  %v6396_v38 = vld [vmem:[#allocation9 + $0x1b8] sm:$0xff] }
 0x220   : > { %v8531_v44 = vrot.slane %v2372_v32, 5  ;;  %v1259_v32 = vpack.c.bf16 %v1226_v23, %v1226_v23  ;;  %10333 = vst [vmem:[#allocation23_spill] sm:$0xff] %v8546_v24  ;;  %v2235_v23 = vsel %vm1732_vm1, %v8468_v54, %v8533_v0  ;;  %5141 = vmatpush.bf16.msra.mxu3 %v6396_v38  ;;  %v2239_v5 = vrot.slane %v2237_v4, 4 }
 0x221   : > { %v8550_v47 = vrot.slane %v6601_v61, 7  ;;  %v3975_v61 = vshll.u32 %v8462_v52, 16 }
 0x222   : > { %5085 = vmatmul.bf16.gmra.mxu2 %v3286_v41  ;;  %v2396_v63 = vsel %vm1959_vm4, %v8447_v33, %v8531_v44  ;;  %v6600_v41 = vunpack.c.l.bf16 %v6668_v57 }
 0x223   : > { %v4661_v58 = vpop.f32.mrf.mxu1  ;;  %v4752_v60 = vpop.f32.mrf.mxu2  ;;  %v3351_v11 = vshrl.u32 %v2396_v63, 16  ;;  %v3354_v27 = vshll.u32 %v2396_v63, 16  ;;  %v3414_v63 = vshrl.u32 %v2235_v23, 16  ;;  %v3977_v38 = vrot.slane %v3975_v61, 4 }
 0x224   : > { %v4662_v25 = vadd.f32 %v8247_v34, %v4661_v58  ;;  %v2926_v58 = vsel %vm2790_vm2, %v2917_v59, %v10334_v37  ;;  %v1158_v33 = vrot.slane %v6600_v41, 7  ;;  %v3417_v41 = vshll.u32 %v2235_v23, 16  ;;  %v10339_v37 = vld [vmem:[#allocation72_spill] sm:$0xff] }
 0x225   : > { %v3356_v46 = vrot.slane %v3354_v27, 4  ;;  %v1912_v23 = vunpack.c.l.b16 %v1259_v32  ;;  %v10342_v32 = vld [vmem:[#allocation27_spill] sm:$0xff] }
 0x226   : > { %4996 = vmatmul.bf16.gmra.mxu1 %v8455_v49  ;;  %v8541_v43 = vadd.f32 %v4750_v2, %v4662_v25  ;;  %v8553_v49 = vpop.f32.mrf.mxu0  ;;  %v3353_v2 = vrot.slane %v3351_v11, 3  ;;  %v3972_v25 = vshrl.u32 %v8462_v52, 16  ;;  %v8561_v59 = vsel %vm1126_vm3, %v8486_v39, %v1158_v33  ;;  %v10338_v11 = vld [vmem:[#allocation62_spill] sm:$0xff] }
 0x227   : > { %10335 = vst [vmem:[#allocation65_spill] sm:$0xff] %v8553_v49  ;;  %v8565_v57 = vsel %vm1126_vm3, %v1158_v33, %v8550_v47  ;;  %v1379_v27 = vmul.f32 %v8561_v59, %v10338_v11  ;;  %v1911_v39 = vunpack.c.l.b16 %v1258_v3 }
 0x228   : > { %10332 = vst [vmem:[#allocation21_spill] sm:$0xff] %v8541_v43  ;;  %4774 = vmatmul.bf16.gmra.mxu3 %v8546_v24  ;;  %5238 = vmatmul.bf16.vlgmr.msra.gmra.mxu0 %v2926_v58  ;;  %v1380_v54 = vmul.f32 %v8565_v57, %v10339_v37  ;;  %v2240_v58 = vshll.u32 %v10331_v13, 16  ;;  %v3416_v43 = vrot.slane %v3414_v63, 3  ;;  %v3419_v24 = vrot.slane %v3417_v41, 4  ;;  %v10341_v63 = vld [vmem:[#allocation25_spill] sm:$0xff] }
 0x229   : > { %10336 = vst [vmem:[#allocation30_spill] sm:$0xff] %v8561_v59  ;;  %v1412_v18 = vpack.c.bf16 %v1379_v27, %v1379_v27  ;;  %v8574_v52 = vor.u32 %v3356_v46, %v3353_v2  ;;  %v3974_v56 = vrot.slane %v3972_v25, 3  ;;  %v1227_v4 = vmul.f32 %v8129_v55, %v10341_v63 }
 0x22a   : > { %10337 = vst [vmem:[#allocation156_spill] sm:$0xff] %v8565_v57  ;;  %v1413_v12 = vpack.c.bf16 %v1380_v54, %v1380_v54  ;;  %v8576_v11 = vor.u32 %v3419_v24, %v3416_v43  ;;  %v6412_v57 = vld [vmem:[#allocation9 + $0x238] sm:$0xff]  ;;  %v2242_v3 = vrot.slane %v2240_v58, 5  ;;  %v1228_v2 = vmul.f32 %v8133_v28, %v10342_v32 }
 0x22b   : > { %v4663_v49 = vpop.f32.mrf.mxu1  ;;  %v2348_v37 = vunpack.c.l.b16 %v1412_v18  ;;  %5319 = vmatpush.bf16.msra.mxu1 %v6412_v57  ;;  %v3358_v18 = vsel %vm2790_vm2, %v8511_v8, %v8574_v52  ;;  %v3978_v46 = vor.u32 %v3977_v38, %v3974_v56  ;;  %v1260_v61 = vpack.c.bf16 %v1227_v4, %v1227_v4  ;;  %v6669_v56 = vld [vmem:[#allocation6 + $0xc8] sm:$0xff]  }
 0x22c   : > { %v4664_v33 = vadd.f32 %v8247_v34, %v4663_v49  ;;  %v2349_v13 = vunpack.c.l.b16 %v1413_v12  ;;  %v8583_v49 = vsel %vm2790_vm2, %v8513_v30, %v8576_v11  ;;  %v8596_v25 = vor.u32 %v2242_v3, %v2239_v5  ;;  %v10345_v38 = vld [vmem:[#allocation70_spill] sm:$0xff] }
 0x22d   : > { %v1261_v27 = vpack.c.bf16 %v1228_v2, %v1228_v2  ;;  %v10344_v8 = vpack.c.b16 %v8466_v51, %v8464_v36  ;;  %v6604_v5 = vunpack.c.l.bf16 %v6669_v56  ;;  %v2249_v3 = vshll.u32 %v10345_v38, 16 }
 0x22e   : > { %v8578_v59 = vadd.f32 %v4752_v60, %v4664_v33  ;;  %v2373_v24 = vpack.c.b16 %v2349_v13, %v2348_v37  ;;  %v1943_v60 = vpack.c.b16 %v1912_v23, %v1911_v39  ;;  %v8592_v12 = vpop.f32.mrf.mxu0  ;;  %v6605_v23 = vunpack.c.h.bf16 %v6669_v56  ;;  %v10350_v56 = vld [vmem:[#allocation73_spill] sm:$0xff] }
 0x22f   : > { %10343 = vst [vmem:[#allocation25_spill] sm:$0xff] %v8592_v12  ;;  %v1960_v37 = vrot.slane %v10344_v8, 5  ;;  %v2246_v13 = vshrl.u32 %v10345_v38, 16  ;;  %v3979_v4 = vsel %vm2790_vm2, %v8529_v35, %v3978_v46  ;;  %v1162_v36 = vrot.slane %v6604_v5, 7  ;;  %v10347_v8 = vld [vmem:[#allocation35_spill] sm:$0xff] }
 0x230   : > { %10340 = vst [vmem:[#allocation157_spill] sm:$0xff] %v8578_v59  ;;  %v4755_v43 = vpop.f32.mrf.mxu2  ;;  %v8594_v30 = vrot.slane %v2373_v24, 5  ;;  %v8605_v58 = vrot.slane %v1943_v60, 5  ;;  %v8614_v51 = vrot.slane %v6605_v23, 7  ;;  %v1913_v2 = vunpack.c.l.b16 %v1260_v61  ;;  %v10351_v5 = vld [vmem:[#allocation83_spill] sm:$0xff] }
 0x231   : > { %v1914_v24 = vunpack.c.l.b16 %v1261_v27  ;;  %v2244_v46 = vsel %vm1732_vm1, %v8533_v0, %v8596_v25  ;;  %v2251_v55 = vrot.slane %v2249_v3, 5 }
 0x232   : > { %5090 = vmatmul.bf16.gmra.mxu2 %v3358_v18  ;;  %v2398_v57 = vsel %vm1959_vm4, %v8531_v44, %v8594_v30  ;;  %v8628_v61 = vsel %vm1126_vm3, %v1162_v36, %v8614_v51  ;;  %v3486_v27 = vshrl.u32 %v2244_v46, 16  ;;  %v3489_v0 = vshll.u32 %v2244_v46, 16 }
 0x233   : > { %v4666_v41 = vpop.f32.mrf.mxu1  ;;  %v3423_v39 = vshrl.u32 %v2398_v57, 16  ;;  %v3426_v33 = vshll.u32 %v2398_v57, 16  ;;  %v2826_v57 = vshrl.u32 %v1960_v37, 16  ;;  %10349 = vst [vmem:[#allocation35_spill] sm:$0xff] %v8628_v61  ;;  %v1382_v23 = vmul.f32 %v8628_v61, %v10351_v5 }
 0x234   : > { %v4667_v54 = vadd.f32 %v8247_v34, %v4666_v41  ;;  %v1962_v41 = vsel %vm1959_vm4, %v1960_v37, %v8605_v58  ;;  %v3488_v12 = vrot.slane %v3486_v27, 3  ;;  %v3491_v35 = vrot.slane %v3489_v0, 4 }
 0x235   : > { %v3425_v18 = vrot.slane %v3423_v39, 3  ;;  %v1415_v59 = vpack.c.bf16 %v1382_v23, %v1382_v23 }
 0x236   : > { %5001 = vmatmul.bf16.gmra.mxu1 %v8520_v62  ;;  %v8612_v44 = vadd.f32 %v4755_v43, %v4667_v54  ;;  %v3428_v62 = vrot.slane %v3426_v33, 4  ;;  %v8624_v43 = vsel %vm1126_vm3, %v8550_v47, %v1162_v36  ;;  %v2829_v54 = vshll.u32 %v1960_v37, 16  ;;  %v8634_v47 = vpop.f32.mrf.mxu0 }
 0x237   : > { %10348 = vst [vmem:[#allocation70_spill] sm:$0xff] %v8624_v43  ;;  %v1381_v39 = vmul.f32 %v8624_v43, %v10350_v56  ;;  %v2837_v33 = vshll.u32 %v1962_v41, 16  ;;  %v2248_v37 = vrot.slane %v2246_v13, 4  ;;  %v2351_v46 = vunpack.c.l.b16 %v1415_v59 }
 0x238   : > { %10346 = vst [vmem:[#allocation27_spill] sm:$0xff] %v8612_v44  ;;  %4779 = vmatmul.bf16.gmra.mxu3 %v3979_v4  ;;  %v4757_v60 = vpop.f32.mrf.mxu2  ;;  %5243 = vmatmul.bf16.gmra.mxu0 %v10347_v8  ;;  %v2834_v4 = vshrl.u32 %v1962_v41, 16  ;;  %v1944_v8 = vpack.c.b16 %v1914_v24, %v1913_v2  ;;  %v8637_v28 = vor.u32 %v3428_v62, %v3425_v18  ;;  %v2828_v41 = vrot.slane %v2826_v57, 3  ;;  %v6670_v62 = vld [vmem:[#allocation6 + $0xd0] sm:$0xff]  }
 0x239   : > { %10352 = vst [vmem:[#allocation158_spill] sm:$0xff] %v8634_v47  ;;  %v1414_v36 = vpack.c.bf16 %v1381_v39, %v1381_v39  ;;  %v8641_v43 = vor.u32 %v3491_v35, %v3488_v12  ;;  %v2831_v2 = vrot.slane %v2829_v54, 4  ;;  %v2839_v27 = vrot.slane %v2837_v33, 4 }
 0x23a   : > { %v2836_v24 = vrot.slane %v2834_v4, 3  ;;  %v3430_v3 = vsel %vm2790_vm2, %v8574_v52, %v8637_v28  ;;  %v8655_v59 = vor.u32 %v2251_v55, %v2248_v37  ;;  %v1229_v18 = vmul.f32 %v8208_v6, %v7403_v42  ;;  %v10354_v55 = vld [vmem:[#allocation33_spill] sm:$0xff] }
 0x23b   : > { %v4668_v38 = vpop.f32.mrf.mxu1  ;;  %v2350_v5 = vunpack.c.l.b16 %v1414_v36  ;;  %v8648_v13 = vsel %vm2790_vm2, %v8576_v11, %v8641_v43  ;;  %v6609_v23 = vunpack.c.h.bf16 %v6670_v62 }
 0x23c   : > { %v4669_v44 = vadd.f32 %v8247_v34, %v4668_v38  ;;  %v8643_v38 = vrot.slane %v1944_v8, 5 }
 0x23d   : > { %v2374_v61 = vpack.c.b16 %v2351_v46, %v2350_v5  ;;  %v6608_v5 = vunpack.c.l.bf16 %v6670_v62  ;;  %v8677_v8 = vrot.slane %v6609_v23, 7 }
 0x23e   : > { %v8639_v56 = vadd.f32 %v4757_v60, %v4669_v44  ;;  %v2832_v44 = vor.u32 %v2831_v2, %v2828_v41  ;;  %v8657_v60 = vor.u32 %v2839_v27, %v2836_v24  ;;  %v1964_v52 = vsel %vm1959_vm4, %v8605_v58, %v8643_v38  ;;  %v8670_v0 = vpop.f32.mrf.mxu0  ;;  %v6395_v2 = vld [vmem:[#allocation9 + $0x1b0] sm:$0xff] }
 0x23f   : > { %v8653_v35 = vrot.slane %v2374_v61, 5  ;;  %v1230_v61 = vmul.f32 %v8223_v50, %v10354_v55  ;;  %10355 = vst [vmem:[#allocation33_spill] sm:$0xff] %v8670_v0  ;;  %v1166_v33 = vrot.slane %v6608_v5, 7  ;;  %v1262_v58 = vpack.c.bf16 %v1229_v18, %v1229_v18  ;;  %v10357_v24 = vld [vmem:[#allocation39_spill] sm:$0xff]  ;;  %v10358_v18 = vld [vmem:[#allocation84_spill] sm:$0xff]  ;;  %5142 = vmatpush.bf16.msra.mxu3 %v6395_v2 }
 0x240   : > { %10353 = vst [vmem:[#allocation159_spill] sm:$0xff] %v8639_v56  ;;  %v4760_v47 = vpop.f32.mrf.mxu2  ;;  %v2963_v37 = vshrl.u32 %v1964_v52, 16  ;;  %v2253_v41 = vsel %vm1732_vm1, %v8596_v25, %v8655_v59  ;;  %v6411_v0 = vld [vmem:[#allocation9 + $0x230] sm:$0xff] }
 0x241   : > { %v2400_v11 = vsel %vm1959_vm4, %v8594_v30, %v8653_v35  ;;  %v2841_v30 = vsel %vm2790_vm2, %v2832_v44, %v8657_v60  ;;  %v1263_v46 = vpack.c.bf16 %v1230_v61, %v1230_v61  ;;  %v8689_v27 = vsel %vm1126_vm3, %v1166_v33, %v8677_v8  ;;  %v10360_v61 = vld [vmem:[#allocation81_spill] sm:$0xff]  ;;  %5320 = vmatpush.bf16.msra.mxu1 %v6411_v0 }
 0x242   : > { %5095 = vmatmul.bf16.gmra.mxu2 %v3430_v3  ;;  %v3495_v54 = vshrl.u32 %v2400_v11, 16  ;;  %v3498_v39 = vshll.u32 %v2400_v11, 16  ;;  %v3558_v3 = vshrl.u32 %v2253_v41, 16  ;;  %v2966_v44 = vshll.u32 %v1964_v52, 16  ;;  %v10359_v11 = vld [vmem:[#allocation92_spill] sm:$0xff] }
 0x243   : > { %v4671_v12 = vpop.f32.mrf.mxu1  ;;  %v1384_v25 = vmul.f32 %v8689_v27, %v10359_v11  ;;  %v3561_v62 = vshll.u32 %v2253_v41, 16  ;;  %v2965_v56 = vrot.slane %v2963_v37, 3  ;;  %v1915_v6 = vunpack.c.l.b16 %v1262_v58 }
 0x244   : > { %v4672_v57 = vadd.f32 %v8247_v34, %v4671_v12  ;;  %v3497_v36 = vrot.slane %v3495_v54, 3  ;;  %v2255_v54 = vshrl.u32 %v10360_v61, 16  ;;  %v3560_v23 = vrot.slane %v3558_v3, 3 }
 0x245   : > { %v1417_v52 = vpack.c.bf16 %v1384_v25, %v1384_v25  ;;  %v3563_v41 = vrot.slane %v3561_v62, 4  ;;  %v2968_v50 = vrot.slane %v2966_v44, 4 }
 0x246   : > { %5006 = vmatmul.bf16.gmra.mxu1 %v8583_v49  ;;  %v8673_v4 = vadd.f32 %v4760_v47, %v4672_v57  ;;  %v3500_v49 = vrot.slane %v3498_v39, 4  ;;  %v8685_v47 = vsel %vm1126_vm3, %v8614_v51, %v1166_v33  ;;  %v2258_v51 = vshll.u32 %v10360_v61, 16 }
 0x247   : > { %v1383_v57 = vmul.f32 %v8685_v47, %v10358_v18  ;;  %v2353_v61 = vunpack.c.l.b16 %v1417_v52  ;;  %v8704_v11 = vor.u32 %v3563_v41, %v3560_v23  ;;  %v2257_v3 = vrot.slane %v2255_v54, 4  ;;  %v10364_v54 = vld [vmem:[#allocation20_spill] sm:$0xff]  ;;  %v10365_v52 = vld [vmem:[#allocation19_spill] sm:$0xff] }
 0x248   : > { %10356 = vst [vmem:[#allocation160_spill] sm:$0xff] %v8673_v4  ;;  %4793 = vmatmul.bf16.vlgmr.msrb.gmra.mxu3 %v2841_v30  ;;  %5248 = vmatmul.bf16.gmra.mxu0 %v10357_v24  ;;  %v4762_v12 = vpop.f32.mrf.mxu2  ;;  %v1916_v24 = vunpack.c.l.b16 %v1263_v46  ;;  %v8700_v4 = vor.u32 %v3500_v49, %v3497_v36  ;;  %v1232_v46 = vmul.f32 %v8285_v22, %v7497_v21  ;;  %v2260_v36 = vrot.slane %v2258_v51, 5  ;;  %v8710_v49 = vpop.f32.mrf.mxu0 }
 0x249   : > { %v1416_v33 = vpack.c.bf16 %v1383_v57, %v1383_v57  ;;  %10362 = vst [vmem:[#allocation81_spill] sm:$0xff] %v8710_v49  ;;  %v8718_v0 = vsel %vm2790_vm2, %v8641_v43, %v8704_v11  ;;  %v8720_v44 = vor.u32 %v2968_v50, %v2965_v56  ;;  %v1438_v51 = vmul.f32 %v10364_v54, %v7403_v42  ;;  %v6671_v50 = vld [vmem:[#allocation6 + $0xd8] sm:$0xff]  }
 0x24a   : > { %v1945_v37 = vpack.c.b16 %v1916_v24, %v1915_v6  ;;  %v1265_v6 = vpack.c.bf16 %v1232_v46, %v1232_v46  ;;  %v1437_v24 = vmul.f32 %v10365_v52, %v10342_v32 }
 0x24b   : > { %v8697_v39 = vpop.f32.mrf.mxu3  ;;  %v4673_v5 = vpop.f32.mrf.mxu1  ;;  %v2352_v18 = vunpack.c.l.b16 %v1416_v33  ;;  %v6613_v33 = vunpack.c.h.bf16 %v6671_v50  ;;  %v2970_v41 = vsel %vm2790_vm2, %v8657_v60, %v8720_v44 }
 0x24c   : > { %v4674_v30 = vadd.f32 %v8247_v34, %v4673_v5  ;;  %v1231_v34 = vmul.f32 %v8279_v9, %v7444_v19  ;;  %v8735_v5 = vrot.slane %v1945_v37, 5  ;;  %v1918_v46 = vunpack.c.l.b16 %v1265_v6 }
 0x24d   : > { %v2375_v58 = vpack.c.b16 %v2353_v61, %v2352_v18  ;;  %v1471_v37 = vpack.c.bf16 %v1438_v51, %v1438_v51 }
 0x24e   : > { %v8702_v2 = vadd.f32 %v4762_v12, %v4674_v30  ;;  %v3502_v12 = vsel %vm2790_vm2, %v8637_v28, %v8700_v4  ;;  %v1264_v18 = vpack.c.bf16 %v1231_v34, %v1231_v34  ;;  %v8730_v28 = vor.u32 %v2260_v36, %v2257_v3 }
 0x24f   : > { %v8722_v57 = vrot.slane %v2375_v58, 5  ;;  %v6612_v30 = vunpack.c.l.bf16 %v6671_v50  ;;  %v8743_v34 = vrot.slane %v6613_v33, 7  ;;  %v1966_v36 = vsel %vm1959_vm4, %v8643_v38, %v8735_v5  ;;  %v10369_v38 = vld [vmem:[#allocation94_spill] sm:$0xff]  ;;  %v10370_v50 = vld [vmem:[#allocation97_spill] sm:$0xff] }
 0x250   : > { %10361 = vst [vmem:[#allocation39_spill] sm:$0xff] %v8702_v2  ;;  %v2262_v58 = vsel %vm1732_vm1, %v8655_v59, %v8730_v28  ;;  %v8760_v54 = vpop.f32.mrf.mxu0  ;;  %v3039_v33 = vshll.u32 %v1966_v36, 16 }
 0x251   : > { %v2402_v43 = vsel %vm1959_vm4, %v8653_v35, %v8722_v57  ;;  %v1170_v61 = vrot.slane %v6612_v30, 7  ;;  %v1917_v35 = vunpack.c.l.b16 %v1264_v18  ;;  %v3630_v6 = vshrl.u32 %v2262_v58, 16  ;;  %10368 = vst [vmem:[#allocation19_spill] sm:$0xff] %v8760_v54 }
 0x252   : > { %5100 = vmatmul.bf16.gmra.mxu2 %v3502_v12  ;;  %v3567_v56 = vshrl.u32 %v2402_v43, 16  ;;  %v3570_v23 = vshll.u32 %v2402_v43, 16  ;;  %v10366_v12 = vld [vmem:[#allocation44_spill] sm:$0xff]  ;;  %v3633_v51 = vshll.u32 %v2262_v58, 16  ;;  %v2451_v54 = vunpack.c.l.b16 %v1471_v37 }
 0x253   : > { %v8724_v25 = vpop.f32.mrf.mxu3  ;;  %v8726_v62 = vpop.f32.mrf.mxu1  ;;  %v8758_v18 = vsel %vm1126_vm3, %v1170_v61, %v8743_v34  ;;  %v1946_v52 = vpack.c.b16 %v1918_v46, %v1917_v35  ;;  %v1233_v35 = vmul.f32 %v8346_v17, %v7499_v14  ;;  %v6410_v17 = vld [vmem:[#allocation9 + $0x228] sm:$0xff] }
 0x254   : > { %10363 = vst [vmem:[#allocation161_spill] sm:$0xff] %v8726_v62  ;;  %v3569_v3 = vrot.slane %v3567_v56, 3  ;;  %v3572_v60 = vrot.slane %v3570_v23, 4  ;;  %v1386_v59 = vmul.f32 %v8758_v18, %v10370_v50  ;;  %v1470_v56 = vpack.c.bf16 %v1437_v24, %v1437_v24  ;;  %v10372_v62 = vld [vmem:[#allocation50_spill] sm:$0xff]  ;;  %5321 = vmatpush.bf16.msra.mxu1 %v6410_v17 }
 0x255   : > { %v3635_v49 = vrot.slane %v3633_v51, 4  ;;  %v2264_v2 = vshrl.u32 %v10372_v62, 16  ;;  %v2267_v9 = vshll.u32 %v10372_v62, 16  ;;  %v1234_v62 = vmul.f32 %v8350_v40, %v7559_v26  ;;  %v10382_v17 = vld [vmem:[#allocation18_spill] sm:$0xff] }
 0x256   : > { %5011 = vmatmul.bf16.gmra.mxu1 %v8648_v13  ;;  %v8754_v13 = vsel %vm1126_vm3, %v8677_v8, %v1170_v61  ;;  %v3036_v8 = vshrl.u32 %v1966_v36, 16  ;;  %v8772_v22 = vor.u32 %v3572_v60, %v3569_v3  ;;  %v8776_v36 = vrot.slane %v1946_v52, 5 }
 0x257   : > { %10367 = vst [vmem:[#allocation20_spill] sm:$0xff] %v8754_v13  ;;  %v1385_v43 = vmul.f32 %v8754_v13, %v10369_v38  ;;  %v2450_v38 = vunpack.c.l.b16 %v1470_v56  ;;  %v3041_v13 = vrot.slane %v3039_v33, 4  ;;  %v2266_v60 = vrot.slane %v2264_v2, 4 }
 0x258   : > { %4798 = vmatmul.bf16.gmra.mxu3 %v2970_v41  ;;  %5253 = vmatmul.bf16.gmra.mxu0 %v10366_v12  ;;  %v3632_v41 = vrot.slane %v3630_v6, 3  ;;  %v1419_v12 = vpack.c.bf16 %v1386_v59, %v1386_v59  ;;  %v2269_v6 = vrot.slane %v2267_v9, 5  ;;  %v1266_v56 = vpack.c.bf16 %v1233_v35, %v1233_v35 }
 0x259   : > { %v1418_v61 = vpack.c.bf16 %v1385_v43, %v1385_v43  ;;  %v8787_v3 = vpack.c.b16 %v2451_v54, %v2450_v38  ;;  %v1968_v9 = vsel %vm1959_vm4, %v8735_v5, %v8776_v36  ;;  %v1267_v2 = vpack.c.bf16 %v1234_v62, %v1234_v62  ;;  %v10375_v62 = vld [vmem:[#allocation51_spill] sm:$0xff] }
 0x25a   : > { %v2355_v24 = vunpack.c.l.b16 %v1419_v12  ;;  %v8774_v50 = vor.u32 %v3635_v49, %v3632_v41  ;;  %v3574_v49 = vsel %vm2790_vm2, %v8700_v4, %v8772_v22  ;;  %v6672_v4 = vld [vmem:[#allocation6 + $0xe0] sm:$0xff]   ;;  %v1919_v12 = vunpack.c.l.b16 %v1266_v56  ;;  %v10378_v56 = vld [vmem:[#allocation98_spill] sm:$0xff] }
 0x25b   : > { %v8766_v23 = vpop.f32.mrf.mxu3  ;;  %v8768_v30 = vpop.f32.mrf.mxu1  ;;  %v2354_v58 = vunpack.c.l.b16 %v1418_v61  ;;  %v6616_v52 = vunpack.c.l.bf16 %v6672_v4  ;;  %v6617_v41 = vunpack.c.h.bf16 %v6672_v4  ;;  %v8808_v61 = vor.u32 %v2269_v6, %v2266_v60 }
 0x25c   : > { %10371 = vst [vmem:[#allocation44_spill] sm:$0xff] %v8768_v30  ;;  %v3038_v30 = vrot.slane %v3036_v8, 3  ;;  %v8783_v37 = vsel %vm2790_vm2, %v8704_v11, %v8774_v50  ;;  %v8800_v8 = vpop.f32.mrf.mxu0  ;;  %v3111_v6 = vshll.u32 %v1968_v9, 16 }
 0x25d   : > { %v2376_v46 = vpack.c.b16 %v2355_v24, %v2354_v58  ;;  %10374 = vst [vmem:[#allocation162_spill] sm:$0xff] %v8800_v8  ;;  %v3108_v58 = vshrl.u32 %v1968_v9, 16  ;;  %v1920_v24 = vunpack.c.l.b16 %v1267_v2  ;;  %v2271_v35 = vsel %vm1732_vm1, %v8730_v28, %v8808_v61  ;;  %v10379_v2 = vld [vmem:[#allocation57_spill] sm:$0xff] }
 0x25e   : > { %v8798_v11 = vor.u32 %v3041_v13, %v3038_v30  ;;  %v1174_v30 = vrot.slane %v6616_v52, 7  ;;  %v3702_v60 = vshrl.u32 %v2271_v35, 16  ;;  %v3705_v4 = vshll.u32 %v2271_v35, 16 }
 0x25f   : > { %v8792_v43 = vrot.slane %v2376_v46, 5  ;;  %v6394_v46 = vld [vmem:[#allocation9 + $0x1a8] sm:$0xff]  ;;  %v1947_v9 = vpack.c.b16 %v1920_v24, %v1919_v12  ;;  %v3113_v35 = vrot.slane %v3111_v6, 4  ;;  %v1436_v6 = vmul.f32 %v10382_v17, %v10341_v63 }
 0x260   : > { %v3043_v13 = vsel %vm2790_vm2, %v8720_v44, %v8798_v11  ;;  %5143 = vmatpush.bf16.msra.mxu3 %v6394_v46 }
 0x261   : > { %v2404_v54 = vsel %vm1959_vm4, %v8722_v57, %v8792_v43  ;;  %v8814_v57 = vrot.slane %v6617_v41, 7  ;;  %v3704_v41 = vrot.slane %v3702_v60, 3  ;;  %v1236_v60 = vmul.f32 %v8418_v48, %v7629_v20 }
 0x262   : > { %5105 = vmatmul.bf16.gmra.mxu2 %v3574_v49  ;;  %v3639_v38 = vshrl.u32 %v2404_v54, 16  ;;  %v3642_v33 = vshll.u32 %v2404_v54, 16  ;;  %v8822_v49 = vsel %vm1126_vm3, %v8743_v34, %v1174_v30  ;;  %v8846_v24 = vrot.slane %v1947_v9, 5 }
 0x263   : > { %v8794_v59 = vpop.f32.mrf.mxu3  ;;  %v8796_v51 = vpop.f32.mrf.mxu1  ;;  %10376 = vst [vmem:[#allocation51_spill] sm:$0xff] %v8822_v49  ;;  %v8826_v44 = vsel %vm1126_vm3, %v1174_v30, %v8814_v57  ;;  %v1387_v54 = vmul.f32 %v8822_v49, %v10378_v56 }
 0x264   : > { %10373 = vst [vmem:[#allocation50_spill] sm:$0xff] %v8796_v51  ;;  %v3641_v5 = vrot.slane %v3639_v38, 3  ;;  %v1388_v28 = vmul.f32 %v8826_v44, %v8073_v29  ;;  %v2273_v38 = vshrl.u32 %v10379_v2, 16  ;;  %v3110_v51 = vrot.slane %v3108_v58, 3  ;;  %v8840_v40 = vpop.f32.mrf.mxu0 }
 0x265   : > { %10377 = vst [vmem:[#allocation163_spill] sm:$0xff] %v8826_v44  ;;  %v1235_v58 = vmul.f32 %v8414_v53, %v7561_v7 }
 0x266   : > { %5016 = vmatmul.bf16.gmra.mxu1 %v8718_v0  ;;  %v3644_v0 = vrot.slane %v3642_v33, 4  ;;  %v2276_v33 = vshll.u32 %v10379_v2, 16  ;;  %v1421_v30 = vpack.c.bf16 %v1388_v28, %v1388_v28  ;;  %10381 = vst [vmem:[#allocation164_spill] sm:$0xff] %v8840_v40  ;;  %v2275_v2 = vrot.slane %v2273_v38, 4 }
 0x267   : > { %v8860_v28 = vor.u32 %v3113_v35, %v3110_v51  ;;  %v6673_v51 = vld [vmem:[#allocation6 + $0xe8] sm:$0xff]  }
 0x268   : > { %4803 = vmatmul.bf16.gmra.mxu3 %v3043_v13  ;;  %5258 = vmatmul.bf16.gmra.mxu0 %v10375_v62  ;;  %v1420_v13 = vpack.c.bf16 %v1387_v54, %v1387_v54  ;;  %v3707_v62 = vrot.slane %v3705_v4, 4  ;;  %v8838_v8 = vor.u32 %v3644_v0, %v3641_v5  ;;  %v2357_v29 = vunpack.c.l.b16 %v1421_v30  ;;  %v1429_v54 = vld [vmem:[#allocation2 + $0x14] sm:$0x8] }
 0x269   : > { %v2278_v44 = vrot.slane %v2276_v33, 5  ;;  %v1432_v4 = vunpack.c.l.bf16 %v1429_v54  ;;  %v1269_v33 = vpack.c.bf16 %v1236_v60, %v1236_v60  ;;  %v1268_v30 = vpack.c.bf16 %v1235_v58, %v1235_v58  ;;  %v10384_v54 = vld [vmem:[#allocation67_spill] sm:$0xff] }
 0x26a   : > { %v2356_v46 = vunpack.c.l.b16 %v1420_v13  ;;  %v8842_v56 = vor.u32 %v3707_v62, %v3704_v41  ;;  %v3646_v0 = vsel %vm2790_vm2, %v8772_v22, %v8838_v8  ;;  %v1970_v13 = vsel %vm1959_vm4, %v8776_v36, %v8846_v24 }
 0x26b   : > { %v8834_v34 = vpop.f32.mrf.mxu3  ;;  %v8836_v52 = vpop.f32.mrf.mxu1  ;;  %v8868_v41 = vor.u32 %v2278_v44, %v2275_v2  ;;  %v6620_v35 = vunpack.c.l.bf16 %v6673_v51  ;;  %v3115_v44 = vsel %vm2790_vm2, %v8798_v11, %v8860_v28  ;;  %v10385_v2 = vld [vmem:[#allocation17_spill] sm:$0xff]  ;;  %v1469_v60 = vpack.c.bf16 %v1436_v6, %v1436_v6 }
 0x26c   : > { %10380 = vst [vmem:[#allocation57_spill] sm:$0xff] %v8836_v52  ;;  %v2377_v12 = vpack.c.b16 %v2357_v29, %v2356_v46  ;;  %v8851_v5 = vsel %vm2790_vm2, %v8774_v50, %v8842_v56  ;;  %v6621_v46 = vunpack.c.h.bf16 %v6673_v51  ;;  %v1922_v58 = vunpack.c.l.b16 %v1269_v33  ;;  %v8884_v40 = vpop.f32.mrf.mxu0  ;;  %v10387_v52 = vld [vmem:[#allocation58_spill] sm:$0xff] }
 0x26d   : > { %v1178_v17 = vrot.slane %v6620_v35, 7  ;;  %10386 = vst [vmem:[#allocation67_spill] sm:$0xff] %v8884_v40  ;;  %v3183_v51 = vshll.u32 %v1970_v13, 16  ;;  %v2280_v11 = vsel %vm1732_vm1, %v8808_v61, %v8868_v41 }
 0x26e   : > { %v8862_v29 = vrot.slane %v2377_v12, 5  ;;  %v2282_v12 = vshrl.u32 %v10384_v54, 16  ;;  %v8882_v36 = vrot.slane %v6621_v46, 7  ;;  %v3774_v33 = vshrl.u32 %v2280_v11, 16 }
 0x26f   : > { %v8892_v6 = vsel %vm1126_vm3, %v8814_v57, %v1178_v17  ;;  %v3777_v35 = vshll.u32 %v2280_v11, 16  ;;  %v3185_v40 = vrot.slane %v3183_v51, 4 }
 0x270   : > { %v2406_v22 = vsel %vm1959_vm4, %v8792_v43, %v8862_v29  ;;  %v1435_v43 = vmul.f32 %v1432_v4, %v10385_v2  ;;  %10388 = vst [vmem:[#allocation17_spill] sm:$0xff] %v8892_v6  ;;  %v8896_v4 = vsel %vm1126_vm3, %v1178_v17, %v8882_v36  ;;  %v8907_v17 = vpop.f32.mrf.mxu2 }
 0x271   : > { %v3711_v9 = vshrl.u32 %v2406_v22, 16  ;;  %v3714_v62 = vshll.u32 %v2406_v22, 16  ;;  %10389 = vst [vmem:[#allocation58_spill] sm:$0xff] %v8896_v4  ;;  %v3779_v48 = vrot.slane %v3777_v35, 4  ;;  %v8947_v35 = vld [vmem:[%s9995_s5] ss:$0 sm:$0xff] }
 0x272   : > { %5110 = vmatmul.bf16.gmra.mxu2 %v3646_v0  ;;  %v3180_v0 = vshrl.u32 %v1970_v13, 16  ;;  %v1389_v13 = vmul.f32 %v8892_v6, %v8075_v45  ;;  %v1468_v2 = vpack.c.bf16 %v1435_v43, %v1435_v43  ;;  %10392 = vst [vmem:[#allocation166_spill] sm:$0xff] %v8907_v17  ;;  %v2449_v45 = vunpack.c.l.b16 %v1469_v60 }
 0x273   : > { %v8864_v38 = vpop.f32.mrf.mxu3  ;;  %v8866_v50 = vpop.f32.mrf.mxu1  ;;  %v3713_v22 = vrot.slane %v3711_v9, 3  ;;  %v2285_v9 = vshll.u32 %v10384_v54, 16 }
 0x274   : > { %10383 = vst [vmem:[#allocation18_spill] sm:$0xff] %v8866_v50  ;;  %v1921_v50 = vunpack.c.l.b16 %v1268_v30  ;;  %v10390_v30 = vld [vmem:[#allocation114_spill] sm:$0xff]  ;;  %v3182_v57 = vrot.slane %v3180_v0, 3  ;;  %v1422_v53 = vpack.c.bf16 %v1389_v13, %v1389_v13  ;;  %v2284_v0 = vrot.slane %v2282_v12, 4 }
 0x275   : > { %v1390_v61 = vmul.f32 %v8896_v4, %v10390_v30  ;;  %v2448_v60 = vunpack.c.l.b16 %v1468_v2 }
 0x276   : > { %5021 = vmatmul.bf16.gmra.mxu1 %v8783_v37  ;;  %v3716_v37 = vrot.slane %v3714_v62, 4  ;;  %v1948_v46 = vpack.c.b16 %v1922_v58, %v1921_v50  ;;  %v2358_v6 = vunpack.c.l.b16 %v1422_v53  ;;  %v2287_v50 = vrot.slane %v2285_v9, 5  ;;  %v10394_v9 = vld [vmem:[#allocation79_spill] sm:$0xff] }
 0x277   : > { %v1423_v54 = vpack.c.bf16 %v1390_v61, %v1390_v61  ;;  %v8917_v43 = vor.u32 %v3185_v40, %v3182_v57  ;;  %v1238_v40 = vmul.f32 %v8502_v1, %v10311_v10  ;;  %v2294_v61 = vshll.u32 %v10394_v9, 16 }
 0x278   : > { %4808 = vmatmul.bf16.gmra.mxu3 %v3115_v44  ;;  %5263 = vmatmul.bf16.gmra.mxu0 %v10387_v52  ;;  %v3776_v44 = vrot.slane %v3774_v33, 3  ;;  %v8909_v7 = vor.u32 %v3716_v37, %v3713_v22  ;;  %v8915_v58 = vrot.slane %v1948_v46, 5  ;;  %v8933_v33 = vor.u32 %v2287_v50, %v2284_v0  ;;  %v6674_v46 = vld [vmem:[#allocation6 + $0xf0] sm:$0xff]   ;;  %v8957_v0 = vpop.f32.mrf.mxu2 }
 0x279   : > { %v2359_v30 = vunpack.c.l.b16 %v1423_v54  ;;  %v6624_v2 = vunpack.c.l.bf16 %v6674_v46  ;;  %v6625_v54 = vunpack.c.h.bf16 %v6674_v46  ;;  %10396 = vst [vmem:[#allocation168_spill] sm:$0xff] %v8957_v0  ;;  %v10397_v0 = vld [vmem:[#allocation66_spill] sm:$0xff] }
 0x27a   : > { %v8911_v11 = vor.u32 %v3779_v48, %v3776_v44  ;;  %v3718_v53 = vsel %vm2790_vm2, %v8838_v8, %v8909_v7  ;;  %v8927_v48 = vpop.f32.mrf.mxu0  ;;  %v1972_v8 = vsel %vm1959_vm4, %v8846_v24, %v8915_v58  ;;  %v2289_v46 = vsel %vm1732_vm1, %v8868_v41, %v8933_v33 }
 0x27b   : > { %v8903_v52 = vpop.f32.mrf.mxu3  ;;  %v8905_v62 = vpop.f32.mrf.mxu1  ;;  %v2378_v51 = vpack.c.b16 %v2359_v30, %v2358_v6  ;;  %10393 = vst [vmem:[#allocation167_spill] sm:$0xff] %v8927_v48  ;;  %v2481_v6 = vpack.c.b16 %v2449_v45, %v2448_v60  ;;  %v4677_v45 = vadd.f32 %v8947_v35, %v8697_v39  ;;  %v3252_v50 = vshrl.u32 %v1972_v8, 16 }
 0x27c   : > { %10391 = vst [vmem:[#allocation165_spill] sm:$0xff] %v8905_v62  ;;  %v1237_v62 = vmul.f32 %v8497_v16, %v7636_v31  ;;  %v8922_v22 = vsel %vm2790_vm2, %v8842_v56, %v8911_v11  ;;  %v2291_v56 = vshrl.u32 %v10394_v9, 16  ;;  %v8960_v9 = vrot.slane %v6625_v54, 7 }
 0x27d   : > { %v8929_v12 = vrot.slane %v2378_v51, 5  ;;  %v1271_v51 = vpack.c.bf16 %v1238_v40, %v1238_v40  ;;  %v2894_v60 = vshrl.u32 %v2481_v6, 16 }
 0x27e   : > { %v1270_v37 = vpack.c.bf16 %v1237_v62, %v1237_v62  ;;  %v3187_v62 = vsel %vm2790_vm2, %v8860_v28, %v8917_v43  ;;  %v2902_v28 = vshrl.u32 %v8787_v3, 16 }
 0x27f   : > { %v2408_v57 = vsel %vm1959_vm4, %v8862_v29, %v8929_v12  ;;  %v2905_v29 = vshll.u32 %v8787_v3, 16  ;;  %v3846_v3 = vshrl.u32 %v2289_v46, 16  ;;  %v1924_v54 = vunpack.c.l.b16 %v1271_v51 }
 0x280   : > { %v3783_v24 = vshrl.u32 %v2408_v57, 16  ;;  %v3786_v44 = vshll.u32 %v2408_v57, 16  ;;  %v1923_v39 = vunpack.c.l.b16 %v1270_v37  ;;  %v3255_v57 = vshll.u32 %v1972_v8, 16 }
 0x281   : > { %v3848_v17 = vrot.slane %v3846_v3, 3  ;;  %v2904_v16 = vrot.slane %v2902_v28, 3  ;;  %v2907_v1 = vrot.slane %v2905_v29, 4  ;;  %v8990_v28 = vpop.f32.mrf.mxu2 }
 0x282   : > { %5115 = vmatmul.bf16.gmra.mxu2 %v3718_v53  ;;  %v1182_v53 = vrot.slane %v6624_v2, 7  ;;  %v3785_v48 = vrot.slane %v3783_v24, 3  ;;  %v3788_v40 = vrot.slane %v3786_v44, 4  ;;  %v10401_v24 = vld [vmem:[#allocation126_spill] sm:$0xff]  ;;  %v8984_v20 = vpop.f32.mrf.mxu0  ;;  %v3257_v51 = vrot.slane %v3255_v57, 4  ;;  %10405 = vst [vmem:[#allocation173_spill] sm:$0xff] %v8990_v28 }
 0x283   : > { %v8936_v13 = vpop.f32.mrf.mxu3  ;;  %v8938_v30 = vpop.f32.mrf.mxu1  ;;  %10404 = vst [vmem:[#allocation172_spill] sm:$0xff] %v8984_v20  ;;  %v4679_v57 = vadd.f32 %v8947_v35, %v8724_v25 }
 0x284   : > { %10395 = vst [vmem:[#allocation79_spill] sm:$0xff] %v8938_v30  ;;  %v6393_v30 = vld [vmem:[#allocation9 + $0x1a0] sm:$0xff]  ;;  %v8970_v37 = vsel %vm1126_vm3, %v8882_v36, %v1182_v53  ;;  %v8974_v2 = vsel %vm1126_vm3, %v1182_v53, %v8960_v9  ;;  %v2896_v36 = vrot.slane %v2894_v60, 3  ;;  %v2293_v60 = vrot.slane %v2291_v56, 4 }
 0x285   : > { %10398 = vst [vmem:[#allocation66_spill] sm:$0xff] %v8970_v37  ;;  %v1392_v41 = vmul.f32 %v8974_v2, %v10401_v24  ;;  %5144 = vmatpush.bf16.msra.mxu3 %v6393_v30  ;;  %v3254_v24 = vrot.slane %v3252_v50, 3  ;;  %v8997_v50 = vor.u32 %v2907_v1, %v2904_v16 }
 0x286   : > { %5026 = vmatmul.bf16.gmra.mxu1 %v8851_v5  ;;  %v2897_v5 = vshll.u32 %v2481_v6, 16  ;;  %10399 = vst [vmem:[#allocation169_spill] sm:$0xff] %v8974_v2  ;;  %v3849_v6 = vshll.u32 %v2289_v46, 16  ;;  %v6409_v46 = vld [vmem:[#allocation9 + $0x220] sm:$0xff] }
 0x287   : > { %v1425_v10 = vpack.c.bf16 %v1392_v41, %v1392_v41  ;;  %5322 = vmatpush.bf16.msra.mxu1 %v6409_v46  ;;  %10406 = vst [vmem:[#allocation174_spill] sm:$0xff] %v8997_v50 }
 0x288   : > { %4813 = vmatmul.bf16.gmra.mxu3 %v3187_v62  ;;  %5268 = vmatmul.bf16.gmra.mxu0 %v10397_v0  ;;  %v10400_v62 = vld [vmem:[#allocation119_spill] sm:$0xff]  ;;  %v3851_v4 = vrot.slane %v3849_v6, 4  ;;  %v2899_v30 = vrot.slane %v2897_v5, 4 }
 0x289   : > { %v1391_v8 = vmul.f32 %v8970_v37, %v10400_v62  ;;  %v8986_v62 = vor.u32 %v3788_v40, %v3785_v48  ;;  %v2361_v37 = vunpack.c.l.b16 %v1425_v10 }
 0x28a   : > { %v8988_v3 = vor.u32 %v3851_v4, %v3848_v17  ;;  %v2900_v4 = vor.u32 %v2899_v30, %v2896_v36  ;;  %v9004_v17 = vor.u32 %v3257_v51, %v3254_v24  ;;  %v9034_v36 = vpop.f32.mrf.mxu0  ;;  %v4682_v30 = vadd.f32 %v8947_v35, %v8766_v23 }
 0x28b   : > { %v4765_v0 = vpop.f32.mrf.mxu3  ;;  %v8980_v44 = vpop.f32.mrf.mxu1  ;;  %v1424_v53 = vpack.c.bf16 %v1391_v8, %v1391_v8  ;;  %v3790_v10 = vsel %vm2790_vm2, %v8909_v7, %v8986_v62  ;;  %v10411_v8 = vld [vmem:[#allocation30_spill] sm:$0xff] }
 0x28c   : > { %10402 = vst [vmem:[#allocation170_spill] sm:$0xff] %v8980_v44  ;;  %v8982_v31 = vadd.f32 %v4765_v0, %v4677_v45  ;;  %v1949_v44 = vpack.c.b16 %v1924_v54, %v1923_v39  ;;  %v2296_v45 = vrot.slane %v2294_v61, 5  ;;  %v8995_v48 = vsel %vm2790_vm2, %v8911_v11, %v8988_v3  ;;  %v10407_v11 = vld [vmem:[#allocation156_spill] sm:$0xff] }
 0x28d   : > { %v2360_v2 = vunpack.c.l.b16 %v1424_v53  ;;  %v1240_v39 = vmul.f32 %v10407_v11, %v10323_v15  ;;  %v9016_v25 = vsel %vm2790_vm2, %v2900_v4, %v8997_v50  ;;  %v3259_v6 = vsel %vm2790_vm2, %v8917_v43, %v9004_v17  ;;  %v10416_v4 = vld [vmem:[#allocation137_spill] sm:$0xff] }
 0x28e   : > { %10403 = vst [vmem:[#allocation171_spill] sm:$0xff] %v8982_v31  ;;  %v9008_v61 = vrot.slane %v1949_v44, 5  ;;  %v9018_v5 = vor.u32 %v2296_v45, %v2293_v60 }
 0x28f   : > { %v2379_v29 = vpack.c.b16 %v2361_v37, %v2360_v2  ;;  %v6675_v37 = vld [vmem:[#allocation6 + $0xf8] sm:$0xff]   ;;  %v10410_v2 = vld [vmem:[#allocation55_spill] sm:$0xff]  ;;  %v1273_v44 = vpack.c.bf16 %v1240_v39, %v1240_v39 }
 0x290   : > { %v1239_v24 = vmul.f32 %v10411_v8, %v10410_v2  ;;  %v6628_v41 = vunpack.c.l.bf16 %v6675_v37  ;;  %v6629_v54 = vunpack.c.h.bf16 %v6675_v37  ;;  %v1974_v0 = vsel %vm1959_vm4, %v8915_v58, %v9008_v61  ;;  %10412 = vst [vmem:[#allocation55_spill] sm:$0xff] %v9034_v36 }
 0x291   : > { %v9006_v56 = vrot.slane %v2379_v29, 5  ;;  %v2298_v43 = vsel %vm1732_vm1, %v8933_v33, %v9018_v5  ;;  %v3324_v58 = vshrl.u32 %v1974_v0, 16  ;;  %v3327_v23 = vshll.u32 %v1974_v0, 16  ;;  %v10417_v33 = vld [vmem:[#allocation145_spill] sm:$0xff] }
 0x292   : > { %5120 = vmatmul.bf16.gmra.mxu2 %v3790_v10  ;;  %v1186_v51 = vrot.slane %v6628_v41, 7  ;;  %v9036_v46 = vrot.slane %v6629_v54, 7  ;;  %v1272_v60 = vpack.c.bf16 %v1239_v24, %v1239_v24  ;;  %v9052_v10 = vpop.f32.mrf.mxu2  ;;  %v1926_v54 = vunpack.c.l.b16 %v1273_v44  ;;  %v9068_v44 = vpop.f32.mrf.mxu0 }
 0x293   : > { %v4767_v16 = vpop.f32.mrf.mxu3  ;;  %v9012_v1 = vpop.f32.mrf.mxu1  ;;  %v2410_v40 = vsel %vm1959_vm4, %v8929_v12, %v9006_v56  ;;  %v3326_v31 = vrot.slane %v3324_v58, 3  ;;  %10420 = vst [vmem:[#allocation177_spill] sm:$0xff] %v9068_v44 }
 0x294   : > { %10408 = vst [vmem:[#allocation156_spill] sm:$0xff] %v9012_v1  ;;  %v9020_v7 = vadd.f32 %v4767_v16, %v4679_v57  ;;  %v3855_v12 = vshrl.u32 %v2410_v40, 16  ;;  %v3858_v53 = vshll.u32 %v2410_v40, 16  ;;  %v9046_v45 = vsel %vm1126_vm3, %v8960_v9, %v1186_v51 }
 0x295   : > { %v9050_v29 = vsel %vm1126_vm3, %v1186_v51, %v9036_v46  ;;  %v3918_v57 = vshrl.u32 %v2298_v43, 16  ;;  %v1393_v39 = vmul.f32 %v10416_v4, %v9046_v45  ;;  %v3921_v40 = vshll.u32 %v2298_v43, 16 }
 0x296   : > { %10409 = vst [vmem:[#allocation175_spill] sm:$0xff] %v9020_v7  ;;  %5031 = vmatmul.bf16.gmra.mxu1 %v8922_v22  ;;  %v10413_v22 = vld [vmem:[#allocation76_spill] sm:$0xff]  ;;  %v1394_v16 = vmul.f32 %v10417_v33, %v9050_v29  ;;  %v3857_v9 = vrot.slane %v3855_v12, 3  ;;  %v3860_v41 = vrot.slane %v3858_v53, 4  ;;  %v3329_v43 = vrot.slane %v3327_v23, 4 }
 0x297   : > { %10414 = vst [vmem:[#allocation30_spill] sm:$0xff] %v9050_v29  ;;  %v3923_v20 = vrot.slane %v3921_v40, 4  ;;  %v10424_v23 = vld [vmem:[#allocation72_spill] sm:$0xff] }
 0x298   : > { %4818 = vmatmul.bf16.gmra.mxu3 %v3259_v6  ;;  %5273 = vmatmul.bf16.gmra.mxu0 %v10413_v22  ;;  %10415 = vst [vmem:[#allocation76_spill] sm:$0xff] %v9052_v10  ;;  %v3920_v6 = vrot.slane %v3918_v57, 3  ;;  %v1426_v22 = vpack.c.bf16 %v1393_v39, %v1393_v39  ;;  %v1427_v36 = vpack.c.bf16 %v1394_v16, %v1394_v16  ;;  %v1925_v10 = vunpack.c.l.b16 %v1272_v60  ;;  %v10425_v39 = vld [vmem:[#allocation35_spill] sm:$0xff] }
 0x299   : > { %v9062_v7 = vor.u32 %v3860_v41, %v3857_v9  ;;  %v9075_v60 = vor.u32 %v3329_v43, %v3326_v31  ;;  %v10426_v31 = vld [vmem:[#allocation62_spill] sm:$0xff] }
 0x29a   : > { %v2362_v0 = vunpack.c.l.b16 %v1426_v22  ;;  %v2363_v1 = vunpack.c.l.b16 %v1427_v36  ;;  %v3924_v28 = vor.u32 %v3923_v20, %v3920_v6  ;;  %v1950_v50 = vpack.c.b16 %v1926_v54, %v1925_v10  ;;  %v10428_v43 = vld [vmem:[#allocation90_spill] sm:$0xff] }
 0x29b   : > { %v4770_v37 = vpop.f32.mrf.mxu3  ;;  %v9058_v24 = vpop.f32.mrf.mxu1  ;;  %v3862_v53 = vsel %vm2790_vm2, %v8986_v62, %v9062_v7  ;;  %v4684_v36 = vadd.f32 %v8947_v35, %v8794_v59  ;;  %v1361_v62 = vld [vmem:[#allocation2 + $0x90] sm:$0x1]  ;;  %v1242_v59 = vmul.f32 %v10425_v39, %v10424_v23  ;;  %v3331_v41 = vsel %vm2790_vm2, %v9004_v17, %v9075_v60 }
 0x29c   : > { %10418 = vst [vmem:[#allocation145_spill] sm:$0xff] %v9058_v24  ;;  %v9060_v51 = vadd.f32 %v4770_v37, %v4682_v30  ;;  %v2380_v4 = vpack.c.b16 %v2363_v1, %v2362_v0  ;;  %v9066_v12 = vsel %vm2790_vm2, %v8988_v3, %v3924_v28  ;;  %v9077_v1 = vpop.f32.mrf.mxu2  ;;  %v9085_v10 = vrot.slane %v1950_v50, 5  ;;  %v10427_v37 = vld [vmem:[#allocation70_spill] sm:$0xff]  ;;  %v6408_v0 = vld [vmem:[#allocation9 + $0x218] sm:$0xff] }
 0x29d   : > { %10421 = vst [vmem:[#allocation178_spill] sm:$0xff] %v9077_v1  ;;  %v1362_v40 = vunpack.c.l.bf16 %v1361_v62  ;;  %v1241_v9 = vmul.f32 %v10427_v37, %v10426_v31  ;;  %v1275_v54 = vpack.c.bf16 %v1242_v59, %v1242_v59  ;;  %v3999_v6 = vshrl.u32 %v9018_v5, 16  ;;  %5323 = vmatpush.bf16.msra.mxu1 %v6408_v0  ;;  %v10459_v1 = vld [vmem:[#allocation69_spill] sm:$0xff] }
 0x29e   : > { %10419 = vst [vmem:[#allocation176_spill] sm:$0xff] %v9060_v51  ;;  %v2411_v20 = vrot.slane %v2380_v4, 5  ;;  %v1976_v50 = vsel %vm1959_vm4, %v9008_v61, %v9085_v10  ;;  %v4002_v22 = vshll.u32 %v9018_v5, 16  ;;  %v4687_v17 = vadd.f32 %v8947_v35, %v8834_v34  ;;  %v9104_v61 = vpop.f32.mrf.mxu0 }
 0x29f   : > { %v4001_v62 = vrot.slane %v3999_v6, 3  ;;  %10429 = vst [vmem:[#allocation72_spill] sm:$0xff] %v9104_v61  ;;  %v3399_v5 = vshll.u32 %v1976_v50, 16 }
 0x2a0   : > { %v2412_v57 = vsel %vm1959_vm4, %v9006_v56, %v2411_v20  ;;  %v1395_v56 = vmul.f32 %v1362_v40, %v9036_v46  ;;  %v4004_v40 = vrot.slane %v4002_v22, 4  ;;  %v6407_v22 = vld [vmem:[#allocation9 + $0x210] sm:$0xff] }
 0x2a1   : > { %v3927_v16 = vshrl.u32 %v2412_v57, 16  ;;  %v3930_v4 = vshll.u32 %v2412_v57, 16  ;;  %v1274_v57 = vpack.c.bf16 %v1241_v9, %v1241_v9  ;;  %v3401_v0 = vrot.slane %v3399_v5, 4  ;;  %5324 = vmatpush.bf16.msra.mxu1 %v6407_v22 }
 0x2a2   : > { %5125 = vmatmul.bf16.gmra.mxu2 %v3862_v53 }
 0x2a3   : > { %v4772_v30 = vpop.f32.mrf.mxu3  ;;  %v9081_v3 = vpop.f32.mrf.mxu1  ;;  %v3929_v53 = vrot.slane %v3927_v16, 3  ;;  %v4005_v16 = vor.u32 %v4004_v40, %v4001_v62  ;;  %v1927_v9 = vunpack.c.l.b16 %v1274_v57  ;;  %v10434_v40 = vld [vmem:[#allocation34_spill] sm:$0xff] }
 0x2a4   : > { %v9079_v58 = vadd.f32 %v4772_v30, %v4684_v36  ;;  %10423 = vst [vmem:[#allocation180_spill] sm:$0xff] %v9081_v3  ;;  %v3932_v36 = vrot.slane %v3930_v4, 4  ;;  %v1428_v30 = vpack.c.bf16 %v1395_v56, %v1395_v56  ;;  %v9110_v24 = vpop.f32.mrf.mxu2 }
 0x2a5   : > { %10431 = vst [vmem:[#allocation62_spill] sm:$0xff] %v9110_v24  ;;  %v9115_v6 = vsel %vm2790_vm2, %v3924_v28, %v4005_v16  ;;  %v10433_v28 = vld [vmem:[#allocation60_spill] sm:$0xff]  ;;  %v10438_v16 = vld [vmem:[#allocation59_spill] sm:$0xff] }
 0x2a6   : > { %10422 = vst [vmem:[#allocation179_spill] sm:$0xff] %v9079_v58  ;;  %5036 = vmatmul.bf16.gmra.mxu1 %v8995_v48  ;;  %v6392_v48 = vld [vmem:[#allocation9 + $0x198] sm:$0xff]  ;;  %v2364_v44 = vunpack.c.l.b16 %v1428_v30  ;;  %v9108_v4 = vor.u32 %v3932_v36, %v3929_v53  ;;  %v1506_v36 = vmul.f32 %v10433_v28, %v10354_v55 }
 0x2a7   : > { %5145 = vmatpush.bf16.msra.mxu3 %v6392_v48 }
 0x2a8   : > { %4823 = vmatmul.bf16.gmra.mxu3 %v3331_v41  ;;  %5278 = vmatmul.bf16.gmra.mxu0 %v10428_v43  ;;  %v3396_v41 = vshrl.u32 %v1976_v50, 16  ;;  %v1928_v43 = vunpack.c.l.b16 %v1275_v54  ;;  %v2381_v56 = vpack.c.b16 %v2364_v44, %v2364_v44  ;;  %v3934_v54 = vsel %vm2790_vm2, %v9062_v7, %v9108_v4 }
 0x2a9   : > { %v4689_v44 = vadd.f32 %v8947_v35, %v8864_v38  ;;  %v10437_v38 = vld [vmem:[#allocation83_spill] sm:$0xff] }
 0x2aa   : > { %v3398_v48 = vrot.slane %v3396_v41, 3  ;;  %v2413_v50 = vrot.slane %v2381_v56, 5  ;;  %v1951_v30 = vpack.c.b16 %v1928_v43, %v1927_v9  ;;  %v10435_v41 = vld [vmem:[#allocation38_spill] sm:$0xff]  ;;  %v1505_v56 = vmul.f32 %v10438_v16, %v7403_v42  ;;  %v9139_v9 = vpop.f32.mrf.mxu0 }
 0x2ab   : > { %v4775_v59 = vpop.f32.mrf.mxu3  ;;  %v9112_v34 = vpop.f32.mrf.mxu1  ;;  %v1504_v5 = vmul.f32 %v10435_v41, %v10342_v32  ;;  %10439 = vst [vmem:[#allocation60_spill] sm:$0xff] %v9139_v9 }
 0x2ac   : > { %v9106_v3 = vadd.f32 %v4775_v59, %v4687_v17  ;;  %10432 = vst [vmem:[#allocation70_spill] sm:$0xff] %v9112_v34  ;;  %v6406_v17 = vld [vmem:[#allocation9 + $0x208] sm:$0xff]  ;;  %v2414_v53 = vsel %vm1959_vm4, %v2411_v20, %v2413_v50  ;;  %v9125_v62 = vor.u32 %v3401_v0, %v3398_v48  ;;  %v1503_v59 = vmul.f32 %v10434_v40, %v10341_v63  ;;  %v6405_v63 = vld [vmem:[#allocation9 + $0x200] sm:$0xff] }
 0x2ad   : > { %v9133_v7 = vrot.slane %v1951_v30, 5  ;;  %5325 = vmatpush.bf16.msra.mxu1 %v6406_v17  ;;  %v1244_v20 = vmul.f32 %v8689_v27, %v10437_v38  ;;  %v4008_v22 = vshrl.u32 %v2414_v53, 16  ;;  %v4011_v48 = vshll.u32 %v2414_v53, 16  ;;  %v10440_v0 = vld [vmem:[#allocation73_spill] sm:$0xff] }
 0x2ae   : > { %10430 = vst [vmem:[#allocation35_spill] sm:$0xff] %v9106_v3  ;;  %v1243_v32 = vmul.f32 %v8685_v47, %v10440_v0  ;;  %v1539_v50 = vpack.c.bf16 %v1506_v36, %v1506_v36  ;;  %v3403_v30 = vsel %vm2790_vm2, %v9075_v60, %v9125_v62  ;;  %v1536_v17 = vpack.c.bf16 %v1503_v59, %v1503_v59 }
 0x2af   : > { %v1277_v53 = vpack.c.bf16 %v1244_v20, %v1244_v20  ;;  %v1538_v28 = vpack.c.bf16 %v1505_v56, %v1505_v56  ;;  %v4010_v36 = vrot.slane %v4008_v22, 3  ;;  %v4013_v40 = vrot.slane %v4011_v48, 4 }
 0x2b0   : > { %v4692_v60 = vadd.f32 %v8947_v35, %v8903_v52  ;;  %v1276_v59 = vpack.c.bf16 %v1243_v32, %v1243_v32  ;;  %v2562_v41 = vunpack.c.l.b16 %v1539_v50 }
 0x2b1   : > { %5326 = vmatpush.bf16.msra.mxu1 %v6405_v63  ;;  %v2561_v63 = vunpack.c.l.b16 %v1538_v28  ;;  %v4014_v20 = vor.u32 %v4013_v40, %v4010_v36  ;;  %v10448_v28 = vld [vmem:[#allocation116_spill] sm:$0xff] }
 0x2b2   : > { %5130 = vmatmul.bf16.gmra.mxu2 %v3934_v54  ;;  %v1537_v54 = vpack.c.bf16 %v1504_v5, %v1504_v5  ;;  %v1929_v56 = vunpack.c.l.b16 %v1276_v59  ;;  %v9159_v22 = vpop.f32.mrf.mxu0  ;;  %v1508_v36 = vmul.f32 %v10448_v28, %v7497_v21 }
 0x2b3   : > { %v4777_v57 = vpop.f32.mrf.mxu3  ;;  %v9149_v42 = vpop.f32.mrf.mxu1  ;;  %v2593_v34 = vpack.c.b16 %v2562_v41, %v2561_v63  ;;  %10445 = vst [vmem:[#allocation59_spill] sm:$0xff] %v9159_v22  ;;  %v4015_v50 = vsel %vm2790_vm2, %v9108_v4, %v4014_v20  ;;  %v10450_v41 = vld [vmem:[#allocation92_spill] sm:$0xff] }
 0x2b4   : > { %v9131_v43 = vadd.f32 %v4777_v57, %v4689_v44  ;;  %v9147_v44 = vpop.f32.mrf.mxu2  ;;  %10442 = vst [vmem:[#allocation38_spill] sm:$0xff] %v9149_v42  ;;  %v10443_v57 = vld [vmem:[#allocation102_spill] sm:$0xff]  ;;  %v2560_v61 = vunpack.c.l.b16 %v1537_v54  ;;  %v1246_v4 = vmul.f32 %v8758_v18, %v10450_v41  ;;  %v1541_v63 = vpack.c.bf16 %v1508_v36, %v1508_v36 }
 0x2b5   : > { %10441 = vst [vmem:[#allocation34_spill] sm:$0xff] %v9147_v44 }
 0x2b6   : > { %10436 = vst [vmem:[#allocation90_spill] sm:$0xff] %v9131_v43  ;;  %5041 = vmatmul.bf16.gmra.mxu1 %v9066_v12  ;;  %v1978_v12 = vsel %vm1959_vm4, %v9085_v10, %v9133_v7  ;;  %v1930_v10 = vunpack.c.l.b16 %v1277_v53  ;;  %v2610_v53 = vrot.slane %v2593_v34, 5  ;;  %v10452_v34 = vld [vmem:[#allocation84_spill] sm:$0xff]  ;;  %v2564_v28 = vunpack.c.l.b16 %v1541_v63 }
 0x2b7   : > { %v3468_v16 = vshrl.u32 %v1978_v12, 16  ;;  %v3471_v9 = vshll.u32 %v1978_v12, 16 }
 0x2b8   : > { %4828 = vmatmul.bf16.gmra.mxu3 %v3403_v30  ;;  %5283 = vmatmul.bf16.gmra.mxu0 %v10443_v57  ;;  %v2559_v30 = vunpack.c.l.b16 %v1536_v17  ;;  %v6420_v57 = vld [vmem:[#allocation11 + $0x38] sm:$0xff]  ;;  %v1952_v32 = vpack.c.b16 %v1930_v10, %v1929_v56  ;;  %v4694_v17 = vadd.f32 %v8947_v35, %v8936_v13  ;;  %v10451_v13 = vld [vmem:[#allocation115_spill] sm:$0xff]  ;;  %v1279_v56 = vpack.c.bf16 %v1246_v4, %v1246_v4 }
 0x2b9   : > { %v3470_v48 = vrot.slane %v3468_v16, 3  ;;  %v3473_v44 = vrot.slane %v3471_v9, 4  ;;  %5524 = vmatpush.bf16.msra.mxu2 %v6420_v57  ;;  %v6391_v57 = vld [vmem:[#allocation9 + $0x190] sm:$0xff] }
 0x2ba   : > { %v2592_v52 = vpack.c.b16 %v2560_v61, %v2559_v30  ;;  %v1979_v59 = vrot.slane %v1952_v32, 5  ;;  %v10453_v30 = vld [vmem:[#allocation20_spill] sm:$0xff]  ;;  %v10455_v32 = vld [vmem:[#allocation146_spill] sm:$0xff]  ;;  %5146 = vmatpush.bf16.msra.mxu3 %v6391_v57 }
 0x2bb   : > { %v4780_v5 = vpop.f32.mrf.mxu3  ;;  %v9167_v12 = vpop.f32.mrf.mxu1  ;;  %v3474_v9 = vor.u32 %v3473_v44, %v3470_v48  ;;  %v1245_v10 = vmul.f32 %v10453_v30, %v10452_v34 }
 0x2bc   : > { %v9157_v42 = vadd.f32 %v4780_v5, %v4692_v60  ;;  %v9165_v54 = vpop.f32.mrf.mxu2  ;;  %10447 = vst [vmem:[#allocation102_spill] sm:$0xff] %v9167_v12  ;;  %v2609_v61 = vrot.slane %v2592_v52, 5  ;;  %v1507_v5 = vmul.f32 %v10451_v13, %v7444_v19  ;;  %v1980_v20 = vsel %vm1959_vm4, %v9133_v7, %v1979_v59  ;;  %v9185_v52 = vpop.f32.mrf.mxu0  ;;  %v10457_v7 = vld [vmem:[#allocation68_spill] sm:$0xff] }
 0x2bd   : > { %10446 = vst [vmem:[#allocation73_spill] sm:$0xff] %v9165_v54  ;;  %v3475_v44 = vsel %vm2790_vm2, %v9125_v62, %v3474_v9  ;;  %v3543_v13 = vshll.u32 %v1980_v20, 16 }
 0x2be   : > { %10444 = vst [vmem:[#allocation83_spill] sm:$0xff] %v9157_v42  ;;  %v2611_v16 = vsel %vm1959_vm4, %v2609_v61, %v2610_v53  ;;  %v1540_v48 = vpack.c.bf16 %v1507_v5, %v1507_v5  ;;  %v2928_v62 = vshrl.u32 %v2609_v61, 16  ;;  %v1932_v5 = vunpack.c.l.b16 %v1279_v56  ;;  %v10460_v42 = vld [vmem:[#allocation71_spill] sm:$0xff]  ;;  %v10461_v56 = vld [vmem:[#allocation129_spill] sm:$0xff] }
 0x2bf   : > { %10454 = vst [vmem:[#allocation92_spill] sm:$0xff] %v9185_v52 }
 0x2c0   : > { %v2563_v12 = vunpack.c.l.b16 %v1540_v48  ;;  %v2930_v57 = vrot.slane %v2928_v62, 3  ;;  %v1510_v48 = vmul.f32 %v10461_v56, %v7559_v26  ;;  %v6339_v56 = vld [vmem:[#allocation2 + $0x88] sm:$0xff] }
 0x2c2   : > { %5135 = vmatmul.bf16.gmra.mxu2 %v4015_v50  ;;  %v2939_v50 = vshll.u32 %v2611_v16, 16  ;;  %v2594_v24 = vpack.c.b16 %v2564_v28, %v2563_v12  ;;  %v10463_v28 = vld [vmem:[#allocation127_spill] sm:$0xff] }
 0x2c3   : > { %v4782_v40 = vpop.f32.mrf.mxu3  ;;  %v9188_v22 = vpop.f32.mrf.mxu1 }
 0x2c4   : > { %v9171_v60 = vadd.f32 %v4782_v40, %v4694_v17  ;;  %v1278_v17 = vpack.c.bf16 %v1245_v10, %v1245_v10  ;;  %v3540_v40 = vshrl.u32 %v1980_v20, 16  ;;  %10456 = vst [vmem:[#allocation115_spill] sm:$0xff] %v9188_v22  ;;  %v2941_v54 = vrot.slane %v2939_v50, 4 }
 0x2c5   : > { %v3545_v10 = vrot.slane %v3543_v13, 4  ;;  %v4619_v20 = vadd.f32 %v8947_v35, %v10459_v1  ;;  %v9196_v43 = vrot.slane %v2594_v24, 5  ;;  %v10466_v24 = vld [vmem:[#allocation97_spill] sm:$0xff] }
 0x2c6   : > { %10449 = vst [vmem:[#allocation116_spill] sm:$0xff] %v9171_v60  ;;  %5046 = vmatmul.bf16.gmra.mxu1 %v9115_v6  ;;  %v2936_v6 = vshrl.u32 %v2611_v16, 16  ;;  %v3542_v16 = vrot.slane %v3540_v40, 3 }
 0x2c7   : > { %v4708_v22 = vadd.f32 %v10460_v42, %v4619_v20 }
 0x2c8   : > { %4833 = vmatmul.bf16.gmra.mxu3 %v3475_v44  ;;  %5288 = vmatmul.bf16.gmra.mxu0 %v10455_v32  ;;  %v2931_v44 = vshll.u32 %v2609_v61, 16  ;;  %v2938_v52 = vrot.slane %v2936_v6, 3  ;;  %v1931_v32 = vunpack.c.l.b16 %v1278_v17  ;;  %v9200_v6 = vpop.f32.mrf.mxu0  ;;  %v9202_v12 = vor.u32 %v3545_v10, %v3542_v16 }
 0x2c9   : > { %10462 = vst [vmem:[#allocation20_spill] sm:$0xff] %v9200_v6 }
 0x2ca   : > { %v2933_v63 = vrot.slane %v2931_v44, 4  ;;  %v1953_v60 = vpack.c.b16 %v1932_v5, %v1931_v32  ;;  %v2942_v61 = vor.u32 %v2941_v54, %v2938_v52  ;;  %v10465_v54 = vld [vmem:[#allocation94_spill] sm:$0xff]  ;;  %v10467_v52 = vld [vmem:[#allocation163_spill] sm:$0xff]  ;;  %v1543_v5 = vpack.c.bf16 %v1510_v48, %v1510_v48 }
 0x2cb   : > { %v4794_v36 = vpop.f32.mrf.mxu3  ;;  %v1247_v42 = vmul.f32 %v8822_v49, %v10465_v54  ;;  %v1248_v13 = vmul.f32 %v10467_v52, %v10466_v24  ;;  %v9213_v44 = vpop.f32.mrf.mxu1 }
 0x2cc   : > { %v9191_v4 = vadd.f32 %v4794_v36, %v10457_v7  ;;  %v2934_v17 = vor.u32 %v2933_v63, %v2930_v57  ;;  %v1509_v36 = vmul.f32 %v10463_v28, %v7499_v14  ;;  %v1981_v1 = vrot.slane %v1953_v60, 5  ;;  %10468 = vst [vmem:[#allocation68_spill] sm:$0xff] %v9213_v44  ;;  %v10469_v57 = vld [vmem:[#allocation153_spill] sm:$0xff] }
 0x2cd   : > { %v2613_v7 = vsel %vm1959_vm4, %v2610_v53, %v9196_v43  ;;  %v1280_v32 = vpack.c.bf16 %v1247_v42, %v1247_v42  ;;  %v1281_v16 = vpack.c.bf16 %v1248_v13, %v1248_v13  ;;  %v10470_v53 = vld [vmem:[#allocation77_spill] sm:$0xff]  ;;  %v2512_v13 = vshll.u32 %v6339_v56, 16 }
 0x2ce   : > { %10458 = vst [vmem:[#allocation84_spill] sm:$0xff] %v9191_v4  ;;  %v2943_v62 = vsel %vm2790_vm2, %v2934_v17, %v2942_v61  ;;  %v1982_v60 = vsel %vm1959_vm4, %v1979_v59, %v1981_v1  ;;  %v1542_v10 = vpack.c.bf16 %v1509_v36, %v1509_v36  ;;  %v3017_v63 = vshrl.u32 %v2613_v7, 16 }
 0x2cf   : > { %v3020_v20 = vshll.u32 %v2613_v7, 16  ;;  %v3612_v28 = vshrl.u32 %v1982_v60, 16  ;;  %v1933_v44 = vunpack.c.l.b16 %v1280_v32  ;;  %v2509_v36 = vshrl.u32 %v6339_v56, 16  ;;  %v10476_v56 = vld [vmem:[#allocation47_spill] sm:$0xff] }
 0x2d0   : > { %v9224_v6 = vpop.f32.mrf.mxu0  ;;  %v3019_v59 = vrot.slane %v3017_v63, 3 }
 0x2d1   : > { %10472 = vst [vmem:[#allocation71_spill] sm:$0xff] %v9224_v6  ;;  %v3022_v42 = vrot.slane %v3020_v20, 4  ;;  %v3614_v7 = vrot.slane %v3612_v28, 3  ;;  %v10478_v6 = vld [vmem:[#allocation43_spill] sm:$0xff] }
 0x2d3   : > { %v4796_v50 = vpop.f32.mrf.mxu3  ;;  %v9230_v32 = vor.u32 %v3022_v42, %v3019_v59 }
 0x2d4   : > { %v9206_v40 = vadd.f32 %v4796_v50, %v4708_v22  ;;  %v3547_v22 = vsel %vm2790_vm2, %v3474_v9, %v9202_v12  ;;  %v2566_v50 = vunpack.c.l.b16 %v1543_v5  ;;  %v1934_v9 = vunpack.c.l.b16 %v1281_v16  ;;  %v10473_v5 = vld [vmem:[#allocation78_spill] sm:$0xff] }
 0x2d5   : > { %v4624_v3 = vadd.f32 %v8947_v35, %v10473_v5  ;;  %v2511_v16 = vrot.slane %v2509_v36, 4  ;;  %v10479_v35 = vld [vmem:[#allocation132_spill] sm:$0xff]  ;;  %v10483_v36 = vld [vmem:[#allocation107_spill] sm:$0xff] }
 0x2d6   : > { %10464 = vst [vmem:[#allocation146_spill] sm:$0xff] %v9206_v40  ;;  %5327 = vmatmul.bf16.vlgmr.msra.gmra.mxu1 %v2943_v62  ;;  %v3615_v62 = vshll.u32 %v1982_v60, 16  ;;  %v6419_v40 = vld [vmem:[#allocation11 + $0x30] sm:$0xff]  ;;  %v9228_v60 = vpop.f32.mrf.mxu1  ;;  %v1511_v5 = vmul.f32 %v10479_v35, %v10478_v6 }
 0x2d7   : > { %10474 = vst [vmem:[#allocation129_spill] sm:$0xff] %v9228_v60  ;;  %5525 = vmatpush.bf16.msra.mxu2 %v6419_v40  ;;  %v10487_v35 = vld [vmem:[#allocation151_spill] sm:$0xff] }
 0x2d8   : > { %4838 = vmatmul.bf16.gmra.mxu3 %v3547_v22  ;;  %5293 = vmatmul.bf16.gmra.mxu0 %v10469_v57  ;;  %v2565_v22 = vunpack.c.l.b16 %v1542_v10  ;;  %v3617_v4 = vrot.slane %v3615_v62, 4  ;;  %v2514_v10 = vrot.slane %v2512_v13, 5  ;;  %v10484_v13 = vld [vmem:[#allocation58_spill] sm:$0xff] }
 0x2da   : > { %v2595_v57 = vpack.c.b16 %v2566_v50, %v2565_v22  ;;  %v10477_v50 = vld [vmem:[#allocation134_spill] sm:$0xff]  ;;  %v9237_v62 = vor.u32 %v3617_v4, %v3614_v7  ;;  %v9249_v42 = vor.u32 %v2514_v10, %v2511_v16 }
 0x2db   : > { %v4799_v17 = vpop.f32.mrf.mxu3  ;;  %v1512_v22 = vmul.f32 %v10477_v50, %v10476_v56  ;;  %v6390_v10 = vld [vmem:[#allocation9 + $0x188] sm:$0xff]  ;;  %v10486_v50 = vld [vmem:[#allocation23_spill] sm:$0xff] }
 0x2dc   : > { %v9222_v48 = vadd.f32 %v4799_v17, %v10470_v53  ;;  %v1954_v17 = vpack.c.b16 %v1934_v9, %v1933_v44  ;;  %v10475_v53 = vld [vmem:[#allocation82_spill] sm:$0xff]  ;;  %v9233_v20 = vrot.slane %v2595_v57, 5  ;;  %v10482_v9 = vld [vmem:[#allocation17_spill] sm:$0xff]  ;;  %v1250_v57 = vmul.f32 %v10484_v13, %v10483_v36  ;;  %5147 = vmatpush.bf16.msra.mxu3 %v6390_v10 }
 0x2dd   : > { %v4713_v63 = vadd.f32 %v10475_v53, %v4624_v3  ;;  %v10481_v44 = vld [vmem:[#allocation98_spill] sm:$0xff]  ;;  %v3024_v3 = vsel %vm2790_vm2, %v2942_v61, %v9230_v32  ;;  %v1545_v7 = vpack.c.bf16 %v1512_v22, %v1512_v22  ;;  %v9256_v53 = vpop.f32.mrf.mxu0  ;;  %v2516_v22 = vsel %vm1732_vm1, %v10487_v35, %v9249_v42 }
 0x2de   : > { %10471 = vst [vmem:[#allocation69_spill] sm:$0xff] %v9222_v48  ;;  %v9243_v40 = vrot.slane %v1954_v17, 5  ;;  %v1249_v59 = vmul.f32 %v10482_v9, %v10481_v44  ;;  %v2615_v4 = vsel %vm1959_vm4, %v9196_v43, %v9233_v20  ;;  %v3619_v17 = vsel %vm2790_vm2, %v9202_v12, %v9237_v62 }
 0x2df   : > { %10485 = vst [vmem:[#allocation94_spill] sm:$0xff] %v9256_v53  ;;  %v3090_v43 = vshrl.u32 %v2615_v4, 16  ;;  %v9267_v53 = vpop.f32.mrf.mxu1  ;;  %v2568_v12 = vunpack.c.l.b16 %v1545_v7  ;;  %v3876_v51 = vshll.u32 %v2516_v22, 16 }
 0x2e0   : > { %v1984_v61 = vsel %vm1959_vm4, %v1981_v1, %v9243_v40  ;;  %v1282_v16 = vpack.c.bf16 %v1249_v59, %v1249_v59  ;;  %10488 = vst [vmem:[#allocation97_spill] sm:$0xff] %v9267_v53  ;;  %v10489_v59 = vld [vmem:[#allocation88_spill] sm:$0xff] }
 0x2e1   : > { %v3687_v48 = vshll.u32 %v1984_v61, 16  ;;  %v3092_v13 = vrot.slane %v3090_v43, 3  ;;  %v3878_v7 = vrot.slane %v3876_v51, 4 }
 0x2e3   : > { %v4801_v28 = vpop.f32.mrf.mxu3 }
 0x2e4   : > { %v9241_v60 = vadd.f32 %v4801_v28, %v4713_v63  ;;  %v1544_v63 = vpack.c.bf16 %v1511_v5, %v1511_v5  ;;  %v3093_v28 = vshll.u32 %v2615_v4, 16  ;;  %v1935_v4 = vunpack.c.l.b16 %v1282_v16 }
 0x2e5   : > { %v9272_v26 = vpop.f32.mrf.mxu0 }
 0x2e6   : > { %10480 = vst [vmem:[#allocation127_spill] sm:$0xff] %v9241_v60  ;;  %5332 = vmatmul.bf16.gmra.mxu1 %v3024_v3  ;;  %v6340_v3 = vld [vmem:[#allocation2 + $0x90] sm:$0xff]  ;;  %v1283_v60 = vpack.c.bf16 %v1250_v57, %v1250_v57  ;;  %v2567_v1 = vunpack.c.l.b16 %v1544_v63  ;;  %v3095_v9 = vrot.slane %v3093_v28, 4  ;;  %v3689_v57 = vrot.slane %v3687_v48, 4 }
 0x2e7   : > { %v2518_v56 = vshrl.u32 %v6340_v3, 16  ;;  %v2521_v35 = vshll.u32 %v6340_v3, 16  ;;  %10491 = vst [vmem:[#allocation77_spill] sm:$0xff] %v9272_v26  ;;  %v10495_v3 = vld [vmem:[#allocation48_spill] sm:$0xff] }
 0x2e8   : > { %4843 = vmatmul.bf16.gmra.mxu3 %v3619_v17  ;;  %5298 = vmatmul.bf16.gmra.mxu0 %v10486_v50  ;;  %v3684_v17 = vshrl.u32 %v1984_v61, 16  ;;  %v3873_v50 = vshrl.u32 %v2516_v22, 16  ;;  %v1936_v52 = vunpack.c.l.b16 %v1283_v60  ;;  %v2596_v49 = vpack.c.b16 %v2568_v12, %v2567_v1  ;;  %v10496_v60 = vld [vmem:[#allocation139_spill] sm:$0xff]  ;;  %v10500_v1 = vld [vmem:[#allocation114_spill] sm:$0xff] }
 0x2e9   : > { %v3096_v63 = vor.u32 %v3095_v9, %v3092_v13  ;;  %v2520_v61 = vrot.slane %v2518_v56, 4  ;;  %v1513_v12 = vmul.f32 %v10496_v60, %v10495_v3  ;;  %v10499_v13 = vld [vmem:[#allocation66_spill] sm:$0xff] }
 0x2ea   : > { %v3686_v53 = vrot.slane %v3684_v17, 3  ;;  %v3875_v10 = vrot.slane %v3873_v50, 3  ;;  %v1955_v6 = vpack.c.b16 %v1936_v52, %v1935_v4  ;;  %v2616_v16 = vrot.slane %v2596_v49, 5  ;;  %v9280_v17 = vpop.f32.mrf.mxu1  ;;  %v10501_v50 = vld [vmem:[#allocation169_spill] sm:$0xff] }
 0x2eb   : > { %v4804_v5 = vpop.f32.mrf.mxu3  ;;  %10497 = vst [vmem:[#allocation82_spill] sm:$0xff] %v9280_v17  ;;  %v3097_v52 = vsel %vm2790_vm2, %v9230_v32, %v3096_v63  ;;  %v1252_v4 = vmul.f32 %v10501_v50, %v10500_v1 }
 0x2ec   : > { %v9270_v58 = vadd.f32 %v4804_v5, %v10489_v59  ;;  %v2523_v5 = vrot.slane %v2521_v35, 5  ;;  %v10492_v59 = vld [vmem:[#allocation54_spill] sm:$0xff]  ;;  %v3690_v28 = vor.u32 %v3689_v57, %v3686_v53  ;;  %v3879_v48 = vor.u32 %v3878_v7, %v3875_v10 }
 0x2ed   : > { %v1985_v51 = vrot.slane %v1955_v6, 5  ;;  %v2617_v49 = vsel %vm1959_vm4, %v9233_v20, %v2616_v16  ;;  %v1546_v6 = vpack.c.bf16 %v1513_v12, %v1513_v12  ;;  %v10502_v57 = vld [vmem:[#allocation26_spill] sm:$0xff]  ;;  %v1285_v60 = vpack.c.bf16 %v1252_v4, %v1252_v4 }
 0x2ee   : > { %10490 = vst [vmem:[#allocation153_spill] sm:$0xff] %v9270_v58  ;;  %v10493_v58 = vld [vmem:[#allocation140_spill] sm:$0xff]  ;;  %v9284_v9 = vor.u32 %v2523_v5, %v2520_v61  ;;  %v3691_v35 = vsel %vm2790_vm2, %v9237_v62, %v3690_v28  ;;  %v3880_v32 = vsel %vm2790_vm2, %v10502_v57, %v3879_v48  ;;  %v3162_v7 = vshrl.u32 %v2617_v49, 16  ;;  %v10504_v57 = vld [vmem:[#allocation101_spill] sm:$0xff] }
 0x2ef   : > { %v1514_v22 = vmul.f32 %v10493_v58, %v10492_v59  ;;  %v10498_v58 = vld [vmem:[#allocation108_spill] sm:$0xff]  ;;  %v1986_v10 = vsel %vm1959_vm4, %v9243_v40, %v1985_v51  ;;  %v3165_v20 = vshll.u32 %v2617_v49, 16  ;;  %v2569_v17 = vunpack.c.l.b16 %v1546_v6 }
 0x2f0   : > { %v1251_v53 = vmul.f32 %v10499_v13, %v10498_v58  ;;  %v2525_v61 = vsel %vm1732_vm1, %v9249_v42, %v9284_v9  ;;  %v3756_v12 = vshrl.u32 %v1986_v10, 16 }
 0x2f1   : > { %v1547_v56 = vpack.c.bf16 %v1514_v22, %v1514_v22  ;;  %v3945_v40 = vshrl.u32 %v2525_v61, 16  ;;  %v3167_v49 = vrot.slane %v3165_v20, 4  ;;  %v10509_v20 = vld [vmem:[#allocation147_spill] sm:$0xff] }
 0x2f2   : > { %v1284_v22 = vpack.c.bf16 %v1251_v53, %v1251_v53  ;;  %v9306_v13 = vpop.f32.mrf.mxu1  ;;  %v6418_v53 = vld [vmem:[#allocation11 + $0x28] sm:$0xff]  ;;  %v3758_v4 = vrot.slane %v3756_v12, 3 }
 0x2f3   : > { %v9276_v43 = vpop.f32.mrf.mxu3  ;;  %v2570_v5 = vunpack.c.l.b16 %v1547_v56  ;;  %10506 = vst [vmem:[#allocation98_spill] sm:$0xff] %v9306_v13  ;;  %v1938_v56 = vunpack.c.l.b16 %v1285_v60  ;;  %5526 = vmatpush.bf16.msra.mxu2 %v6418_v53 }
 0x2f4   : > { %10494 = vst [vmem:[#allocation78_spill] sm:$0xff] %v9276_v43  ;;  %v3164_v43 = vrot.slane %v3162_v7, 3  ;;  %v1937_v42 = vunpack.c.l.b16 %v1284_v22 }
 0x2f5   : > { %v2597_v50 = vpack.c.b16 %v2570_v5, %v2569_v17  ;;  %v1515_v5 = vmul.f32 %v10509_v20, %v10410_v2 }
 0x2f6   : > { %5337 = vmatmul.bf16.gmra.mxu1 %v3097_v52  ;;  %v9301_v52 = vpop.f32.mrf.mxu0  ;;  %v1956_v1 = vpack.c.b16 %v1938_v56, %v1937_v42  ;;  %v6389_v42 = vld [vmem:[#allocation9 + $0x180] sm:$0xff] }
 0x2f7   : > { %10503 = vst [vmem:[#allocation134_spill] sm:$0xff] %v9301_v52  ;;  %v3947_v52 = vrot.slane %v3945_v40, 3  ;;  %v2618_v6 = vrot.slane %v2597_v50, 5  ;;  %v10511_v50 = vld [vmem:[#allocation119_spill] sm:$0xff]  ;;  %v10512_v40 = vld [vmem:[#allocation126_spill] sm:$0xff]  ;;  %5148 = vmatpush.bf16.msra.mxu3 %v6389_v42 }
 0x2f8   : > { %4848 = vmatmul.bf16.gmra.mxu3 %v3691_v35  ;;  %5303 = vmatmul.bf16.gmra.mxu0 %v3880_v32  ;;  %v3759_v35 = vshll.u32 %v1986_v10, 16  ;;  %v3948_v32 = vshll.u32 %v2525_v61, 16  ;;  %v3168_v10 = vor.u32 %v3167_v49, %v3164_v43  ;;  %v1987_v43 = vrot.slane %v1956_v1, 5 }
 0x2f9   : > { %v2619_v12 = vsel %vm1959_vm4, %v2616_v16, %v2618_v6  ;;  %v1548_v16 = vpack.c.bf16 %v1515_v5, %v1515_v5 }
 0x2fa   : > { %v3761_v59 = vrot.slane %v3759_v35, 4  ;;  %v3950_v3 = vrot.slane %v3948_v32, 4  ;;  %v3169_v60 = vsel %vm2790_vm2, %v3096_v63, %v3168_v10  ;;  %v1253_v35 = vmul.f32 %v9046_v45, %v10511_v50 }
 0x2fb   : > { %v4809_v62 = vpop.f32.mrf.mxu3  ;;  %v1254_v32 = vmul.f32 %v9050_v29, %v10512_v40  ;;  %v1988_v63 = vsel %vm1959_vm4, %v1985_v51, %v1987_v43  ;;  %v3234_v1 = vshrl.u32 %v2619_v12, 16  ;;  %v3237_v56 = vshll.u32 %v2619_v12, 16 }
 0x2fc   : > { %v9304_v26 = vadd.f32 %v4809_v62, %v10504_v57  ;;  %v10507_v62 = vld [vmem:[#allocation148_spill] sm:$0xff]  ;;  %v3762_v7 = vor.u32 %v3761_v59, %v3758_v4  ;;  %v3951_v17 = vor.u32 %v3950_v3, %v3947_v52  ;;  %v9323_v3 = vpop.f32.mrf.mxu1  ;;  %v1286_v53 = vpack.c.bf16 %v1253_v35, %v1253_v35 }
 0x2fd   : > { %v1516_v57 = vmul.f32 %v10507_v62, %v10323_v15  ;;  %10513 = vst [vmem:[#allocation151_spill] sm:$0xff] %v9323_v3  ;;  %v1287_v4 = vpack.c.bf16 %v1254_v32, %v1254_v32  ;;  %v2571_v51 = vunpack.c.l.b16 %v1548_v16  ;;  %v3236_v3 = vrot.slane %v3234_v1, 3 }
 0x2fe   : > { %10505 = vst [vmem:[#allocation132_spill] sm:$0xff] %v9304_v26  ;;  %v9314_v22 = vpop.f32.mrf.mxu0  ;;  %v3763_v59 = vsel %vm2790_vm2, %v3690_v28, %v3762_v7  ;;  %v3952_v52 = vsel %vm2790_vm2, %v3879_v48, %v3951_v17  ;;  %v10514_v28 = vld [vmem:[#allocation112_spill] sm:$0xff]  ;;  %v4029_v48 = vshll.u32 %v9284_v9, 16  ;;  %v3239_v5 = vrot.slane %v3237_v56, 4 }
 0x2ff   : > { %10510 = vst [vmem:[#allocation23_spill] sm:$0xff] %v9314_v22  ;;  %v1549_v49 = vpack.c.bf16 %v1516_v57, %v1516_v57  ;;  %v3828_v57 = vshrl.u32 %v1988_v63, 16  ;;  %v1939_v22 = vunpack.c.l.b16 %v1286_v53  ;;  %v1940_v12 = vunpack.c.l.b16 %v1287_v4 }
 0x301   : > { %v2572_v62 = vunpack.c.l.b16 %v1549_v49  ;;  %v3830_v49 = vrot.slane %v3828_v57, 3 }
 0x303   : > { %v9310_v61 = vpop.f32.mrf.mxu3  ;;  %v2598_v35 = vpack.c.b16 %v2572_v62, %v2571_v51  ;;  %v10518_v62 = vld [vmem:[#allocation155_spill] sm:$0xff] }
 0x304   : > { %10508 = vst [vmem:[#allocation107_spill] sm:$0xff] %v9310_v61  ;;  %v1517_v57 = vmul.f32 %v10518_v62, %v10426_v31  ;;  %v6417_v62 = vld [vmem:[#allocation11 + $0x20] sm:$0xff] }
 0x305   : > { %v2620_v29 = vrot.slane %v2598_v35, 5  ;;  %5527 = vmatpush.bf16.msra.mxu2 %v6417_v62 }
 0x306   : > { %5342 = vmatmul.bf16.gmra.mxu1 %v3169_v60  ;;  %v3831_v60 = vshll.u32 %v1988_v63, 16  ;;  %v9332_v32 = vpop.f32.mrf.mxu0  ;;  %v4031_v63 = vrot.slane %v4029_v48, 4 }
 0x308   : > { %4853 = vmatmul.bf16.gmra.mxu3 %v3763_v59  ;;  %5308 = vmatmul.bf16.gmra.mxu0 %v3952_v52  ;;  %v4026_v59 = vshrl.u32 %v9284_v9, 16  ;;  %v1027_v52 = vld [vmem:[#allocation2 + $0x88] sm:$0x1]  ;;  %v3833_v42 = vrot.slane %v3831_v60, 4  ;;  %v10517_v9 = vld [vmem:[#allocation56_spill] sm:$0xff] }
 0x309   : > { %v1061_v26 = vunpack.c.l.bf16 %v1027_v52  ;;  %v1518_v16 = vmul.f32 %v10517_v9, %v10424_v23  ;;  %v1550_v52 = vpack.c.bf16 %v1517_v57, %v1517_v57 }
 0x30a   : > { %v4028_v61 = vrot.slane %v4026_v59, 3  ;;  %v3834_v56 = vor.u32 %v3833_v42, %v3830_v49  ;;  %v2621_v59 = vsel %vm1959_vm4, %v2618_v6, %v2620_v29  ;;  %v10520_v6 = vld [vmem:[#allocation123_spill] sm:$0xff] }
 0x30b   : > { %v4814_v20 = vpop.f32.mrf.mxu3  ;;  %v1255_v4 = vmul.f32 %v9036_v46, %v1061_v26  ;;  %v3306_v26 = vshrl.u32 %v2621_v59, 16 }
 0x30c   : > { %v9328_v13 = vadd.f32 %v4814_v20, %v10514_v28  ;;  %v3240_v20 = vor.u32 %v3239_v5, %v3236_v3  ;;  %v9334_v28 = vpop.f32.mrf.mxu1  ;;  %v4032_v53 = vor.u32 %v4031_v63, %v4028_v61  ;;  %v3835_v48 = vsel %vm2790_vm2, %v3762_v7, %v3834_v56 }
 0x30d   : > { %10516 = vst [vmem:[#allocation140_spill] sm:$0xff] %v9334_v28  ;;  %v1288_v5 = vpack.c.bf16 %v1255_v4, %v1255_v4  ;;  %v2573_v63 = vunpack.c.l.b16 %v1550_v52 }
 0x30e   : > { %10515 = vst [vmem:[#allocation88_spill] sm:$0xff] %v9328_v13  ;;  %v1957_v13 = vpack.c.b16 %v1940_v12, %v1939_v22  ;;  %v3241_v60 = vsel %vm2790_vm2, %v3168_v10, %v3240_v20  ;;  %v1551_v22 = vpack.c.bf16 %v1518_v16, %v1518_v16  ;;  %v4033_v51 = vsel %vm2790_vm2, %v3951_v17, %v4032_v53  ;;  %v9347_v61 = vpop.f32.mrf.mxu0 }
 0x30f   : > { %v3309_v12 = vshll.u32 %v2621_v59, 16  ;;  %v1941_v7 = vunpack.c.l.b16 %v1288_v5  ;;  %v3308_v16 = vrot.slane %v3306_v26, 3  ;;  %v1519_v5 = vmul.f32 %v10411_v8, %v10440_v0 }
 0x310   : > { %v1989_v3 = vrot.slane %v1957_v13, 5  ;;  %v2574_v10 = vunpack.c.l.b16 %v1551_v22 }
 0x311   : > { %v3311_v53 = vrot.slane %v3309_v12, 4  ;;  %v1958_v57 = vpack.c.b16 %v1941_v7, %v1941_v7  ;;  %v1552_v7 = vpack.c.bf16 %v1519_v5, %v1519_v5 }
 0x312   : > { %v1990_v35 = vsel %vm1959_vm4, %v1987_v43, %v1989_v3  ;;  %v2599_v4 = vpack.c.b16 %v2574_v10, %v2573_v63 }
 0x313   : > { %v9338_v1 = vpop.f32.mrf.mxu3  ;;  %v3900_v9 = vshrl.u32 %v1990_v35, 16  ;;  %v3903_v17 = vshll.u32 %v1990_v35, 16  ;;  %v3312_v43 = vor.u32 %v3311_v53, %v3308_v16  ;;  %v2575_v62 = vunpack.c.l.b16 %v1552_v7 }
 0x314   : > { %v9350_v13 = vpop.f32.mrf.mxu1  ;;  %v2622_v22 = vrot.slane %v2599_v4, 5  ;;  %v10522_v4 = vld [vmem:[#allocation131_spill] sm:$0xff] }
 0x315   : > { %10519 = vst [vmem:[#allocation139_spill] sm:$0xff] %v9350_v13  ;;  %v3905_v59 = vrot.slane %v3903_v17, 4  ;;  %v3313_v26 = vsel %vm2790_vm2, %v3240_v20, %v3312_v43 }
 0x316   : > { %5347 = vmatmul.bf16.gmra.mxu1 %v3241_v60  ;;  %v3902_v60 = vrot.slane %v3900_v9, 3  ;;  %v2623_v35 = vsel %vm1959_vm4, %v2620_v29, %v2622_v22 }
 0x317   : > { %v3378_v63 = vshrl.u32 %v2623_v35, 16  ;;  %v3381_v9 = vshll.u32 %v2623_v35, 16 }
 0x318   : > { %4858 = vmatmul.bf16.gmra.mxu3 %v3835_v48  ;;  %5313 = vmatmul.bf16.gmra.mxu0 %v4033_v51  ;;  %v1520_v48 = vmul.f32 %v10407_v11, %v10437_v38  ;;  %v3906_v52 = vor.u32 %v3905_v59, %v3902_v60 }
 0x319   : > { %v3383_v60 = vrot.slane %v3381_v9, 4 }
 0x31a   : > { %v1553_v10 = vpack.c.bf16 %v1520_v48, %v1520_v48 }
 0x31b   : > { %v4819_v49 = vpop.f32.mrf.mxu3 }
 0x31c   : > { %v9353_v42 = vadd.f32 %v4819_v49, %v10520_v6  ;;  %v1991_v49 = vrot.slane %v1958_v57, 5  ;;  %v9362_v12 = vpop.f32.mrf.mxu1  ;;  %v3907_v6 = vsel %vm2790_vm2, %v3834_v56, %v3906_v52  ;;  %v2576_v17 = vunpack.c.l.b16 %v1553_v10  ;;  %v9376_v10 = vld [vmem:[#allocation2 + $0x90] sm:$0xff]  }
 0x31d   : > { %10521 = vst [vmem:[#allocation108_spill] sm:$0xff] %v9362_v12  ;;  %v3380_v57 = vrot.slane %v3378_v63, 3  ;;  %v10155_v9 = vunpack.c.l.bf16 %v9376_v10 }
 0x31e   : > { %v1992_v11 = vsel %vm1959_vm4, %v1989_v3, %v1991_v49  ;;  %v2600_v29 = vpack.c.b16 %v2576_v17, %v2575_v62  ;;  %v1522_v49 = vmul.f32 %v10425_v39, %v10450_v41 }
 0x31f   : > { %v3981_v8 = vshrl.u32 %v1992_v11, 16  ;;  %v3984_v53 = vshll.u32 %v1992_v11, 16 }
 0x320   : > { %v2624_v3 = vrot.slane %v2600_v29, 5  ;;  %v1555_v63 = vpack.c.bf16 %v1522_v49, %v1522_v49 }
 0x321   : > { %v3983_v59 = vrot.slane %v3981_v8, 3  ;;  %v3986_v48 = vrot.slane %v3984_v53, 4  ;;  %v10525_v53 = vld [vmem:[#allocation122_spill] sm:$0xff] }
 0x322   : > { %v2625_v7 = vsel %vm1959_vm4, %v2622_v22, %v2624_v3  ;;  %v2578_v22 = vunpack.c.l.b16 %v1555_v63  ;;  %v10156_v63 = vunpack.c.h.bf16 %v9376_v10 }
 0x323   : > { %v9357_v51 = vpop.f32.mrf.mxu3  ;;  %v3987_v35 = vor.u32 %v3986_v48, %v3983_v59  ;;  %v3453_v62 = vshll.u32 %v2625_v7, 16  ;;  %v10527_v59 = vld [vmem:[#allocation22_spill] sm:$0xff]  ;;  %v10528_v48 = vld [vmem:[#allocation24_spill] sm:$0xff] }
 0x324   : > { %v9370_v56 = vpop.f32.mrf.mxu1  ;;  %v1440_v49 = vmul.f32 %v10528_v48, %v7444_v19 }
 0x325   : > { %10523 = vst [vmem:[#allocation26_spill] sm:$0xff] %v9370_v56  ;;  %v3988_v17 = vsel %vm2790_vm2, %v3906_v52, %v3987_v35  ;;  %v1439_v52 = vmul.f32 %v10527_v59, %v10354_v55  ;;  %v10529_v35 = vld [vmem:[#allocation141_spill] sm:$0xff]  ;;  %v10530_v55 = vld [vmem:[#allocation144_spill] sm:$0xff] }
 0x326   : > { %5352 = vmatmul.bf16.gmra.mxu1 %v3313_v26  ;;  %v3384_v26 = vor.u32 %v3383_v60, %v3380_v57 }
 0x327   : > { %v1472_v59 = vpack.c.bf16 %v1439_v52, %v1439_v52 }
 0x328   : > { %4863 = vmatmul.bf16.gmra.mxu3 %v3907_v6  ;;  %v1521_v6 = vmul.f32 %v10427_v37, %v10452_v34  ;;  %v3385_v11 = vsel %vm2790_vm2, %v3312_v43, %v3384_v26  ;;  %v3450_v37 = vshrl.u32 %v2625_v7, 16  ;;  %v3455_v7 = vrot.slane %v3453_v62, 4  ;;  %v10532_v62 = vld [vmem:[#allocation142_spill] sm:$0xff] }
 0x329   : > { %v2452_v52 = vunpack.c.l.b16 %v1472_v59 }
 0x32a   : > { %v1554_v8 = vpack.c.bf16 %v1521_v6, %v1521_v6 }
 0x32b   : > { %v4824_v16 = vpop.f32.mrf.mxu3 }
 0x32c   : > { %v9368_v20 = vadd.f32 %v4824_v16, %v10522_v4  ;;  %v10524_v16 = vld [vmem:[#allocation121_spill] sm:$0xff]  ;;  %v1466_v4 = vmul.f32 %v10155_v9, %v10525_v53  ;;  %v9389_v57 = vpop.f32.mrf.mxu1  ;;  %v3452_v53 = vrot.slane %v3450_v37, 3  ;;  %v6416_v9 = vld [vmem:[#allocation11 + $0x18] sm:$0xff] }
 0x32d   : > { %v1465_v39 = vmul.f32 %v10417_v33, %v10524_v16  ;;  %10526 = vst [vmem:[#allocation101_spill] sm:$0xff] %v9389_v57  ;;  %5528 = vmatpush.bf16.msra.mxu2 %v6416_v9 }
 0x32e   : > { %v1499_v60 = vpack.c.bf16 %v1466_v4, %v1466_v4  ;;  %v9402_v4 = vld [vmem:[%s9995_s5] ss:$0 sm:$0xff] }
 0x32f   : > { %v1498_v43 = vpack.c.bf16 %v1465_v39, %v1465_v39  ;;  %v4654_v19 = vadd.f32 %v9402_v4, %v10530_v55 }
 0x330   : > { %v2479_v16 = vunpack.c.l.b16 %v1499_v60  ;;  %v3456_v60 = vor.u32 %v3455_v7, %v3452_v53 }
 0x332   : > { %v3457_v53 = vsel %vm2790_vm2, %v3384_v26, %v3456_v60 }
 0x333   : > { %v9374_v5 = vpop.f32.mrf.mxu3 }
 0x334   : > { %v9414_v9 = vpop.f32.mrf.mxu1 }
 0x335   : > { %10533 = vst [vmem:[#allocation148_spill] sm:$0xff] %v9414_v9 }
 0x336   : > { %5357 = vmatmul.bf16.gmra.mxu1 %v3385_v11  ;;  %v2577_v11 = vunpack.c.l.b16 %v1554_v8 }
 0x338   : > { %4868 = vmatmul.bf16.gmra.mxu3 %v3988_v17  ;;  %v2478_v17 = vunpack.c.l.b16 %v1498_v43  ;;  %v2601_v39 = vpack.c.b16 %v2578_v22, %v2577_v11  ;;  %v10531_v43 = vld [vmem:[#allocation120_spill] sm:$0xff]  ;;  %v4743_v22 = vadd.f32 %v10532_v62, %v4654_v19  ;;  %v1524_v11 = vmul.f32 %v8689_v27, %v10466_v24 }
 0x339   : > { %v1467_v37 = vmul.f32 %v10156_v63, %v10531_v43 }
 0x33a   : > { %v2496_v8 = vpack.c.b16 %v2479_v16, %v2478_v17  ;;  %v2626_v48 = vrot.slane %v2601_v39, 5  ;;  %v1557_v39 = vpack.c.bf16 %v1524_v11, %v1524_v11 }
 0x33b   : > { %v4829_v29 = vpop.f32.mrf.mxu3  ;;  %v1500_v57 = vpack.c.bf16 %v1467_v37, %v1467_v37 }
 0x33c   : > { %v9396_v6 = vadd.f32 %v4829_v29, %v10529_v35  ;;  %v1473_v29 = vpack.c.bf16 %v1440_v49, %v1440_v49  ;;  %v1523_v35 = vmul.f32 %v8685_v47, %v10465_v54  ;;  %v3936_v16 = vshrl.u32 %v2496_v8, 16 }
 0x33d   : > { %v3939_v43 = vshll.u32 %v2496_v8, 16  ;;  %v2480_v63 = vunpack.c.l.b16 %v1500_v57  ;;  %v2627_v7 = vsel %vm1959_vm4, %v2624_v3, %v2626_v48  ;;  %v2580_v8 = vunpack.c.l.b16 %v1557_v39  ;;  %v10534_v3 = vld [vmem:[#allocation28_spill] sm:$0xff] }
 0x33e   : > { %v2453_v49 = vunpack.c.l.b16 %v1473_v29  ;;  %v1556_v47 = vpack.c.bf16 %v1523_v35, %v1523_v35  ;;  %v3938_v59 = vrot.slane %v3936_v16, 3  ;;  %v1441_v35 = vmul.f32 %v10534_v3, %v7497_v21 }
 0x33f   : > { %v2497_v19 = vpack.c.b16 %v2480_v63, %v2480_v63  ;;  %v3941_v29 = vrot.slane %v3939_v43, 4  ;;  %v10535_v63 = vld [vmem:[#allocation29_spill] sm:$0xff] }
 0x340   : > { %v2483_v27 = vpack.c.b16 %v2453_v49, %v2452_v52  ;;  %v2579_v9 = vunpack.c.l.b16 %v1556_v47  ;;  %v1442_v11 = vmul.f32 %v10535_v63, %v7499_v14  ;;  %v9430_v47 = vpop.f32.mrf.mxu1  ;;  %v10538_v14 = vld [vmem:[#allocation154_spill] sm:$0xff] }
 0x341   : > { %v4017_v37 = vshrl.u32 %v2497_v19, 16  ;;  %v4020_v62 = vshll.u32 %v2497_v19, 16  ;;  %v9428_v49 = vor.u32 %v3941_v29, %v3938_v59  ;;  %10537 = vst [vmem:[#allocation147_spill] sm:$0xff] %v9430_v47  ;;  %v10539_v59 = vld [vmem:[#allocation150_spill] sm:$0xff] }
 0x342   : > { %v3002_v12 = vshll.u32 %v2483_v27, 16  ;;  %v2602_v39 = vpack.c.b16 %v2580_v8, %v2579_v9 }
 0x343   : > { %v4831_v55 = vpop.f32.mrf.mxu3  ;;  %v4019_v57 = vrot.slane %v4017_v37, 3  ;;  %v4022_v56 = vrot.slane %v4020_v62, 4  ;;  %v1474_v37 = vpack.c.bf16 %v1441_v35, %v1441_v35  ;;  %v1475_v62 = vpack.c.bf16 %v1442_v11, %v1442_v11 }
 0x344   : > { %v9416_v17 = vadd.f32 %v4831_v55, %v4743_v22  ;;  %v3522_v22 = vshrl.u32 %v2627_v7, 16  ;;  %v3525_v55 = vshll.u32 %v2627_v7, 16  ;;  %v3004_v21 = vrot.slane %v3002_v12, 4 }
 0x345   : > { %v4023_v16 = vor.u32 %v4022_v56, %v4019_v57  ;;  %v2628_v56 = vrot.slane %v2602_v39, 5  ;;  %v2454_v8 = vunpack.c.l.b16 %v1474_v37  ;;  %v2455_v57 = vunpack.c.l.b16 %v1475_v62 }
 0x346   : > { %5362 = vmatmul.bf16.gmra.mxu1 %v3457_v53  ;;  %v2999_v53 = vshrl.u32 %v2483_v27, 16  ;;  %v3524_v43 = vrot.slane %v3522_v22, 3  ;;  %v3527_v7 = vrot.slane %v3525_v55, 4  ;;  %v1525_v22 = vmul.f32 %v10453_v30, %v10481_v44 }
 0x347   : > { %v9434_v19 = vsel %vm2790_vm2, %v9428_v49, %v4023_v16  ;;  %v1526_v12 = vmul.f32 %v8758_v18, %v10483_v36  ;;  %v2629_v35 = vsel %vm1959_vm4, %v2626_v48, %v2628_v56  ;;  %v10546_v48 = vld [vmem:[#allocation32_spill] sm:$0xff] }
 0x348   : > { %5149 = vmatmul.bf16.vlgmr.msra.gmra.mxu3 %v9016_v25  ;;  %v10536_v25 = vld [vmem:[#allocation149_spill] sm:$0xff]  ;;  %v3001_v27 = vrot.slane %v2999_v53, 3  ;;  %v3528_v3 = vor.u32 %v3527_v7, %v3524_v43  ;;  %v1558_v11 = vpack.c.bf16 %v1525_v22, %v1525_v22  ;;  %v2484_v43 = vpack.c.b16 %v2455_v57, %v2454_v8  ;;  %v9449_v30 = vpop.f32.mrf.mxu1 }
 0x349   : > { %10542 = vst [vmem:[#allocation126_spill] sm:$0xff] %v9449_v30  ;;  %v1559_v7 = vpack.c.bf16 %v1526_v12, %v1526_v12  ;;  %v3594_v39 = vshrl.u32 %v2629_v35, 16  ;;  %v10547_v22 = vld [vmem:[#allocation21_spill] sm:$0xff]  ;;  %v6415_v12 = vld [vmem:[#allocation11 + $0x10] sm:$0xff] }
 0x34a   : > { %v3005_v9 = vor.u32 %v3004_v21, %v3001_v27  ;;  %v3529_v53 = vsel %vm2790_vm2, %v3456_v60, %v3528_v3  ;;  %v3597_v27 = vshll.u32 %v2629_v35, 16  ;;  %v2581_v21 = vunpack.c.l.b16 %v1558_v11  ;;  %v10544_v60 = vld [vmem:[#allocation31_spill] sm:$0xff]  ;;  %5529 = vmatpush.bf16.msra.mxu2 %v6415_v12 }
 0x34b   : > { %v4834_v26 = vpop.f32.mrf.mxu3  ;;  %v3072_v62 = vshrl.u32 %v2484_v43, 16  ;;  %v3075_v18 = vshll.u32 %v2484_v43, 16  ;;  %v2582_v8 = vunpack.c.l.b16 %v1559_v7  ;;  %v3596_v57 = vrot.slane %v3594_v39, 3  ;;  %v10552_v7 = vld [vmem:[#allocation51_spill] sm:$0xff] }
 0x34c   : > { %v9426_v52 = vadd.f32 %v4834_v26, %v10536_v25  ;;  %v4659_v26 = vadd.f32 %v9402_v4, %v10538_v14  ;;  %v10541_v25 = vld [vmem:[#allocation174_spill] sm:$0xff]  ;;  %v1527_v39 = vmul.f32 %v10552_v7, %v10498_v58  ;;  %v10557_v7 = vld [vmem:[#allocation48_spill] sm:$0xff] }
 0x34d   : > { %v3006_v16 = vsel %vm2790_vm2, %v10541_v25, %v3005_v9  ;;  %v10543_v14 = vld [vmem:[#allocation42_spill] sm:$0xff]  ;;  %v2603_v25 = vpack.c.b16 %v2582_v8, %v2581_v21  ;;  %v3077_v35 = vrot.slane %v3075_v18, 4  ;;  %v10554_v21 = vld [vmem:[#allocation163_spill] sm:$0xff] }
 0x34e   : > { %v4748_v29 = vadd.f32 %v10539_v59, %v4659_v26  ;;  %v1443_v26 = vmul.f32 %v10544_v60, %v10543_v14  ;;  %v10545_v59 = vld [vmem:[#allocation43_spill] sm:$0xff] }
 0x34f   : > { %v2630_v14 = vrot.slane %v2603_v25, 5 }
 0x350   : > { %v1476_v11 = vpack.c.bf16 %v1443_v26, %v1443_v26  ;;  %v9458_v47 = vpop.f32.mrf.mxu1 }
 0x351   : > { %10549 = vst [vmem:[#allocation56_spill] sm:$0xff] %v9458_v47  ;;  %v2631_v26 = vsel %vm1959_vm4, %v2628_v56, %v2630_v14  ;;  %v10560_v56 = vld [vmem:[#allocation27_spill] sm:$0xff] }
 0x352   : > { %v3669_v25 = vshll.u32 %v2631_v26, 16 }
 0x353   : > { %v4836_v55 = vpop.f32.mrf.mxu3 }
 0x354   : > { %v9441_v63 = vadd.f32 %v4836_v55, %v4748_v29  ;;  %v1444_v29 = vmul.f32 %v10546_v48, %v10545_v59  ;;  %v2456_v59 = vunpack.c.l.b16 %v1476_v11  ;;  %v10555_v11 = vld [vmem:[#allocation47_spill] sm:$0xff] }
 0x356   : > { %10540 = vst [vmem:[#allocation119_spill] sm:$0xff] %v9441_v63  ;;  %5367 = vmatmul.bf16.gmra.mxu1 %v3529_v53  ;;  %v3599_v53 = vrot.slane %v3597_v27, 4  ;;  %v1477_v30 = vpack.c.bf16 %v1444_v29, %v1444_v29  ;;  %v10553_v27 = vld [vmem:[#allocation114_spill] sm:$0xff] }
 0x358   : > { %5154 = vmatmul.bf16.gmra.mxu3 %v3006_v16  ;;  %v3074_v16 = vrot.slane %v3072_v62, 3  ;;  %v3600_v43 = vor.u32 %v3599_v53, %v3596_v57  ;;  %v2457_v48 = vunpack.c.l.b16 %v1477_v30  ;;  %v1528_v62 = vmul.f32 %v10554_v21, %v10553_v27  ;;  %v10558_v21 = vld [vmem:[#allocation37_spill] sm:$0xff] }
 0x359   : > { %v1560_v57 = vpack.c.bf16 %v1527_v39, %v1527_v39  ;;  %v3666_v53 = vshrl.u32 %v2631_v26, 16  ;;  %v3671_v39 = vrot.slane %v3669_v25, 4 }
 0x35a   : > { %v3078_v13 = vor.u32 %v3077_v35, %v3074_v16  ;;  %v3601_v18 = vsel %vm2790_vm2, %v3528_v3, %v3600_v43  ;;  %v2485_v8 = vpack.c.b16 %v2457_v48, %v2456_v59  ;;  %v1561_v30 = vpack.c.bf16 %v1528_v62, %v1528_v62 }
 0x35b   : > { %v4839_v37 = vpop.f32.mrf.mxu3  ;;  %v1446_v3 = vmul.f32 %v10558_v21, %v10557_v7  ;;  %v3668_v48 = vrot.slane %v3666_v53, 3  ;;  %v10565_v53 = vld [vmem:[#allocation58_spill] sm:$0xff] }
 0x35c   : > { %v9456_v55 = vadd.f32 %v4839_v37, %v10547_v22  ;;  %v10550_v37 = vld [vmem:[#allocation157_spill] sm:$0xff]  ;;  %v3079_v29 = vsel %vm2790_vm2, %v3005_v9, %v3078_v13  ;;  %v3144_v16 = vshrl.u32 %v2485_v8, 16  ;;  %v3147_v35 = vshll.u32 %v2485_v8, 16 }
 0x35d   : > { %v2583_v9 = vunpack.c.l.b16 %v1560_v57  ;;  %v2584_v59 = vunpack.c.l.b16 %v1561_v30  ;;  %v1479_v28 = vpack.c.bf16 %v1446_v3, %v1446_v3  ;;  %v10564_v57 = vld [vmem:[#allocation17_spill] sm:$0xff]  ;;  %v1530_v25 = vmul.f32 %v10565_v53, %v10512_v40 }
 0x35e   : > { %10548 = vst [vmem:[#allocation112_spill] sm:$0xff] %v9456_v55  ;;  %v3146_v62 = vrot.slane %v3144_v16, 3  ;;  %v3149_v26 = vrot.slane %v3147_v35, 4  ;;  %v9479_v55 = vpop.f32.mrf.mxu2  ;;  %v1529_v30 = vmul.f32 %v10564_v57, %v10511_v50 }
 0x35f   : > { %v2604_v8 = vpack.c.b16 %v2584_v59, %v2583_v9  ;;  %v2459_v21 = vunpack.c.l.b16 %v1479_v28 }
 0x363   : > { %v4841_v60 = vpop.f32.mrf.mxu3 }
 0x364   : > { %v9461_v22 = vadd.f32 %v4841_v60, %v10550_v37  ;;  %v10556_v60 = vld [vmem:[#allocation36_spill] sm:$0xff] }
 0x365   : > { %v1445_v37 = vmul.f32 %v10556_v60, %v10555_v11  ;;  %v3150_v60 = vor.u32 %v3149_v26, %v3146_v62  ;;  %v10569_v26 = vld [vmem:[#allocation41_spill] sm:$0xff] }
 0x366   : > { %10551 = vst [vmem:[#allocation155_spill] sm:$0xff] %v9461_v22  ;;  %5372 = vmatmul.bf16.gmra.mxu1 %v3601_v18  ;;  %v9474_v18 = vpop.f32.mrf.mxu1  ;;  %v3672_v22 = vor.u32 %v3671_v39, %v3668_v48  ;;  %v10567_v48 = vld [vmem:[#allocation54_spill] sm:$0xff]  ;;  %v10568_v39 = vld [vmem:[#allocation40_spill] sm:$0xff]  ;;  %v9497_v57 = vpop.f32.mrf.mxu2 }
 0x367   : > { %10559 = vst [vmem:[#allocation123_spill] sm:$0xff] %v9474_v18  ;;  %v10562_v18 = vld [vmem:[#allocation159_spill] sm:$0xff]  ;;  %v3151_v3 = vsel %vm2790_vm2, %v3078_v13, %v3150_v60  ;;  %v1447_v62 = vmul.f32 %v10568_v39, %v10567_v48 }
 0x368   : > { %5159 = vmatmul.bf16.gmra.mxu3 %v3079_v29  ;;  %v1478_v29 = vpack.c.bf16 %v1445_v37, %v1445_v37  ;;  %v3673_v16 = vsel %vm2790_vm2, %v3600_v43, %v3672_v22 }
 0x36a   : > { %v2458_v7 = vunpack.c.l.b16 %v1478_v29  ;;  %v1448_v29 = vmul.f32 %v10569_v26, %v10410_v2 }
 0x36b   : > { %v4844_v12 = vpop.f32.mrf.mxu3 }
 0x36c   : > { %v9477_v47 = vadd.f32 %v4844_v12, %v10560_v56  ;;  %v2632_v12 = vrot.slane %v2604_v8, 5  ;;  %v2486_v28 = vpack.c.b16 %v2459_v21, %v2458_v7  ;;  %v1563_v56 = vpack.c.bf16 %v1530_v25, %v1530_v25 }
 0x36d   : > { %v1480_v25 = vpack.c.bf16 %v1447_v62, %v1447_v62 }
 0x36e   : > { %10561 = vst [vmem:[#allocation131_spill] sm:$0xff] %v9477_v47  ;;  %v9489_v35 = vpop.f32.mrf.mxu1  ;;  %v2633_v37 = vsel %vm1959_vm4, %v2630_v14, %v2632_v12  ;;  %v3216_v8 = vshrl.u32 %v2486_v28, 16  ;;  %v10570_v14 = vld [vmem:[#allocation160_spill] sm:$0xff]  ;;  %v2586_v7 = vunpack.c.l.b16 %v1563_v56  ;;  %v10573_v47 = vld [vmem:[#allocation137_spill] sm:$0xff] }
 0x36f   : > { %10566 = vst [vmem:[#allocation122_spill] sm:$0xff] %v9489_v35  ;;  %v3738_v9 = vshrl.u32 %v2633_v37, 16  ;;  %v3741_v59 = vshll.u32 %v2633_v37, 16  ;;  %v6414_v37 = vld [vmem:[#allocation11 + $0x8] sm:$0xff] }
 0x370   : > { %5530 = vmatpush.bf16.msra.mxu2 %v6414_v37 }
 0x371   : > { %v3740_v21 = vrot.slane %v3738_v9, 3 }
 0x373   : > { %v4846_v11 = vpop.f32.mrf.mxu3 }
 0x374   : > { %v9482_v63 = vadd.f32 %v4846_v11, %v10562_v18  ;;  %v1562_v18 = vpack.c.bf16 %v1529_v30, %v1529_v30  ;;  %v3219_v11 = vshll.u32 %v2486_v28, 16  ;;  %v3743_v30 = vrot.slane %v3741_v59, 4  ;;  %v10575_v59 = vld [vmem:[#allocation39_spill] sm:$0xff] }
 0x375   : > { %v2460_v28 = vunpack.c.l.b16 %v1480_v25 }
 0x376   : > { %10563 = vst [vmem:[#allocation121_spill] sm:$0xff] %v9482_v63  ;;  %5377 = vmatmul.bf16.gmra.mxu1 %v3673_v16  ;;  %v2585_v13 = vunpack.c.l.b16 %v1562_v18  ;;  %v1481_v16 = vpack.c.bf16 %v1448_v29, %v1448_v29  ;;  %v3221_v48 = vrot.slane %v3219_v11, 4  ;;  %v9502_v39 = vpop.f32.mrf.mxu1  ;;  %v3744_v26 = vor.u32 %v3743_v30, %v3740_v21  ;;  %v10572_v63 = vld [vmem:[#allocation66_spill] sm:$0xff]  ;;  %v9512_v11 = vpop.f32.mrf.mxu2 }
 0x378   : > { %5164 = vmatmul.bf16.gmra.mxu3 %v3151_v3  ;;  %v3218_v3 = vrot.slane %v3216_v8, 3  ;;  %v2605_v2 = vpack.c.b16 %v2586_v7, %v2585_v13  ;;  %v2461_v35 = vunpack.c.l.b16 %v1481_v16  ;;  %v3745_v8 = vsel %vm2790_vm2, %v3672_v22, %v3744_v26 }
 0x37a   : > { %v3222_v9 = vor.u32 %v3221_v48, %v3218_v3  ;;  %v2634_v29 = vrot.slane %v2605_v2, 5  ;;  %v2487_v13 = vpack.c.b16 %v2461_v35, %v2460_v28  ;;  %v10578_v35 = vld [vmem:[#allocation46_spill] sm:$0xff] }
 0x37b   : > { %v4849_v43 = vpop.f32.mrf.mxu3  ;;  %v1450_v28 = vmul.f32 %v10578_v35, %v10426_v31  ;;  %v10583_v31 = vunpack.c.h.bf16 %v9376_v10 }
 0x37c   : > { %v9500_v53 = vadd.f32 %v4849_v43, %v10570_v14  ;;  %v1531_v43 = vmul.f32 %v10573_v47, %v10572_v63  ;;  %v10574_v14 = vld [vmem:[#allocation169_spill] sm:$0xff]  ;;  %v3223_v30 = vsel %vm2790_vm2, %v3150_v60, %v3222_v9  ;;  %v2635_v63 = vsel %vm1959_vm4, %v2632_v12, %v2634_v29 }
 0x37d   : > { %v1532_v18 = vmul.f32 %v10417_v33, %v10574_v14  ;;  %v3288_v25 = vshrl.u32 %v2487_v13, 16  ;;  %v3291_v16 = vshll.u32 %v2487_v13, 16  ;;  %v3810_v2 = vshrl.u32 %v2635_v63, 16  ;;  %v10577_v14 = vld [vmem:[#allocation45_spill] sm:$0xff] }
 0x37e   : > { %10571 = vst [vmem:[#allocation22_spill] sm:$0xff] %v9500_v53  ;;  %v1564_v7 = vpack.c.bf16 %v1531_v43, %v1531_v43  ;;  %v9516_v33 = vpop.f32.mrf.mxu1  ;;  %v3813_v22 = vshll.u32 %v2635_v63, 16  ;;  %v10579_v43 = vld [vmem:[#allocation171_spill] sm:$0xff]  ;;  %v10581_v63 = vunpack.c.l.bf16 %v9376_v10 }
 0x37f   : > { %v1565_v21 = vpack.c.bf16 %v1532_v18, %v1532_v18  ;;  %v3290_v18 = vrot.slane %v3288_v25, 3  ;;  %v3293_v12 = vrot.slane %v3291_v16, 4 }
 0x380   : > { %v2587_v37 = vunpack.c.l.b16 %v1564_v7  ;;  %v1483_v7 = vpack.c.bf16 %v1450_v28, %v1450_v28 }
 0x381   : > { %v2588_v3 = vunpack.c.l.b16 %v1565_v21  ;;  %v9525_v21 = vpop.f32.mrf.mxu2 }
 0x383   : > { %v4851_v56 = vpop.f32.mrf.mxu3 }
 0x384   : > { %v9509_v62 = vadd.f32 %v4851_v56, %v10575_v59  ;;  %v1449_v56 = vmul.f32 %v10577_v14, %v10323_v15  ;;  %v2606_v59 = vpack.c.b16 %v2588_v3, %v2587_v37  ;;  %v1533_v15 = vmul.f32 %v10581_v63, %v9046_v45  ;;  %v10582_v14 = vld [vmem:[#allocation30_spill] sm:$0xff] }
 0x385   : > { %v1534_v35 = vmul.f32 %v10583_v31, %v10582_v14  ;;  %v2463_v37 = vunpack.c.l.b16 %v1483_v7 }
 0x386   : > { %10576 = vst [vmem:[#allocation24_spill] sm:$0xff] %v9509_v62  ;;  %5382 = vmatmul.bf16.gmra.mxu1 %v3745_v8  ;;  %v3812_v8 = vrot.slane %v3810_v2, 3  ;;  %v1482_v13 = vpack.c.bf16 %v1449_v56, %v1449_v56  ;;  %v2636_v62 = vrot.slane %v2606_v59, 5  ;;  %v9533_v3 = vpop.f32.mrf.mxu1  ;;  %v10584_v2 = vld [vmem:[#allocation175_spill] sm:$0xff]  ;;  %v1566_v45 = vpack.c.bf16 %v1533_v15, %v1533_v15 }
 0x387   : > { %v1567_v59 = vpack.c.bf16 %v1534_v35, %v1534_v35  ;;  %v1501_v35 = vld [vmem:[#allocation2 + $0x98] sm:$0x1] }
 0x388   : > { %5169 = vmatmul.bf16.gmra.mxu3 %v3223_v30  ;;  %v3815_v30 = vrot.slane %v3813_v22, 4  ;;  %v2462_v16 = vunpack.c.l.b16 %v1482_v13  ;;  %v2637_v28 = vsel %vm1959_vm4, %v2634_v29, %v2636_v62  ;;  %v10587_v29 = vld [vmem:[#allocation53_spill] sm:$0xff] }
 0x389   : > { %v2590_v13 = vunpack.c.l.b16 %v1567_v59  ;;  %v1452_v15 = vmul.f32 %v10587_v29, %v10440_v0  ;;  %v1502_v59 = vunpack.c.l.bf16 %v1501_v35 }
 0x38a   : > { %v3816_v25 = vor.u32 %v3815_v30, %v3812_v8  ;;  %v2488_v63 = vpack.c.b16 %v2463_v37, %v2462_v16  ;;  %v9541_v8 = vpop.f32.mrf.mxu2  ;;  %v2589_v30 = vunpack.c.l.b16 %v1566_v45  ;;  %v6413_v45 = vld [vmem:[#allocation11] sm:$0xff] }
 0x38b   : > { %v4854_v48 = vpop.f32.mrf.mxu3  ;;  %5531 = vmatpush.bf16.msra.mxu2 %v6413_v45  ;;  %v1535_v0 = vmul.f32 %v1502_v59, %v9036_v46 }
 0x38c   : > { %v9523_v60 = vadd.f32 %v4854_v48, %v10579_v43  ;;  %v3294_v43 = vor.u32 %v3293_v12, %v3290_v18  ;;  %v3817_v56 = vsel %vm2790_vm2, %v3744_v26, %v3816_v25  ;;  %v3882_v18 = vshrl.u32 %v2637_v28, 16  ;;  %v10586_v26 = vld [vmem:[#allocation52_spill] sm:$0xff] }
 0x38d   : > { %v3885_v12 = vshll.u32 %v2637_v28, 16  ;;  %v3360_v14 = vshrl.u32 %v2488_v63, 16  ;;  %v3363_v31 = vshll.u32 %v2488_v63, 16  ;;  %v2607_v28 = vpack.c.b16 %v2590_v13, %v2589_v30 }
 0x38e   : > { %10580 = vst [vmem:[#allocation141_spill] sm:$0xff] %v9523_v60  ;;  %v3295_v10 = vsel %vm2790_vm2, %v3222_v9, %v3294_v43  ;;  %v3884_v16 = vrot.slane %v3882_v18, 3  ;;  %v1485_v60 = vpack.c.bf16 %v1452_v15, %v1452_v15 }
 0x38f   : > { %v3887_v37 = vrot.slane %v3885_v12, 4  ;;  %v10590_v12 = vld [vmem:[#allocation179_spill] sm:$0xff] }
 0x392   : > { %v9553_v18 = vpop.f32.mrf.mxu2 }
 0x393   : > { %v4856_v48 = vpop.f32.mrf.mxu3 }
 0x394   : > { %v9536_v22 = vadd.f32 %v4856_v48, %v10584_v2  ;;  %v1451_v48 = vmul.f32 %v10586_v26, %v10424_v23  ;;  %v10588_v2 = vld [vmem:[#allocation176_spill] sm:$0xff]  ;;  %v3888_v23 = vor.u32 %v3887_v37, %v3884_v16  ;;  %v2638_v26 = vrot.slane %v2607_v28, 5  ;;  %v10592_v28 = vld [vmem:[#allocation63_spill] sm:$0xff] }
 0x395   : > { %v1453_v45 = vmul.f32 %v10592_v28, %v10437_v38 }
 0x396   : > { %10585 = vst [vmem:[#allocation144_spill] sm:$0xff] %v9536_v22  ;;  %5387 = vmatmul.bf16.gmra.mxu1 %v3817_v56  ;;  %v9550_v56 = vpop.f32.mrf.mxu1  ;;  %v3365_v22 = vrot.slane %v3363_v31, 4  ;;  %v1484_v63 = vpack.c.bf16 %v1451_v48, %v1451_v48  ;;  %v3889_v30 = vsel %vm2790_vm2, %v3816_v25, %v3888_v23  ;;  %v2639_v13 = vsel %vm1959_vm4, %v2636_v62, %v2638_v26  ;;  %v10593_v25 = vld [vmem:[#allocation64_spill] sm:$0xff]  ;;  %v10594_v62 = vld [vmem:[#allocation35_spill] sm:$0xff] }
 0x397   : > { %v3954_v46 = vshrl.u32 %v2639_v13, 16  ;;  %v1454_v59 = vmul.f32 %v10593_v25, %v10452_v34  ;;  %v10596_v25 = vld [vmem:[#allocation90_spill] sm:$0xff] }
 0x398   : > { %5174 = vmatmul.bf16.gmra.mxu3 %v3295_v10  ;;  %v3362_v10 = vrot.slane %v3360_v14, 3  ;;  %v1568_v14 = vpack.c.bf16 %v1535_v0, %v1535_v0 }
 0x39a   : > { %v3366_v53 = vor.u32 %v3365_v22, %v3362_v10  ;;  %v3957_v22 = vshll.u32 %v2639_v13, 16  ;;  %v9570_v0 = vpop.f32.mrf.mxu2 }
 0x39b   : > { %v4859_v7 = vpop.f32.mrf.mxu3 }
 0x39c   : > { %v9548_v9 = vadd.f32 %v4859_v7, %v10588_v2  ;;  %v2464_v7 = vunpack.c.l.b16 %v1484_v63  ;;  %v2465_v2 = vunpack.c.l.b16 %v1485_v60  ;;  %v3367_v31 = vsel %vm2790_vm2, %v3294_v43, %v3366_v53 }
 0x39d   : > { %v2591_v60 = vunpack.c.l.b16 %v1568_v14  ;;  %v3956_v43 = vrot.slane %v3954_v46, 3  ;;  %v3959_v63 = vrot.slane %v3957_v22, 4 }
 0x39e   : > { %10589 = vst [vmem:[#allocation120_spill] sm:$0xff] %v9548_v9  ;;  %v2489_v48 = vpack.c.b16 %v2465_v2, %v2464_v7  ;;  %v9561_v15 = vpop.f32.mrf.mxu1 }
 0x39f   : > { %v3960_v13 = vor.u32 %v3959_v63, %v3956_v43 }
 0x3a0   : > { %v3432_v16 = vshrl.u32 %v2489_v48, 16  ;;  %v3435_v37 = vshll.u32 %v2489_v48, 16 }
 0x3a1   : > { %v3961_v46 = vsel %vm2790_vm2, %v3888_v23, %v3960_v13 }
 0x3a2   : > { %v3434_v7 = vrot.slane %v3432_v16, 3  ;;  %v3437_v2 = vrot.slane %v3435_v37, 4  ;;  %v9580_v37 = vpop.f32.mrf.mxu2 }
 0x3a3   : > { %v4861_v29 = vpop.f32.mrf.mxu3 }
 0x3a4   : > { %v9556_v9 = vadd.f32 %v4861_v29, %v10590_v12  ;;  %v2608_v29 = vpack.c.b16 %v2591_v60, %v2591_v60  ;;  %v1486_v12 = vpack.c.bf16 %v1453_v45, %v1453_v45  ;;  %v3438_v48 = vor.u32 %v3437_v2, %v3434_v7  ;;  %v10599_v2 = vld [vmem:[#allocation75_spill] sm:$0xff] }
 0x3a5   : > { %v1456_v23 = vmul.f32 %v10599_v2, %v10465_v54  ;;  %v10604_v54 = vld [vmem:[#allocation80_spill] sm:$0xff] }
 0x3a6   : > { %10591 = vst [vmem:[#allocation142_spill] sm:$0xff] %v9556_v9  ;;  %5392 = vmatmul.bf16.gmra.mxu1 %v3889_v30  ;;  %v1487_v30 = vpack.c.bf16 %v1454_v59, %v1454_v59  ;;  %v9572_v14 = vpop.f32.mrf.mxu1  ;;  %v2466_v28 = vunpack.c.l.b16 %v1486_v12  ;;  %v3439_v60 = vsel %vm2790_vm2, %v3366_v53, %v3438_v48 }
 0x3a8   : > { %5179 = vmatmul.bf16.gmra.mxu3 %v3367_v31  ;;  %v2640_v31 = vrot.slane %v2608_v29, 5  ;;  %v2467_v34 = vunpack.c.l.b16 %v1487_v30  ;;  %v10598_v29 = vld [vmem:[#allocation74_spill] sm:$0xff] }
 0x3a9   : > { %v1455_v7 = vmul.f32 %v10598_v29, %v10450_v41 }
 0x3aa   : > { %v2641_v22 = vsel %vm1959_vm4, %v2638_v26, %v2640_v31  ;;  %v2490_v16 = vpack.c.b16 %v2467_v34, %v2466_v28  ;;  %v10600_v26 = vld [vmem:[#allocation83_spill] sm:$0xff] }
 0x3ab   : > { %v4864_v35 = vpop.f32.mrf.mxu3  ;;  %v4035_v45 = vshrl.u32 %v2641_v22, 16  ;;  %v4038_v59 = vshll.u32 %v2641_v22, 16  ;;  %v1488_v34 = vpack.c.bf16 %v1455_v7, %v1455_v7  ;;  %v9591_v22 = vpop.f32.mrf.mxu2 }
 0x3ac   : > { %v9568_v10 = vadd.f32 %v4864_v35, %v10594_v62  ;;  %v3504_v43 = vshrl.u32 %v2490_v16, 16  ;;  %v3507_v63 = vshll.u32 %v2490_v16, 16  ;;  %10602 = vst [vmem:[#allocation154_spill] sm:$0xff] %v9591_v22 }
 0x3ad   : > { %v4037_v53 = vrot.slane %v4035_v45, 3  ;;  %v4040_v31 = vrot.slane %v4038_v59, 4  ;;  %v2468_v41 = vunpack.c.l.b16 %v1488_v34 }
 0x3ae   : > { %10595 = vst [vmem:[#allocation28_spill] sm:$0xff] %v9568_v10  ;;  %v9586_v12 = vpop.f32.mrf.mxu1  ;;  %v3509_v28 = vrot.slane %v3507_v63, 4  ;;  %v10605_v10 = vld [vmem:[#allocation116_spill] sm:$0xff]  ;;  %v10607_v63 = vld [vmem:[#allocation161_spill] sm:$0xff] }
 0x3b3   : > { %v4866_v38 = vpop.f32.mrf.mxu3 }
 0x3b4   : > { %v9575_v35 = vadd.f32 %v4866_v38, %v10596_v25  ;;  %v3506_v38 = vrot.slane %v3504_v43, 3  ;;  %v1489_v25 = vpack.c.bf16 %v1456_v23, %v1456_v23  ;;  %v10608_v23 = vld [vmem:[#allocation146_spill] sm:$0xff] }
 0x3b6   : > { %10597 = vst [vmem:[#allocation29_spill] sm:$0xff] %v9575_v35  ;;  %5397 = vmatmul.bf16.gmra.mxu1 %v3961_v46  ;;  %v4041_v46 = vor.u32 %v4040_v31, %v4037_v53  ;;  %v3510_v16 = vor.u32 %v3509_v28, %v3506_v38  ;;  %v2469_v29 = vunpack.c.l.b16 %v1489_v25  ;;  %v10603_v35 = vld [vmem:[#allocation84_spill] sm:$0xff]  ;;  %v9599_v59 = vpop.f32.mrf.mxu1  ;;  %v9609_v25 = vpop.f32.mrf.mxu2 }
 0x3b7   : > { %v4884_v2 = vadd.f32 %v10604_v54, %v10603_v35  ;;  %10612 = vst [vmem:[#allocation174_spill] sm:$0xff] %v9609_v25 }
 0x3b8   : > { %5184 = vmatmul.bf16.gmra.mxu3 %v3439_v60  ;;  %v4042_v45 = vsel %vm2790_vm2, %v3960_v13, %v4041_v46  ;;  %v2491_v43 = vpack.c.b16 %v2469_v29, %v2468_v41  ;;  %v10611_v13 = vld [vmem:[#allocation87_spill] sm:$0xff]  ;;  %v10613_v46 = vld [vmem:[#allocation166_spill] sm:$0xff]  ;;  %v10614_v41 = vld [vmem:[#allocation44_spill] sm:$0xff] }
 0x3b9   : > { %v4973_v7 = vadd.f32 %v10607_v63, %v4884_v2  ;;  %v1458_v34 = vmul.f32 %v10611_v13, %v10481_v44  ;;  %v10615_v63 = vld [vmem:[#allocation20_spill] sm:$0xff]  ;;  %v10617_v44 = vld [vmem:[#allocation69_spill] sm:$0xff]  ;;  %v10618_v13 = vld [vmem:[#allocation91_spill] sm:$0xff] }
 0x3ba   : > { %v3576_v38 = vshrl.u32 %v2491_v43, 16  ;;  %v3579_v35 = vshll.u32 %v2491_v43, 16  ;;  %v10616_v43 = vld [vmem:[#allocation168_spill] sm:$0xff]  ;;  %v4889_v25 = vadd.f32 %v10618_v13, %v10617_v44 }
 0x3bb   : > { %v4869_v62 = vpop.f32.mrf.mxu3 }
 0x3bc   : > { %v9589_v30 = vadd.f32 %v4869_v62, %v10600_v26  ;;  %v3511_v62 = vsel %vm2790_vm2, %v3438_v48, %v3510_v16  ;;  %v10609_v26 = vld [vmem:[#allocation86_spill] sm:$0xff]  ;;  %v5062_v48 = vadd.f32 %v10613_v46, %v4973_v7  ;;  %v3578_v54 = vrot.slane %v3576_v38, 3 }
 0x3bd   : > { %v4886_v53 = vadd.f32 %v10609_v26, %v10608_v23  ;;  %v3581_v2 = vrot.slane %v3579_v35, 4  ;;  %v10620_v46 = vld [vmem:[#allocation50_spill] sm:$0xff] }
 0x3be   : > { %10601 = vst [vmem:[#allocation149_spill] sm:$0xff] %v9589_v30  ;;  %v9617_v7 = vpop.f32.mrf.mxu2 }
 0x3bf   : > { %v4975_v29 = vadd.f32 %v10614_v41, %v4886_v53  ;;  %v10622_v41 = vld [vmem:[#allocation99_spill] sm:$0xff] }
 0x3c1   : > { %v5064_v26 = vadd.f32 %v10616_v43, %v4975_v29 }
 0x3c3   : > { %v4871_v60 = vpop.f32.mrf.mxu3 }
 0x3c4   : > { %v9596_v9 = vadd.f32 %v4871_v60, %v10605_v10  ;;  %v10610_v10 = vld [vmem:[#allocation85_spill] sm:$0xff] }
 0x3c5   : > { %v1457_v28 = vmul.f32 %v10610_v10, %v10466_v24  ;;  %v3582_v24 = vor.u32 %v3581_v2, %v3578_v54 }
 0x3c6   : > { %10606 = vst [vmem:[#allocation150_spill] sm:$0xff] %v9596_v9  ;;  %5402 = vmatmul.bf16.gmra.mxu1 %v4042_v45 }
 0x3c7   : > { %v1490_v45 = vpack.c.bf16 %v1457_v28, %v1457_v28  ;;  %v3583_v35 = vsel %vm2790_vm2, %v3510_v16, %v3582_v24 }
 0x3c8   : > { %5189 = vmatmul.bf16.gmra.mxu3 %v3511_v62  ;;  %v1491_v62 = vpack.c.bf16 %v1458_v34, %v1458_v34 }
 0x3c9   : > { %v2470_v10 = vunpack.c.l.b16 %v1490_v45 }
 0x3ca   : > { %v2471_v30 = vunpack.c.l.b16 %v1491_v62 }
 0x3cb   : > { %v5150_v31 = vpop.f32.mrf.mxu3 }
 0x3cc   : > { %v5151_v60 = vadd.f32 %v5150_v31, %v5062_v48  ;;  %v10619_v31 = vld [vmem:[#allocation71_spill] sm:$0xff]  ;;  %v2492_v28 = vpack.c.b16 %v2471_v30, %v2470_v10  ;;  %v4978_v48 = vadd.f32 %v10620_v46, %v4889_v25  ;;  %v10625_v30 = vld [vmem:[#allocation96_spill] sm:$0xff]  ;;  %v10626_v25 = vld [vmem:[#allocation57_spill] sm:$0xff]  ;;  %v9632_v10 = vpop.f32.mrf.mxu0 }
 0x3ce   : > { %v5240_v23 = vadd.f32 %v10615_v63, %v5151_v60  ;;  %v10621_v60 = vld [vmem:[#allocation127_spill] sm:$0xff]  ;;  %v3648_v45 = vshrl.u32 %v2492_v28, 16  ;;  %v3651_v62 = vshll.u32 %v2492_v28, 16  ;;  %v10627_v28 = vld [vmem:[#allocation89_spill] sm:$0xff] }
 0x3cf   : > { %v4891_v29 = vadd.f32 %v10622_v41, %v10621_v60 }
 0x3d0   : > { %v5329_v53 = vadd.f32 %v9502_v39, %v5240_v23  ;;  %v10623_v39 = vld [vmem:[#allocation173_spill] sm:$0xff]  ;;  %v3650_v44 = vrot.slane %v3648_v45, 3  ;;  %v3653_v13 = vrot.slane %v3651_v62, 4 }
 0x3d1   : > { %v5067_v23 = vadd.f32 %v10623_v39, %v4978_v48 }
 0x3d2   : > { %v5408_v54 = vmax.f32 %v5329_v53, 0.0  ;;  %v9634_v53 = vpop.f32.mrf.mxu2  ;;  %v3654_v41 = vor.u32 %v3653_v13, %v3650_v44 }
 0x3d3   : > { %v5152_v9 = vpop.f32.mrf.mxu3 }
 0x3d4   : > { %v5153_v22 = vadd.f32 %v5152_v9, %v5064_v26  ;;  %v4980_v26 = vadd.f32 %v10626_v25, %v4891_v29  ;;  %v10630_v29 = vld [vmem:[#allocation93_spill] sm:$0xff]  ;;  %v9651_v13 = vpop.f32.mrf.mxu0 }
 0x3d6   : > { %v5242_v38 = vadd.f32 %v10619_v31, %v5153_v22  ;;  %v10624_v22 = vld [vmem:[#allocation95_spill] sm:$0xff]  ;;  %v9636_v31 = vpop.f32.mrf.mxu1 }
 0x3d7   : > { %v1459_v16 = vmul.f32 %v10624_v22, %v10483_v36  ;;  %v4629_v36 = vadd.f32 %v9402_v4, %v10627_v28 }
 0x3d8   : > { %v5331_v34 = vadd.f32 %v9516_v33, %v5242_v38  ;;  %5194 = vmatmul.bf16.gmra.mxu3 %v3583_v35  ;;  %v1460_v33 = vmul.f32 %v10625_v30, %v10498_v58  ;;  %v10629_v58 = vld [vmem:[#allocation76_spill] sm:$0xff]  ;;  %v10634_v30 = vld [vmem:[#allocation77_spill] sm:$0xff] }
 0x3d9   : > { %v1492_v38 = vpack.c.bf16 %v1459_v16, %v1459_v16  ;;  %v5069_v48 = vadd.f32 %v10629_v58, %v4980_v26  ;;  %v10635_v26 = vld [vmem:[#allocation18_spill] sm:$0xff] }
 0x3da   : > { %v5409_v2 = vmax.f32 %v5331_v34, 0.0  ;;  %v1493_v35 = vpack.c.bf16 %v1460_v33, %v1460_v33  ;;  %v10628_v34 = vld [vmem:[#allocation94_spill] sm:$0xff] }
 0x3db   : > { %v5155_v9 = vpop.f32.mrf.mxu3 }
 0x3dc   : > { %v5440_v63 = vpack.c.bf16 %v5409_v2, %v5408_v54  ;;  %v5156_v43 = vadd.f32 %v5155_v9, %v5067_v23  ;;  %v4718_v54 = vadd.f32 %v10630_v29, %v4629_v36  ;;  %v10631_v2 = vld [vmem:[#allocation153_spill] sm:$0xff]  ;;  %v2473_v39 = vunpack.c.l.b16 %v1493_v35  ;;  %v10633_v23 = vld [vmem:[#allocation78_spill] sm:$0xff]  ;;  %v10636_v36 = vld [vmem:[#allocation111_spill] sm:$0xff] }
 0x3dd   : > { %v10632_v9 = vld [vmem:[#allocation105_spill] sm:$0xff]  ;;  %v10639_v29 = vld [vmem:[#allocation178_spill] sm:$0xff] }
 0x3de   : > { %5532 = vmatmul.bf16.vlgmr.msra.gmra.mxu2 %v5440_v63  ;;  %v5245_v46 = vadd.f32 %v10628_v34, %v5156_v43  ;;  %v4894_v45 = vadd.f32 %v10632_v9, %v10631_v2  ;;  %v2472_v63 = vunpack.c.l.b16 %v1492_v38  ;;  %v4807_v22 = vadd.f32 %v10633_v23, %v4718_v54  ;;  %v9654_v38 = vpop.f32.mrf.mxu2 }
 0x3df   : > { %v3655_v43 = vsel %vm2790_vm2, %v3582_v24, %v3654_v41 }
 0x3e0   : > { %v5334_v16 = vadd.f32 %v9533_v3, %v5245_v46  ;;  %v4983_v44 = vadd.f32 %v10635_v26, %v4894_v45  ;;  %v2493_v28 = vpack.c.b16 %v2473_v39, %v2472_v63  ;;  %v4896_v34 = vadd.f32 %v10636_v36, %v4807_v22  ;;  %v10637_v46 = vld [vmem:[#allocation100_spill] sm:$0xff]  ;;  %v10640_v63 = vld [vmem:[#allocation165_spill] sm:$0xff]  ;;  %v10643_v26 = vld [vmem:[#allocation62_spill] sm:$0xff]  ;;  %v9668_v36 = vpop.f32.mrf.mxu0 }
 0x3e1   : > { %v1461_v24 = vmul.f32 %v10637_v46, %v10553_v27  ;;  %v10642_v27 = vld [vmem:[#allocation134_spill] sm:$0xff]  ;;  %v10645_v46 = vld [vmem:[#allocation132_spill] sm:$0xff] }
 0x3e2   : > { %v5410_v35 = vmax.f32 %v5334_v16, 0.0  ;;  %v5072_v54 = vadd.f32 %v10639_v29, %v4983_v44  ;;  %v3720_v9 = vshrl.u32 %v2493_v28, 16  ;;  %v3723_v45 = vshll.u32 %v2493_v28, 16 }
 0x3e3   : > { %v5157_v60 = vpop.f32.mrf.mxu3  ;;  %v4985_v39 = vadd.f32 %v10640_v63, %v4896_v34  ;;  %v1494_v23 = vpack.c.bf16 %v1461_v24, %v1461_v24  ;;  %v10646_v34 = vld [vmem:[#allocation117_spill] sm:$0xff] }
 0x3e4   : > { %v5158_v62 = vadd.f32 %v5157_v60, %v5069_v48  ;;  %v9656_v48 = vpop.f32.mrf.mxu1  ;;  %v3722_v16 = vrot.slane %v3720_v9, 3  ;;  %v4899_v24 = vadd.f32 %v10646_v34, %v10645_v46 }
 0x3e6   : > { %v5247_v33 = vadd.f32 %v10634_v30, %v5158_v62  ;;  %v3725_v30 = vrot.slane %v3723_v45, 4 }
 0x3e8   : > { %v5336_v25 = vadd.f32 %v9550_v56, %v5247_v33  ;;  %5199 = vmatmul.bf16.gmra.mxu3 %v3655_v43  ;;  %v10638_v56 = vld [vmem:[#allocation103_spill] sm:$0xff]  ;;  %v10641_v33 = vld [vmem:[#allocation104_spill] sm:$0xff] }
 0x3e9   : > { %v1462_v60 = vmul.f32 %v10638_v56, %v10511_v50  ;;  %v4634_v43 = vadd.f32 %v9402_v4, %v10641_v33  ;;  %v5074_v50 = vadd.f32 %v10643_v26, %v4985_v39  ;;  %v9673_v56 = vpop.f32.mrf.mxu2  ;;  %v10649_v33 = vld [vmem:[#allocation79_spill] sm:$0xff] }
 0x3ea   : > { %v5411_v58 = vmax.f32 %v5336_v25, 0.0 }
 0x3eb   : > { %v5160_v3 = vpop.f32.mrf.mxu3  ;;  %v1495_v22 = vpack.c.bf16 %v1462_v60, %v1462_v60 }
 0x3ec   : > { %v5441_v2 = vpack.c.bf16 %v5411_v58, %v5410_v35  ;;  %v5161_v62 = vadd.f32 %v5160_v3, %v5072_v54  ;;  %v2474_v35 = vunpack.c.l.b16 %v1494_v23  ;;  %v10644_v58 = vld [vmem:[#allocation106_spill] sm:$0xff]  ;;  %v9675_v29 = vpop.f32.mrf.mxu1  ;;  %v3726_v54 = vor.u32 %v3725_v30, %v3722_v16 }
 0x3ed   : > { %v2475_v28 = vunpack.c.l.b16 %v1495_v22  ;;  %v4723_v3 = vadd.f32 %v10644_v58, %v4634_v43  ;;  %v4988_v43 = vadd.f32 %v10649_v33, %v4899_v24 }
 0x3ee   : > { %5537 = vmatmul.bf16.gmra.mxu2 %v5441_v2  ;;  %v5250_v25 = vadd.f32 %v10642_v27, %v5161_v62  ;;  %v10647_v2 = vld [vmem:[#allocation107_spill] sm:$0xff]  ;;  %v3727_v39 = vsel %vm2790_vm2, %v3654_v41, %v3726_v54  ;;  %v10650_v27 = vld [vmem:[#allocation124_spill] sm:$0xff]  ;;  %v10653_v41 = vld [vmem:[#allocation34_spill] sm:$0xff] }
 0x3ef   : > { %v4812_v9 = vadd.f32 %v10647_v2, %v4723_v3  ;;  %v10648_v62 = vld [vmem:[#allocation23_spill] sm:$0xff]  ;;  %v2494_v23 = vpack.c.b16 %v2475_v28, %v2474_v35  ;;  %v10651_v3 = vld [vmem:[#allocation109_spill] sm:$0xff]  ;;  %v5077_v35 = vadd.f32 %v10653_v41, %v4988_v43 }
 0x3f0   : > { %v5339_v45 = vadd.f32 %v9561_v15, %v5250_v25  ;;  %v1463_v15 = vmul.f32 %v10651_v3, %v10512_v40  ;;  %v10652_v25 = vld [vmem:[#allocation110_spill] sm:$0xff] }
 0x3f1   : > { %v4901_v26 = vadd.f32 %v10650_v27, %v4812_v9  ;;  %v3792_v16 = vshrl.u32 %v2494_v23, 16  ;;  %v3795_v30 = vshll.u32 %v2494_v23, 16  ;;  %v1464_v46 = vmul.f32 %v10573_v47, %v10652_v25  ;;  %v9691_v34 = vpop.f32.mrf.mxu2  ;;  %v10659_v25 = vld [vmem:[#allocation130_spill] sm:$0xff] }
 0x3f3   : > { %v5162_v44 = vpop.f32.mrf.mxu3  ;;  %v1497_v40 = vpack.c.bf16 %v1464_v46, %v1464_v46 }
 0x3f4   : > { %v5163_v60 = vadd.f32 %v5162_v44, %v5074_v50  ;;  %v5412_v50 = vmax.f32 %v5339_v45, 0.0  ;;  %v9694_v9 = vpop.f32.mrf.mxu1  ;;  %v3794_v45 = vrot.slane %v3792_v16, 3 }
 0x3f6   : > { %v5252_v63 = vadd.f32 %v10648_v62, %v5163_v60  ;;  %v10654_v60 = vld [vmem:[#allocation170_spill] sm:$0xff]  ;;  %v3797_v62 = vrot.slane %v3795_v30, 4 }
 0x3f7   : > { %v4990_v2 = vadd.f32 %v10654_v60, %v4901_v26  ;;  %v10658_v26 = vld [vmem:[#allocation88_spill] sm:$0xff] }
 0x3f8   : > { %v5341_v22 = vadd.f32 %v9572_v14, %v5252_v63  ;;  %5204 = vmatmul.bf16.gmra.mxu3 %v3727_v39  ;;  %v9689_v14 = vpop.f32.mrf.mxu0  ;;  %v1496_v63 = vpack.c.bf16 %v1463_v15, %v1463_v15  ;;  %v10655_v39 = vld [vmem:[#allocation113_spill] sm:$0xff]  ;;  %v3798_v27 = vor.u32 %v3797_v62, %v3794_v45  ;;  %v4904_v41 = vadd.f32 %v10659_v25, %v10658_v26 }
 0x3f9   : > { %v4639_v47 = vadd.f32 %v9402_v4, %v10655_v39 }
 0x3fa   : > { %v5413_v44 = vmax.f32 %v5341_v22, 0.0  ;;  %v10656_v22 = vld [vmem:[#allocation73_spill] sm:$0xff] }
 0x3fb   : > { %v5165_v58 = vpop.f32.mrf.mxu3  ;;  %v5079_v33 = vadd.f32 %v10656_v22, %v4990_v2  ;;  %v10660_v2 = vld [vmem:[#allocation156_spill] sm:$0xff] }
 0x3fc   : > { %v5442_v28 = vpack.c.bf16 %v5413_v44, %v5412_v50  ;;  %v5166_v24 = vadd.f32 %v5165_v58, %v5077_v35  ;;  %v2476_v50 = vunpack.c.l.b16 %v1496_v63  ;;  %v2477_v44 = vunpack.c.l.b16 %v1497_v40  ;;  %v10657_v58 = vld [vmem:[#allocation118_spill] sm:$0xff]  ;;  %v9713_v62 = vpop.f32.mrf.mxu1  ;;  %v10661_v63 = vld [vmem:[#allocation133_spill] sm:$0xff] }
 0x3fd   : > { %v4728_v3 = vadd.f32 %v10657_v58, %v4639_v47  ;;  %v4993_v45 = vadd.f32 %v10660_v2, %v4904_v41  ;;  %v10663_v58 = vld [vmem:[#allocation125_spill] sm:$0xff] }
 0x3fe   : > { %5542 = vmatmul.bf16.gmra.mxu2 %v5442_v28  ;;  %v5255_v23 = vadd.f32 %v9332_v32, %v5166_v24  ;;  %v3799_v32 = vsel %vm2790_vm2, %v3726_v54, %v3798_v27  ;;  %v2495_v28 = vpack.c.b16 %v2477_v44, %v2476_v50  ;;  %v9709_v24 = vpop.f32.mrf.mxu2 }
 0x3ff   : > { %v4817_v30 = vadd.f32 %v9338_v1, %v4728_v3  ;;  %v4644_v3 = vadd.f32 %v9402_v4, %v10663_v58 }
 0x400   : > { %v5344_v15 = vadd.f32 %v9586_v12, %v5255_v23  ;;  %v9706_v35 = vpop.f32.mrf.mxu0  ;;  %v3867_v47 = vshll.u32 %v2495_v28, 16  ;;  %v5082_v23 = vadd.f32 %v9479_v55, %v4993_v45 }
 0x401   : > { %v4906_v1 = vadd.f32 %v10661_v63, %v4817_v30 }
 0x402   : > { %v5414_v40 = vmax.f32 %v5344_v15, 0.0  ;;  %v3869_v50 = vrot.slane %v3867_v47, 4  ;;  %v10664_v15 = vld [vmem:[#allocation128_spill] sm:$0xff] }
 0x403   : > { %v5167_v43 = vpop.f32.mrf.mxu3 }
 0x404   : > { %v5168_v16 = vadd.f32 %v5167_v43, %v5079_v33  ;;  %v10662_v33 = vld [vmem:[#allocation145_spill] sm:$0xff] }
 0x405   : > { %v4995_v43 = vadd.f32 %v10662_v33, %v4906_v1  ;;  %v10669_v33 = vld [vmem:[#allocation135_spill] sm:$0xff] }
 0x406   : > { %v5257_v46 = vadd.f32 %v9347_v61, %v5168_v16  ;;  %v3864_v61 = vshrl.u32 %v2495_v28, 16  ;;  %v9722_v26 = vpop.f32.mrf.mxu2  ;;  %v5360_v16 = vpop.f32.mrf.mxu1 }
 0x407   : > { %v5084_v41 = vadd.f32 %v9497_v57, %v4995_v43  ;;  %v10666_v57 = vld [vmem:[#allocation180_spill] sm:$0xff] }
 0x408   : > { %v5346_v60 = vadd.f32 %v9599_v59, %v5257_v46  ;;  %5209 = vmatmul.bf16.gmra.mxu3 %v3799_v32  ;;  %v3866_v59 = vrot.slane %v3864_v61, 3  ;;  %v9718_v44 = vpop.f32.mrf.mxu0  ;;  %v4733_v46 = vadd.f32 %v10664_v15, %v4644_v3  ;;  %v10665_v32 = vld [vmem:[#allocation138_spill] sm:$0xff]  ;;  %v10670_v3 = vld [vmem:[#allocation136_spill] sm:$0xff] }
 0x409   : > { %v4909_v28 = vadd.f32 %v10665_v32, %v9353_v42 }
 0x40a   : > { %v5415_v12 = vmax.f32 %v5346_v60, 0.0  ;;  %v3870_v30 = vor.u32 %v3869_v50, %v3866_v59  ;;  %v4822_v2 = vadd.f32 %v9357_v51, %v4733_v46 }
 0x40b   : > { %v5170_v39 = vpop.f32.mrf.mxu3  ;;  %v4998_v1 = vadd.f32 %v10666_v57, %v4909_v28 }
 0x40c   : > { %v5443_v54 = vpack.c.bf16 %v5415_v12, %v5414_v40  ;;  %v5171_v22 = vadd.f32 %v5170_v39, %v5082_v23  ;;  %v3871_v63 = vsel %vm2790_vm2, %v3798_v27, %v3870_v30  ;;  %v10667_v40 = vld [vmem:[#allocation143_spill] sm:$0xff]  ;;  %v10668_v27 = vld [vmem:[#allocation70_spill] sm:$0xff] }
 0x40d   : > { %v4911_v12 = vadd.f32 %v10667_v40, %v4822_v2  ;;  %v5087_v51 = vadd.f32 %v9512_v11, %v4998_v1 }
 0x40e   : > { %5547 = vmatmul.bf16.gmra.mxu2 %v5443_v54  ;;  %v5260_v25 = vadd.f32 %v9632_v10, %v5171_v22  ;;  %v9736_v23 = vpop.f32.mrf.mxu2  ;;  %v9739_v54 = vpop.f32.mrf.mxu1  ;;  %v6801_v22 = vld [vmem:[%s9995_s5] ss:$0 sm:$0xff] }
 0x40f   : > { %v4649_v43 = vadd.f32 %v6801_v22, %v10669_v33  ;;  %v10676_v22 = vld [vmem:[#allocation115_spill] sm:$0xff] }
 0x410   : > { %v5349_v45 = vadd.f32 %v9636_v31, %v5260_v25  ;;  %v5274_v47 = vpop.f32.mrf.mxu0  ;;  %v10671_v25 = vld [vmem:[#allocation49_spill] sm:$0xff] }
 0x411   : > { %v4738_v11 = vadd.f32 %v10670_v3, %v4649_v43 }
 0x412   : > { %v5416_v39 = vmax.f32 %v5349_v45, 0.0  ;;  %v10672_v45 = vld [vmem:[#allocation38_spill] sm:$0xff] }
 0x413   : > { %v5172_v55 = vpop.f32.mrf.mxu3  ;;  %v4827_v32 = vadd.f32 %v9374_v5, %v4738_v11 }
 0x414   : > { %v5173_v60 = vadd.f32 %v5172_v55, %v5084_v41  ;;  %v4914_v41 = vadd.f32 %v10671_v25, %v9368_v20  ;;  %v10673_v20 = vld [vmem:[#allocation152_spill] sm:$0xff] }
 0x416   : > { %v5262_v4 = vadd.f32 %v9651_v13, %v5173_v60  ;;  %v9751_v46 = vpop.f32.mrf.mxu2  ;;  %v5365_v2 = vpop.f32.mrf.mxu1 }
 0x418   : > { %v5351_v10 = vadd.f32 %v9656_v48, %v5262_v4  ;;  %5214 = vmatmul.bf16.gmra.mxu3 %v3871_v63  ;;  %v5000_v48 = vadd.f32 %v10668_v27, %v4911_v12  ;;  %v5276_v15 = vpop.f32.mrf.mxu0  ;;  %v5003_v4 = vadd.f32 %v10672_v45, %v4914_v41  ;;  %v4916_v63 = vadd.f32 %v10673_v20, %v4827_v32  ;;  %v10680_v20 = vld [vmem:[#allocation129_spill] sm:$0xff] }
 0x41a   : > { %v5417_v61 = vmax.f32 %v5351_v10, 0.0  ;;  %v5089_v50 = vadd.f32 %v9525_v21, %v5000_v48  ;;  %v3943_v21 = vsel %vm2790_vm2, %v3870_v30, %v9428_v49  ;;  %v5092_v5 = vadd.f32 %v9541_v8, %v5003_v4 }
 0x41b   : > { %v5175_v42 = vpop.f32.mrf.mxu3 }
 0x41c   : > { %v5444_v31 = vpack.c.bf16 %v5417_v61, %v5416_v39  ;;  %v5176_v13 = vadd.f32 %v5175_v42, %v5087_v51  ;;  %v10675_v51 = vld [vmem:[#allocation61_spill] sm:$0xff] }
 0x41e   : > { %5552 = vmatmul.bf16.gmra.mxu2 %v5444_v31  ;;  %v5265_v59 = vadd.f32 %v9668_v36, %v5176_v13  ;;  %v9763_v61 = vpop.f32.mrf.mxu2  ;;  %v5368_v49 = vpop.f32.mrf.mxu1  ;;  %v4919_v31 = vadd.f32 %v10675_v51, %v9396_v6 }
 0x420   : > { %v5354_v28 = vadd.f32 %v9675_v29, %v5265_v59  ;;  %v5279_v39 = vpop.f32.mrf.mxu0  ;;  %v5008_v33 = vadd.f32 %v10676_v22, %v4919_v31 }
 0x422   : > { %v5418_v10 = vmax.f32 %v5354_v28, 0.0  ;;  %v5097_v11 = vadd.f32 %v9570_v0, %v5008_v33  ;;  %v10679_v28 = vld [vmem:[#allocation25_spill] sm:$0xff] }
 0x423   : > { %v5177_v58 = vpop.f32.mrf.mxu3 }
 0x424   : > { %v5178_v55 = vadd.f32 %v5177_v58, %v5089_v50 }
 0x426   : > { %v5267_v60 = vadd.f32 %v9689_v14, %v5178_v55  ;;  %v10674_v14 = vld [vmem:[#allocation102_spill] sm:$0xff]  ;;  %v9773_v59 = vpop.f32.mrf.mxu2  ;;  %v5370_v3 = vpop.f32.mrf.mxu1 }
 0x427   : > { %v5005_v12 = vadd.f32 %v10674_v14, %v4916_v63 }
 0x428   : > { %v5356_v36 = vadd.f32 %v9694_v9, %v5267_v60  ;;  %5219 = vmatmul.bf16.gmra.mxu3 %v3943_v21  ;;  %v5281_v43 = vpop.f32.mrf.mxu0  ;;  %v4924_v60 = vadd.f32 %v10679_v28, %v9426_v52 }
 0x429   : > { %v5094_v30 = vadd.f32 %v9553_v18, %v5005_v12 }
 0x42a   : > { %v5419_v57 = vmax.f32 %v5356_v36, 0.0  ;;  %v5013_v63 = vadd.f32 %v10680_v20, %v4924_v60 }
 0x42b   : > { %v5180_v1 = vpop.f32.mrf.mxu3 }
 0x42c   : > { %v5445_v40 = vpack.c.bf16 %v5419_v57, %v5418_v10  ;;  %v5181_v29 = vadd.f32 %v5180_v1, %v5092_v5  ;;  %v10681_v10 = vld [vmem:[#allocation119_spill] sm:$0xff]  ;;  %v10682_v57 = vld [vmem:[#allocation158_spill] sm:$0xff] }
 0x42e   : > { %5557 = vmatmul.bf16.gmra.mxu2 %v5445_v40  ;;  %v5270_v9 = vadd.f32 %v9706_v35, %v5181_v29  ;;  %v10677_v35 = vld [vmem:[#allocation65_spill] sm:$0xff]  ;;  %v9782_v21 = vpop.f32.mrf.mxu2  ;;  %v5373_v36 = vpop.f32.mrf.mxu1  ;;  %v10683_v40 = vld [vmem:[#allocation154_spill] sm:$0xff] }
 0x42f   : > { %v4921_v18 = vadd.f32 %v10677_v35, %v9416_v17  ;;  %v5102_v29 = vadd.f32 %v10683_v40, %v5013_v63 }
 0x430   : > { %v5359_v8 = vadd.f32 %v9713_v62, %v5270_v9  ;;  %v5284_v55 = vpop.f32.mrf.mxu0  ;;  %v10684_v9 = vld [vmem:[#allocation97_spill] sm:$0xff] }
 0x432   : > { %v5420_v50 = vmax.f32 %v5359_v8, 0.0  ;;  %v10687_v8 = vld [vmem:[#allocation33_spill] sm:$0xff] }
 0x433   : > { %v5182_v42 = vpop.f32.mrf.mxu3 }
 0x434   : > { %v5183_v13 = vadd.f32 %v5182_v42, %v5094_v30 }
 0x436   : > { %v5272_v27 = vadd.f32 %v9718_v44, %v5183_v13  ;;  %v10678_v44 = vld [vmem:[#allocation68_spill] sm:$0xff]  ;;  %v9790_v42 = vpop.f32.mrf.mxu2 }
 0x437   : > { %v10686_v13 = vld [vmem:[#allocation112_spill] sm:$0xff] }
 0x438   : > { %v5361_v48 = vadd.f32 %v5360_v16, %v5272_v27  ;;  %5224 = vmatmul.bf16.gmra.mxu3 %v9434_v19  ;;  %v5010_v16 = vadd.f32 %v10678_v44, %v4921_v18  ;;  %v5286_v52 = vpop.f32.mrf.mxu0  ;;  %v4929_v27 = vadd.f32 %v10687_v8, %v10686_v13 }
 0x43a   : > { %v5421_v58 = vmax.f32 %v5361_v48, 0.0  ;;  %v5099_v41 = vadd.f32 %v9580_v37, %v5010_v16 }
 0x43b   : > { %v5185_v6 = vpop.f32.mrf.mxu3 }
 0x43c   : > { %v5446_v62 = vpack.c.bf16 %v5421_v58, %v5420_v50  ;;  %v5186_v25 = vadd.f32 %v5185_v6, %v5097_v11  ;;  %v10688_v50 = vld [vmem:[#allocation82_spill] sm:$0xff] }
 0x43d   : > { %v5018_v58 = vadd.f32 %v10688_v50, %v4929_v27 }
 0x43e   : > { %5562 = vmatmul.bf16.gmra.mxu2 %v5446_v62  ;;  %v5275_v19 = vadd.f32 %v5274_v47, %v5186_v25  ;;  %v4926_v47 = vadd.f32 %v10682_v57, %v10681_v10  ;;  %v9796_v6 = vpop.f32.mrf.mxu2  ;;  %v10689_v62 = vld [vmem:[#allocation155_spill] sm:$0xff]  ;;  %v10690_v25 = vld [vmem:[#allocation81_spill] sm:$0xff] }
 0x43f   : > { %v10692_v10 = vld [vmem:[#allocation131_spill] sm:$0xff] }
 0x440   : > { %v5364_v45 = vadd.f32 %v9739_v54, %v5275_v19  ;;  %v5015_v30 = vadd.f32 %v10684_v9, %v4926_v47  ;;  %v5375_v54 = vpop.f32.mrf.mxu1  ;;  %v5289_v35 = vpop.f32.mrf.mxu0  ;;  %v10693_v57 = vld [vmem:[#allocation19_spill] sm:$0xff] }
 0x441   : > { %v4934_v47 = vadd.f32 %v10693_v57, %v10692_v10  ;;  %v5616_v10 = vld [vmem:[%s7204_s19 + $0x18] sm:$0xff] }
 0x442   : > { %v5422_v1 = vmax.f32 %v5364_v45, 0.0  ;;  %v5613_v45 = vld [vmem:[%s7204_s19] sm:$0xff]  ;;  %v10701_v57 = vld [vmem:[#allocation24_spill] sm:$0xff] }
 0x443   : > { %v5187_v32 = vpop.f32.mrf.mxu3 }
 0x444   : > { %v5188_v17 = vadd.f32 %v5187_v32, %v5099_v41  ;;  %v5107_v41 = vadd.f32 %v9617_v7, %v5018_v58 }
 0x446   : > { %v5277_v0 = vadd.f32 %v5276_v15, %v5188_v17 }
 0x448   : > { %v5366_v4 = vadd.f32 %v5365_v2, %v5277_v0  ;;  %v10685_v2 = vld [vmem:[#allocation174_spill] sm:$0xff]  ;;  %v5378_v11 = vpop.f32.mrf.mxu1  ;;  %v5291_v60 = vpop.f32.mrf.mxu0 }
 0x449   : > { %v5104_v51 = vadd.f32 %v10685_v2, %v5015_v30  ;;  %v10695_v30 = vld [vmem:[#allocation121_spill] sm:$0xff] }
 0x44a   : > { %v5423_v37 = vmax.f32 %v5366_v4, 0.0 }
 0x44b   : > { %v5190_v5 = vpop.f32.mrf.mxu3 }
 0x44c   : > { %v5447_v14 = vpack.c.bf16 %v5423_v37, %v5422_v1  ;;  %v5191_v12 = vadd.f32 %v5190_v5, %v5102_v29 }
 0x44e   : > { %5567 = vmatmul.bf16.gmra.mxu2 %v5447_v14  ;;  %v5280_v15 = vadd.f32 %v5279_v39, %v5191_v12  ;;  %v4931_v39 = vadd.f32 %v10690_v25, %v10689_v62  ;;  %v10694_v14 = vld [vmem:[#allocation151_spill] sm:$0xff] }
 0x44f   : > { %v5023_v12 = vadd.f32 %v10694_v14, %v4934_v47  ;;  %v5615_v62 = vld [vmem:[%s7204_s19 + $0x10] sm:$0xff]  ;;  %v10703_v14 = vld [vmem:[#allocation108_spill] sm:$0xff] }
 0x450   : > { %v5369_v22 = vadd.f32 %v5368_v49, %v5280_v15  ;;  %v9804_v49 = vld [vmem:[%s9997_s7] ss:$0 sm:$0xff]  ;;  %v5380_v20 = vpop.f32.mrf.mxu1  ;;  %v10696_v15 = vld [vmem:[#allocation162_spill] sm:$0xff] }
 0x451   : > { %v4936_v2 = vadd.f32 %v10696_v15, %v10695_v30  ;;  %v5112_v27 = vadd.f32 %v9654_v38, %v5023_v12  ;;  %v10699_v38 = vld [vmem:[#allocation164_spill] sm:$0xff]  ;;  %v5617_v15 = vld [vmem:[%s7204_s19 + $0x20] sm:$0xff] }
 0x452   : > { %v5424_v44 = vmax.f32 %v5369_v22, 0.0 }
 0x453   : > { %v5192_v31 = vpop.f32.mrf.mxu3 }
 0x454   : > { %v5193_v48 = vadd.f32 %v5192_v31, %v5104_v51 }
 0x456   : > { %v5282_v33 = vadd.f32 %v5281_v43, %v5193_v48  ;;  %v10691_v43 = vld [vmem:[#allocation98_spill] sm:$0xff] }
 0x458   : > { %v5371_v18 = vadd.f32 %v5370_v3, %v5282_v33  ;;  %v5020_v3 = vadd.f32 %v10691_v43, %v4931_v39 }
 0x45a   : > { %v5425_v16 = vmax.f32 %v5371_v18, 0.0  ;;  %v5109_v7 = vadd.f32 %v9634_v53, %v5020_v3  ;;  %v5614_v53 = vld [vmem:[%s7204_s19 + $0x8] sm:$0xff]  ;;  %v10697_v18 = vld [vmem:[#allocation140_spill] sm:$0xff] }
 0x45b   : > { %v5195_v19 = vpop.f32.mrf.mxu3  ;;  %v5025_v50 = vadd.f32 %v10697_v18, %v4936_v2 }
 0x45c   : > { %v5448_v32 = vpack.c.bf16 %v5425_v16, %v5424_v44  ;;  %v5196_v28 = vadd.f32 %v5195_v19, %v5107_v41  ;;  %v10698_v19 = vld [vmem:[#allocation22_spill] sm:$0xff] }
 0x45d   : > { %v5114_v44 = vadd.f32 %v9673_v56, %v5025_v50  ;;  %v4939_v41 = vadd.f32 %v10699_v38, %v10698_v19  ;;  %v10702_v56 = vld [vmem:[#allocation67_spill] sm:$0xff] }
 0x45e   : > { %5572 = vmatmul.bf16.gmra.mxu2 %v5448_v32  ;;  %v5285_v0 = vadd.f32 %v5284_v55, %v5196_v28  ;;  %v4941_v47 = vadd.f32 %v10702_v56, %v10701_v57 }
 0x460   : > { %v5374_v5 = vadd.f32 %v5373_v36, %v5285_v0  ;;  %v5030_v12 = vadd.f32 %v10703_v14, %v4941_v47  ;;  %v10712_v14 = vld [vmem:[#allocation148_spill] sm:$0xff] }
 0x461   : > { %v5533_v17 = vpop.f32.mrf.mxu2 }
 0x462   : > { %v5534_v4 = vadd.f32 %v9804_v49, %v5533_v17  ;;  %v5426_v51 = vmax.f32 %v5374_v5, 0.0 }
 0x463   : > { %v5197_v63 = vpop.f32.mrf.mxu3 }
 0x464   : > { %v5645_v1 = vadd.f32 %v5613_v45, %v5534_v4  ;;  %v5198_v37 = vadd.f32 %v5197_v63, %v5109_v7  ;;  %v10700_v7 = vld [vmem:[#allocation139_spill] sm:$0xff] }
 0x466   : > { %v5677_v40 = vmax.f32 %v5645_v1, 0.0  ;;  %v5287_v29 = vadd.f32 %v5286_v52, %v5198_v37  ;;  %v5294_v52 = vpop.f32.mrf.mxu0 }
 0x468   : > { %5709 = vst [vmem:[%s9814_s13] sm:$0xff] %v5677_v40  ;;  %v5376_v55 = vadd.f32 %v5375_v54, %v5287_v29  ;;  %v5383_v54 = vpop.f32.mrf.mxu1 }
 0x469   : > { %v5535_v9 = vpop.f32.mrf.mxu2 }
 0x46a   : > { %v5427_v31 = vmax.f32 %v5376_v55, 0.0  ;;  %v5536_v36 = vadd.f32 %v9804_v49, %v5535_v9 }
 0x46b   : > { %v5200_v13 = vpop.f32.mrf.mxu3 }
 0x46c   : > { %v5646_v8 = vadd.f32 %v5614_v53, %v5536_v36  ;;  %v5449_v48 = vpack.c.bf16 %v5427_v31, %v5426_v51  ;;  %v5201_v33 = vadd.f32 %v5200_v13, %v5112_v27  ;;  %v5119_v31 = vadd.f32 %v9709_v24, %v5030_v12  ;;  %v10705_v13 = vld [vmem:[#allocation167_spill] sm:$0xff] }
 0x46e   : > { %v5678_v22 = vmax.f32 %v5646_v8, 0.0  ;;  %5577 = vmatmul.bf16.gmra.mxu2 %v5449_v48  ;;  %v5290_v25 = vadd.f32 %v5289_v35, %v5201_v33  ;;  %v5296_v43 = vpop.f32.mrf.mxu0  ;;  %v5028_v35 = vadd.f32 %v10700_v7, %v4939_v41 }
 0x470   : > { %5710 = vst [vmem:[%s9814_s13 + $0x8] sm:$0xff] %v5678_v22  ;;  %v5379_v3 = vadd.f32 %v5378_v11, %v5290_v25  ;;  %v5385_v0 = vpop.f32.mrf.mxu1 }
 0x471   : > { %v5538_v58 = vpop.f32.mrf.mxu2 }
 0x472   : > { %v5539_v39 = vadd.f32 %v9804_v49, %v5538_v58  ;;  %v5428_v1 = vmax.f32 %v5379_v3, 0.0  ;;  %v10706_v58 = vld [vmem:[#allocation26_spill] sm:$0xff] }
 0x473   : > { %v5202_v16 = vpop.f32.mrf.mxu3 }
 0x474   : > { %v5647_v32 = vadd.f32 %v5615_v62, %v5539_v39  ;;  %v5203_v28 = vadd.f32 %v5202_v16, %v5114_v44  ;;  %v5618_v39 = vld [vmem:[%s7204_s19 + $0x28] sm:$0xff]  ;;  %v10707_v44 = vld [vmem:[#allocation144_spill] sm:$0xff] }
 0x475   : > { %v10708_v16 = vld [vmem:[#allocation172_spill] sm:$0xff] }
 0x476   : > { %v5679_v17 = vmax.f32 %v5647_v32, 0.0  ;;  %v5292_v45 = vadd.f32 %v5291_v60, %v5203_v28  ;;  %v5117_v60 = vadd.f32 %v9691_v34, %v5028_v35  ;;  %v5299_v9 = vpop.f32.mrf.mxu0  ;;  %v10704_v34 = vld [vmem:[#allocation141_spill] sm:$0xff]  ;;  %v4946_v24 = vadd.f32 %v10708_v16, %v10707_v44  ;;  %v5619_v35 = vld [vmem:[%s7204_s19 + $0x30] sm:$0xff]  ;;  %v10717_v16 = vld [vmem:[#allocation72_spill] sm:$0xff] }
 0x477   : > { %v4944_v8 = vadd.f32 %v10705_v13, %v10704_v34 }
 0x478   : > { %5711 = vst [vmem:[%s9814_s13 + $0x10] sm:$0xff] %v5679_v17  ;;  %v5381_v4 = vadd.f32 %v5380_v20, %v5292_v45  ;;  %v5388_v53 = vpop.f32.mrf.mxu1 }
 0x479   : > { %v5540_v63 = vpop.f32.mrf.mxu2  ;;  %v5033_v62 = vadd.f32 %v10706_v58, %v4944_v8 }
 0x47a   : > { %v5429_v37 = vmax.f32 %v5381_v4, 0.0  ;;  %v5541_v5 = vadd.f32 %v9804_v49, %v5540_v63 }
 0x47b   : > { %v5205_v40 = vpop.f32.mrf.mxu3 }
 0x47c   : > { %v5648_v11 = vadd.f32 %v5616_v10, %v5541_v5  ;;  %v5450_v29 = vpack.c.bf16 %v5429_v37, %v5428_v1  ;;  %v5206_v20 = vadd.f32 %v5205_v40, %v5117_v60  ;;  %v10710_v1 = vld [vmem:[#allocation120_spill] sm:$0xff] }
 0x47e   : > { %v5680_v55 = vmax.f32 %v5648_v11, 0.0  ;;  %5582 = vmatmul.bf16.gmra.mxu2 %v5450_v29  ;;  %v5295_v2 = vadd.f32 %v5294_v52, %v5206_v20  ;;  %v5301_v25 = vpop.f32.mrf.mxu0 }
 0x480   : > { %5712 = vst [vmem:[%s9814_s13 + $0x18] sm:$0xff] %v5680_v55  ;;  %v5384_v22 = vadd.f32 %v5383_v54, %v5295_v2  ;;  %v5390_v32 = vpop.f32.mrf.mxu1 }
 0x481   : > { %v5543_v30 = vpop.f32.mrf.mxu2 }
 0x482   : > { %v5544_v51 = vadd.f32 %v9804_v49, %v5543_v30  ;;  %v5430_v19 = vmax.f32 %v5384_v22, 0.0  ;;  %v5620_v30 = vld [vmem:[%s7204_s19 + $0x38] sm:$0xff] }
 0x483   : > { %v5207_v36 = vpop.f32.mrf.mxu3 }
 0x484   : > { %v5649_v27 = vadd.f32 %v5617_v15, %v5544_v51  ;;  %v5208_v48 = vadd.f32 %v5207_v36, %v5119_v31  ;;  %v10713_v15 = vld [vmem:[#allocation142_spill] sm:$0xff] }
 0x486   : > { %v5681_v33 = vmax.f32 %v5649_v27, 0.0  ;;  %v5297_v18 = vadd.f32 %v5296_v43, %v5208_v48  ;;  %v5122_v43 = vadd.f32 %v9722_v26, %v5033_v62  ;;  %v5304_v56 = vpop.f32.mrf.mxu0  ;;  %v10711_v26 = vld [vmem:[#allocation55_spill] sm:$0xff]  ;;  %v5621_v62 = vld [vmem:[%s7204_s19 + $0x40] sm:$0xff] }
 0x487   : > { %v4949_v37 = vadd.f32 %v10711_v26, %v10710_v1 }
 0x488   : > { %5713 = vst [vmem:[%s9814_s13 + $0x20] sm:$0xff] %v5681_v33  ;;  %v5386_v50 = vadd.f32 %v5385_v0, %v5297_v18  ;;  %v10709_v0 = vld [vmem:[#allocation101_spill] sm:$0xff]  ;;  %v5393_v11 = vpop.f32.mrf.mxu1  ;;  %v10715_v33 = vld [vmem:[#allocation147_spill] sm:$0xff] }
 0x489   : > { %v5545_v52 = vpop.f32.mrf.mxu2  ;;  %v5035_v4 = vadd.f32 %v10709_v0, %v4946_v24  ;;  %v5038_v12 = vadd.f32 %v10712_v14, %v4949_v37 }
 0x48a   : > { %v5431_v38 = vmax.f32 %v5386_v50, 0.0  ;;  %v5546_v41 = vadd.f32 %v9804_v49, %v5545_v52 }
 0x48b   : > { %v5210_v54 = vpop.f32.mrf.mxu3  ;;  %v5124_v57 = vadd.f32 %v9736_v23, %v5035_v4  ;;  %v10714_v23 = vld [vmem:[#allocation177_spill] sm:$0xff]  ;;  %v5622_v4 = vld [vmem:[%s7204_s19 + $0x48] sm:$0xff] }
 0x48c   : > { %v5650_v28 = vadd.f32 %v5618_v39, %v5546_v41  ;;  %v5451_v3 = vpack.c.bf16 %v5431_v38, %v5430_v19  ;;  %v5211_v45 = vadd.f32 %v5210_v54, %v5122_v43  ;;  %v4951_v2 = vadd.f32 %v10714_v23, %v10713_v15  ;;  %v10723_v15 = vld [vmem:[#allocation59_spill] sm:$0xff] }
 0x48e   : > { %v5682_v17 = vmax.f32 %v5650_v28, 0.0  ;;  %5587 = vmatmul.bf16.gmra.mxu2 %v5451_v3  ;;  %v5300_v63 = vadd.f32 %v5299_v9, %v5211_v45  ;;  %v5306_v27 = vpop.f32.mrf.mxu0  ;;  %v5040_v18 = vadd.f32 %v10715_v33, %v4951_v2  ;;  %v10718_v3 = vld [vmem:[#allocation126_spill] sm:$0xff]  ;;  %v10726_v33 = vld [vmem:[#allocation92_spill] sm:$0xff] }
 0x490   : > { %5714 = vst [vmem:[%s9814_s13 + $0x28] sm:$0xff] %v5682_v17  ;;  %v5389_v60 = vadd.f32 %v5388_v53, %v5300_v63  ;;  %v5127_v53 = vadd.f32 %v9751_v46, %v5038_v12  ;;  %v5395_v50 = vpop.f32.mrf.mxu1  ;;  %v5129_v39 = vadd.f32 %v9763_v61, %v5040_v18  ;;  %v10716_v46 = vld [vmem:[#allocation28_spill] sm:$0xff] }
 0x491   : > { %v5548_v7 = vpop.f32.mrf.mxu2  ;;  %v4954_v24 = vadd.f32 %v10717_v16, %v10716_v46  ;;  %v10720_v61 = vld [vmem:[#allocation60_spill] sm:$0xff] }
 0x492   : > { %v5549_v10 = vadd.f32 %v9804_v49, %v5548_v7  ;;  %v5432_v51 = vmax.f32 %v5389_v60, 0.0  ;;  %v10719_v7 = vld [vmem:[#allocation29_spill] sm:$0xff] }
 0x493   : > { %v5212_v47 = vpop.f32.mrf.mxu3  ;;  %v5043_v17 = vadd.f32 %v10718_v3, %v4954_v24 }
 0x494   : > { %v5651_v5 = vadd.f32 %v5619_v35, %v5549_v10  ;;  %v5213_v40 = vadd.f32 %v5212_v47, %v5124_v57  ;;  %v4956_v35 = vadd.f32 %v10720_v61, %v10719_v7 }
 0x495   : > { %v5132_v1 = vadd.f32 %v9773_v59, %v5043_v17  ;;  %v10722_v59 = vld [vmem:[#allocation149_spill] sm:$0xff] }
 0x496   : > { %v5683_v29 = vmax.f32 %v5651_v5, 0.0  ;;  %v5302_v55 = vadd.f32 %v5301_v25, %v5213_v40  ;;  %v5309_v28 = vpop.f32.mrf.mxu0  ;;  %v10721_v40 = vld [vmem:[#allocation56_spill] sm:$0xff]  ;;  %v4959_v23 = vadd.f32 %v10723_v15, %v10722_v59 }
 0x498   : > { %5715 = vst [vmem:[%s9814_s13 + $0x30] sm:$0xff] %v5683_v29  ;;  %v5391_v20 = vadd.f32 %v5390_v32, %v5302_v55  ;;  %v5398_v45 = vpop.f32.mrf.mxu1  ;;  %v5623_v55 = vld [vmem:[%s7204_s19 + $0x50] sm:$0xff] }
 0x499   : > { %v5550_v9 = vpop.f32.mrf.mxu2 }
 0x49a   : > { %v5433_v31 = vmax.f32 %v5391_v20, 0.0  ;;  %v5551_v36 = vadd.f32 %v9804_v49, %v5550_v9 }
 0x49b   : > { %v5215_v34 = vpop.f32.mrf.mxu3 }
 0x49c   : > { %v5652_v13 = vadd.f32 %v5620_v30, %v5551_v36  ;;  %v5452_v8 = vpack.c.bf16 %v5433_v31, %v5432_v51  ;;  %v5216_v22 = vadd.f32 %v5215_v34, %v5127_v53  ;;  %v10724_v53 = vld [vmem:[#allocation123_spill] sm:$0xff] }
 0x49e   : > { %v5684_v48 = vmax.f32 %v5652_v13, 0.0  ;;  %5592 = vmatmul.bf16.gmra.mxu2 %v5452_v8  ;;  %v5305_v25 = vadd.f32 %v5304_v56, %v5216_v22  ;;  %v5311_v60 = vpop.f32.mrf.mxu0  ;;  %v5048_v8 = vadd.f32 %v10724_v53, %v4959_v23  ;;  %v10725_v22 = vld [vmem:[#allocation150_spill] sm:$0xff]  ;;  %v5631_v53 = vld [vmem:[%s7204_s19 + $0x90] sm:$0xff] }
 0x4a0   : > { %5716 = vst [vmem:[%s9814_s13 + $0x38] sm:$0xff] %v5684_v48  ;;  %v5394_v41 = vadd.f32 %v5393_v11, %v5305_v25  ;;  %v5045_v11 = vadd.f32 %v10721_v40, %v4956_v35  ;;  %v5400_v9 = vpop.f32.mrf.mxu1  ;;  %v5624_v48 = vld [vmem:[%s7204_s19 + $0x58] sm:$0xff] }
 0x4a1   : > { %v5553_v58 = vpop.f32.mrf.mxu2 }
 0x4a2   : > { %v5554_v52 = vadd.f32 %v9804_v49, %v5553_v58  ;;  %v5434_v63 = vmax.f32 %v5394_v41, 0.0  ;;  %v5134_v12 = vadd.f32 %v9782_v21, %v5045_v11  ;;  %v4961_v21 = vadd.f32 %v10726_v33, %v10725_v22  ;;  %v5632_v33 = vld [vmem:[%s7204_s19 + $0x98] sm:$0xff] }
 0x4a3   : > { %v5217_v44 = vpop.f32.mrf.mxu3 }
 0x4a4   : > { %v5653_v19 = vadd.f32 %v5621_v62, %v5554_v52  ;;  %v5218_v38 = vadd.f32 %v5217_v44, %v5129_v39  ;;  %v5137_v39 = vadd.f32 %v9790_v42, %v5048_v8 }
 0x4a6   : > { %v5685_v32 = vmax.f32 %v5653_v19, 0.0  ;;  %v5307_v54 = vadd.f32 %v5306_v27, %v5218_v38  ;;  %v5314_v62 = vpop.f32.mrf.mxu0  ;;  %v10727_v19 = vld [vmem:[#allocation122_spill] sm:$0xff] }
 0x4a7   : > { %v5050_v38 = vadd.f32 %v10727_v19, %v4961_v21 }
 0x4a8   : > { %5717 = vst [vmem:[%s9814_s13 + $0x40] sm:$0xff] %v5685_v32  ;;  %v5396_v43 = vadd.f32 %v5395_v50, %v5307_v54  ;;  %v5403_v46 = vpop.f32.mrf.mxu1  ;;  %v5625_v32 = vld [vmem:[%s7204_s19 + $0x60] sm:$0xff] }
 0x4a9   : > { %v5555_v0 = vpop.f32.mrf.mxu2 }
 0x4aa   : > { %v5435_v10 = vmax.f32 %v5396_v43, 0.0  ;;  %v5556_v57 = vadd.f32 %v9804_v49, %v5555_v0  ;;  %v5139_v43 = vadd.f32 %v9796_v6, %v5050_v38 }
 0x4ab   : > { %v5220_v56 = vpop.f32.mrf.mxu3 }
 0x4ac   : > { %v5654_v47 = vadd.f32 %v5622_v4, %v5556_v57  ;;  %v5453_v26 = vpack.c.bf16 %v5435_v10, %v5434_v63  ;;  %v5221_v5 = vadd.f32 %v5220_v56, %v5132_v1  ;;  %v5626_v10 = vld [vmem:[%s7204_s19 + $0x68] sm:$0xff] }
 0x4ae   : > { %v5686_v37 = vmax.f32 %v5654_v47, 0.0  ;;  %5597 = vmatmul.bf16.gmra.mxu2 %v5453_v26  ;;  %v5310_v20 = vadd.f32 %v5309_v28, %v5221_v5  ;;  %v5627_v5 = vld [vmem:[%s7204_s19 + $0x70] sm:$0xff] }
 0x4b0   : > { %5718 = vst [vmem:[%s9814_s13 + $0x48] sm:$0xff] %v5686_v37  ;;  %v5399_v31 = vadd.f32 %v5398_v45, %v5310_v20  ;;  %v5316_v45 = vpop.f32.mrf.mxu0  ;;  %v5405_v61 = vpop.f32.mrf.mxu1 }
 0x4b1   : > { %v5558_v29 = vpop.f32.mrf.mxu2 }
 0x4b2   : > { %v5559_v14 = vadd.f32 %v9804_v49, %v5558_v29  ;;  %v5436_v18 = vmax.f32 %v5399_v31, 0.0 }
 0x4b3   : > { %v5222_v30 = vpop.f32.mrf.mxu3 }
 0x4b4   : > { %v5655_v2 = vadd.f32 %v5623_v55, %v5559_v14  ;;  %v5223_v51 = vadd.f32 %v5222_v30, %v5134_v12  ;;  %v5628_v55 = vld [vmem:[%s7204_s19 + $0x78] sm:$0xff]  ;;  %v5629_v30 = vld [vmem:[%s7204_s19 + $0x80] sm:$0xff] }
 0x4b6   : > { %v5687_v36 = vmax.f32 %v5655_v2, 0.0  ;;  %v5312_v34 = vadd.f32 %v5311_v60, %v5223_v51  ;;  %v5630_v51 = vld [vmem:[%s7204_s19 + $0x88] sm:$0xff] }
 0x4b8   : > { %5719 = vst [vmem:[%s9814_s13 + $0x50] sm:$0xff] %v5687_v36  ;;  %v5401_v13 = vadd.f32 %v5400_v9, %v5312_v34 }
 0x4b9   : > { %v5560_v27 = vpop.f32.mrf.mxu2 }
 0x4ba   : > { %v5437_v50 = vmax.f32 %v5401_v13, 0.0  ;;  %v5561_v58 = vadd.f32 %v9804_v49, %v5560_v27 }
 0x4bb   : > { %v5225_v25 = vpop.f32.mrf.mxu3 }
 0x4bc   : > { %v5656_v52 = vadd.f32 %v5624_v48, %v5561_v58  ;;  %v5454_v44 = vpack.c.bf16 %v5437_v50, %v5436_v18  ;;  %v5226_v24 = vadd.f32 %v5225_v25, %v5137_v39 }
 0x4be   : > { %v5688_v16 = vmax.f32 %v5656_v52, 0.0  ;;  %5602 = vmatmul.bf16.gmra.mxu2 %v5454_v44  ;;  %v5315_v54 = vadd.f32 %v5314_v62, %v5226_v24  ;;  %v5633_v62 = vld [vmem:[%s7204_s19 + $0xa0] sm:$0xff] }
 0x4c0   : > { %5720 = vst [vmem:[%s9814_s13 + $0x58] sm:$0xff] %v5688_v16  ;;  %v5404_v0 = vadd.f32 %v5403_v46, %v5315_v54  ;;  %v5634_v46 = vld [vmem:[%s7204_s19 + $0xa8] sm:$0xff] }
 0x4c1   : > { %v5563_v41 = vpop.f32.mrf.mxu2 }
 0x4c2   : > { %v5564_v28 = vadd.f32 %v9804_v49, %v5563_v41  ;;  %v5438_v57 = vmax.f32 %v5404_v0, 0.0  ;;  %v5635_v41 = vld [vmem:[%s7204_s19 + $0xb0] sm:$0xff] }
 0x4c3   : > { %v5227_v3 = vpop.f32.mrf.mxu3 }
 0x4c4   : > { %v5657_v17 = vadd.f32 %v5625_v32, %v5564_v28  ;;  %v5228_v42 = vadd.f32 %v5227_v3, %v5139_v43  ;;  %v5636_v3 = vld [vmem:[%s7204_s19 + $0xb8] sm:$0xff] }
 0x4c6   : > { %v5689_v4 = vmax.f32 %v5657_v17, 0.0  ;;  %v5317_v7 = vadd.f32 %v5316_v45, %v5228_v42 }
 0x4c8   : > { %5721 = vst [vmem:[%s9814_s13 + $0x60] sm:$0xff] %v5689_v4  ;;  %v5406_v35 = vadd.f32 %v5405_v61, %v5317_v7  ;;  %v5637_v4 = vld [vmem:[%s7204_s19 + $0xc0] sm:$0xff] }
 0x4c9   : > { %v5565_v63 = vpop.f32.mrf.mxu2 }
 0x4ca   : > { %v5439_v56 = vmax.f32 %v5406_v35, 0.0  ;;  %v5566_v6 = vadd.f32 %v9804_v49, %v5565_v63 }
 0x4cc   : > { %v5658_v47 = vadd.f32 %v5626_v10, %v5566_v6  ;;  %v5455_v1 = vpack.c.bf16 %v5439_v56, %v5438_v57  ;;  %v5638_v10 = vld [vmem:[%s7204_s19 + $0xc8] sm:$0xff] }
 0x4ce   : > { %v5690_v26 = vmax.f32 %v5658_v47, 0.0  ;;  %5607 = vmatmul.bf16.gmra.mxu2 %v5455_v1  ;;  %v5639_v1 = vld [vmem:[%s7204_s19 + $0xd0] sm:$0xff] }
 0x4d0   : > { %5722 = vst [vmem:[%s9814_s13 + $0x68] sm:$0xff] %v5690_v26 }
 0x4d1   : > { %v5568_v37 = vpop.f32.mrf.mxu2 }
 0x4d2   : > { %v5569_v40 = vadd.f32 %v9804_v49, %v5568_v37 }
 0x4d4   : > { %v5659_v11 = vadd.f32 %v5627_v5, %v5569_v40 }
 0x4d6   : > { %v5691_v60 = vmax.f32 %v5659_v11, 0.0  ;;  %v5640_v11 = vld [vmem:[%s7204_s19 + $0xd8] sm:$0xff] }
 0x4d8   : > { %5723 = vst [vmem:[%s9814_s13 + $0x70] sm:$0xff] %v5691_v60 }
 0x4d9   : > { %v5570_v29 = vpop.f32.mrf.mxu2 }
 0x4da   : > { %v5571_v20 = vadd.f32 %v9804_v49, %v5570_v29 }
 0x4dc   : > { %v5660_v14 = vadd.f32 %v5628_v55, %v5571_v20 }
 0x4de   : > { %v5692_v12 = vmax.f32 %v5660_v14, 0.0  ;;  %v5641_v14 = vld [vmem:[%s7204_s19 + $0xe0] sm:$0xff] }
 0x4e0   : > { %5724 = vst [vmem:[%s9814_s13 + $0x78] sm:$0xff] %v5692_v12 }
 0x4e1   : > { %v5573_v9 = vpop.f32.mrf.mxu2 }
 0x4e2   : > { %v5574_v59 = vadd.f32 %v9804_v49, %v5573_v9 }
 0x4e4   : > { %v5661_v15 = vadd.f32 %v5629_v30, %v5574_v59 }
 0x4e6   : > { %v5693_v23 = vmax.f32 %v5661_v15, 0.0  ;;  %v5642_v15 = vld [vmem:[%s7204_s19 + $0xe8] sm:$0xff] }
 0x4e8   : > { %5725 = vst [vmem:[%s9814_s13 + $0x80] sm:$0xff] %v5693_v23 }
 0x4e9   : > { %v5575_v2 = vpop.f32.mrf.mxu2 }
 0x4ea   : > { %v5576_v31 = vadd.f32 %v9804_v49, %v5575_v2 }
 0x4ec   : > { %v5662_v36 = vadd.f32 %v5630_v51, %v5576_v31 }
 0x4ee   : > { %v5694_v34 = vmax.f32 %v5662_v36, 0.0  ;;  %v5643_v36 = vld [vmem:[%s7204_s19 + $0xf0] sm:$0xff] }
 0x4f0   : > { %5726 = vst [vmem:[%s9814_s13 + $0x88] sm:$0xff] %v5694_v34 }
 0x4f1   : > { %v5578_v13 = vpop.f32.mrf.mxu2 }
 0x4f2   : > { %v5579_v8 = vadd.f32 %v9804_v49, %v5578_v13 }
 0x4f4   : > { %v5663_v27 = vadd.f32 %v5631_v53, %v5579_v8 }
 0x4f6   : > { %v5695_v48 = vmax.f32 %v5663_v27, 0.0  ;;  %v5644_v27 = vld [vmem:[%s7204_s19 + $0xf8] sm:$0xff]  ;;  %s6972_s19 = scalar_lea.hbm %s9998_s8, 512 }
 0x4f7   : > { %p6974_p2 = scmp.lt.s32.totalorder %s6972_s19, %s6968_s2 }
 0x4f8   : > { %5727 = vst [vmem:[%s9814_s13 + $0x90] sm:$0xff] %v5695_v48 }
 0x4f9   : > { %v5580_v22 = vpop.f32.mrf.mxu2  ;;  %p6975_p9 = por %p6974_p2, %p6973_p11 }
 0x4fa   : > { %v5581_v21 = vadd.f32 %v9804_v49, %v5580_v22 }
 0x4fb   : > { %p6976_p10 = pnand %p6975_p9, %p6971_p8 }
 0x4fc   : > { %v5664_v18 = vadd.f32 %v5632_v33, %v5581_v21 }
 0x4fe   : > { %v5696_v50 = vmax.f32 %v5664_v18, 0.0 }
 0x500   : > { %5728 = vst [vmem:[%s9814_s13 + $0x98] sm:$0xff] %v5696_v50 }
 0x501   : > { %v5583_v58 = vpop.f32.mrf.mxu2 }
 0x502   : > { %v5584_v25 = vadd.f32 %v9804_v49, %v5583_v58 }
 0x504   : > { %v5665_v52 = vadd.f32 %v5633_v62, %v5584_v25 }
 0x506   : > { %v5697_v39 = vmax.f32 %v5665_v52, 0.0 }
 0x508   : > { %5729 = vst [vmem:[%s9814_s13 + $0xa0] sm:$0xff] %v5697_v39 }
 0x509   : > { %v5585_v44 = vpop.f32.mrf.mxu2 }
 0x50a   : > { %v5586_v16 = vadd.f32 %v9804_v49, %v5585_v44 }
 0x50c   : > { %v5666_v24 = vadd.f32 %v5634_v46, %v5586_v16 }
 0x50e   : > { %v5698_v19 = vmax.f32 %v5666_v24, 0.0 }
 0x510   : > { %5730 = vst [vmem:[%s9814_s13 + $0xa8] sm:$0xff] %v5698_v19 }
 0x511   : > { %v5588_v38 = vpop.f32.mrf.mxu2 }
 0x512   : > { %v5589_v32 = vadd.f32 %v9804_v49, %v5588_v38 }
 0x514   : > { %v5667_v54 = vadd.f32 %v5635_v41, %v5589_v32 }
 0x516   : > { %v5699_v28 = vmax.f32 %v5667_v54, 0.0 }
 0x518   : > { %5731 = vst [vmem:[%s9814_s13 + $0xb0] sm:$0xff] %v5699_v28 }
 0x519   : > { %v5590_v43 = vpop.f32.mrf.mxu2 }
 0x51a   : > { %v5591_v17 = vadd.f32 %v9804_v49, %v5590_v43 }
 0x51c   : > { %v5668_v42 = vadd.f32 %v5636_v3, %v5591_v17 }
 0x51e   : > { %v5700_v45 = vmax.f32 %v5668_v42, 0.0 }
 0x520   : > { %5732 = vst [vmem:[%s9814_s13 + $0xb8] sm:$0xff] %v5700_v45 }
 0x521   : > { %v5593_v0 = vpop.f32.mrf.mxu2 }
 0x522   : > { %v5594_v7 = vadd.f32 %v9804_v49, %v5593_v0 }
 0x524   : > { %v5669_v61 = vadd.f32 %v5637_v4, %v5594_v7 }
 0x526   : > { %v5701_v35 = vmax.f32 %v5669_v61, 0.0 }
 0x528   : > { %5733 = vst [vmem:[%s9814_s13 + $0xc0] sm:$0xff] %v5701_v35 }
 0x529   : > { %v5595_v63 = vpop.f32.mrf.mxu2 }
 0x52a   : > { %v5596_v57 = vadd.f32 %v9804_v49, %v5595_v63 }
 0x52c   : > { %v5670_v56 = vadd.f32 %v5638_v10, %v5596_v57 }
 0x52e   : > { %v5702_v6 = vmax.f32 %v5670_v56, 0.0 }
 0x530   : > { %5734 = vst [vmem:[%s9814_s13 + $0xc8] sm:$0xff] %v5702_v6 }
 0x531   : > { %v5598_v47 = vpop.f32.mrf.mxu2 }
 0x532   : > { %v5599_v26 = vadd.f32 %v9804_v49, %v5598_v47 }
 0x534   : > { %v5671_v37 = vadd.f32 %v5639_v1, %v5599_v26 }
 0x536   : > { %v5703_v5 = vmax.f32 %v5671_v37, 0.0 }
 0x538   : > { %5735 = vst [vmem:[%s9814_s13 + $0xd0] sm:$0xff] %v5703_v5 }
 0x539   : > { %v5600_v40 = vpop.f32.mrf.mxu2 }
 0x53a   : > { %v5601_v60 = vadd.f32 %v9804_v49, %v5600_v40 }
 0x53c   : > { %v5672_v29 = vadd.f32 %v5640_v11, %v5601_v60 }
 0x53e   : > { %v5704_v55 = vmax.f32 %v5672_v29, 0.0 }
 0x540   : > { %5736 = vst [vmem:[%s9814_s13 + $0xd8] sm:$0xff] %v5704_v55 }
 0x541   : > { %v5603_v20 = vpop.f32.mrf.mxu2 }
 0x542   : > { %v5604_v12 = vadd.f32 %v9804_v49, %v5603_v20 }
 0x544   : > { %v5673_v9 = vadd.f32 %v5641_v14, %v5604_v12 }
 0x546   : > { %v5705_v30 = vmax.f32 %v5673_v9, 0.0 }
 0x548   : > { %5737 = vst [vmem:[%s9814_s13 + $0xe0] sm:$0xff] %v5705_v30 }
 0x549   : > { %v5605_v59 = vpop.f32.mrf.mxu2 }
 0x54a   : > { %v5606_v23 = vadd.f32 %v9804_v49, %v5605_v59 }
 0x54c   : > { %v5674_v2 = vadd.f32 %v5642_v15, %v5606_v23 }
 0x54e   : > { %v5706_v51 = vmax.f32 %v5674_v2, 0.0 }
 0x550   : > { %5738 = vst [vmem:[%s9814_s13 + $0xe8] sm:$0xff] %v5706_v51 }
 0x551   : > { %v5608_v31 = vpop.f32.mrf.mxu2 }
 0x552   : > { %v5609_v34 = vadd.f32 %v9804_v49, %v5608_v31 }
 0x554   : > { %v5675_v13 = vadd.f32 %v5643_v36, %v5609_v34 }
 0x556   : > { %v5707_v53 = vmax.f32 %v5675_v13, 0.0 }
 0x558   : > { %5739 = vst [vmem:[%s9814_s13 + $0xf0] sm:$0xff] %v5707_v53 }
 0x559   : > { %v5610_v8 = vpop.f32.mrf.mxu2 }
 0x55a   : > { %v5611_v48 = vadd.f32 %v9804_v49, %v5610_v8 }
 0x55c   : > { %v5676_v22 = vadd.f32 %v5644_v27, %v5611_v48 }
 0x55e   : > { %v5708_v33 = vmax.f32 %v5676_v22, 0.0 }
 0x560   : > { %5740 = vst [vmem:[%s9814_s13 + $0xf8] sm:$0xff] %v5708_v33 }
 0x561   : > { %6979 = shalt.err (!%p6976_p10)
}
 0x562   : > { %s7037_s23 = smov 128   ;;  %s7038_s13 = smov 8  }
 0x563   : > { %6718 = dma.vmem_to_hbm [thread:$0]  (%p7168_p3), %s5755_s18, 4096, %s5757_s20, %s5742_s21, %s7037_s23, %s7037_s23, %s7038_s13  }
 0x564 PF: > { %s5771_s1 = sand.u32 1, %s7014_s27   ;;  %p10728_p12 = scmp.ge.s32.totalorder %s7026_s30, 2 }
 0x565   : > { %s5772_s26 = scalar_lea.sflag [#allocation5], %s5771_s1 }
 0x566   : > { %p6738_p13 = pnand %p10728_p12, %p7119_p6 }
 0x568   : > { %p6739_p0 = pneg %p6738_p13 }
 0x56a   : > { %7009 = dma.done.wait (%p6739_p0), %s5772_s26, 4096  }
 0x56b   : > { %7011 = vsyncadd (%p6739_p0), %s5772_s26, 4294963200  ;;  %p23_p5 = scmp.ge.s32.totalorder %s7158_s22, 4   ;;  %s10729_s27 = smov %s7018_s28 }
 0x56c   : > { %s10730_s28 = smov %s7022_s29  ;;  %s10731_s29 = smov %s7174_s14 }
 0x56d   : > { %s10732_s30 = smov %s7158_s22  ;;  %25 = sbr.rel (!%p23_p5) target bundleno = 10 (0xa), region = 114 }
 0x572   :  { %5778 = vsyncpa [#allocation4], 1 }
 0x573   :  { %5780 = vsyncpa [#allocation4 + $0x1], 1 }
 0x574   :  { %5781 = vsyncpa [#allocation7], 1 }
 0x575   :  { %5782 = vsyncpa [#allocation10], 1 }
 0x576   :  { %5783 = vsyncpa [#allocation5], 1 }
 0x577   :  { %5785 = vsyncpa [#allocation5 + $0x1], 1 }

</bundles_post_ra>
